<compile_context>
chip_gen: v7x
topology: tpu7x:2x2x1
jax: 0.10.0
libtpu: 0.0.40
codegen_flags: <defaults>
</compile_context>

<pallas_src>
import functools

import jax
import jax.numpy as jnp
from jax import lax
from jax.experimental import pallas as pl
from jax.experimental.pallas import tpu as pltpu

# bf16 MXU operands (with f32 accumulation) are the fast path on all of
# v5e/v6e/v7x; keep f32 by default for exact module numerics.
MATMUL_DTYPE = jnp.float32

TAPS = tuple((dy, dx) for dy in range(3) for dx in range(3))


def _make_fused_kernel(H, W, c0, c1, c2, c3, leak):
    """Fused 5-layer 3x3-conv net, one image per grid step. Channels 1->c0->c1->c2->c3->1."""
    M = H * W

    def lrelu(v):
        return jnp.where(v > 0, v, leak * v)

    def zero_halo(pad, c):
        # Only the 1-wide padding ring needs zeroing; interiors are always
        # fully overwritten before being read.
        pad[0:1, :, :] = jnp.zeros((1, W + 2, c), jnp.float32)
        pad[H + 1:H + 2, :, :] = jnp.zeros((1, W + 2, c), jnp.float32)
        pad[1:H + 1, 0:1, :] = jnp.zeros((H, 1, c), jnp.float32)
        pad[1:H + 1, W + 1:W + 2, :] = jnp.zeros((H, 1, c), jnp.float32)

    def conv_mxu(pad, cin, cout, w_ref, b_ref):
        # Nine per-tap (M, cin) @ (cin, cout) matmuls accumulated in f32.
        acc = jnp.zeros((M, cout), jnp.float32)
        for t, (dy, dx) in enumerate(TAPS):
            # (H, W, cin) -> (M, cin) is a layout-free reshape (W % 8 == 0).
            patch = pad[dy:dy + H, dx:dx + W, :].reshape(M, cin)
            acc = acc + jnp.dot(patch.astype(MATMUL_DTYPE), w_ref[t],
                                preferred_element_type=jnp.float32)
        return acc + b_ref[...]

    def conv_first(pad_x, cout, w_ref, b_ref):
        # cin == 1: nine VPU broadcast multiply-adds; keep the idle MXU out of it.
        acc = jnp.zeros((M, cout), jnp.float32)
        for t, (dy, dx) in enumerate(TAPS):
            patch = pad_x[dy:dy + H, dx:dx + W, :].reshape(M, 1)
            acc = acc + patch * w_ref[t]                     # (M,1) * (1,cout)
        return acc + b_ref[...]

    def conv_last(pad, cin, w_ref, b_ref):
        # cout == 1: VPU multiply-adds + one channel (lane) reduce, kept in
        # (H, W) spatial form so the output store needs no relayout.
        acc = jnp.zeros((H, W, cin), jnp.float32)
        for t, (dy, dx) in enumerate(TAPS):
            acc = acc + pad[dy:dy + H, dx:dx + W, :] * w_ref[t]   # w_ref[t]: (cin,)
        return jnp.sum(acc, axis=-1) + b_ref[...]                 # (H, W) + (1, 1)

    def kernel(x_ref, w0_ref, b0_ref, w1_ref, b1_ref, w2_ref, b2_ref,
               w3_ref, b3_ref, w4_ref, b4_ref, o_ref,
               pad_x, pad0, pad1, pad2, pad3):
        zero_halo(pad_x, 1)
        zero_halo(pad0, c0)
        zero_halo(pad1, c1)
        zero_halo(pad2, c2)
        zero_halo(pad3, c3)

        # Stage this image's pixels into the interior of the padded input.
        pad_x[1:H + 1, 1:W + 1, :] = x_ref[...].reshape(H, W, 1)

        # Layer 0: 1 -> c0
        a = lrelu(conv_first(pad_x, c0, w0_ref, b0_ref))
        pad0[1:H + 1, 1:W + 1, :] = a.reshape(H, W, c0)

        # Layer 1: c0 -> c1
        a = lrelu(conv_mxu(pad0, c0, c1, w1_ref, b1_ref))
        pad1[1:H + 1, 1:W + 1, :] = a.reshape(H, W, c1)

        # Layer 2: c1 -> c2
        a = lrelu(conv_mxu(pad1, c1, c2, w2_ref, b2_ref))
        pad2[1:H + 1, 1:W + 1, :] = a.reshape(H, W, c2)

        # Layer 3: c2 -> c3
        a = lrelu(conv_mxu(pad2, c2, c3, w3_ref, b3_ref))
        pad3[1:H + 1, 1:W + 1, :] = a.reshape(H, W, c3)

        # Layer 4: c3 -> 1 (no LeakyReLU). Stored directly in NCHW block layout.
        out = conv_last(pad3, c3, w4_ref, b4_ref)
        o_ref[...] = out.reshape(1, 1, H, W).astype(o_ref.dtype)

    return kernel


def torch_conv_weight_to_hwio(weight_oihw):
    """Real PyTorch Conv2d weights are OIHW (Cout, Cin, 3, 3); convert to HWIO."""
    return jnp.transpose(jnp.asarray(weight_oihw), (2, 3, 1, 0))


def neural_areawise_net_fused(x_nchw, params, leak=0.2):
    """Forward pass matching the PyTorch module. Input/output are NCHW (N, 1, H, W)."""
    N, cin0, H, W = x_nchw.shape
    assert cin0 == 1, "NeuralAreawiseNet takes single-channel input"
    assert H % 8 == 0, "H is assumed a multiple of 8 (sublane alignment)"

    (w0, b0), (w1, b1), (w2, b2), (w3, b3), (w4, b4) = params
    c0, c1, c2, c3 = w0.shape[-1], w1.shape[-1], w2.shape[-1], w3.shape[-1]

    x = jnp.transpose(x_nchw, (0, 2, 3, 1)).astype(jnp.float32)      # (N, H, W, 1)

    # Weight layout: (tap = 3*dy + dx, cin, cout). MXU layers carry MATMUL_DTYPE
    # operands (cast outside the kernel); VPU layers (0 and 4) + biases stay f32.
    w0r = w0.reshape(9, 1, c0).astype(jnp.float32)
    w1r = w1.reshape(9, c0, c1).astype(MATMUL_DTYPE)
    w2r = w2.reshape(9, c1, c2).astype(MATMUL_DTYPE)
    w3r = w3.reshape(9, c2, c3).astype(MATMUL_DTYPE)
    w4r = w4.reshape(9, c3).astype(jnp.float32)
    b0r = b0.reshape(1, c0).astype(jnp.float32)
    b1r = b1.reshape(1, c1).astype(jnp.float32)
    b2r = b2.reshape(1, c2).astype(jnp.float32)
    b3r = b3.reshape(1, c3).astype(jnp.float32)
    b4r = b4.reshape(1, 1).astype(jnp.float32)

    kernel = _make_fused_kernel(H, W, c0, c1, c2, c3, float(leak))

    def full(shape):  # whole-array, grid-invariant block
        return pl.BlockSpec(shape, lambda n: (0,) * len(shape))

    weight_elems = 9 * (1 * c0 + c0 * c1 + c1 * c2 + c2 * c3 + c3 * 1)
    flops = 2 * N * H * W * weight_elems
    bytes_accessed = 4 * (2 * N * H * W + weight_elems + (c0 + c1 + c2 + c3 + 1))

    out = pl.pallas_call(
        kernel,
        out_shape=jax.ShapeDtypeStruct((N, 1, H, W), jnp.float32),
        grid=(N,),
        in_specs=[
            pl.BlockSpec((1, H, W, 1), lambda n: (n, 0, 0, 0)),      # one image / step
            full((9, 1, c0)), full((1, c0)),
            full((9, c0, c1)), full((1, c1)),
            full((9, c1, c2)), full((1, c2)),
            full((9, c2, c3)), full((1, c3)),
            full((9, c3)), full((1, 1)),
        ],
        out_specs=pl.BlockSpec((1, 1, H, W), lambda n: (n, 0, 0, 0)),
        scratch_shapes=[
            pltpu.VMEM((H + 2, W + 2, 1), jnp.float32),              # padded input
            pltpu.VMEM((H + 2, W + 2, c0), jnp.float32),             # padded act, layer 0
            pltpu.VMEM((H + 2, W + 2, c1), jnp.float32),             # padded act, layer 1
            pltpu.VMEM((H + 2, W + 2, c2), jnp.float32),             # padded act, layer 2
            pltpu.VMEM((H + 2, W + 2, c3), jnp.float32),             # padded act, layer 3
        ],
        compiler_params=pltpu.CompilerParams(
            dimension_semantics=("parallel",),       # batch shards across v7x's 2 TCs
            vmem_limit_bytes=32 * 1024 * 1024),
        cost_estimate=pl.CostEstimate(flops=flops, transcendentals=0,
                                      bytes_accessed=bytes_accessed),
    )(x, w0r, b0r, w1r, b1r, w2r, b2r, w3r, b3r, w4r, b4r)
    return out                                                       # already NCHW


@functools.partial(jax.jit, static_argnames=("leak",))
def neural_areawise_net(x_nchw, params, leak=0.2):
    return neural_areawise_net_fused(x_nchw, params, leak=leak)


def init_params(key, ch=32):
    """Deterministic synthetic params in HWIO (3,3,Cin,Cout).

    For real PyTorch checkpoints (OIHW), use torch_conv_weight_to_hwio first.
    """
    dims = [(1, 2 * ch), (2 * ch, 2 * ch), (2 * ch, ch), (ch, ch), (ch, 1)]
    params = []
    for cin, cout in dims:
        key, kw, kb = jax.random.split(key, 3)
        w = 0.1 * jax.random.normal(kw, (3, 3, cin, cout), jnp.float32)
        b = 0.01 * jax.random.normal(kb, (cout,), jnp.float32)
        params.append((w, b))
    return params


def _reference(x_nchw, params, leak=0.2):
    """Pure-JAX reference (lax conv) for a correctness check."""
    x = jnp.transpose(x_nchw, (0, 2, 3, 1))
    dn = lax.conv_dimension_numbers(x.shape, (3, 3, 1, 1), ("NHWC", "HWIO", "NHWC"))
    n_layers = len(params)
    for i, (w, b) in enumerate(params):
        x = lax.conv_general_dilated(x, w, (1, 1), ((1, 1), (1, 1)),
                                     dimension_numbers=dn) + b
        if i < n_layers - 1:
            x = jnp.where(x > 0, x, leak * x)
    return jnp.transpose(x, (0, 3, 1, 2))


if __name__ == "__main__":
    key = jax.random.PRNGKey(0)
    k_in, k_par = jax.random.split(key)

    # Module takes single-channel images (in_channels=1): NCHW = (2, 1, 16, 16).
    x = jax.random.normal(k_in, (2, 1, 16, 16), jnp.float32)
    params = init_params(k_par, ch=32)

    out = neural_areawise_net(x, params, leak=0.2)
    out = jax.block_until_ready(out)

    ref = _reference(x, params, leak=0.2)
    assert out.shape == (2, 1, 16, 16), out.shape
    assert jnp.allclose(out, ref, atol=1e-3, rtol=1e-3), float(jnp.max(jnp.abs(out - ref)))

    print("KERNEL_OK")
</pallas_src>

<mosaic_0001>
module attributes {stable_mosaic.version = 11 : i64} {
  func.func @kernel(%arg0: i32, %arg1: memref<1x16x16x1xf32, #tpu.memory_space<vmem>>, %arg2: memref<9x1x64xf32, #tpu.memory_space<vmem>>, %arg3: memref<1x64xf32, #tpu.memory_space<vmem>>, %arg4: memref<9x64x64xf32, #tpu.memory_space<vmem>>, %arg5: memref<1x64xf32, #tpu.memory_space<vmem>>, %arg6: memref<9x64x32xf32, #tpu.memory_space<vmem>>, %arg7: memref<1x32xf32, #tpu.memory_space<vmem>>, %arg8: memref<9x32x32xf32, #tpu.memory_space<vmem>>, %arg9: memref<1x32xf32, #tpu.memory_space<vmem>>, %arg10: memref<9x32xf32, #tpu.memory_space<vmem>>, %arg11: memref<1x1xf32, #tpu.memory_space<vmem>>, %arg12: memref<1x1x16x16xf32, #tpu.memory_space<vmem>>, %arg13: memref<18x18x1xf32, #tpu.memory_space<vmem>>, %arg14: memref<18x18x64xf32, #tpu.memory_space<vmem>>, %arg15: memref<18x18x64xf32, #tpu.memory_space<vmem>>, %arg16: memref<18x18x32xf32, #tpu.memory_space<vmem>>, %arg17: memref<18x18x32xf32, #tpu.memory_space<vmem>>) attributes {dimension_semantics = [#tpu.dimension_semantics<parallel>], iteration_bounds = array<i64: 2>, scalar_prefetch = 0 : i64, scratch_operands = 5 : i64, tpu.core_type = #tpu.core_type<tc>, window_params = [{transform_indices = @transform_0, window_bounds = array<i64: 1, 16, 16, 1>}, {pipeline_mode = #tpu.pipeline_mode<synchronous>, transform_indices = @transform_1, window_bounds = array<i64: 9, 1, 64>}, {pipeline_mode = #tpu.pipeline_mode<synchronous>, transform_indices = @transform_2, window_bounds = array<i64: 1, 64>}, {pipeline_mode = #tpu.pipeline_mode<synchronous>, transform_indices = @transform_3, window_bounds = array<i64: 9, 64, 64>}, {pipeline_mode = #tpu.pipeline_mode<synchronous>, transform_indices = @transform_4, window_bounds = array<i64: 1, 64>}, {pipeline_mode = #tpu.pipeline_mode<synchronous>, transform_indices = @transform_5, window_bounds = array<i64: 9, 64, 32>}, {pipeline_mode = #tpu.pipeline_mode<synchronous>, transform_indices = @transform_6, window_bounds = array<i64: 1, 32>}, {pipeline_mode = #tpu.pipeline_mode<synchronous>, transform_indices = @transform_7, window_bounds = array<i64: 9, 32, 32>}, {pipeline_mode = #tpu.pipeline_mode<synchronous>, transform_indices = @transform_8, window_bounds = array<i64: 1, 32>}, {pipeline_mode = #tpu.pipeline_mode<synchronous>, transform_indices = @transform_9, window_bounds = array<i64: 9, 32>}, {pipeline_mode = #tpu.pipeline_mode<synchronous>, transform_indices = @transform_10, window_bounds = array<i64: 1, 1>}, {transform_indices = @transform_11, window_bounds = array<i64: 1, 1, 16, 16>}]} {
    %cst = arith.constant 0.000000e+00 : f32
    %0 = vector.broadcast %cst : f32 to vector<1x18x1xf32>
    %c0 = arith.constant 0 : index
    %c0_0 = arith.constant 0 : index
    %c0_1 = arith.constant 0 : index
    %1 = vector.load %arg13[%c0, %c0_0, %c0_1] : memref<18x18x1xf32, #tpu.memory_space<vmem>>, vector<1x18x1xf32>
    tpu.vector_store %arg13[%c0, %c0_0, %c0_1], %0 {strides = array<i32>} : memref<18x18x1xf32, #tpu.memory_space<vmem>>, vector<1x18x1xf32>,
    %cst_2 = arith.constant 0.000000e+00 : f32
    %2 = vector.broadcast %cst_2 : f32 to vector<1x18x1xf32>
    %c17 = arith.constant 17 : index
    %c0_3 = arith.constant 0 : index
    %c0_4 = arith.constant 0 : index
    %3 = vector.load %arg13[%c17, %c0_3, %c0_4] : memref<18x18x1xf32, #tpu.memory_space<vmem>>, vector<1x18x1xf32>
    tpu.vector_store %arg13[%c17, %c0_3, %c0_4], %2 {strides = array<i32>} : memref<18x18x1xf32, #tpu.memory_space<vmem>>, vector<1x18x1xf32>,
    %cst_5 = arith.constant 0.000000e+00 : f32
    %4 = vector.broadcast %cst_5 : f32 to vector<16x1x1xf32>
    %c1 = arith.constant 1 : index
    %c0_6 = arith.constant 0 : index
    %c0_7 = arith.constant 0 : index
    %5 = vector.load %arg13[%c1, %c0_6, %c0_7] : memref<18x18x1xf32, #tpu.memory_space<vmem>>, vector<16x1x1xf32>
    tpu.vector_store %arg13[%c1, %c0_6, %c0_7], %4 {strides = array<i32>} : memref<18x18x1xf32, #tpu.memory_space<vmem>>, vector<16x1x1xf32>,
    %cst_8 = arith.constant 0.000000e+00 : f32
    %6 = vector.broadcast %cst_8 : f32 to vector<16x1x1xf32>
    %c1_9 = arith.constant 1 : index
    %c17_10 = arith.constant 17 : index
    %c0_11 = arith.constant 0 : index
    %7 = vector.load %arg13[%c1_9, %c17_10, %c0_11] : memref<18x18x1xf32, #tpu.memory_space<vmem>>, vector<16x1x1xf32>
    tpu.vector_store %arg13[%c1_9, %c17_10, %c0_11], %6 {strides = array<i32>} : memref<18x18x1xf32, #tpu.memory_space<vmem>>, vector<16x1x1xf32>,
    %cst_12 = arith.constant 0.000000e+00 : f32
    %8 = vector.broadcast %cst_12 : f32 to vector<1x18x64xf32>
    %c0_13 = arith.constant 0 : index
    %c0_14 = arith.constant 0 : index
    %c0_15 = arith.constant 0 : index
    %9 = vector.load %arg14[%c0_13, %c0_14, %c0_15] : memref<18x18x64xf32, #tpu.memory_space<vmem>>, vector<1x18x64xf32>
    tpu.vector_store %arg14[%c0_13, %c0_14, %c0_15], %8 {strides = array<i32>} : memref<18x18x64xf32, #tpu.memory_space<vmem>>, vector<1x18x64xf32>,
    %cst_16 = arith.constant 0.000000e+00 : f32
    %10 = vector.broadcast %cst_16 : f32 to vector<1x18x64xf32>
    %c17_17 = arith.constant 17 : index
    %c0_18 = arith.constant 0 : index
    %c0_19 = arith.constant 0 : index
    %11 = vector.load %arg14[%c17_17, %c0_18, %c0_19] : memref<18x18x64xf32, #tpu.memory_space<vmem>>, vector<1x18x64xf32>
    tpu.vector_store %arg14[%c17_17, %c0_18, %c0_19], %10 {strides = array<i32>} : memref<18x18x64xf32, #tpu.memory_space<vmem>>, vector<1x18x64xf32>,
    %cst_20 = arith.constant 0.000000e+00 : f32
    %12 = vector.broadcast %cst_20 : f32 to vector<16x1x64xf32>
    %c1_21 = arith.constant 1 : index
    %c0_22 = arith.constant 0 : index
    %c0_23 = arith.constant 0 : index
    %13 = vector.load %arg14[%c1_21, %c0_22, %c0_23] : memref<18x18x64xf32, #tpu.memory_space<vmem>>, vector<16x1x64xf32>
    tpu.vector_store %arg14[%c1_21, %c0_22, %c0_23], %12 {strides = array<i32>} : memref<18x18x64xf32, #tpu.memory_space<vmem>>, vector<16x1x64xf32>,
    %cst_24 = arith.constant 0.000000e+00 : f32
    %14 = vector.broadcast %cst_24 : f32 to vector<16x1x64xf32>
    %c1_25 = arith.constant 1 : index
    %c17_26 = arith.constant 17 : index
    %c0_27 = arith.constant 0 : index
    %15 = vector.load %arg14[%c1_25, %c17_26, %c0_27] : memref<18x18x64xf32, #tpu.memory_space<vmem>>, vector<16x1x64xf32>
    tpu.vector_store %arg14[%c1_25, %c17_26, %c0_27], %14 {strides = array<i32>} : memref<18x18x64xf32, #tpu.memory_space<vmem>>, vector<16x1x64xf32>,
    %cst_28 = arith.constant 0.000000e+00 : f32
    %16 = vector.broadcast %cst_28 : f32 to vector<1x18x64xf32>
    %c0_29 = arith.constant 0 : index
    %c0_30 = arith.constant 0 : index
    %c0_31 = arith.constant 0 : index
    %17 = vector.load %arg15[%c0_29, %c0_30, %c0_31] : memref<18x18x64xf32, #tpu.memory_space<vmem>>, vector<1x18x64xf32>
    tpu.vector_store %arg15[%c0_29, %c0_30, %c0_31], %16 {strides = array<i32>} : memref<18x18x64xf32, #tpu.memory_space<vmem>>, vector<1x18x64xf32>,
    %cst_32 = arith.constant 0.000000e+00 : f32
    %18 = vector.broadcast %cst_32 : f32 to vector<1x18x64xf32>
    %c17_33 = arith.constant 17 : index
    %c0_34 = arith.constant 0 : index
    %c0_35 = arith.constant 0 : index
    %19 = vector.load %arg15[%c17_33, %c0_34, %c0_35] : memref<18x18x64xf32, #tpu.memory_space<vmem>>, vector<1x18x64xf32>
    tpu.vector_store %arg15[%c17_33, %c0_34, %c0_35], %18 {strides = array<i32>} : memref<18x18x64xf32, #tpu.memory_space<vmem>>, vector<1x18x64xf32>,
    %cst_36 = arith.constant 0.000000e+00 : f32
    %20 = vector.broadcast %cst_36 : f32 to vector<16x1x64xf32>
    %c1_37 = arith.constant 1 : index
    %c0_38 = arith.constant 0 : index
    %c0_39 = arith.constant 0 : index
    %21 = vector.load %arg15[%c1_37, %c0_38, %c0_39] : memref<18x18x64xf32, #tpu.memory_space<vmem>>, vector<16x1x64xf32>
    tpu.vector_store %arg15[%c1_37, %c0_38, %c0_39], %20 {strides = array<i32>} : memref<18x18x64xf32, #tpu.memory_space<vmem>>, vector<16x1x64xf32>,
    %cst_40 = arith.constant 0.000000e+00 : f32
    %22 = vector.broadcast %cst_40 : f32 to vector<16x1x64xf32>
    %c1_41 = arith.constant 1 : index
    %c17_42 = arith.constant 17 : index
    %c0_43 = arith.constant 0 : index
    %23 = vector.load %arg15[%c1_41, %c17_42, %c0_43] : memref<18x18x64xf32, #tpu.memory_space<vmem>>, vector<16x1x64xf32>
    tpu.vector_store %arg15[%c1_41, %c17_42, %c0_43], %22 {strides = array<i32>} : memref<18x18x64xf32, #tpu.memory_space<vmem>>, vector<16x1x64xf32>,
    %cst_44 = arith.constant 0.000000e+00 : f32
    %24 = vector.broadcast %cst_44 : f32 to vector<1x18x32xf32>
    %c0_45 = arith.constant 0 : index
    %c0_46 = arith.constant 0 : index
    %c0_47 = arith.constant 0 : index
    %25 = vector.load %arg16[%c0_45, %c0_46, %c0_47] : memref<18x18x32xf32, #tpu.memory_space<vmem>>, vector<1x18x32xf32>
    tpu.vector_store %arg16[%c0_45, %c0_46, %c0_47], %24 {strides = array<i32>} : memref<18x18x32xf32, #tpu.memory_space<vmem>>, vector<1x18x32xf32>,
    %cst_48 = arith.constant 0.000000e+00 : f32
    %26 = vector.broadcast %cst_48 : f32 to vector<1x18x32xf32>
    %c17_49 = arith.constant 17 : index
    %c0_50 = arith.constant 0 : index
    %c0_51 = arith.constant 0 : index
    %27 = vector.load %arg16[%c17_49, %c0_50, %c0_51] : memref<18x18x32xf32, #tpu.memory_space<vmem>>, vector<1x18x32xf32>
    tpu.vector_store %arg16[%c17_49, %c0_50, %c0_51], %26 {strides = array<i32>} : memref<18x18x32xf32, #tpu.memory_space<vmem>>, vector<1x18x32xf32>,
    %cst_52 = arith.constant 0.000000e+00 : f32
    %28 = vector.broadcast %cst_52 : f32 to vector<16x1x32xf32>
    %c1_53 = arith.constant 1 : index
    %c0_54 = arith.constant 0 : index
    %c0_55 = arith.constant 0 : index
    %29 = vector.load %arg16[%c1_53, %c0_54, %c0_55] : memref<18x18x32xf32, #tpu.memory_space<vmem>>, vector<16x1x32xf32>
    tpu.vector_store %arg16[%c1_53, %c0_54, %c0_55], %28 {strides = array<i32>} : memref<18x18x32xf32, #tpu.memory_space<vmem>>, vector<16x1x32xf32>,
    %cst_56 = arith.constant 0.000000e+00 : f32
    %30 = vector.broadcast %cst_56 : f32 to vector<16x1x32xf32>
    %c1_57 = arith.constant 1 : index
    %c17_58 = arith.constant 17 : index
    %c0_59 = arith.constant 0 : index
    %31 = vector.load %arg16[%c1_57, %c17_58, %c0_59] : memref<18x18x32xf32, #tpu.memory_space<vmem>>, vector<16x1x32xf32>
    tpu.vector_store %arg16[%c1_57, %c17_58, %c0_59], %30 {strides = array<i32>} : memref<18x18x32xf32, #tpu.memory_space<vmem>>, vector<16x1x32xf32>,
    %cst_60 = arith.constant 0.000000e+00 : f32
    %32 = vector.broadcast %cst_60 : f32 to vector<1x18x32xf32>
    %c0_61 = arith.constant 0 : index
    %c0_62 = arith.constant 0 : index
    %c0_63 = arith.constant 0 : index
    %33 = vector.load %arg17[%c0_61, %c0_62, %c0_63] : memref<18x18x32xf32, #tpu.memory_space<vmem>>, vector<1x18x32xf32>
    tpu.vector_store %arg17[%c0_61, %c0_62, %c0_63], %32 {strides = array<i32>} : memref<18x18x32xf32, #tpu.memory_space<vmem>>, vector<1x18x32xf32>,
    %cst_64 = arith.constant 0.000000e+00 : f32
    %34 = vector.broadcast %cst_64 : f32 to vector<1x18x32xf32>
    %c17_65 = arith.constant 17 : index
    %c0_66 = arith.constant 0 : index
    %c0_67 = arith.constant 0 : index
    %35 = vector.load %arg17[%c17_65, %c0_66, %c0_67] : memref<18x18x32xf32, #tpu.memory_space<vmem>>, vector<1x18x32xf32>
    tpu.vector_store %arg17[%c17_65, %c0_66, %c0_67], %34 {strides = array<i32>} : memref<18x18x32xf32, #tpu.memory_space<vmem>>, vector<1x18x32xf32>,
    %cst_68 = arith.constant 0.000000e+00 : f32
    %36 = vector.broadcast %cst_68 : f32 to vector<16x1x32xf32>
    %c1_69 = arith.constant 1 : index
    %c0_70 = arith.constant 0 : index
    %c0_71 = arith.constant 0 : index
    %37 = vector.load %arg17[%c1_69, %c0_70, %c0_71] : memref<18x18x32xf32, #tpu.memory_space<vmem>>, vector<16x1x32xf32>
    tpu.vector_store %arg17[%c1_69, %c0_70, %c0_71], %36 {strides = array<i32>} : memref<18x18x32xf32, #tpu.memory_space<vmem>>, vector<16x1x32xf32>,
    %cst_72 = arith.constant 0.000000e+00 : f32
    %38 = vector.broadcast %cst_72 : f32 to vector<16x1x32xf32>
    %c1_73 = arith.constant 1 : index
    %c17_74 = arith.constant 17 : index
    %c0_75 = arith.constant 0 : index
    %39 = vector.load %arg17[%c1_73, %c17_74, %c0_75] : memref<18x18x32xf32, #tpu.memory_space<vmem>>, vector<16x1x32xf32>
    tpu.vector_store %arg17[%c1_73, %c17_74, %c0_75], %38 {strides = array<i32>} : memref<18x18x32xf32, #tpu.memory_space<vmem>>, vector<16x1x32xf32>,
    %c0_76 = arith.constant 0 : index
    %c0_77 = arith.constant 0 : index
    %c0_78 = arith.constant 0 : index
    %c0_79 = arith.constant 0 : index
    %40 = vector.load %arg1[%c0_76, %c0_77, %c0_78, %c0_79] : memref<1x16x16x1xf32, #tpu.memory_space<vmem>>, vector<1x16x16x1xf32>
    %41 = vector.shape_cast %40 : vector<1x16x16x1xf32> to vector<16x16x1xf32>
    %c1_80 = arith.constant 1 : index
    %c1_81 = arith.constant 1 : index
    %c0_82 = arith.constant 0 : index
    %42 = vector.load %arg13[%c1_80, %c1_81, %c0_82] : memref<18x18x1xf32, #tpu.memory_space<vmem>>, vector<16x16x1xf32>
    tpu.vector_store %arg13[%c1_80, %c1_81, %c0_82], %41 {strides = array<i32>} : memref<18x18x1xf32, #tpu.memory_space<vmem>>, vector<16x16x1xf32>,
    %cst_83 = arith.constant 0.000000e+00 : f32
    %43 = vector.broadcast %cst_83 : f32 to vector<256x64xf32>
    %c0_84 = arith.constant 0 : index
    %c0_85 = arith.constant 0 : index
    %c0_86 = arith.constant 0 : index
    %44 = vector.load %arg13[%c0_84, %c0_85, %c0_86] : memref<18x18x1xf32, #tpu.memory_space<vmem>>, vector<16x16x1xf32>
    %45 = vector.shape_cast %44 : vector<16x16x1xf32> to vector<256x1xf32>
    %c0_87 = arith.constant 0 : index
    %c0_88 = arith.constant 0 : index
    %c0_89 = arith.constant 0 : index
    %46 = vector.load %arg2[%c0_87, %c0_88, %c0_89] : memref<9x1x64xf32, #tpu.memory_space<vmem>>, vector<1x1x64xf32>
    %47 = vector.shape_cast %46 : vector<1x1x64xf32> to vector<1x64xf32>
    %48 = vector.broadcast %45 : vector<256x1xf32> to vector<256x64xf32>
    %49 = vector.broadcast %47 : vector<1x64xf32> to vector<256x64xf32>
    %50 = arith.mulf %48, %49 : vector<256x64xf32>
    %51 = arith.addf %43, %50 : vector<256x64xf32>
    %c0_90 = arith.constant 0 : index
    %c1_91 = arith.constant 1 : index
    %c0_92 = arith.constant 0 : index
    %52 = vector.load %arg13[%c0_90, %c1_91, %c0_92] : memref<18x18x1xf32, #tpu.memory_space<vmem>>, vector<16x16x1xf32>
    %53 = vector.shape_cast %52 : vector<16x16x1xf32> to vector<256x1xf32>
    %c1_93 = arith.constant 1 : index
    %c0_94 = arith.constant 0 : index
    %c0_95 = arith.constant 0 : index
    %54 = vector.load %arg2[%c1_93, %c0_94, %c0_95] : memref<9x1x64xf32, #tpu.memory_space<vmem>>, vector<1x1x64xf32>
    %55 = vector.shape_cast %54 : vector<1x1x64xf32> to vector<1x64xf32>
    %56 = vector.broadcast %53 : vector<256x1xf32> to vector<256x64xf32>
    %57 = vector.broadcast %55 : vector<1x64xf32> to vector<256x64xf32>
    %58 = arith.mulf %56, %57 : vector<256x64xf32>
    %59 = arith.addf %51, %58 : vector<256x64xf32>
    %c0_96 = arith.constant 0 : index
    %c2 = arith.constant 2 : index
    %c0_97 = arith.constant 0 : index
    %60 = vector.load %arg13[%c0_96, %c2, %c0_97] : memref<18x18x1xf32, #tpu.memory_space<vmem>>, vector<16x16x1xf32>
    %61 = vector.shape_cast %60 : vector<16x16x1xf32> to vector<256x1xf32>
    %c2_98 = arith.constant 2 : index
    %c0_99 = arith.constant 0 : index
    %c0_100 = arith.constant 0 : index
    %62 = vector.load %arg2[%c2_98, %c0_99, %c0_100] : memref<9x1x64xf32, #tpu.memory_space<vmem>>, vector<1x1x64xf32>
    %63 = vector.shape_cast %62 : vector<1x1x64xf32> to vector<1x64xf32>
    %64 = vector.broadcast %61 : vector<256x1xf32> to vector<256x64xf32>
    %65 = vector.broadcast %63 : vector<1x64xf32> to vector<256x64xf32>
    %66 = arith.mulf %64, %65 : vector<256x64xf32>
    %67 = arith.addf %59, %66 : vector<256x64xf32>
    %c1_101 = arith.constant 1 : index
    %c0_102 = arith.constant 0 : index
    %c0_103 = arith.constant 0 : index
    %68 = vector.load %arg13[%c1_101, %c0_102, %c0_103] : memref<18x18x1xf32, #tpu.memory_space<vmem>>, vector<16x16x1xf32>
    %69 = vector.shape_cast %68 : vector<16x16x1xf32> to vector<256x1xf32>
    %c3 = arith.constant 3 : index
    %c0_104 = arith.constant 0 : index
    %c0_105 = arith.constant 0 : index
    %70 = vector.load %arg2[%c3, %c0_104, %c0_105] : memref<9x1x64xf32, #tpu.memory_space<vmem>>, vector<1x1x64xf32>
    %71 = vector.shape_cast %70 : vector<1x1x64xf32> to vector<1x64xf32>
    %72 = vector.broadcast %69 : vector<256x1xf32> to vector<256x64xf32>
    %73 = vector.broadcast %71 : vector<1x64xf32> to vector<256x64xf32>
    %74 = arith.mulf %72, %73 : vector<256x64xf32>
    %75 = arith.addf %67, %74 : vector<256x64xf32>
    %c1_106 = arith.constant 1 : index
    %c1_107 = arith.constant 1 : index
    %c0_108 = arith.constant 0 : index
    %76 = vector.load %arg13[%c1_106, %c1_107, %c0_108] : memref<18x18x1xf32, #tpu.memory_space<vmem>>, vector<16x16x1xf32>
    %77 = vector.shape_cast %76 : vector<16x16x1xf32> to vector<256x1xf32>
    %c4 = arith.constant 4 : index
    %c0_109 = arith.constant 0 : index
    %c0_110 = arith.constant 0 : index
    %78 = vector.load %arg2[%c4, %c0_109, %c0_110] : memref<9x1x64xf32, #tpu.memory_space<vmem>>, vector<1x1x64xf32>
    %79 = vector.shape_cast %78 : vector<1x1x64xf32> to vector<1x64xf32>
    %80 = vector.broadcast %77 : vector<256x1xf32> to vector<256x64xf32>
    %81 = vector.broadcast %79 : vector<1x64xf32> to vector<256x64xf32>
    %82 = arith.mulf %80, %81 : vector<256x64xf32>
    %83 = arith.addf %75, %82 : vector<256x64xf32>
    %c1_111 = arith.constant 1 : index
    %c2_112 = arith.constant 2 : index
    %c0_113 = arith.constant 0 : index
    %84 = vector.load %arg13[%c1_111, %c2_112, %c0_113] : memref<18x18x1xf32, #tpu.memory_space<vmem>>, vector<16x16x1xf32>
    %85 = vector.shape_cast %84 : vector<16x16x1xf32> to vector<256x1xf32>
    %c5 = arith.constant 5 : index
    %c0_114 = arith.constant 0 : index
    %c0_115 = arith.constant 0 : index
    %86 = vector.load %arg2[%c5, %c0_114, %c0_115] : memref<9x1x64xf32, #tpu.memory_space<vmem>>, vector<1x1x64xf32>
    %87 = vector.shape_cast %86 : vector<1x1x64xf32> to vector<1x64xf32>
    %88 = vector.broadcast %85 : vector<256x1xf32> to vector<256x64xf32>
    %89 = vector.broadcast %87 : vector<1x64xf32> to vector<256x64xf32>
    %90 = arith.mulf %88, %89 : vector<256x64xf32>
    %91 = arith.addf %83, %90 : vector<256x64xf32>
    %c2_116 = arith.constant 2 : index
    %c0_117 = arith.constant 0 : index
    %c0_118 = arith.constant 0 : index
    %92 = vector.load %arg13[%c2_116, %c0_117, %c0_118] : memref<18x18x1xf32, #tpu.memory_space<vmem>>, vector<16x16x1xf32>
    %93 = vector.shape_cast %92 : vector<16x16x1xf32> to vector<256x1xf32>
    %c6 = arith.constant 6 : index
    %c0_119 = arith.constant 0 : index
    %c0_120 = arith.constant 0 : index
    %94 = vector.load %arg2[%c6, %c0_119, %c0_120] : memref<9x1x64xf32, #tpu.memory_space<vmem>>, vector<1x1x64xf32>
    %95 = vector.shape_cast %94 : vector<1x1x64xf32> to vector<1x64xf32>
    %96 = vector.broadcast %93 : vector<256x1xf32> to vector<256x64xf32>
    %97 = vector.broadcast %95 : vector<1x64xf32> to vector<256x64xf32>
    %98 = arith.mulf %96, %97 : vector<256x64xf32>
    %99 = arith.addf %91, %98 : vector<256x64xf32>
    %c2_121 = arith.constant 2 : index
    %c1_122 = arith.constant 1 : index
    %c0_123 = arith.constant 0 : index
    %100 = vector.load %arg13[%c2_121, %c1_122, %c0_123] : memref<18x18x1xf32, #tpu.memory_space<vmem>>, vector<16x16x1xf32>
    %101 = vector.shape_cast %100 : vector<16x16x1xf32> to vector<256x1xf32>
    %c7 = arith.constant 7 : index
    %c0_124 = arith.constant 0 : index
    %c0_125 = arith.constant 0 : index
    %102 = vector.load %arg2[%c7, %c0_124, %c0_125] : memref<9x1x64xf32, #tpu.memory_space<vmem>>, vector<1x1x64xf32>
    %103 = vector.shape_cast %102 : vector<1x1x64xf32> to vector<1x64xf32>
    %104 = vector.broadcast %101 : vector<256x1xf32> to vector<256x64xf32>
    %105 = vector.broadcast %103 : vector<1x64xf32> to vector<256x64xf32>
    %106 = arith.mulf %104, %105 : vector<256x64xf32>
    %107 = arith.addf %99, %106 : vector<256x64xf32>
    %c2_126 = arith.constant 2 : index
    %c2_127 = arith.constant 2 : index
    %c0_128 = arith.constant 0 : index
    %108 = vector.load %arg13[%c2_126, %c2_127, %c0_128] : memref<18x18x1xf32, #tpu.memory_space<vmem>>, vector<16x16x1xf32>
    %109 = vector.shape_cast %108 : vector<16x16x1xf32> to vector<256x1xf32>
    %c8 = arith.constant 8 : index
    %c0_129 = arith.constant 0 : index
    %c0_130 = arith.constant 0 : index
    %110 = vector.load %arg2[%c8, %c0_129, %c0_130] : memref<9x1x64xf32, #tpu.memory_space<vmem>>, vector<1x1x64xf32>
    %111 = vector.shape_cast %110 : vector<1x1x64xf32> to vector<1x64xf32>
    %112 = vector.broadcast %109 : vector<256x1xf32> to vector<256x64xf32>
    %113 = vector.broadcast %111 : vector<1x64xf32> to vector<256x64xf32>
    %114 = arith.mulf %112, %113 : vector<256x64xf32>
    %115 = arith.addf %107, %114 : vector<256x64xf32>
    %c0_131 = arith.constant 0 : index
    %c0_132 = arith.constant 0 : index
    %116 = vector.load %arg3[%c0_131, %c0_132] : memref<1x64xf32, #tpu.memory_space<vmem>>, vector<1x64xf32>
    %117 = vector.broadcast %116 : vector<1x64xf32> to vector<256x64xf32>
    %118 = arith.addf %115, %117 : vector<256x64xf32>
    %cst_133 = arith.constant 0.000000e+00 : f32
    %119 = vector.broadcast %cst_133 : f32 to vector<256x64xf32>
    %120 = arith.cmpf ogt, %118, %119 : vector<256x64xf32>
    %cst_134 = arith.constant 2.000000e-01 : f32
    %121 = vector.broadcast %cst_134 : f32 to vector<256x64xf32>
    %122 = arith.mulf %121, %118 : vector<256x64xf32>
    %123 = arith.select %120, %118, %122 : vector<256x64xi1>, vector<256x64xf32>
    %124 = vector.shape_cast %123 : vector<256x64xf32> to vector<16x16x64xf32>
    %c1_135 = arith.constant 1 : index
    %c1_136 = arith.constant 1 : index
    %c0_137 = arith.constant 0 : index
    %125 = vector.load %arg14[%c1_135, %c1_136, %c0_137] : memref<18x18x64xf32, #tpu.memory_space<vmem>>, vector<16x16x64xf32>
    tpu.vector_store %arg14[%c1_135, %c1_136, %c0_137], %124 {strides = array<i32>} : memref<18x18x64xf32, #tpu.memory_space<vmem>>, vector<16x16x64xf32>,
    %cst_138 = arith.constant 0.000000e+00 : f32
    %126 = vector.broadcast %cst_138 : f32 to vector<256x64xf32>
    %c0_139 = arith.constant 0 : index
    %c0_140 = arith.constant 0 : index
    %c0_141 = arith.constant 0 : index
    %127 = vector.load %arg14[%c0_139, %c0_140, %c0_141] : memref<18x18x64xf32, #tpu.memory_space<vmem>>, vector<16x16x64xf32>
    %128 = vector.shape_cast %127 : vector<16x16x64xf32> to vector<256x64xf32>
    %c0_142 = arith.constant 0 : index
    %c0_143 = arith.constant 0 : index
    %c0_144 = arith.constant 0 : index
    %129 = vector.load %arg4[%c0_142, %c0_143, %c0_144] : memref<9x64x64xf32, #tpu.memory_space<vmem>>, vector<1x64x64xf32>
    %130 = vector.shape_cast %129 : vector<1x64x64xf32> to vector<64x64xf32>
    %cst_145 = arith.constant dense<0.000000e+00> : vector<256x64xf32>
    %131 = tpu.matmul %128, %130, %cst_145 {dimension_numbers = #tpu.dot_dimension_numbers<[1], [0], [0], [1], [0, 0, 1, 1], [], []>} : vector<256x64xf32>, vector<64x64xf32>, vector<256x64xf32> -> vector<256x64xf32>
    %132 = arith.addf %126, %131 : vector<256x64xf32>
    %c0_146 = arith.constant 0 : index
    %c1_147 = arith.constant 1 : index
    %c0_148 = arith.constant 0 : index
    %133 = vector.load %arg14[%c0_146, %c1_147, %c0_148] : memref<18x18x64xf32, #tpu.memory_space<vmem>>, vector<16x16x64xf32>
    %134 = vector.shape_cast %133 : vector<16x16x64xf32> to vector<256x64xf32>
    %c1_149 = arith.constant 1 : index
    %c0_150 = arith.constant 0 : index
    %c0_151 = arith.constant 0 : index
    %135 = vector.load %arg4[%c1_149, %c0_150, %c0_151] : memref<9x64x64xf32, #tpu.memory_space<vmem>>, vector<1x64x64xf32>
    %136 = vector.shape_cast %135 : vector<1x64x64xf32> to vector<64x64xf32>
    %cst_152 = arith.constant dense<0.000000e+00> : vector<256x64xf32>
    %137 = tpu.matmul %134, %136, %cst_152 {dimension_numbers = #tpu.dot_dimension_numbers<[1], [0], [0], [1], [0, 0, 1, 1], [], []>} : vector<256x64xf32>, vector<64x64xf32>, vector<256x64xf32> -> vector<256x64xf32>
    %138 = arith.addf %132, %137 : vector<256x64xf32>
    %c0_153 = arith.constant 0 : index
    %c2_154 = arith.constant 2 : index
    %c0_155 = arith.constant 0 : index
    %139 = vector.load %arg14[%c0_153, %c2_154, %c0_155] : memref<18x18x64xf32, #tpu.memory_space<vmem>>, vector<16x16x64xf32>
    %140 = vector.shape_cast %139 : vector<16x16x64xf32> to vector<256x64xf32>
    %c2_156 = arith.constant 2 : index
    %c0_157 = arith.constant 0 : index
    %c0_158 = arith.constant 0 : index
    %141 = vector.load %arg4[%c2_156, %c0_157, %c0_158] : memref<9x64x64xf32, #tpu.memory_space<vmem>>, vector<1x64x64xf32>
    %142 = vector.shape_cast %141 : vector<1x64x64xf32> to vector<64x64xf32>
    %cst_159 = arith.constant dense<0.000000e+00> : vector<256x64xf32>
    %143 = tpu.matmul %140, %142, %cst_159 {dimension_numbers = #tpu.dot_dimension_numbers<[1], [0], [0], [1], [0, 0, 1, 1], [], []>} : vector<256x64xf32>, vector<64x64xf32>, vector<256x64xf32> -> vector<256x64xf32>
    %144 = arith.addf %138, %143 : vector<256x64xf32>
    %c1_160 = arith.constant 1 : index
    %c0_161 = arith.constant 0 : index
    %c0_162 = arith.constant 0 : index
    %145 = vector.load %arg14[%c1_160, %c0_161, %c0_162] : memref<18x18x64xf32, #tpu.memory_space<vmem>>, vector<16x16x64xf32>
    %146 = vector.shape_cast %145 : vector<16x16x64xf32> to vector<256x64xf32>
    %c3_163 = arith.constant 3 : index
    %c0_164 = arith.constant 0 : index
    %c0_165 = arith.constant 0 : index
    %147 = vector.load %arg4[%c3_163, %c0_164, %c0_165] : memref<9x64x64xf32, #tpu.memory_space<vmem>>, vector<1x64x64xf32>
    %148 = vector.shape_cast %147 : vector<1x64x64xf32> to vector<64x64xf32>
    %cst_166 = arith.constant dense<0.000000e+00> : vector<256x64xf32>
    %149 = tpu.matmul %146, %148, %cst_166 {dimension_numbers = #tpu.dot_dimension_numbers<[1], [0], [0], [1], [0, 0, 1, 1], [], []>} : vector<256x64xf32>, vector<64x64xf32>, vector<256x64xf32> -> vector<256x64xf32>
    %150 = arith.addf %144, %149 : vector<256x64xf32>
    %c1_167 = arith.constant 1 : index
    %c1_168 = arith.constant 1 : index
    %c0_169 = arith.constant 0 : index
    %151 = vector.load %arg14[%c1_167, %c1_168, %c0_169] : memref<18x18x64xf32, #tpu.memory_space<vmem>>, vector<16x16x64xf32>
    %152 = vector.shape_cast %151 : vector<16x16x64xf32> to vector<256x64xf32>
    %c4_170 = arith.constant 4 : index
    %c0_171 = arith.constant 0 : index
    %c0_172 = arith.constant 0 : index
    %153 = vector.load %arg4[%c4_170, %c0_171, %c0_172] : memref<9x64x64xf32, #tpu.memory_space<vmem>>, vector<1x64x64xf32>
    %154 = vector.shape_cast %153 : vector<1x64x64xf32> to vector<64x64xf32>
    %cst_173 = arith.constant dense<0.000000e+00> : vector<256x64xf32>
    %155 = tpu.matmul %152, %154, %cst_173 {dimension_numbers = #tpu.dot_dimension_numbers<[1], [0], [0], [1], [0, 0, 1, 1], [], []>} : vector<256x64xf32>, vector<64x64xf32>, vector<256x64xf32> -> vector<256x64xf32>
    %156 = arith.addf %150, %155 : vector<256x64xf32>
    %c1_174 = arith.constant 1 : index
    %c2_175 = arith.constant 2 : index
    %c0_176 = arith.constant 0 : index
    %157 = vector.load %arg14[%c1_174, %c2_175, %c0_176] : memref<18x18x64xf32, #tpu.memory_space<vmem>>, vector<16x16x64xf32>
    %158 = vector.shape_cast %157 : vector<16x16x64xf32> to vector<256x64xf32>
    %c5_177 = arith.constant 5 : index
    %c0_178 = arith.constant 0 : index
    %c0_179 = arith.constant 0 : index
    %159 = vector.load %arg4[%c5_177, %c0_178, %c0_179] : memref<9x64x64xf32, #tpu.memory_space<vmem>>, vector<1x64x64xf32>
    %160 = vector.shape_cast %159 : vector<1x64x64xf32> to vector<64x64xf32>
    %cst_180 = arith.constant dense<0.000000e+00> : vector<256x64xf32>
    %161 = tpu.matmul %158, %160, %cst_180 {dimension_numbers = #tpu.dot_dimension_numbers<[1], [0], [0], [1], [0, 0, 1, 1], [], []>} : vector<256x64xf32>, vector<64x64xf32>, vector<256x64xf32> -> vector<256x64xf32>
    %162 = arith.addf %156, %161 : vector<256x64xf32>
    %c2_181 = arith.constant 2 : index
    %c0_182 = arith.constant 0 : index
    %c0_183 = arith.constant 0 : index
    %163 = vector.load %arg14[%c2_181, %c0_182, %c0_183] : memref<18x18x64xf32, #tpu.memory_space<vmem>>, vector<16x16x64xf32>
    %164 = vector.shape_cast %163 : vector<16x16x64xf32> to vector<256x64xf32>
    %c6_184 = arith.constant 6 : index
    %c0_185 = arith.constant 0 : index
    %c0_186 = arith.constant 0 : index
    %165 = vector.load %arg4[%c6_184, %c0_185, %c0_186] : memref<9x64x64xf32, #tpu.memory_space<vmem>>, vector<1x64x64xf32>
    %166 = vector.shape_cast %165 : vector<1x64x64xf32> to vector<64x64xf32>
    %cst_187 = arith.constant dense<0.000000e+00> : vector<256x64xf32>
    %167 = tpu.matmul %164, %166, %cst_187 {dimension_numbers = #tpu.dot_dimension_numbers<[1], [0], [0], [1], [0, 0, 1, 1], [], []>} : vector<256x64xf32>, vector<64x64xf32>, vector<256x64xf32> -> vector<256x64xf32>
    %168 = arith.addf %162, %167 : vector<256x64xf32>
    %c2_188 = arith.constant 2 : index
    %c1_189 = arith.constant 1 : index
    %c0_190 = arith.constant 0 : index
    %169 = vector.load %arg14[%c2_188, %c1_189, %c0_190] : memref<18x18x64xf32, #tpu.memory_space<vmem>>, vector<16x16x64xf32>
    %170 = vector.shape_cast %169 : vector<16x16x64xf32> to vector<256x64xf32>
    %c7_191 = arith.constant 7 : index
    %c0_192 = arith.constant 0 : index
    %c0_193 = arith.constant 0 : index
    %171 = vector.load %arg4[%c7_191, %c0_192, %c0_193] : memref<9x64x64xf32, #tpu.memory_space<vmem>>, vector<1x64x64xf32>
    %172 = vector.shape_cast %171 : vector<1x64x64xf32> to vector<64x64xf32>
    %cst_194 = arith.constant dense<0.000000e+00> : vector<256x64xf32>
    %173 = tpu.matmul %170, %172, %cst_194 {dimension_numbers = #tpu.dot_dimension_numbers<[1], [0], [0], [1], [0, 0, 1, 1], [], []>} : vector<256x64xf32>, vector<64x64xf32>, vector<256x64xf32> -> vector<256x64xf32>
    %174 = arith.addf %168, %173 : vector<256x64xf32>
    %c2_195 = arith.constant 2 : index
    %c2_196 = arith.constant 2 : index
    %c0_197 = arith.constant 0 : index
    %175 = vector.load %arg14[%c2_195, %c2_196, %c0_197] : memref<18x18x64xf32, #tpu.memory_space<vmem>>, vector<16x16x64xf32>
    %176 = vector.shape_cast %175 : vector<16x16x64xf32> to vector<256x64xf32>
    %c8_198 = arith.constant 8 : index
    %c0_199 = arith.constant 0 : index
    %c0_200 = arith.constant 0 : index
    %177 = vector.load %arg4[%c8_198, %c0_199, %c0_200] : memref<9x64x64xf32, #tpu.memory_space<vmem>>, vector<1x64x64xf32>
    %178 = vector.shape_cast %177 : vector<1x64x64xf32> to vector<64x64xf32>
    %cst_201 = arith.constant dense<0.000000e+00> : vector<256x64xf32>
    %179 = tpu.matmul %176, %178, %cst_201 {dimension_numbers = #tpu.dot_dimension_numbers<[1], [0], [0], [1], [0, 0, 1, 1], [], []>} : vector<256x64xf32>, vector<64x64xf32>, vector<256x64xf32> -> vector<256x64xf32>
    %180 = arith.addf %174, %179 : vector<256x64xf32>
    %c0_202 = arith.constant 0 : index
    %c0_203 = arith.constant 0 : index
    %181 = vector.load %arg5[%c0_202, %c0_203] : memref<1x64xf32, #tpu.memory_space<vmem>>, vector<1x64xf32>
    %182 = vector.broadcast %181 : vector<1x64xf32> to vector<256x64xf32>
    %183 = arith.addf %180, %182 : vector<256x64xf32>
    %cst_204 = arith.constant 0.000000e+00 : f32
    %184 = vector.broadcast %cst_204 : f32 to vector<256x64xf32>
    %185 = arith.cmpf ogt, %183, %184 : vector<256x64xf32>
    %cst_205 = arith.constant 2.000000e-01 : f32
    %186 = vector.broadcast %cst_205 : f32 to vector<256x64xf32>
    %187 = arith.mulf %186, %183 : vector<256x64xf32>
    %188 = arith.select %185, %183, %187 : vector<256x64xi1>, vector<256x64xf32>
    %189 = vector.shape_cast %188 : vector<256x64xf32> to vector<16x16x64xf32>
    %c1_206 = arith.constant 1 : index
    %c1_207 = arith.constant 1 : index
    %c0_208 = arith.constant 0 : index
    %190 = vector.load %arg15[%c1_206, %c1_207, %c0_208] : memref<18x18x64xf32, #tpu.memory_space<vmem>>, vector<16x16x64xf32>
    tpu.vector_store %arg15[%c1_206, %c1_207, %c0_208], %189 {strides = array<i32>} : memref<18x18x64xf32, #tpu.memory_space<vmem>>, vector<16x16x64xf32>,
    %cst_209 = arith.constant 0.000000e+00 : f32
    %191 = vector.broadcast %cst_209 : f32 to vector<256x32xf32>
    %c0_210 = arith.constant 0 : index
    %c0_211 = arith.constant 0 : index
    %c0_212 = arith.constant 0 : index
    %192 = vector.load %arg15[%c0_210, %c0_211, %c0_212] : memref<18x18x64xf32, #tpu.memory_space<vmem>>, vector<16x16x64xf32>
    %193 = vector.shape_cast %192 : vector<16x16x64xf32> to vector<256x64xf32>
    %c0_213 = arith.constant 0 : index
    %c0_214 = arith.constant 0 : index
    %c0_215 = arith.constant 0 : index
    %194 = vector.load %arg6[%c0_213, %c0_214, %c0_215] : memref<9x64x32xf32, #tpu.memory_space<vmem>>, vector<1x64x32xf32>
    %195 = vector.shape_cast %194 : vector<1x64x32xf32> to vector<64x32xf32>
    %cst_216 = arith.constant dense<0.000000e+00> : vector<256x32xf32>
    %196 = tpu.matmul %193, %195, %cst_216 {dimension_numbers = #tpu.dot_dimension_numbers<[1], [0], [0], [1], [0, 0, 1, 1], [], []>} : vector<256x64xf32>, vector<64x32xf32>, vector<256x32xf32> -> vector<256x32xf32>
    %197 = arith.addf %191, %196 : vector<256x32xf32>
    %c0_217 = arith.constant 0 : index
    %c1_218 = arith.constant 1 : index
    %c0_219 = arith.constant 0 : index
    %198 = vector.load %arg15[%c0_217, %c1_218, %c0_219] : memref<18x18x64xf32, #tpu.memory_space<vmem>>, vector<16x16x64xf32>
    %199 = vector.shape_cast %198 : vector<16x16x64xf32> to vector<256x64xf32>
    %c1_220 = arith.constant 1 : index
    %c0_221 = arith.constant 0 : index
    %c0_222 = arith.constant 0 : index
    %200 = vector.load %arg6[%c1_220, %c0_221, %c0_222] : memref<9x64x32xf32, #tpu.memory_space<vmem>>, vector<1x64x32xf32>
    %201 = vector.shape_cast %200 : vector<1x64x32xf32> to vector<64x32xf32>
    %cst_223 = arith.constant dense<0.000000e+00> : vector<256x32xf32>
    %202 = tpu.matmul %199, %201, %cst_223 {dimension_numbers = #tpu.dot_dimension_numbers<[1], [0], [0], [1], [0, 0, 1, 1], [], []>} : vector<256x64xf32>, vector<64x32xf32>, vector<256x32xf32> -> vector<256x32xf32>
    %203 = arith.addf %197, %202 : vector<256x32xf32>
    %c0_224 = arith.constant 0 : index
    %c2_225 = arith.constant 2 : index
    %c0_226 = arith.constant 0 : index
    %204 = vector.load %arg15[%c0_224, %c2_225, %c0_226] : memref<18x18x64xf32, #tpu.memory_space<vmem>>, vector<16x16x64xf32>
    %205 = vector.shape_cast %204 : vector<16x16x64xf32> to vector<256x64xf32>
    %c2_227 = arith.constant 2 : index
    %c0_228 = arith.constant 0 : index
    %c0_229 = arith.constant 0 : index
    %206 = vector.load %arg6[%c2_227, %c0_228, %c0_229] : memref<9x64x32xf32, #tpu.memory_space<vmem>>, vector<1x64x32xf32>
    %207 = vector.shape_cast %206 : vector<1x64x32xf32> to vector<64x32xf32>
    %cst_230 = arith.constant dense<0.000000e+00> : vector<256x32xf32>
    %208 = tpu.matmul %205, %207, %cst_230 {dimension_numbers = #tpu.dot_dimension_numbers<[1], [0], [0], [1], [0, 0, 1, 1], [], []>} : vector<256x64xf32>, vector<64x32xf32>, vector<256x32xf32> -> vector<256x32xf32>
    %209 = arith.addf %203, %208 : vector<256x32xf32>
    %c1_231 = arith.constant 1 : index
    %c0_232 = arith.constant 0 : index
    %c0_233 = arith.constant 0 : index
    %210 = vector.load %arg15[%c1_231, %c0_232, %c0_233] : memref<18x18x64xf32, #tpu.memory_space<vmem>>, vector<16x16x64xf32>
    %211 = vector.shape_cast %210 : vector<16x16x64xf32> to vector<256x64xf32>
    %c3_234 = arith.constant 3 : index
    %c0_235 = arith.constant 0 : index
    %c0_236 = arith.constant 0 : index
    %212 = vector.load %arg6[%c3_234, %c0_235, %c0_236] : memref<9x64x32xf32, #tpu.memory_space<vmem>>, vector<1x64x32xf32>
    %213 = vector.shape_cast %212 : vector<1x64x32xf32> to vector<64x32xf32>
    %cst_237 = arith.constant dense<0.000000e+00> : vector<256x32xf32>
    %214 = tpu.matmul %211, %213, %cst_237 {dimension_numbers = #tpu.dot_dimension_numbers<[1], [0], [0], [1], [0, 0, 1, 1], [], []>} : vector<256x64xf32>, vector<64x32xf32>, vector<256x32xf32> -> vector<256x32xf32>
    %215 = arith.addf %209, %214 : vector<256x32xf32>
    %c1_238 = arith.constant 1 : index
    %c1_239 = arith.constant 1 : index
    %c0_240 = arith.constant 0 : index
    %216 = vector.load %arg15[%c1_238, %c1_239, %c0_240] : memref<18x18x64xf32, #tpu.memory_space<vmem>>, vector<16x16x64xf32>
    %217 = vector.shape_cast %216 : vector<16x16x64xf32> to vector<256x64xf32>
    %c4_241 = arith.constant 4 : index
    %c0_242 = arith.constant 0 : index
    %c0_243 = arith.constant 0 : index
    %218 = vector.load %arg6[%c4_241, %c0_242, %c0_243] : memref<9x64x32xf32, #tpu.memory_space<vmem>>, vector<1x64x32xf32>
    %219 = vector.shape_cast %218 : vector<1x64x32xf32> to vector<64x32xf32>
    %cst_244 = arith.constant dense<0.000000e+00> : vector<256x32xf32>
    %220 = tpu.matmul %217, %219, %cst_244 {dimension_numbers = #tpu.dot_dimension_numbers<[1], [0], [0], [1], [0, 0, 1, 1], [], []>} : vector<256x64xf32>, vector<64x32xf32>, vector<256x32xf32> -> vector<256x32xf32>
    %221 = arith.addf %215, %220 : vector<256x32xf32>
    %c1_245 = arith.constant 1 : index
    %c2_246 = arith.constant 2 : index
    %c0_247 = arith.constant 0 : index
    %222 = vector.load %arg15[%c1_245, %c2_246, %c0_247] : memref<18x18x64xf32, #tpu.memory_space<vmem>>, vector<16x16x64xf32>
    %223 = vector.shape_cast %222 : vector<16x16x64xf32> to vector<256x64xf32>
    %c5_248 = arith.constant 5 : index
    %c0_249 = arith.constant 0 : index
    %c0_250 = arith.constant 0 : index
    %224 = vector.load %arg6[%c5_248, %c0_249, %c0_250] : memref<9x64x32xf32, #tpu.memory_space<vmem>>, vector<1x64x32xf32>
    %225 = vector.shape_cast %224 : vector<1x64x32xf32> to vector<64x32xf32>
    %cst_251 = arith.constant dense<0.000000e+00> : vector<256x32xf32>
    %226 = tpu.matmul %223, %225, %cst_251 {dimension_numbers = #tpu.dot_dimension_numbers<[1], [0], [0], [1], [0, 0, 1, 1], [], []>} : vector<256x64xf32>, vector<64x32xf32>, vector<256x32xf32> -> vector<256x32xf32>
    %227 = arith.addf %221, %226 : vector<256x32xf32>
    %c2_252 = arith.constant 2 : index
    %c0_253 = arith.constant 0 : index
    %c0_254 = arith.constant 0 : index
    %228 = vector.load %arg15[%c2_252, %c0_253, %c0_254] : memref<18x18x64xf32, #tpu.memory_space<vmem>>, vector<16x16x64xf32>
    %229 = vector.shape_cast %228 : vector<16x16x64xf32> to vector<256x64xf32>
    %c6_255 = arith.constant 6 : index
    %c0_256 = arith.constant 0 : index
    %c0_257 = arith.constant 0 : index
    %230 = vector.load %arg6[%c6_255, %c0_256, %c0_257] : memref<9x64x32xf32, #tpu.memory_space<vmem>>, vector<1x64x32xf32>
    %231 = vector.shape_cast %230 : vector<1x64x32xf32> to vector<64x32xf32>
    %cst_258 = arith.constant dense<0.000000e+00> : vector<256x32xf32>
    %232 = tpu.matmul %229, %231, %cst_258 {dimension_numbers = #tpu.dot_dimension_numbers<[1], [0], [0], [1], [0, 0, 1, 1], [], []>} : vector<256x64xf32>, vector<64x32xf32>, vector<256x32xf32> -> vector<256x32xf32>
    %233 = arith.addf %227, %232 : vector<256x32xf32>
    %c2_259 = arith.constant 2 : index
    %c1_260 = arith.constant 1 : index
    %c0_261 = arith.constant 0 : index
    %234 = vector.load %arg15[%c2_259, %c1_260, %c0_261] : memref<18x18x64xf32, #tpu.memory_space<vmem>>, vector<16x16x64xf32>
    %235 = vector.shape_cast %234 : vector<16x16x64xf32> to vector<256x64xf32>
    %c7_262 = arith.constant 7 : index
    %c0_263 = arith.constant 0 : index
    %c0_264 = arith.constant 0 : index
    %236 = vector.load %arg6[%c7_262, %c0_263, %c0_264] : memref<9x64x32xf32, #tpu.memory_space<vmem>>, vector<1x64x32xf32>
    %237 = vector.shape_cast %236 : vector<1x64x32xf32> to vector<64x32xf32>
    %cst_265 = arith.constant dense<0.000000e+00> : vector<256x32xf32>
    %238 = tpu.matmul %235, %237, %cst_265 {dimension_numbers = #tpu.dot_dimension_numbers<[1], [0], [0], [1], [0, 0, 1, 1], [], []>} : vector<256x64xf32>, vector<64x32xf32>, vector<256x32xf32> -> vector<256x32xf32>
    %239 = arith.addf %233, %238 : vector<256x32xf32>
    %c2_266 = arith.constant 2 : index
    %c2_267 = arith.constant 2 : index
    %c0_268 = arith.constant 0 : index
    %240 = vector.load %arg15[%c2_266, %c2_267, %c0_268] : memref<18x18x64xf32, #tpu.memory_space<vmem>>, vector<16x16x64xf32>
    %241 = vector.shape_cast %240 : vector<16x16x64xf32> to vector<256x64xf32>
    %c8_269 = arith.constant 8 : index
    %c0_270 = arith.constant 0 : index
    %c0_271 = arith.constant 0 : index
    %242 = vector.load %arg6[%c8_269, %c0_270, %c0_271] : memref<9x64x32xf32, #tpu.memory_space<vmem>>, vector<1x64x32xf32>
    %243 = vector.shape_cast %242 : vector<1x64x32xf32> to vector<64x32xf32>
    %cst_272 = arith.constant dense<0.000000e+00> : vector<256x32xf32>
    %244 = tpu.matmul %241, %243, %cst_272 {dimension_numbers = #tpu.dot_dimension_numbers<[1], [0], [0], [1], [0, 0, 1, 1], [], []>} : vector<256x64xf32>, vector<64x32xf32>, vector<256x32xf32> -> vector<256x32xf32>
    %245 = arith.addf %239, %244 : vector<256x32xf32>
    %c0_273 = arith.constant 0 : index
    %c0_274 = arith.constant 0 : index
    %246 = vector.load %arg7[%c0_273, %c0_274] : memref<1x32xf32, #tpu.memory_space<vmem>>, vector<1x32xf32>
    %247 = vector.broadcast %246 : vector<1x32xf32> to vector<256x32xf32>
    %248 = arith.addf %245, %247 : vector<256x32xf32>
    %cst_275 = arith.constant 0.000000e+00 : f32
    %249 = vector.broadcast %cst_275 : f32 to vector<256x32xf32>
    %250 = arith.cmpf ogt, %248, %249 : vector<256x32xf32>
    %cst_276 = arith.constant 2.000000e-01 : f32
    %251 = vector.broadcast %cst_276 : f32 to vector<256x32xf32>
    %252 = arith.mulf %251, %248 : vector<256x32xf32>
    %253 = arith.select %250, %248, %252 : vector<256x32xi1>, vector<256x32xf32>
    %254 = vector.shape_cast %253 : vector<256x32xf32> to vector<16x16x32xf32>
    %c1_277 = arith.constant 1 : index
    %c1_278 = arith.constant 1 : index
    %c0_279 = arith.constant 0 : index
    %255 = vector.load %arg16[%c1_277, %c1_278, %c0_279] : memref<18x18x32xf32, #tpu.memory_space<vmem>>, vector<16x16x32xf32>
    tpu.vector_store %arg16[%c1_277, %c1_278, %c0_279], %254 {strides = array<i32>} : memref<18x18x32xf32, #tpu.memory_space<vmem>>, vector<16x16x32xf32>,
    %cst_280 = arith.constant 0.000000e+00 : f32
    %256 = vector.broadcast %cst_280 : f32 to vector<256x32xf32>
    %c0_281 = arith.constant 0 : index
    %c0_282 = arith.constant 0 : index
    %c0_283 = arith.constant 0 : index
    %257 = vector.load %arg16[%c0_281, %c0_282, %c0_283] : memref<18x18x32xf32, #tpu.memory_space<vmem>>, vector<16x16x32xf32>
    %258 = vector.shape_cast %257 : vector<16x16x32xf32> to vector<256x32xf32>
    %c0_284 = arith.constant 0 : index
    %c0_285 = arith.constant 0 : index
    %c0_286 = arith.constant 0 : index
    %259 = vector.load %arg8[%c0_284, %c0_285, %c0_286] : memref<9x32x32xf32, #tpu.memory_space<vmem>>, vector<1x32x32xf32>
    %260 = vector.shape_cast %259 : vector<1x32x32xf32> to vector<32x32xf32>
    %cst_287 = arith.constant dense<0.000000e+00> : vector<256x32xf32>
    %261 = tpu.matmul %258, %260, %cst_287 {dimension_numbers = #tpu.dot_dimension_numbers<[1], [0], [0], [1], [0, 0, 1, 1], [], []>} : vector<256x32xf32>, vector<32x32xf32>, vector<256x32xf32> -> vector<256x32xf32>
    %262 = arith.addf %256, %261 : vector<256x32xf32>
    %c0_288 = arith.constant 0 : index
    %c1_289 = arith.constant 1 : index
    %c0_290 = arith.constant 0 : index
    %263 = vector.load %arg16[%c0_288, %c1_289, %c0_290] : memref<18x18x32xf32, #tpu.memory_space<vmem>>, vector<16x16x32xf32>
    %264 = vector.shape_cast %263 : vector<16x16x32xf32> to vector<256x32xf32>
    %c1_291 = arith.constant 1 : index
    %c0_292 = arith.constant 0 : index
    %c0_293 = arith.constant 0 : index
    %265 = vector.load %arg8[%c1_291, %c0_292, %c0_293] : memref<9x32x32xf32, #tpu.memory_space<vmem>>, vector<1x32x32xf32>
    %266 = vector.shape_cast %265 : vector<1x32x32xf32> to vector<32x32xf32>
    %cst_294 = arith.constant dense<0.000000e+00> : vector<256x32xf32>
    %267 = tpu.matmul %264, %266, %cst_294 {dimension_numbers = #tpu.dot_dimension_numbers<[1], [0], [0], [1], [0, 0, 1, 1], [], []>} : vector<256x32xf32>, vector<32x32xf32>, vector<256x32xf32> -> vector<256x32xf32>
    %268 = arith.addf %262, %267 : vector<256x32xf32>
    %c0_295 = arith.constant 0 : index
    %c2_296 = arith.constant 2 : index
    %c0_297 = arith.constant 0 : index
    %269 = vector.load %arg16[%c0_295, %c2_296, %c0_297] : memref<18x18x32xf32, #tpu.memory_space<vmem>>, vector<16x16x32xf32>
    %270 = vector.shape_cast %269 : vector<16x16x32xf32> to vector<256x32xf32>
    %c2_298 = arith.constant 2 : index
    %c0_299 = arith.constant 0 : index
    %c0_300 = arith.constant 0 : index
    %271 = vector.load %arg8[%c2_298, %c0_299, %c0_300] : memref<9x32x32xf32, #tpu.memory_space<vmem>>, vector<1x32x32xf32>
    %272 = vector.shape_cast %271 : vector<1x32x32xf32> to vector<32x32xf32>
    %cst_301 = arith.constant dense<0.000000e+00> : vector<256x32xf32>
    %273 = tpu.matmul %270, %272, %cst_301 {dimension_numbers = #tpu.dot_dimension_numbers<[1], [0], [0], [1], [0, 0, 1, 1], [], []>} : vector<256x32xf32>, vector<32x32xf32>, vector<256x32xf32> -> vector<256x32xf32>
    %274 = arith.addf %268, %273 : vector<256x32xf32>
    %c1_302 = arith.constant 1 : index
    %c0_303 = arith.constant 0 : index
    %c0_304 = arith.constant 0 : index
    %275 = vector.load %arg16[%c1_302, %c0_303, %c0_304] : memref<18x18x32xf32, #tpu.memory_space<vmem>>, vector<16x16x32xf32>
    %276 = vector.shape_cast %275 : vector<16x16x32xf32> to vector<256x32xf32>
    %c3_305 = arith.constant 3 : index
    %c0_306 = arith.constant 0 : index
    %c0_307 = arith.constant 0 : index
    %277 = vector.load %arg8[%c3_305, %c0_306, %c0_307] : memref<9x32x32xf32, #tpu.memory_space<vmem>>, vector<1x32x32xf32>
    %278 = vector.shape_cast %277 : vector<1x32x32xf32> to vector<32x32xf32>
    %cst_308 = arith.constant dense<0.000000e+00> : vector<256x32xf32>
    %279 = tpu.matmul %276, %278, %cst_308 {dimension_numbers = #tpu.dot_dimension_numbers<[1], [0], [0], [1], [0, 0, 1, 1], [], []>} : vector<256x32xf32>, vector<32x32xf32>, vector<256x32xf32> -> vector<256x32xf32>
    %280 = arith.addf %274, %279 : vector<256x32xf32>
    %c1_309 = arith.constant 1 : index
    %c1_310 = arith.constant 1 : index
    %c0_311 = arith.constant 0 : index
    %281 = vector.load %arg16[%c1_309, %c1_310, %c0_311] : memref<18x18x32xf32, #tpu.memory_space<vmem>>, vector<16x16x32xf32>
    %282 = vector.shape_cast %281 : vector<16x16x32xf32> to vector<256x32xf32>
    %c4_312 = arith.constant 4 : index
    %c0_313 = arith.constant 0 : index
    %c0_314 = arith.constant 0 : index
    %283 = vector.load %arg8[%c4_312, %c0_313, %c0_314] : memref<9x32x32xf32, #tpu.memory_space<vmem>>, vector<1x32x32xf32>
    %284 = vector.shape_cast %283 : vector<1x32x32xf32> to vector<32x32xf32>
    %cst_315 = arith.constant dense<0.000000e+00> : vector<256x32xf32>
    %285 = tpu.matmul %282, %284, %cst_315 {dimension_numbers = #tpu.dot_dimension_numbers<[1], [0], [0], [1], [0, 0, 1, 1], [], []>} : vector<256x32xf32>, vector<32x32xf32>, vector<256x32xf32> -> vector<256x32xf32>
    %286 = arith.addf %280, %285 : vector<256x32xf32>
    %c1_316 = arith.constant 1 : index
    %c2_317 = arith.constant 2 : index
    %c0_318 = arith.constant 0 : index
    %287 = vector.load %arg16[%c1_316, %c2_317, %c0_318] : memref<18x18x32xf32, #tpu.memory_space<vmem>>, vector<16x16x32xf32>
    %288 = vector.shape_cast %287 : vector<16x16x32xf32> to vector<256x32xf32>
    %c5_319 = arith.constant 5 : index
    %c0_320 = arith.constant 0 : index
    %c0_321 = arith.constant 0 : index
    %289 = vector.load %arg8[%c5_319, %c0_320, %c0_321] : memref<9x32x32xf32, #tpu.memory_space<vmem>>, vector<1x32x32xf32>
    %290 = vector.shape_cast %289 : vector<1x32x32xf32> to vector<32x32xf32>
    %cst_322 = arith.constant dense<0.000000e+00> : vector<256x32xf32>
    %291 = tpu.matmul %288, %290, %cst_322 {dimension_numbers = #tpu.dot_dimension_numbers<[1], [0], [0], [1], [0, 0, 1, 1], [], []>} : vector<256x32xf32>, vector<32x32xf32>, vector<256x32xf32> -> vector<256x32xf32>
    %292 = arith.addf %286, %291 : vector<256x32xf32>
    %c2_323 = arith.constant 2 : index
    %c0_324 = arith.constant 0 : index
    %c0_325 = arith.constant 0 : index
    %293 = vector.load %arg16[%c2_323, %c0_324, %c0_325] : memref<18x18x32xf32, #tpu.memory_space<vmem>>, vector<16x16x32xf32>
    %294 = vector.shape_cast %293 : vector<16x16x32xf32> to vector<256x32xf32>
    %c6_326 = arith.constant 6 : index
    %c0_327 = arith.constant 0 : index
    %c0_328 = arith.constant 0 : index
    %295 = vector.load %arg8[%c6_326, %c0_327, %c0_328] : memref<9x32x32xf32, #tpu.memory_space<vmem>>, vector<1x32x32xf32>
    %296 = vector.shape_cast %295 : vector<1x32x32xf32> to vector<32x32xf32>
    %cst_329 = arith.constant dense<0.000000e+00> : vector<256x32xf32>
    %297 = tpu.matmul %294, %296, %cst_329 {dimension_numbers = #tpu.dot_dimension_numbers<[1], [0], [0], [1], [0, 0, 1, 1], [], []>} : vector<256x32xf32>, vector<32x32xf32>, vector<256x32xf32> -> vector<256x32xf32>
    %298 = arith.addf %292, %297 : vector<256x32xf32>
    %c2_330 = arith.constant 2 : index
    %c1_331 = arith.constant 1 : index
    %c0_332 = arith.constant 0 : index
    %299 = vector.load %arg16[%c2_330, %c1_331, %c0_332] : memref<18x18x32xf32, #tpu.memory_space<vmem>>, vector<16x16x32xf32>
    %300 = vector.shape_cast %299 : vector<16x16x32xf32> to vector<256x32xf32>
    %c7_333 = arith.constant 7 : index
    %c0_334 = arith.constant 0 : index
    %c0_335 = arith.constant 0 : index
    %301 = vector.load %arg8[%c7_333, %c0_334, %c0_335] : memref<9x32x32xf32, #tpu.memory_space<vmem>>, vector<1x32x32xf32>
    %302 = vector.shape_cast %301 : vector<1x32x32xf32> to vector<32x32xf32>
    %cst_336 = arith.constant dense<0.000000e+00> : vector<256x32xf32>
    %303 = tpu.matmul %300, %302, %cst_336 {dimension_numbers = #tpu.dot_dimension_numbers<[1], [0], [0], [1], [0, 0, 1, 1], [], []>} : vector<256x32xf32>, vector<32x32xf32>, vector<256x32xf32> -> vector<256x32xf32>
    %304 = arith.addf %298, %303 : vector<256x32xf32>
    %c2_337 = arith.constant 2 : index
    %c2_338 = arith.constant 2 : index
    %c0_339 = arith.constant 0 : index
    %305 = vector.load %arg16[%c2_337, %c2_338, %c0_339] : memref<18x18x32xf32, #tpu.memory_space<vmem>>, vector<16x16x32xf32>
    %306 = vector.shape_cast %305 : vector<16x16x32xf32> to vector<256x32xf32>
    %c8_340 = arith.constant 8 : index
    %c0_341 = arith.constant 0 : index
    %c0_342 = arith.constant 0 : index
    %307 = vector.load %arg8[%c8_340, %c0_341, %c0_342] : memref<9x32x32xf32, #tpu.memory_space<vmem>>, vector<1x32x32xf32>
    %308 = vector.shape_cast %307 : vector<1x32x32xf32> to vector<32x32xf32>
    %cst_343 = arith.constant dense<0.000000e+00> : vector<256x32xf32>
    %309 = tpu.matmul %306, %308, %cst_343 {dimension_numbers = #tpu.dot_dimension_numbers<[1], [0], [0], [1], [0, 0, 1, 1], [], []>} : vector<256x32xf32>, vector<32x32xf32>, vector<256x32xf32> -> vector<256x32xf32>
    %310 = arith.addf %304, %309 : vector<256x32xf32>
    %c0_344 = arith.constant 0 : index
    %c0_345 = arith.constant 0 : index
    %311 = vector.load %arg9[%c0_344, %c0_345] : memref<1x32xf32, #tpu.memory_space<vmem>>, vector<1x32xf32>
    %312 = vector.broadcast %311 : vector<1x32xf32> to vector<256x32xf32>
    %313 = arith.addf %310, %312 : vector<256x32xf32>
    %cst_346 = arith.constant 0.000000e+00 : f32
    %314 = vector.broadcast %cst_346 : f32 to vector<256x32xf32>
    %315 = arith.cmpf ogt, %313, %314 : vector<256x32xf32>
    %cst_347 = arith.constant 2.000000e-01 : f32
    %316 = vector.broadcast %cst_347 : f32 to vector<256x32xf32>
    %317 = arith.mulf %316, %313 : vector<256x32xf32>
    %318 = arith.select %315, %313, %317 : vector<256x32xi1>, vector<256x32xf32>
    %319 = vector.shape_cast %318 : vector<256x32xf32> to vector<16x16x32xf32>
    %c1_348 = arith.constant 1 : index
    %c1_349 = arith.constant 1 : index
    %c0_350 = arith.constant 0 : index
    %320 = vector.load %arg17[%c1_348, %c1_349, %c0_350] : memref<18x18x32xf32, #tpu.memory_space<vmem>>, vector<16x16x32xf32>
    tpu.vector_store %arg17[%c1_348, %c1_349, %c0_350], %319 {strides = array<i32>} : memref<18x18x32xf32, #tpu.memory_space<vmem>>, vector<16x16x32xf32>,
    %cst_351 = arith.constant 0.000000e+00 : f32
    %321 = vector.broadcast %cst_351 : f32 to vector<16x16x32xf32>
    %c0_352 = arith.constant 0 : index
    %c0_353 = arith.constant 0 : index
    %c0_354 = arith.constant 0 : index
    %322 = vector.load %arg17[%c0_352, %c0_353, %c0_354] : memref<18x18x32xf32, #tpu.memory_space<vmem>>, vector<16x16x32xf32>
    %c0_355 = arith.constant 0 : index
    %c0_356 = arith.constant 0 : index
    %323 = vector.load %arg10[%c0_355, %c0_356] : memref<9x32xf32, #tpu.memory_space<vmem>>, vector<1x32xf32>
    %324 = vector.shape_cast %323 : vector<1x32xf32> to vector<32xf32>
    %325 = vector.shape_cast %324 : vector<32xf32> to vector<1x1x32xf32>
    %326 = vector.broadcast %325 : vector<1x1x32xf32> to vector<16x16x32xf32>
    %327 = arith.mulf %322, %326 : vector<16x16x32xf32>
    %328 = arith.addf %321, %327 : vector<16x16x32xf32>
    %c0_357 = arith.constant 0 : index
    %c1_358 = arith.constant 1 : index
    %c0_359 = arith.constant 0 : index
    %329 = vector.load %arg17[%c0_357, %c1_358, %c0_359] : memref<18x18x32xf32, #tpu.memory_space<vmem>>, vector<16x16x32xf32>
    %c1_360 = arith.constant 1 : index
    %c0_361 = arith.constant 0 : index
    %330 = vector.load %arg10[%c1_360, %c0_361] : memref<9x32xf32, #tpu.memory_space<vmem>>, vector<1x32xf32>
    %331 = vector.shape_cast %330 : vector<1x32xf32> to vector<32xf32>
    %332 = vector.shape_cast %331 : vector<32xf32> to vector<1x1x32xf32>
    %333 = vector.broadcast %332 : vector<1x1x32xf32> to vector<16x16x32xf32>
    %334 = arith.mulf %329, %333 : vector<16x16x32xf32>
    %335 = arith.addf %328, %334 : vector<16x16x32xf32>
    %c0_362 = arith.constant 0 : index
    %c2_363 = arith.constant 2 : index
    %c0_364 = arith.constant 0 : index
    %336 = vector.load %arg17[%c0_362, %c2_363, %c0_364] : memref<18x18x32xf32, #tpu.memory_space<vmem>>, vector<16x16x32xf32>
    %c2_365 = arith.constant 2 : index
    %c0_366 = arith.constant 0 : index
    %337 = vector.load %arg10[%c2_365, %c0_366] : memref<9x32xf32, #tpu.memory_space<vmem>>, vector<1x32xf32>
    %338 = vector.shape_cast %337 : vector<1x32xf32> to vector<32xf32>
    %339 = vector.shape_cast %338 : vector<32xf32> to vector<1x1x32xf32>
    %340 = vector.broadcast %339 : vector<1x1x32xf32> to vector<16x16x32xf32>
    %341 = arith.mulf %336, %340 : vector<16x16x32xf32>
    %342 = arith.addf %335, %341 : vector<16x16x32xf32>
    %c1_367 = arith.constant 1 : index
    %c0_368 = arith.constant 0 : index
    %c0_369 = arith.constant 0 : index
    %343 = vector.load %arg17[%c1_367, %c0_368, %c0_369] : memref<18x18x32xf32, #tpu.memory_space<vmem>>, vector<16x16x32xf32>
    %c3_370 = arith.constant 3 : index
    %c0_371 = arith.constant 0 : index
    %344 = vector.load %arg10[%c3_370, %c0_371] : memref<9x32xf32, #tpu.memory_space<vmem>>, vector<1x32xf32>
    %345 = vector.shape_cast %344 : vector<1x32xf32> to vector<32xf32>
    %346 = vector.shape_cast %345 : vector<32xf32> to vector<1x1x32xf32>
    %347 = vector.broadcast %346 : vector<1x1x32xf32> to vector<16x16x32xf32>
    %348 = arith.mulf %343, %347 : vector<16x16x32xf32>
    %349 = arith.addf %342, %348 : vector<16x16x32xf32>
    %c1_372 = arith.constant 1 : index
    %c1_373 = arith.constant 1 : index
    %c0_374 = arith.constant 0 : index
    %350 = vector.load %arg17[%c1_372, %c1_373, %c0_374] : memref<18x18x32xf32, #tpu.memory_space<vmem>>, vector<16x16x32xf32>
    %c4_375 = arith.constant 4 : index
    %c0_376 = arith.constant 0 : index
    %351 = vector.load %arg10[%c4_375, %c0_376] : memref<9x32xf32, #tpu.memory_space<vmem>>, vector<1x32xf32>
    %352 = vector.shape_cast %351 : vector<1x32xf32> to vector<32xf32>
    %353 = vector.shape_cast %352 : vector<32xf32> to vector<1x1x32xf32>
    %354 = vector.broadcast %353 : vector<1x1x32xf32> to vector<16x16x32xf32>
    %355 = arith.mulf %350, %354 : vector<16x16x32xf32>
    %356 = arith.addf %349, %355 : vector<16x16x32xf32>
    %c1_377 = arith.constant 1 : index
    %c2_378 = arith.constant 2 : index
    %c0_379 = arith.constant 0 : index
    %357 = vector.load %arg17[%c1_377, %c2_378, %c0_379] : memref<18x18x32xf32, #tpu.memory_space<vmem>>, vector<16x16x32xf32>
    %c5_380 = arith.constant 5 : index
    %c0_381 = arith.constant 0 : index
    %358 = vector.load %arg10[%c5_380, %c0_381] : memref<9x32xf32, #tpu.memory_space<vmem>>, vector<1x32xf32>
    %359 = vector.shape_cast %358 : vector<1x32xf32> to vector<32xf32>
    %360 = vector.shape_cast %359 : vector<32xf32> to vector<1x1x32xf32>
    %361 = vector.broadcast %360 : vector<1x1x32xf32> to vector<16x16x32xf32>
    %362 = arith.mulf %357, %361 : vector<16x16x32xf32>
    %363 = arith.addf %356, %362 : vector<16x16x32xf32>
    %c2_382 = arith.constant 2 : index
    %c0_383 = arith.constant 0 : index
    %c0_384 = arith.constant 0 : index
    %364 = vector.load %arg17[%c2_382, %c0_383, %c0_384] : memref<18x18x32xf32, #tpu.memory_space<vmem>>, vector<16x16x32xf32>
    %c6_385 = arith.constant 6 : index
    %c0_386 = arith.constant 0 : index
    %365 = vector.load %arg10[%c6_385, %c0_386] : memref<9x32xf32, #tpu.memory_space<vmem>>, vector<1x32xf32>
    %366 = vector.shape_cast %365 : vector<1x32xf32> to vector<32xf32>
    %367 = vector.shape_cast %366 : vector<32xf32> to vector<1x1x32xf32>
    %368 = vector.broadcast %367 : vector<1x1x32xf32> to vector<16x16x32xf32>
    %369 = arith.mulf %364, %368 : vector<16x16x32xf32>
    %370 = arith.addf %363, %369 : vector<16x16x32xf32>
    %c2_387 = arith.constant 2 : index
    %c1_388 = arith.constant 1 : index
    %c0_389 = arith.constant 0 : index
    %371 = vector.load %arg17[%c2_387, %c1_388, %c0_389] : memref<18x18x32xf32, #tpu.memory_space<vmem>>, vector<16x16x32xf32>
    %c7_390 = arith.constant 7 : index
    %c0_391 = arith.constant 0 : index
    %372 = vector.load %arg10[%c7_390, %c0_391] : memref<9x32xf32, #tpu.memory_space<vmem>>, vector<1x32xf32>
    %373 = vector.shape_cast %372 : vector<1x32xf32> to vector<32xf32>
    %374 = vector.shape_cast %373 : vector<32xf32> to vector<1x1x32xf32>
    %375 = vector.broadcast %374 : vector<1x1x32xf32> to vector<16x16x32xf32>
    %376 = arith.mulf %371, %375 : vector<16x16x32xf32>
    %377 = arith.addf %370, %376 : vector<16x16x32xf32>
    %c2_392 = arith.constant 2 : index
    %c2_393 = arith.constant 2 : index
    %c0_394 = arith.constant 0 : index
    %378 = vector.load %arg17[%c2_392, %c2_393, %c0_394] : memref<18x18x32xf32, #tpu.memory_space<vmem>>, vector<16x16x32xf32>
    %c8_395 = arith.constant 8 : index
    %c0_396 = arith.constant 0 : index
    %379 = vector.load %arg10[%c8_395, %c0_396] : memref<9x32xf32, #tpu.memory_space<vmem>>, vector<1x32xf32>
    %380 = vector.shape_cast %379 : vector<1x32xf32> to vector<32xf32>
    %381 = vector.shape_cast %380 : vector<32xf32> to vector<1x1x32xf32>
    %382 = vector.broadcast %381 : vector<1x1x32xf32> to vector<16x16x32xf32>
    %383 = arith.mulf %378, %382 : vector<16x16x32xf32>
    %384 = arith.addf %377, %383 : vector<16x16x32xf32>
    %cst_397 = arith.constant dense<0.000000e+00> : vector<16x16xf32>
    %385 = vector.multi_reduction <add>, %384, %cst_397 [2] : vector<16x16x32xf32> to vector<16x16xf32>
    %c0_398 = arith.constant 0 : index
    %c0_399 = arith.constant 0 : index
    %386 = vector.load %arg11[%c0_398, %c0_399] : memref<1x1xf32, #tpu.memory_space<vmem>>, vector<1x1xf32>
    %387 = vector.broadcast %386 : vector<1x1xf32> to vector<16x16xf32>
    %388 = arith.addf %385, %387 : vector<16x16xf32>
    %389 = vector.shape_cast %388 : vector<16x16xf32> to vector<1x1x16x16xf32>
    %c0_400 = arith.constant 0 : index
    %c0_401 = arith.constant 0 : index
    %c0_402 = arith.constant 0 : index
    %c0_403 = arith.constant 0 : index
    %390 = vector.load %arg12[%c0_400, %c0_401, %c0_402, %c0_403] : memref<1x1x16x16xf32, #tpu.memory_space<vmem>>, vector<1x1x16x16xf32>
    tpu.vector_store %arg12[%c0_400, %c0_401, %c0_402, %c0_403], %389 {strides = array<i32>} : memref<1x1x16x16xf32, #tpu.memory_space<vmem>>, vector<1x1x16x16xf32>,
    return
  }
  func.func @transform_0(%arg0: i32) -> (i32, i32, i32, i32) {
    %c0_i32 = arith.constant 0 : i32
    %c0_i32_0 = arith.constant 0 : i32
    %c0_i32_1 = arith.constant 0 : i32
    %c0_i32_2 = arith.constant 0 : i32
    return %arg0, %c0_i32, %c0_i32_0, %c0_i32_1 : i32, i32, i32, i32
  }
  func.func @transform_1(%arg0: i32) -> (i32, i32, i32) {
    %c0_i32 = arith.constant 0 : i32
    %c0_i32_0 = arith.constant 0 : i32
    %c0_i32_1 = arith.constant 0 : i32
    %c0_i32_2 = arith.constant 0 : i32
    return %c0_i32, %c0_i32_0, %c0_i32_1 : i32, i32, i32
  }
  func.func @transform_2(%arg0: i32) -> (i32, i32) {
    %c0_i32 = arith.constant 0 : i32
    %c0_i32_0 = arith.constant 0 : i32
    %c0_i32_1 = arith.constant 0 : i32
    return %c0_i32, %c0_i32_0 : i32, i32
  }
  func.func @transform_3(%arg0: i32) -> (i32, i32, i32) {
    %c0_i32 = arith.constant 0 : i32
    %c0_i32_0 = arith.constant 0 : i32
    %c0_i32_1 = arith.constant 0 : i32
    %c0_i32_2 = arith.constant 0 : i32
    return %c0_i32, %c0_i32_0, %c0_i32_1 : i32, i32, i32
  }
  func.func @transform_4(%arg0: i32) -> (i32, i32) {
    %c0_i32 = arith.constant 0 : i32
    %c0_i32_0 = arith.constant 0 : i32
    %c0_i32_1 = arith.constant 0 : i32
    return %c0_i32, %c0_i32_0 : i32, i32
  }
  func.func @transform_5(%arg0: i32) -> (i32, i32, i32) {
    %c0_i32 = arith.constant 0 : i32
    %c0_i32_0 = arith.constant 0 : i32
    %c0_i32_1 = arith.constant 0 : i32
    %c0_i32_2 = arith.constant 0 : i32
    return %c0_i32, %c0_i32_0, %c0_i32_1 : i32, i32, i32
  }
  func.func @transform_6(%arg0: i32) -> (i32, i32) {
    %c0_i32 = arith.constant 0 : i32
    %c0_i32_0 = arith.constant 0 : i32
    %c0_i32_1 = arith.constant 0 : i32
    return %c0_i32, %c0_i32_0 : i32, i32
  }
  func.func @transform_7(%arg0: i32) -> (i32, i32, i32) {
    %c0_i32 = arith.constant 0 : i32
    %c0_i32_0 = arith.constant 0 : i32
    %c0_i32_1 = arith.constant 0 : i32
    %c0_i32_2 = arith.constant 0 : i32
    return %c0_i32, %c0_i32_0, %c0_i32_1 : i32, i32, i32
  }
  func.func @transform_8(%arg0: i32) -> (i32, i32) {
    %c0_i32 = arith.constant 0 : i32
    %c0_i32_0 = arith.constant 0 : i32
    %c0_i32_1 = arith.constant 0 : i32
    return %c0_i32, %c0_i32_0 : i32, i32
  }
  func.func @transform_9(%arg0: i32) -> (i32, i32) {
    %c0_i32 = arith.constant 0 : i32
    %c0_i32_0 = arith.constant 0 : i32
    %c0_i32_1 = arith.constant 0 : i32
    return %c0_i32, %c0_i32_0 : i32, i32
  }
  func.func @transform_10(%arg0: i32) -> (i32, i32) {
    %c0_i32 = arith.constant 0 : i32
    %c0_i32_0 = arith.constant 0 : i32
    %c0_i32_1 = arith.constant 0 : i32
    return %c0_i32, %c0_i32_0 : i32, i32
  }
  func.func @transform_11(%arg0: i32) -> (i32, i32, i32, i32) {
    %c0_i32 = arith.constant 0 : i32
    %c0_i32_0 = arith.constant 0 : i32
    %c0_i32_1 = arith.constant 0 : i32
    %c0_i32_2 = arith.constant 0 : i32
    return %arg0, %c0_i32, %c0_i32_0, %c0_i32_1 : i32, i32, i32, i32
  }
}

</mosaic_0001>

<bundles_post_ra>
// kernel: neural_areawise_net.1
= control target key start
LH: loop header
LB: loop body
LE: loop exit
PB: predicated region body
PF: predicated region fallthrough
CT: control target
= control target key end

     0   :  { %s26234_s0 = inlined_call_operand.vmem [shape: f32[2,16,16,1], index: 0, kind: input, shape index: {}]   ;;  %s26235_s1 = inlined_call_operand.vmem [shape: f32[9,1,64], index: 1, kind: input, shape index: {}]   ;;  %s26236_s2 = inlined_call_operand.vmem [shape: f32[1,64], index: 2, kind: input, shape index: {}]   ;;  %s26237_s3 = inlined_call_operand.vmem [shape: f32[9,64,64], index: 3, kind: input, shape index: {}]   ;;  %s26238_s4 = inlined_call_operand.vmem [shape: f32[1,64], index: 4, kind: input, shape index: {}]   ;;  %s26239_s5 = inlined_call_operand.vmem [shape: f32[9,64,32], index: 5, kind: input, shape index: {}]   ;;  %s26240_s6 = inlined_call_operand.vmem [shape: f32[1,32], index: 6, kind: input, shape index: {}]   ;;  %s26241_s7 = inlined_call_operand.vmem [shape: f32[9,32,32], index: 7, kind: input, shape index: {}]   ;;  %s26242_s8 = inlined_call_operand.vmem [shape: f32[1,32], index: 8, kind: input, shape index: {}]   ;;  %s26243_s9 = inlined_call_operand.vmem [shape: f32[9,32], index: 9, kind: input, shape index: {}]   ;;  %s26244_s10 = inlined_call_operand.<no memory space> [shape: f32[1,1], index: 10, kind: input, shape index: {}]   ;;  %s26245_s11 = inlined_call_operand.hbm [shape: f32[2,1,16,16], index: 11, kind: output, shape index: {}]  }
   0x1   :  { %v16_v0 = vstv %s26244_s10 }
   0x2   :  { %17 = vst [vmem:[#allocation7] sm:$0x1] %v16_v0 }
   0x3   :  { %18 = vsyncpa [#allocation9], 0 }
   0x4   :  { %20 = vsyncpa [#allocation9 + $0x1], 0  ;;  %s20555_s19 = smov 0   ;;  %s20557_s20 = smov 0  }
   0x5   :  { %s20559_s21 = smov 0   ;;  %s20561_s22 = smov 0  }
   0x6 LB: > { %s20576_s10 = sadd.s32 4294967295, %s20485_s22   ;;  %s15444_s23 = sadd.s32 4294967294, %s20485_s22   ;;  %s20485_s22 = sphi %s20561_s22, %s26589_s22   ;;  %s20481_s21 = sphi %s20559_s21, %s26588_s21   ;;  %s20477_s20 = sphi %s20557_s20, %s26587_s20   ;;  %s20473_s19 = sphi %s20555_s19, %s26586_s19  }
   0x7   : > { %s20580_s24 = sadd.s32 1, %s20485_s22   ;;  %s269_s25 = sadd.s32 1, %s20481_s21 }
   0x8   : > { %s266_s26 = ssub.s32 %s20485_s22, %s20580_s24  ;;  %p279_p0 = scmp.ne.s32.totalorder %s20481_s21, %s20477_s20 }
   0x9   : > { %p267_p1 = scmp.eq.s32.totalorder %s266_s26, 0  ;;  %p280_p2 = scmp.eq.s32.totalorder %s20576_s10, 1 }
   0xa   : > { %p285_p3 = scmp.ne.s32.totalorder %s20477_s20, %s20473_s19  ;;  %p286_p4 = scmp.eq.s32.totalorder %s15444_s23, 1 }
   0xb   : > { %s20591_s27 = scalar_select %p267_p1, %s20481_s21, %s269_s25  }
   0xc   : > { %p20593_p5 = por %p280_p2, %p279_p0  ;;  %p20597_p6 = por %p286_p4, %p285_p3 }
   0xd   : > { %p15447_p7 = scmp.ge.s32.totalorder %s20485_s22, 1  ;;  %p342_p8 = scmp.lt.s32.totalorder %s20485_s22, 3 }
   0xf   : > { %p343_p9 = pnand %p15447_p7, %p342_p8 }
  0x11   : > { %346 = sbr.rel (%p343_p9) target bundleno = 2946 (0xb82), region = 64 }
  0x18   : > { %vm387_vm0 = vcmask 7168   ;;  %vm390_vm1 = vcmask 1024   ;;  %p382_p10 = scmp.lt.s32.totalorder %s20576_s10, 1  ;;  %v20487_v1 = vmov 0   ;;  %v26246_v2 = vmov 0.0   ;;  %v15469_v40 = vld [vmem:[%s26237_s3 + $0x40] sm:$0xff] }
  0x19   : > { %20393 = vset.pattern.permute.xlu1 %v20487_v1  ;;  %20392 = vset.pattern.permute.xlu0 %v20487_v1  ;;  %389 = vst.msk [vmem:[#allocation2 + $0x8] sm:$0xff] %vm387_vm0, %v26246_v2  ;;  %388 = vst.msk [vmem:[#allocation2] sm:$0xff] %vm387_vm0, %v26246_v2  ;;  %vm397_vm2 = vcmask 0   ;;  %v15470_v41 = vld [vmem:[%s26237_s3 + $0x48] sm:$0xff]  ;;  %vm430_vm3 = vcmask 523264   ;;  %v15471_v44 = vld [vmem:[%s26237_s3 + $0x50] sm:$0xff] }
  0x1a   : > { %393 = vst.msk [vmem:[#allocation2 + $0x198] sm:$0xff] %vm387_vm0, %v26246_v2  ;;  %394 = vst.msk [vmem:[#allocation2 + $0x1a0] sm:$0xff] %vm387_vm0, %v26246_v2  ;;  %s20615_s30 = scalar_select %p382_p10, %s20576_s10, 1  ;;  %v19213_v42 = vpack.c.bf16 %v15470_v41, %v15469_v40  ;;  %v15472_v45 = vld [vmem:[%s26237_s3 + $0x58] sm:$0xff]  ;;  %v15473_v47 = vld [vmem:[%s26237_s3 + $0x60] sm:$0xff]  ;;  %vm433_vm4 = vcmask 517120  }
  0x1b   : > { %391 = vst.msk [vmem:[#allocation2 + $0x10] sm:$0x3] %vm390_vm1, %v26246_v2  ;;  %395 = vst.msk [vmem:[#allocation2 + $0x1a8] sm:$0x3] %vm390_vm1, %v26246_v2  ;;  %v19217_v46 = vpack.c.bf16 %v15472_v45, %v15471_v44  ;;  %v15474_v48 = vld [vmem:[%s26237_s3 + $0x68] sm:$0xff]  ;;  %v15621_v50 = vld [vmem:[%s26237_s3 + $0x100] sm:$0xff] }
  0x1c   : > { %398 = vst.msk [vmem:[#allocation2 + $0x18] sm:$0x1] %vm397_vm2, %v26246_v2  ;;  %399 = vst.msk [vmem:[#allocation2 + $0x30] sm:$0x1] %vm397_vm2, %v26246_v2  ;;  %s16511_s12 = sshll.u32 %s20615_s30, 8  ;;  %19214 = vmatprep.subr.bf16.mxu1 %v19213_v42  ;;  %v19221_v49 = vpack.c.bf16 %v15474_v48, %v15473_v47  ;;  %v15622_v51 = vld [vmem:[%s26237_s3 + $0x108] sm:$0xff] }
  0x1d   : > { %400 = vst.msk [vmem:[#allocation2 + $0x48] sm:$0x1] %vm397_vm2, %v26246_v2  ;;  %401 = vst.msk [vmem:[#allocation2 + $0x60] sm:$0x1] %vm397_vm2, %v26246_v2  ;;  %s20685_s15 = scalar_lea.vmem %s26234_s0, %s16511_s12  ;;  %19216 = vmatpush3.bf16.msra.mxu1 %v19213_v42  ;;  %v20769_v52 = vpack.c.bf16 %v15622_v51, %v15621_v50  ;;  %v15475_v55 = vld [vmem:[%s26237_s3 + $0x70] sm:$0xff]  ;;  %v15476_v56 = vld [vmem:[%s26237_s3 + $0x78] sm:$0xff] }
  0x1e   : > { %402 = vst.msk [vmem:[#allocation2 + $0x78] sm:$0x1] %vm397_vm2, %v26246_v2  ;;  %403 = vst.msk [vmem:[#allocation2 + $0x90] sm:$0x1] %vm397_vm2, %v26246_v2  ;;  %v596_v3 = vld [vmem:[%s20685_s15] sm:$0xff]  ;;  %v597_v4 = vld [vmem:[%s20685_s15 + $0x8] sm:$0xff]  ;;  %19218 = vmatprep.subr.bf16.mxu1 %v19217_v46  ;;  %v20787_v57 = vpack.c.bf16 %v15476_v56, %v15475_v55 }
  0x1f   : > { %404 = vst.msk [vmem:[#allocation2 + $0xa8] sm:$0x1] %vm397_vm2, %v26246_v2  ;;  %405 = vst.msk [vmem:[#allocation2 + $0xc0] sm:$0x1] %vm397_vm2, %v26246_v2  ;;  %v598_v5 = vld [vmem:[%s20685_s15 + $0x10] sm:$0xff]  ;;  %v599_v6 = vld [vmem:[%s20685_s15 + $0x18] sm:$0xff]  ;;  %19278 = vmatprep.subr.bf16.mxu0 %v20769_v52 }
  0x20   : > { %406 = vst.msk [vmem:[#allocation2 + $0xd8] sm:$0x1] %vm397_vm2, %v26246_v2  ;;  %407 = vst.msk [vmem:[#allocation2 + $0xf0] sm:$0x1] %vm397_vm2, %v26246_v2  ;;  %v600_v7 = vld [vmem:[%s20685_s15 + $0x20] sm:$0xff]  ;;  %v601_v8 = vld [vmem:[%s20685_s15 + $0x28] sm:$0xff]  ;;  %19280 = vmatpush3.bf16.msra.mxu0 %v20769_v52 }
  0x21   : > { %408 = vst.msk [vmem:[#allocation2 + $0x108] sm:$0x1] %vm397_vm2, %v26246_v2  ;;  %409 = vst.msk [vmem:[#allocation2 + $0x120] sm:$0x1] %vm397_vm2, %v26246_v2  ;;  %v661_v9 = vld [vmem:[#allocation2 + $0x8] sm:$0xff]  ;;  %v660_v10 = vld [vmem:[#allocation2] sm:$0xff]  ;;  %19220 = vmatpush3.bf16.msra.mxu1 %v19217_v46 }
  0x22   : > { %410 = vst.msk [vmem:[#allocation2 + $0x138] sm:$0x1] %vm397_vm2, %v26246_v2  ;;  %411 = vst.msk [vmem:[#allocation2 + $0x150] sm:$0x1] %vm397_vm2, %v26246_v2  ;;  %700 = vperm.xlu1 %20393, %v661_v9   ;;  %695 = vperm.xlu0 %20392, %v660_v10   ;;  %v924_v11 = vld [vmem:[#allocation2 + $0x9] sm:$0xff]  ;;  %v923_v12 = vld [vmem:[#allocation2 + $0x1] sm:$0xff] }
  0x23   : > { %412 = vst.msk [vmem:[#allocation2 + $0x168] sm:$0x1] %vm397_vm2, %v26246_v2  ;;  %413 = vst.msk [vmem:[#allocation2 + $0x180] sm:$0x1] %vm397_vm2, %v26246_v2  ;;  %v602_v13 = vld [vmem:[%s20685_s15 + $0x30] sm:$0xff]  ;;  %v603_v14 = vld [vmem:[%s20685_s15 + $0x38] sm:$0xff]  ;;  %19222 = vmatprep.subr.bf16.mxu1 %v19221_v49 }
  0x24   : > { %414 = vst.msk [vmem:[#allocation2 + $0x29] sm:$0x1] %vm397_vm2, %v26246_v2  ;;  %415 = vst.msk [vmem:[#allocation2 + $0x41] sm:$0x1] %vm397_vm2, %v26246_v2  ;;  %v604_v15 = vld [vmem:[%s20685_s15 + $0x40] sm:$0xff]  ;;  %v605_v16 = vld [vmem:[%s20685_s15 + $0x48] sm:$0xff] }
  0x25   : > { %416 = vst.msk [vmem:[#allocation2 + $0x59] sm:$0x1] %vm397_vm2, %v26246_v2  ;;  %417 = vst.msk [vmem:[#allocation2 + $0x71] sm:$0x1] %vm397_vm2, %v26246_v2  ;;  %v1188_v17 = vld [vmem:[#allocation2 + $0xa] sm:$0xff]  ;;  %v1187_v18 = vld [vmem:[#allocation2 + $0x2] sm:$0xff]  ;;  %19224 = vmatpush3.bf16.msra.mxu1 %v19221_v49 }
  0x26   : > { %418 = vst.msk [vmem:[#allocation2 + $0x89] sm:$0x1] %vm397_vm2, %v26246_v2  ;;  %419 = vst.msk [vmem:[#allocation2 + $0xa1] sm:$0x1] %vm397_vm2, %v26246_v2  ;;  %964 = vperm.xlu1 %20393, %v924_v11   ;;  %959 = vperm.xlu0 %20392, %v923_v12   ;;  %v606_v27 = vld [vmem:[%s20685_s15 + $0x50] sm:$0xff]  ;;  %v607_v30 = vld [vmem:[%s20685_s15 + $0x58] sm:$0xff] }
  0x27   : > { %420 = vst.msk [vmem:[#allocation2 + $0xb9] sm:$0x1] %vm397_vm2, %v26246_v2  ;;  %421 = vst.msk [vmem:[#allocation2 + $0xd1] sm:$0x1] %vm397_vm2, %v26246_v2  ;;  %v608_v36 = vld [vmem:[%s20685_s15 + $0x60] sm:$0xff]  ;;  %v609_v38 = vld [vmem:[%s20685_s15 + $0x68] sm:$0xff]  ;;  %19226 = vmatprep.subr.bf16.mxu1 %v20787_v57 }
  0x28   : > { %422 = vst.msk [vmem:[#allocation2 + $0xe9] sm:$0x1] %vm397_vm2, %v26246_v2  ;;  %423 = vst.msk [vmem:[#allocation2 + $0x101] sm:$0x1] %vm397_vm2, %v26246_v2  ;;  %vm440_vm5 = vcmask 516096   ;;  %v20792_v58 = vld [vmem:[%s26237_s3 + $0x110] sm:$0xff] }
  0x29   : > { %424 = vst.msk [vmem:[#allocation2 + $0x119] sm:$0x1] %vm397_vm2, %v26246_v2  ;;  %425 = vst.msk [vmem:[#allocation2 + $0x131] sm:$0x1] %vm397_vm2, %v26246_v2  ;;  %v20797_v59 = vld [vmem:[%s26237_s3 + $0x118] sm:$0xff]  ;;  %19228 = vmatpush3.bf16.msra.mxu1 %v20787_v57  ;;  %v15625_v62 = vld [vmem:[%s26237_s3 + $0x120] sm:$0xff] }
  0x2a   : > { %426 = vst.msk [vmem:[#allocation2 + $0x149] sm:$0x1] %vm397_vm2, %v26246_v2  ;;  %427 = vst.msk [vmem:[#allocation2 + $0x161] sm:$0x1] %vm397_vm2, %v26246_v2  ;;  %1228 = vperm.xlu1 %20393, %v1188_v17   ;;  %1223 = vperm.xlu0 %20392, %v1187_v18   ;;  %v20929_v60 = vpack.c.bf16 %v20797_v59, %v20792_v58  ;;  %v15626_v63 = vld [vmem:[%s26237_s3 + $0x128] sm:$0xff]  ;;  %v611_v9 = vld [vmem:[%s20685_s15 + $0x78] sm:$0xff] }
  0x2b   : > { %428 = vst.msk [vmem:[#allocation2 + $0x179] sm:$0x1] %vm397_vm2, %v26246_v2  ;;  %429 = vst.msk [vmem:[#allocation2 + $0x191] sm:$0x1] %vm397_vm2, %v26246_v2  ;;  %v20944_v1 = vpack.c.bf16 %v15626_v63, %v15625_v62  ;;  %v614_v55 = vld [vmem:[%s20685_s15 + $0x90] sm:$0xff]  ;;  %v615_v62 = vld [vmem:[%s20685_s15 + $0x98] sm:$0xff] }
  0x2c   : > { %628 = vst.msk [vmem:[#allocation2 + $0x19] sm:$0xff] %vm387_vm0, %v596_v3  ;;  %629 = vst.msk [vmem:[#allocation2 + $0x21] sm:$0xff] %vm387_vm0, %v597_v4  ;;  %19282 = vmatprep.subr.bf16.mxu0 %v20929_v60  ;;  %v15627_v4 = vld [vmem:[%s26237_s3 + $0x130] sm:$0xff]  ;;  %v21064_v63 = vld [vmem:[%s26235_s1 + $0x1] ss:$0 sm:$0xff]  ;;  %s379_s12 = sand.u32 1, %s20477_s20  }
  0x2d   : > { %630 = vst.msk [vmem:[#allocation2 + $0x31] sm:$0xff] %vm387_vm0, %v598_v5  ;;  %631 = vst.msk [vmem:[#allocation2 + $0x39] sm:$0xff] %vm387_vm0, %v599_v6  ;;  %19284 = vmatpush3.bf16.msra.mxu0 %v20929_v60  ;;  %v15628_v5 = vld [vmem:[%s26237_s3 + $0x138] sm:$0xff]  ;;  %s26124_s13 = sshll.u32 %s379_s12, 4  ;;  %s16512_s14 = sshll.u32 %s20576_s10, 8 }
  0x2e   : > { %632 = vst.msk [vmem:[#allocation2 + $0x49] sm:$0xff] %vm387_vm0, %v600_v7  ;;  %633 = vst.msk [vmem:[#allocation2 + $0x51] sm:$0xff] %vm387_vm0, %v601_v8  ;;  %19286 = vmatprep.subr.bf16.mxu0 %v20944_v1  ;;  %v20957_v6 = vpack.c.bf16 %v15628_v5, %v15627_v4  ;;  %v610_v7 = vld [vmem:[%s20685_s15 + $0x70] sm:$0xff]  ;;  %v21076_v4 = vld [vmem:[%s26235_s1 + $0x2] ss:$0 sm:$0xff]  ;;  %s381_s16 = scalar_lea.vmem [#allocation8], %s26124_s13  ;;  %s26179_s18 = scalar_lea.hbm %s26245_s11, %s16512_s14 }
  0x2f   : > { %634 = vst.msk [vmem:[#allocation2 + $0x61] sm:$0xff] %vm387_vm0, %v602_v13  ;;  %635 = vst.msk [vmem:[#allocation2 + $0x69] sm:$0xff] %vm387_vm0, %v603_v14  ;;  %s15382_s17 = sshll.u32 %s381_s16, 4  ;;  %s26193_s23 = scalar_lea.sflag [#allocation9], %s379_s12  ;;  %s26181_s17 = int_to_ptr.vmem [resolvable:$true] %s15382_s17 }
  0x30   : > { %636 = vst.msk [vmem:[#allocation2 + $0x79] sm:$0xff] %vm387_vm0, %v604_v15  ;;  %637 = vst.msk [vmem:[#allocation2 + $0x81] sm:$0xff] %vm387_vm0, %v605_v16  ;;  %s20423_s25 = scalar_lea.vmem %s26181_s17, 256  ;;  %s20489_s26 = smov [#allocation8]  }
  0x31   : > { %638 = vst.msk [vmem:[#allocation2 + $0x91] sm:$0xff] %vm387_vm0, %v606_v27  ;;  %639 = vst.msk [vmem:[#allocation2 + $0x99] sm:$0xff] %vm387_vm0, %v607_v30  ;;  %19288 = vmatpush3.bf16.msra.mxu0 %v20944_v1  ;;  %p20424_p11 = scmp.ne.s32.totalorder %s26181_s17, %s20423_s25  ;;  %s20427_s30 = sshll.u32 %s20489_s26, 4  ;;  %s20428_s30 = int_to_ptr.vmem [resolvable:$false] %s20427_s30 }
  0x32   : > { %640 = vst.msk [vmem:[#allocation2 + $0xa9] sm:$0xff] %vm387_vm0, %v608_v36  ;;  %641 = vst.msk [vmem:[#allocation2 + $0xb1] sm:$0xff] %vm387_vm0, %v609_v38  ;;  %19290 = vmatprep.subr.bf16.mxu0 %v20957_v6  ;;  %s20429_s13 = scalar_lea.vmem %s20428_s30, 512  ;;  %p20430_p0 = scmp.lt.s32.totalorder %s26181_s17, %s20428_s30 }
  0x33   : > { %v925_v19 = vld [vmem:[#allocation2 + $0x19] sm:$0xff]  ;;  %v926_v22 = vld [vmem:[#allocation2 + $0x21] sm:$0xff]  ;;  %431 = vst.msk [vmem:[#allocation3] sm:$0xff] %vm430_vm3, %v26246_v2  ;;  %432 = vst.msk [vmem:[#allocation3 + $0x8] sm:$0xff] %vm430_vm3, %v26246_v2  ;;  %p20425_p12 = pnand %p20424_p11, %p20593_p5  ;;  %p20431_p1 = scmp.lt.s32.totalorder %s20429_s13, %s20423_s25 }
  0x34   : > { %v662_v20 = vld [vmem:[#allocation2 + $0x18] sm:$0xff]  ;;  %969 = vperm.xlu1 %20393, %v925_v19   ;;  %v663_v21 = vld [vmem:[#allocation2 + $0x20] sm:$0xff]  ;;  %v664_v26 = vld [vmem:[#allocation2 + $0x30] sm:$0xff]  ;;  %436 = vst.msk [vmem:[#allocation3 + $0x198] sm:$0xff] %vm430_vm3, %v26246_v2 }
  0x35   : > { %705 = vperm.xlu0 %20392, %v662_v20   ;;  %v1189_v23 = vld [vmem:[#allocation2 + $0x1a] sm:$0xff]  ;;  %v1190_v24 = vld [vmem:[#allocation2 + $0x22] sm:$0xff]  ;;  %v927_v25 = vld [vmem:[#allocation2 + $0x31] sm:$0xff]  ;;  %437 = vst.msk [vmem:[#allocation3 + $0x1a0] sm:$0xff] %vm430_vm3, %v26246_v2  ;;  %19292 = vmatpush3.bf16.msra.mxu0 %v20957_v6  ;;  %p20426_p13 = pneg %p20425_p12  ;;  %p20432_p2 = por %p20431_p1, %p20430_p0 }
  0x36   : > { %v928_v28 = vld [vmem:[#allocation2 + $0x39] sm:$0xff]  ;;  %v20711_v33 = vld [vmem:[#allocation2 + $0x49] sm:$0xff]  ;;  %v20716_v37 = vld [vmem:[#allocation2 + $0x51] sm:$0xff]  ;;  %473 = vst.msk [vmem:[#allocation4] sm:$0xff] %vm430_vm3, %v26246_v2 }
  0x37   : > { %v665_v29 = vld [vmem:[#allocation2 + $0x38] sm:$0xff]  ;;  %v666_v34 = vld [vmem:[#allocation2 + $0x48] sm:$0xff]  ;;  %v667_v35 = vld [vmem:[#allocation2 + $0x50] sm:$0xff]  ;;  %474 = vst.msk [vmem:[#allocation4 + $0x8] sm:$0xff] %vm430_vm3, %v26246_v2  ;;  %p20433_p3 = pnand %p20432_p2, %p20426_p13 }
  0x38   : > { %710 = vperm.xlu1 %20393, %v663_v21   ;;  %v1191_v31 = vld [vmem:[#allocation2 + $0x32] sm:$0xff]  ;;  %v1192_v32 = vld [vmem:[#allocation2 + $0x3a] sm:$0xff]  ;;  %v20721_v39 = vld [vmem:[#allocation2 + $0x4a] sm:$0xff]  ;;  %477 = vst.msk [vmem:[#allocation4 + $0x198] sm:$0xff] %vm430_vm3, %v26246_v2 }
  0x39   : > { %1487 = vperm.xlu0 %20392, %v662_v20   ;;  %478 = vst.msk [vmem:[#allocation4 + $0x1a0] sm:$0xff] %vm430_vm3, %v26246_v2  ;;  %v20747_v43 = vld [vmem:[#allocation2 + $0x52] sm:$0xff]  ;;  %26395 = vst [vmem:[#allocation11_spill] sm:$0xff] %v20769_v52  ;;  %v20771_v53 = vld [vmem:[#allocation2 + $0x61] sm:$0xff] }
  0x3a   : > { %434 = vst.msk [vmem:[#allocation3 + $0x10] sm:$0x3] %vm433_vm4, %v26246_v2  ;;  %438 = vst.msk [vmem:[#allocation3 + $0x1a8] sm:$0x3] %vm433_vm4, %v26246_v2  ;;  %v20777_v54 = vld [vmem:[#allocation2 + $0x60] sm:$0xff]  ;;  %v3243_v61 = vld [vmem:[#allocation3 + $0x1] sm:$0xff] }
  0x3b   : > { %475 = vst.msk [vmem:[#allocation4 + $0x10] sm:$0x3] %vm433_vm4, %v26246_v2  ;;  %479 = vst.msk [vmem:[#allocation4 + $0x1a8] sm:$0x3] %vm433_vm4, %v26246_v2  ;;  %17573 = vmatprep.mubr.msk.f32.mxu1 %vm430_vm3, %v3243_v61  ;;  %v669_v3 = vld [vmem:[#allocation2 + $0x68] sm:$0xff]  ;;  %v933_v14 = vld [vmem:[#allocation2 + $0x79] sm:$0xff] }
  0x3c   : > { %1492 = vperm.xlu1 %20393, %v663_v21   ;;  %457 = vst.msk [vmem:[#allocation3 + $0x29] sm:$0x1] %vm440_vm5, %v26246_v2  ;;  %441 = vst.msk [vmem:[#allocation3 + $0x18] sm:$0x1] %vm440_vm5, %v26246_v2  ;;  %v932_v8 = vld [vmem:[#allocation2 + $0x69] sm:$0xff]  ;;  %v670_v15 = vld [vmem:[#allocation2 + $0x78] sm:$0xff] }
  0x3d   : > { %974 = vperm.xlu0 %20392, %v926_v22   ;;  %442 = vst.msk [vmem:[#allocation3 + $0x30] sm:$0x1] %vm440_vm5, %v26246_v2  ;;  %443 = vst.msk [vmem:[#allocation3 + $0x48] sm:$0x1] %vm440_vm5, %v26246_v2  ;;  %v1195_v10 = vld [vmem:[#allocation2 + $0x62] sm:$0xff]  ;;  %v1196_v11 = vld [vmem:[#allocation2 + $0x6a] sm:$0xff] }
  0x3e   : > { %444 = vst.msk [vmem:[#allocation3 + $0x60] sm:$0x1] %vm440_vm5, %v26246_v2  ;;  %445 = vst.msk [vmem:[#allocation3 + $0x78] sm:$0x1] %vm440_vm5, %v26246_v2  ;;  %v671_v20 = vld [vmem:[#allocation2 + $0x80] sm:$0xff]  ;;  %v21020_v40 = vld [vmem:[#allocation2 + $0x91] sm:$0xff] }
  0x3f   : > { %446 = vst.msk [vmem:[#allocation3 + $0x90] sm:$0x1] %vm440_vm5, %v26246_v2  ;;  %447 = vst.msk [vmem:[#allocation3 + $0xa8] sm:$0x1] %vm440_vm5, %v26246_v2  ;;  %v672_v41 = vld [vmem:[#allocation2 + $0x90] sm:$0xff]  ;;  %v673_v46 = vld [vmem:[#allocation2 + $0x98] sm:$0xff] }
  0x40   : > { %1751 = vperm.xlu1 %20393, %v925_v19   ;;  %448 = vst.msk [vmem:[#allocation3 + $0xc0] sm:$0x1] %vm440_vm5, %v26246_v2  ;;  %449 = vst.msk [vmem:[#allocation3 + $0xd8] sm:$0x1] %vm440_vm5, %v26246_v2  ;;  %v21035_v49 = vld [vmem:[#allocation2 + $0x99] sm:$0xff] }
  0x41   : > { %1233 = vperm.xlu0 %20392, %v1189_v23   ;;  %450 = vst.msk [vmem:[#allocation3 + $0xf0] sm:$0x1] %vm440_vm5, %v26246_v2  ;;  %451 = vst.msk [vmem:[#allocation3 + $0x108] sm:$0x1] %vm440_vm5, %v26246_v2  ;;  %v3244_v0 = vld [vmem:[#allocation3 + $0x9] sm:$0xff] }
  0x42   : > { %452 = vst.msk [vmem:[#allocation3 + $0x120] sm:$0x1] %vm440_vm5, %v26246_v2  ;;  %453 = vst.msk [vmem:[#allocation3 + $0x138] sm:$0x1] %vm440_vm5, %v26246_v2  ;;  %17574 = vmatmul.mubr.msk.f32.vlgmr.msra.gmra.mrb[0].mxu1 %vm430_vm3, %v3244_v0  ;;  %v21047_v56 = vld [vmem:[#allocation2 + $0x92] sm:$0xff]  ;;  %v21066_v0 = vld [vmem:[#allocation2 + $0x9a] sm:$0xff] }
  0x43   : > { %454 = vst.msk [vmem:[#allocation3 + $0x150] sm:$0x1] %vm440_vm5, %v26246_v2  ;;  %455 = vst.msk [vmem:[#allocation3 + $0x168] sm:$0x1] %vm440_vm5, %v26246_v2 }
  0x44   : > { %1756 = vperm.xlu1 %20393, %v926_v22   ;;  %456 = vst.msk [vmem:[#allocation3 + $0x180] sm:$0x1] %vm440_vm5, %v26246_v2  ;;  %458 = vst.msk [vmem:[#allocation3 + $0x41] sm:$0x1] %vm440_vm5, %v26246_v2 }
  0x45   : > { %1238 = vperm.xlu0 %20392, %v1190_v24   ;;  %459 = vst.msk [vmem:[#allocation3 + $0x59] sm:$0x1] %vm440_vm5, %v26246_v2  ;;  %460 = vst.msk [vmem:[#allocation3 + $0x71] sm:$0x1] %vm440_vm5, %v26246_v2 }
  0x46   : > { %461 = vst.msk [vmem:[#allocation3 + $0x89] sm:$0x1] %vm440_vm5, %v26246_v2  ;;  %462 = vst.msk [vmem:[#allocation3 + $0xa1] sm:$0x1] %vm440_vm5, %v26246_v2 }
  0x47   : > { %463 = vst.msk [vmem:[#allocation3 + $0xb9] sm:$0x1] %vm440_vm5, %v26246_v2  ;;  %464 = vst.msk [vmem:[#allocation3 + $0xd1] sm:$0x1] %vm440_vm5, %v26246_v2 }
  0x48   : > { %979 = vperm.xlu1 %20393, %v927_v25   ;;  %465 = vst.msk [vmem:[#allocation3 + $0xe9] sm:$0x1] %vm440_vm5, %v26246_v2  ;;  %466 = vst.msk [vmem:[#allocation3 + $0x101] sm:$0x1] %vm440_vm5, %v26246_v2 }
  0x49   : > { %715 = vperm.xlu0 %20392, %v664_v26   ;;  %467 = vst.msk [vmem:[#allocation3 + $0x119] sm:$0x1] %vm440_vm5, %v26246_v2  ;;  %468 = vst.msk [vmem:[#allocation3 + $0x131] sm:$0x1] %vm440_vm5, %v26246_v2 }
  0x4a   : > { %469 = vst.msk [vmem:[#allocation3 + $0x149] sm:$0x1] %vm440_vm5, %v26246_v2  ;;  %470 = vst.msk [vmem:[#allocation3 + $0x161] sm:$0x1] %vm440_vm5, %v26246_v2 }
  0x4b   : > { %471 = vst.msk [vmem:[#allocation3 + $0x179] sm:$0x1] %vm440_vm5, %v26246_v2  ;;  %472 = vst.msk [vmem:[#allocation3 + $0x191] sm:$0x1] %vm440_vm5, %v26246_v2 }
  0x4c   : > { %2015 = vperm.xlu1 %20393, %v1189_v23   ;;  %481 = vst.msk [vmem:[#allocation4 + $0x18] sm:$0x1] %vm440_vm5, %v26246_v2  ;;  %482 = vst.msk [vmem:[#allocation4 + $0x30] sm:$0x1] %vm440_vm5, %v26246_v2  ;;  %v934_v23 = vld [vmem:[#allocation2 + $0x81] sm:$0xff] }
  0x4d   : > { %1497 = vperm.xlu0 %20392, %v664_v26   ;;  %483 = vst.msk [vmem:[#allocation4 + $0x48] sm:$0x1] %vm440_vm5, %v26246_v2  ;;  %484 = vst.msk [vmem:[#allocation4 + $0x60] sm:$0x1] %vm440_vm5, %v26246_v2 }
  0x4e   : > { %485 = vst.msk [vmem:[#allocation4 + $0x78] sm:$0x1] %vm440_vm5, %v26246_v2  ;;  %486 = vst.msk [vmem:[#allocation4 + $0x90] sm:$0x1] %vm440_vm5, %v26246_v2 }
  0x4f   : > { %487 = vst.msk [vmem:[#allocation4 + $0xa8] sm:$0x1] %vm440_vm5, %v26246_v2  ;;  %488 = vst.msk [vmem:[#allocation4 + $0xc0] sm:$0x1] %vm440_vm5, %v26246_v2 }
  0x50   : > { %984 = vperm.xlu1 %20393, %v928_v28   ;;  %489 = vst.msk [vmem:[#allocation4 + $0xd8] sm:$0x1] %vm440_vm5, %v26246_v2  ;;  %490 = vst.msk [vmem:[#allocation4 + $0xf0] sm:$0x1] %vm440_vm5, %v26246_v2 }
  0x51   : > { %720 = vperm.xlu0 %20392, %v665_v29   ;;  %491 = vst.msk [vmem:[#allocation4 + $0x108] sm:$0x1] %vm440_vm5, %v26246_v2  ;;  %492 = vst.msk [vmem:[#allocation4 + $0x120] sm:$0x1] %vm440_vm5, %v26246_v2 }
  0x52   : > { %493 = vst.msk [vmem:[#allocation4 + $0x138] sm:$0x1] %vm440_vm5, %v26246_v2  ;;  %494 = vst.msk [vmem:[#allocation4 + $0x150] sm:$0x1] %vm440_vm5, %v26246_v2 }
  0x53   : > { %495 = vst.msk [vmem:[#allocation4 + $0x168] sm:$0x1] %vm440_vm5, %v26246_v2  ;;  %496 = vst.msk [vmem:[#allocation4 + $0x180] sm:$0x1] %vm440_vm5, %v26246_v2 }
  0x54   : > { %2020 = vperm.xlu1 %20393, %v1190_v24   ;;  %497 = vst.msk [vmem:[#allocation4 + $0x29] sm:$0x1] %vm440_vm5, %v26246_v2  ;;  %498 = vst.msk [vmem:[#allocation4 + $0x41] sm:$0x1] %vm440_vm5, %v26246_v2 }
  0x55   : > { %1502 = vperm.xlu0 %20392, %v665_v29   ;;  %499 = vst.msk [vmem:[#allocation4 + $0x59] sm:$0x1] %vm440_vm5, %v26246_v2  ;;  %500 = vst.msk [vmem:[#allocation4 + $0x71] sm:$0x1] %vm440_vm5, %v26246_v2 }
  0x56   : > { %501 = vst.msk [vmem:[#allocation4 + $0x89] sm:$0x1] %vm440_vm5, %v26246_v2  ;;  %502 = vst.msk [vmem:[#allocation4 + $0xa1] sm:$0x1] %vm440_vm5, %v26246_v2 }
  0x57   : > { %503 = vst.msk [vmem:[#allocation4 + $0xb9] sm:$0x1] %vm440_vm5, %v26246_v2  ;;  %504 = vst.msk [vmem:[#allocation4 + $0xd1] sm:$0x1] %vm440_vm5, %v26246_v2 }
  0x58   : > { %1761 = vperm.xlu1 %20393, %v927_v25   ;;  %505 = vst.msk [vmem:[#allocation4 + $0xe9] sm:$0x1] %vm440_vm5, %v26246_v2  ;;  %506 = vst.msk [vmem:[#allocation4 + $0x101] sm:$0x1] %vm440_vm5, %v26246_v2 }
  0x59   : > { %1243 = vperm.xlu0 %20392, %v1191_v31   ;;  %507 = vst.msk [vmem:[#allocation4 + $0x119] sm:$0x1] %vm440_vm5, %v26246_v2  ;;  %508 = vst.msk [vmem:[#allocation4 + $0x131] sm:$0x1] %vm440_vm5, %v26246_v2 }
  0x5a   : > { %509 = vst.msk [vmem:[#allocation4 + $0x149] sm:$0x1] %vm440_vm5, %v26246_v2  ;;  %510 = vst.msk [vmem:[#allocation4 + $0x161] sm:$0x1] %vm440_vm5, %v26246_v2 }
  0x5b   : > { %511 = vst.msk [vmem:[#allocation4 + $0x179] sm:$0x1] %vm440_vm5, %v26246_v2  ;;  %512 = vst.msk [vmem:[#allocation4 + $0x191] sm:$0x1] %vm440_vm5, %v26246_v2 }
  0x5c   : > { %1248 = vperm.xlu1 %20393, %v1192_v32   ;;  %26396 = vst [vmem:[#allocation12_spill] sm:$0xff] %v20929_v60  ;;  %26397 = vst [vmem:[#allocation13_spill] sm:$0xff] %v20944_v1 }
  0x5d   : > { %2280 = vperm.xlu0 %20392, %v664_v26   ;;  %26398 = vst [vmem:[#allocation14_spill] sm:$0xff] %v20957_v6  ;;  %642 = vst.msk [vmem:[#allocation2 + $0xc1] sm:$0xff] %vm387_vm0, %v610_v7  ;;  %v612_v26 = vld [vmem:[%s20685_s15 + $0x80] sm:$0xff] }
  0x5e   : > { %643 = vst.msk [vmem:[#allocation2 + $0xc9] sm:$0xff] %vm387_vm0, %v611_v9  ;;  %644 = vst.msk [vmem:[#allocation2 + $0xd9] sm:$0xff] %vm387_vm0, %v612_v26  ;;  %v21087_v9 = vld [vmem:[%s26235_s1 + $0x3] ss:$0 sm:$0xff]  ;;  %v21112_v26 = vld [vmem:[#allocation2 + $0xa8] sm:$0xff] }
  0x5f   : > { %646 = vst.msk [vmem:[#allocation2 + $0xf1] sm:$0xff] %vm387_vm0, %v614_v55  ;;  %647 = vst.msk [vmem:[#allocation2 + $0xf9] sm:$0xff] %vm387_vm0, %v615_v62 }
  0x60   : > { %2285 = vperm.xlu1 %20393, %v665_v29   ;;  %v1197_v29 = vld [vmem:[#allocation2 + $0x7a] sm:$0xff] }
  0x61   : > { %1766 = vperm.xlu0 %20392, %v928_v28  }
  0x64   : > { %989 = vperm.xlu1 %20393, %v20711_v33  }
  0x65   : > { %725 = vperm.xlu0 %20392, %v666_v34  }
  0x68   : > { %2025 = vperm.xlu1 %20393, %v1191_v31  }
  0x69   : > { %1507 = vperm.xlu0 %20392, %v666_v34  }
  0x6c   : > { %730 = vperm.xlu1 %20393, %v667_v35  }
  0x6d   : > { %2544 = vperm.xlu0 %20392, %v927_v25  }
  0x70   : > { %1512 = vperm.xlu1 %20393, %v667_v35  }
  0x71   : > { %994 = vperm.xlu0 %20392, %v20716_v37  }
  0x74   : > { %2549 = vperm.xlu1 %20393, %v928_v28  }
  0x75   : > { %2030 = vperm.xlu0 %20392, %v1192_v32  }
  0x78   : > { %1771 = vperm.xlu1 %20393, %v20711_v33  }
  0x79   : > { %1253 = vperm.xlu0 %20392, %v20721_v39  }
  0x7c   : > { %2808 = vperm.xlu1 %20393, %v1191_v31  }
  0x7d   : > { %2290 = vperm.xlu0 %20392, %v666_v34  }
  0x80   : > { %1776 = vperm.xlu1 %20393, %v20716_v37  }
  0x81   : > { %1258 = vperm.xlu0 %20392, %v20747_v43  }
  0x84   : > { %2813 = vperm.xlu1 %20393, %v1192_v32   ;;  %v613_v32 = vld [vmem:[%s20685_s15 + $0x88] sm:$0xff] }
  0x85   : > { %2295 = vperm.xlu0 %20392, %v667_v35   ;;  %645 = vst.msk [vmem:[#allocation2 + $0xe1] sm:$0xff] %vm387_vm0, %v613_v32  ;;  %v21009_v35 = vld [vmem:[#allocation2 + $0x82] sm:$0xff] }
  0x88   : > { %999 = vperm.xlu1 %20393, %v20771_v53  }
  0x89   : > { %735 = vperm.xlu0 %20392, %v20777_v54  }
  0x8c   : > { %2035 = vperm.xlu1 %20393, %v20721_v39  }
  0x8d   : > { %1517 = vperm.xlu0 %20392, %v20777_v54  }
  0x90   : > { %740 = vperm.xlu1 %20393, %v669_v3  }
  0x91   : > { %2554 = vperm.xlu0 %20392, %v20711_v33  }
  0x94   : > { %1522 = vperm.xlu1 %20393, %v669_v3  }
  0x95   : > { %1004 = vperm.xlu0 %20392, %v932_v8  }
  0x98   : > { %2559 = vperm.xlu1 %20393, %v20716_v37  }
  0x99   : > { %2040 = vperm.xlu0 %20392, %v20747_v43  }
  0x9c   : > { %1781 = vperm.xlu1 %20393, %v20771_v53  }
  0x9d   : > { %1263 = vperm.xlu0 %20392, %v1195_v10  }
  0xa0   : > { %2818 = vperm.xlu1 %20393, %v20721_v39  }
  0xa1   : > { %2300 = vperm.xlu0 %20392, %v20777_v54   ;;  %v20971_v12 = vpop.permute.xlu1 %700  ;;  %v20973_v13 = vpop.permute.xlu0 %695 }
  0xa4   : > { %1786 = vperm.xlu1 %20393, %v932_v8  }
  0xa5   : > { %1268 = vperm.xlu0 %20392, %v1196_v11   ;;  %v20976_v16 = vpop.permute.xlu1 %964  ;;  %v20978_v17 = vpop.permute.xlu0 %959 }
  0xa8   : > { %2823 = vperm.xlu1 %20393, %v20747_v43  }
  0xa9   : > { %2305 = vperm.xlu0 %20392, %v669_v3   ;;  %v20980_v18 = vpop.permute.xlu1 %1228  ;;  %v20982_v19 = vpop.permute.xlu0 %1223  ;;  %v21071_v3 = vld [vmem:[%s26235_s1] ss:$0 sm:$0xff] }
  0xac   : > { %1009 = vperm.xlu1 %20393, %v933_v14  }
  0xad   : > { %745 = vperm.xlu0 %20392, %v670_v15  }
  0xb0   : > { %2045 = vperm.xlu1 %20393, %v1195_v10  }
  0xb1   : > { %1527 = vperm.xlu0 %20392, %v670_v15  }
  0xb3   : > { %v20984_v21 = vpop.permute.xlu1 %969 }
  0xb4   : > { %v20986_v22 = vpop.permute.xlu0 %705  ;;  %750 = vperm.xlu1 %20393, %v671_v20  }
  0xb5   : > { %2564 = vperm.xlu0 %20392, %v20771_v53  }
  0xb7   : > { %v20989_v24 = vpop.permute.xlu1 %710 }
  0xb8   : > { %v20991_v25 = vpop.permute.xlu0 %1487  ;;  %1532 = vperm.xlu1 %20393, %v671_v20  }
  0xb9   : > { %1014 = vperm.xlu0 %20392, %v934_v23  }
  0xbb   : > { %v20995_v27 = vpop.permute.xlu1 %1492 }
  0xbc   : > { %v20997_v28 = vpop.permute.xlu0 %974  ;;  %2569 = vperm.xlu1 %20393, %v932_v8   ;;  %v1123_v8 = vmul.f32 %v21064_v63, %v20978_v17 }
  0xbd   : > { %2050 = vperm.xlu0 %20392, %v1196_v11  }
  0xbf   : > { %v20999_v30 = vpop.permute.xlu1 %1751 }
  0xc0   : > { %v21001_v31 = vpop.permute.xlu0 %1233  ;;  %1791 = vperm.xlu1 %20393, %v933_v14  }
  0xc1   : > { %1273 = vperm.xlu0 %20392, %v1197_v29  }
  0xc3   : > { %v21005_v33 = vpop.permute.xlu1 %1756 }
  0xc4   : > { %v21007_v34 = vpop.permute.xlu0 %1238  ;;  %2828 = vperm.xlu1 %20393, %v1195_v10   ;;  %v859_v10 = vmul.f32 %v21071_v3, %v20973_v13  ;;  %v21108_v13 = vld [vmem:[%s26235_s1 + $0x5] ss:$0 sm:$0xff] }
  0xc5   : > { %2310 = vperm.xlu0 %20392, %v670_v15  }
  0xc7   : > { %v21011_v36 = vpop.permute.xlu1 %979 }
  0xc8   : > { %v21013_v37 = vpop.permute.xlu0 %715  ;;  %1796 = vperm.xlu1 %20393, %v934_v23  }
  0xc9   : > { %1278 = vperm.xlu0 %20392, %v21009_v35  }
  0xcb   : > { %v21016_v38 = vpop.permute.xlu1 %2015 }
  0xcc   : > { %v21018_v39 = vpop.permute.xlu0 %1497  ;;  %2833 = vperm.xlu1 %20393, %v1196_v11   ;;  %v1387_v11 = vmul.f32 %v21076_v4, %v20982_v19  ;;  %v21110_v19 = vld [vmem:[#allocation2 + $0xa9] sm:$0xff]  ;;  %v2179_v62 = vmul.f32 %v21108_v13, %v21016_v38  ;;  %v1652_v38 = vmul.f32 %v21087_v9, %v20995_v27 }
  0xcd   : > { %2315 = vperm.xlu0 %20392, %v671_v20   ;;  %v1155_v20 = vadd.f32 %v1123_v8, %v859_v10  ;;  %v21136_v8 = vld [vmem:[%s26235_s1 + $0x7] ss:$0 sm:$0xff] }
  0xcf   : > { %v21022_v42 = vpop.permute.xlu1 %984 }
  0xd0   : > { %v21024_v43 = vpop.permute.xlu0 %720  ;;  %1019 = vperm.xlu1 %20393, %v21020_v40  }
  0xd1   : > { %755 = vperm.xlu0 %20392, %v672_v41  }
  0xd3   : > { %v21027_v44 = vpop.permute.xlu1 %2020 }
  0xd4   : > { %v21029_v45 = vpop.permute.xlu0 %1502  ;;  %2055 = vperm.xlu1 %20393, %v1197_v29  }
  0xd5   : > { %1537 = vperm.xlu0 %20392, %v672_v41  }
  0xd7   : > { %v21031_v47 = vpop.permute.xlu1 %1761 }
  0xd8   : > { %v21033_v48 = vpop.permute.xlu0 %1243  ;;  %760 = vperm.xlu1 %20393, %v673_v46  }
  0xd9   : > { %2574 = vperm.xlu0 %20392, %v933_v14   ;;  %v21096_v14 = vld [vmem:[%s26235_s1 + $0x4] ss:$0 sm:$0xff] }
  0xda   : > { %v1915_v32 = vmul.f32 %v21096_v14, %v20999_v30  ;;  %v860_v30 = vmul.f32 %v21071_v3, %v20971_v12  ;;  %v1916_v27 = vmul.f32 %v21096_v14, %v21005_v33  ;;  %v21171_v33 = vld [vmem:[#allocation2 + $0xb1] sm:$0xff] }
  0xdb   : > { %v21037_v50 = vpop.permute.xlu1 %1248 }
  0xdc   : > { %v2281_v51 = vpop.permute.xlu0 %2280  ;;  %1542 = vperm.xlu1 %20393, %v673_v46  }
  0xdd   : > { %1024 = vperm.xlu0 %20392, %v21035_v49  }
  0xdf   : > { %v21040_v53 = vpop.permute.xlu1 %2285 }
  0xe0   : > { %v21042_v54 = vpop.permute.xlu0 %1766  ;;  %2579 = vperm.xlu1 %20393, %v934_v23   ;;  %v1651_v23 = vmul.f32 %v21087_v9, %v20991_v25  ;;  %v21121_v25 = vld [vmem:[%s26235_s1 + $0x6] ss:$0 sm:$0xff] }
  0xe1   : > { %2060 = vperm.xlu0 %20392, %v21009_v35  }
  0xe3   : > { %v21049_v57 = vpop.permute.xlu1 %989 }
  0xe4   : > { %v21051_v58 = vpop.permute.xlu0 %725  ;;  %1801 = vperm.xlu1 %20393, %v21020_v40  }
  0xe5   : > { %1283 = vperm.xlu0 %20392, %v21047_v56  }
  0xe7   : > { %v21055_v59 = vpop.permute.xlu1 %2025 }
  0xe8   : > { %v21057_v61 = vpop.permute.xlu0 %1507  ;;  %2838 = vperm.xlu1 %20393, %v1197_v29   ;;  %v1419_v29 = vadd.f32 %v1387_v11, %v1155_v20  ;;  %v2444_v11 = vmul.f32 %v21121_v25, %v2281_v51  ;;  %v21151_v51 = vld [vmem:[%s26235_s1 + $0x8] ss:$0 sm:$0xff] }
  0xe9   : > { %2320 = vperm.xlu0 %20392, %v672_v41   ;;  %v1124_v41 = vmul.f32 %v21064_v63, %v20976_v16  ;;  %v1388_v16 = vmul.f32 %v21076_v4, %v20980_v18 }
  0xea   : > { %v1683_v55 = vadd.f32 %v1651_v23, %v1419_v29 }
  0xeb   : > { %v21078_v5 = vpop.permute.xlu1 %730  ;;  %v1156_v20 = vadd.f32 %v1124_v41, %v860_v30 }
  0xec   : > { %v2545_v7 = vpop.permute.xlu0 %2544  ;;  %1806 = vperm.xlu1 %20393, %v21035_v49   ;;  %v1947_v10 = vadd.f32 %v1915_v32, %v1683_v55  ;;  %v21153_v32 = vld [vmem:[#allocation2 + $0xb0] sm:$0xff] }
  0xed   : > { %1288 = vperm.xlu0 %20392, %v21066_v0   ;;  %v2708_v18 = vmul.f32 %v21136_v8, %v2545_v7  ;;  %v1420_v2 = vadd.f32 %v1388_v16, %v1156_v20  ;;  %v616_v7 = vld [vmem:[%s20685_s15 + $0xa0] sm:$0xff] }
  0xee   : > { %v2211_v12 = vadd.f32 %v2179_v62, %v1947_v10  ;;  %v2180_v10 = vmul.f32 %v21108_v13, %v21027_v44  ;;  %648 = vst.msk [vmem:[#allocation2 + $0x109] sm:$0xff] %vm387_vm0, %v616_v7  ;;  %v2445_v44 = vmul.f32 %v21121_v25, %v21040_v53  ;;  %v617_v53 = vld [vmem:[%s20685_s15 + $0xa8] sm:$0xff] }
  0xef   : > { %v21098_v15 = vpop.permute.xlu1 %1512  ;;  %v1684_v55 = vadd.f32 %v1652_v38, %v1420_v2  ;;  %v21169_v2 = vld [vmem:[%s26236_s2] ss:$0 sm:$0xff]  ;;  %649 = vst.msk [vmem:[#allocation2 + $0x111] sm:$0xff] %vm387_vm0, %v617_v53  ;;  %v1125_v53 = vmul.f32 %v21064_v63, %v20984_v21 }
  0xf0   : > { %v21100_v17 = vpop.permute.xlu0 %994  ;;  %2843 = vperm.xlu1 %20393, %v21009_v35   ;;  %v2476_v41 = vadd.f32 %v2444_v11, %v2211_v12 }
  0xf1   : > { %2325 = vperm.xlu0 %20392, %v673_v46   ;;  %v1948_v11 = vadd.f32 %v1916_v27, %v1684_v55 }
  0xf2   : > { %v2740_v16 = vadd.f32 %v2708_v18, %v2476_v41 }
  0xf3   : > { %v2550_v35 = vpop.permute.xlu1 %2549 }
  0xf4   : > { %v21123_v46 = vpop.permute.xlu0 %2030  ;;  %1029 = vperm.xlu1 %20393, %v21110_v19   ;;  %v2709_v41 = vmul.f32 %v21136_v8, %v2550_v35  ;;  %v21191_v35 = vld [vmem:[#allocation2 + $0xaa] sm:$0xff] }
  0xf5   : > { %765 = vperm.xlu0 %20392, %v21112_v26   ;;  %v2182_v60 = vmul.f32 %v21108_v13, %v21123_v46 }
  0xf7   : > { %v21141_v23 = vpop.permute.xlu1 %1771 }
  0xf8   : > { %v21143_v29 = vpop.permute.xlu0 %1253  ;;  %2065 = vperm.xlu1 %20393, %v21047_v56  }
  0xf9   : > { %1547 = vperm.xlu0 %20392, %v21112_v26  }
  0xfb   : > { %v2809_v62 = vpop.permute.xlu1 %2808 }
  0xfc   : > { %v21157_v30 = vpop.permute.xlu0 %2290  ;;  %v2972_v20 = vmul.f32 %v21151_v51, %v2809_v62  ;;  %770 = vperm.xlu1 %20393, %v21153_v32  }
  0xfd   : > { %2584 = vperm.xlu0 %20392, %v21020_v40   ;;  %v2212_v40 = vadd.f32 %v2180_v10, %v1948_v11 }
  0xfe   : > { %v3004_v38 = vadd.f32 %v2972_v20, %v2740_v16 }
  0xff   : > { %v21175_v12 = vpop.permute.xlu1 %1776  ;;  %v2477_v7 = vadd.f32 %v2445_v44, %v2212_v40 }
 0x100   : > { %v21177_v18 = vpop.permute.xlu0 %1258  ;;  %v3043_v62 = vadd.f32 %v21169_v2, %v3004_v38  ;;  %1552 = vperm.xlu1 %20393, %v21153_v32  }
 0x101   : > { %1034 = vperm.xlu0 %20392, %v21171_v33   ;;  %v2741_v16 = vadd.f32 %v2709_v41, %v2477_v7  ;;  %v21209_v7 = vld [vmem:[#allocation2 + $0xb2] sm:$0xff] }
 0x102   : > { %vm3075_vm6 = vcmp.gt.f32.partialorder %v3043_v62, 0.0  ;;  %v3107_v27 = vmul.f32 0.2, %v3043_v62 }
 0x103   : > { %v2814_v55 = vpop.permute.xlu1 %2813 }
 0x104   : > { %v21183_v6 = vpop.permute.xlu0 %2295  ;;  %v3139_v20 = vsel %vm3075_vm6, %v3043_v62, %v3107_v27  ;;  %v2973_v1 = vmul.f32 %v21151_v51, %v2814_v55  ;;  %2589 = vperm.xlu1 %20393, %v21035_v49  }
 0x105   : > { %2070 = vperm.xlu0 %20392, %v21066_v0   ;;  %3171 = vst.msk [vmem:[#allocation3 + $0x19] sm:$0xff] %vm430_vm3, %v3139_v20 }
 0x106   : > { %v3005_v10 = vadd.f32 %v2973_v1, %v2741_v16 }
 0x107   : > { %v21193_v11 = vpop.permute.xlu1 %999 }
 0x108   : > { %v21195_v44 = vpop.permute.xlu0 %735  ;;  %v3044_v38 = vadd.f32 %v21169_v2, %v3005_v10  ;;  %1811 = vperm.xlu1 %20393, %v21110_v19  }
 0x109   : > { %1293 = vperm.xlu0 %20392, %v21191_v35  }
 0x10a   : > { %vm3076_vm7 = vcmp.gt.f32.partialorder %v3044_v38, 0.0  ;;  %v3108_v49 = vmul.f32 0.2, %v3044_v38 }
 0x10b   : > { %v21200_v40 = vpop.permute.xlu1 %2035 }
 0x10c   : > { %v21202_v41 = vpop.permute.xlu0 %1517  ;;  %v3140_v62 = vsel %vm3076_vm7, %v3044_v38, %v3108_v49  ;;  %2848 = vperm.xlu1 %20393, %v21047_v56   ;;  %v3245_v1 = vld [vmem:[#allocation3 + $0x19] sm:$0xff]  ;;  %v861_v56 = vmul.f32 %v21071_v3, %v20986_v22  ;;  %v1653_v38 = vmul.f32 %v21087_v9, %v21018_v39  ;;  %v21231_v22 = vld [vmem:[#allocation2 + $0xc0] sm:$0xff]  ;;  %v1917_v49 = vmul.f32 %v21096_v14, %v21031_v47 }
 0x10d   : > { %2330 = vperm.xlu0 %20392, %v21112_v26   ;;  %3172 = vst.msk [vmem:[#allocation3 + $0x21] sm:$0xff] %vm430_vm3, %v3140_v62  ;;  %17576 = vmatprep.mubr.msk.f32.mxu1 %vm430_vm3, %v3245_v1  ;;  %v1389_v26 = vmul.f32 %v21076_v4, %v21001_v31  ;;  %v1126_v62 = vmul.f32 %v21064_v63, %v20997_v28 }
 0x10e   : > { %17829 = vmatprep.mubr.msk.f32.mxu0 %vm430_vm3, %v3245_v1  ;;  %v1157_v10 = vadd.f32 %v1125_v53, %v861_v56  ;;  %v862_v53 = vmul.f32 %v21071_v3, %v20989_v24  ;;  %v1390_v47 = vmul.f32 %v21076_v4, %v21007_v34  ;;  %v21247_v56 = vld [vmem:[#allocation2 + $0xc8] sm:$0xff] }
 0x10f   : > { %v21211_v27 = vpop.permute.xlu1 %740 }
 0x110   : > { %v2555_v55 = vpop.permute.xlu0 %2554  ;;  %1816 = vperm.xlu1 %20393, %v21171_v33   ;;  %v1421_v31 = vadd.f32 %v1389_v26, %v1157_v10  ;;  %v2446_v26 = vmul.f32 %v21121_v25, %v21157_v30  ;;  %v1158_v10 = vadd.f32 %v1126_v62, %v862_v53 }
 0x111   : > { %1298 = vperm.xlu0 %20392, %v21209_v7   ;;  %v2710_v24 = vmul.f32 %v21136_v8, %v2555_v55 }
 0x112   : > { %v1422_v34 = vadd.f32 %v1390_v47, %v1158_v10  ;;  %v2447_v47 = vmul.f32 %v21121_v25, %v21183_v6  ;;  %v619_v6 = vld [vmem:[%s20685_s15 + $0xb8] sm:$0xff] }
 0x113   : > { %v21221_v16 = vpop.permute.xlu1 %1522  ;;  %651 = vst.msk [vmem:[#allocation2 + $0x129] sm:$0xff] %vm387_vm0, %v619_v6 }
 0x114   : > { %v21223_v20 = vpop.permute.xlu0 %1004  ;;  %2853 = vperm.xlu1 %20393, %v21066_v0   ;;  %v3246_v21 = vld [vmem:[#allocation3 + $0x21] sm:$0xff]  ;;  %v1685_v0 = vadd.f32 %v1653_v38, %v1421_v31 }
 0x115   : > { %2335 = vperm.xlu0 %20392, %v21153_v32   ;;  %17577 = vmatmul.mubr.msk.f32.gmra.mrb[2].mxu1 %vm430_vm3, %v3246_v21  ;;  %v2181_v32 = vmul.f32 %v21108_v13, %v21055_v59  ;;  %v1654_v59 = vmul.f32 %v21087_v9, %v21029_v45  ;;  %v618_v45 = vld [vmem:[%s20685_s15 + $0xb0] sm:$0xff] }
 0x116   : > { %17830 = vmatmul.mubr.msk.f32.vlgmr.msra.gmra.mrb[0].mxu0 %vm430_vm3, %v3246_v21  ;;  %v1949_v28 = vadd.f32 %v1917_v49, %v1685_v0  ;;  %v1918_v49 = vmul.f32 %v21096_v14, %v21042_v54  ;;  %650 = vst.msk [vmem:[#allocation2 + $0x121] sm:$0xff] %vm387_vm0, %v618_v45 }
 0x117   : > { %v2560_v1 = vpop.permute.xlu1 %2559  ;;  %v1686_v62 = vadd.f32 %v1654_v59, %v1422_v34 }
 0x118   : > { %v21237_v39 = vpop.permute.xlu0 %2040  ;;  %2075 = vperm.xlu1 %20393, %v21191_v35   ;;  %v2213_v31 = vadd.f32 %v2181_v32, %v1949_v28  ;;  %v2711_v59 = vmul.f32 %v21136_v8, %v2560_v1 }
 0x119   : > { %1557 = vperm.xlu0 %20392, %v21231_v22   ;;  %v1950_v54 = vadd.f32 %v1918_v49, %v1686_v62 }
 0x11a   : > { %v2478_v30 = vadd.f32 %v2446_v26, %v2213_v31  ;;  %v1730_v31 = vld [vmem:[#allocation2 + $0xc9] sm:$0xff] }
 0x11b   : > { %v21253_v38 = vpop.permute.xlu1 %1781  ;;  %v2214_v46 = vadd.f32 %v2182_v60, %v1950_v54 }
 0x11c   : > { %v21255_v21 = vpop.permute.xlu0 %1263  ;;  %1562 = vperm.xlu1 %20393, %v21247_v56   ;;  %v2742_v32 = vadd.f32 %v2710_v24, %v2478_v30 }
 0x11d   : > { %2594 = vperm.xlu0 %20392, %v21110_v19   ;;  %v1729_v19 = vld [vmem:[#allocation2 + $0xc1] sm:$0xff]  ;;  %v2479_v24 = vadd.f32 %v2447_v47, %v2214_v46 }
 0x11f   : > { %v2819_v0 = vpop.permute.xlu1 %2818  ;;  %v2743_v62 = vadd.f32 %v2711_v59, %v2479_v24  ;;  %v1127_v24 = vmul.f32 %v21064_v63, %v21011_v36 }
 0x120   : > { %v21262_v53 = vpop.permute.xlu0 %2300  ;;  %v2974_v55 = vmul.f32 %v21151_v51, %v2819_v0  ;;  %2599 = vperm.xlu1 %20393, %v21171_v33  }
 0x121   : > { %2080 = vperm.xlu0 %20392, %v21209_v7  }
 0x122   : > { %v3006_v28 = vadd.f32 %v2974_v55, %v2742_v32 }
 0x123   : > { %v21273_v26 = vpop.permute.xlu1 %1786 }
 0x124   : > { %v21275_v10 = vpop.permute.xlu0 %1268  ;;  %v3045_v33 = vadd.f32 %v21169_v2, %v3006_v28  ;;  %2340 = vperm.xlu1 %20393, %v21231_v22  }
 0x125   : > { %1821 = vperm.xlu0 %20392, %v1729_v19  }
 0x126   : > { %vm3077_vm8 = vcmp.gt.f32.partialorder %v3045_v33, 0.0  ;;  %v3109_v34 = vmul.f32 0.2, %v3045_v33 }
 0x127   : > { %v2824_v49 = vpop.permute.xlu1 %2823 }
 0x128   : > { %v21280_v30 = vpop.permute.xlu0 %2305  ;;  %v3141_v0 = vsel %vm3077_vm8, %v3045_v33, %v3109_v34  ;;  %v2975_v45 = vmul.f32 %v21151_v51, %v2824_v49  ;;  %1826 = vperm.xlu1 %20393, %v1730_v31   ;;  %v863_v34 = vmul.f32 %v21071_v3, %v21013_v37  ;;  %v1994_v37 = vld [vmem:[#allocation2 + $0xca] sm:$0xff] }
 0x129   : > { %2858 = vperm.xlu0 %20392, %v21191_v35   ;;  %3173 = vst.msk [vmem:[#allocation3 + $0x31] sm:$0xff] %vm430_vm3, %v3141_v0  ;;  %v1655_v0 = vmul.f32 %v21087_v9, %v21057_v61 }
 0x12a   : > { %v3007_v60 = vadd.f32 %v2975_v45, %v2743_v62  ;;  %v1159_v62 = vadd.f32 %v1127_v24, %v863_v34  ;;  %v1128_v45 = vmul.f32 %v21064_v63, %v21022_v42  ;;  %v2448_v42 = vmul.f32 %v21121_v25, %v21262_v53 }
 0x12b   : > { %v21287_v1 = vpop.permute.xlu1 %1009 }
 0x12c   : > { %v21289_v32 = vpop.permute.xlu0 %745  ;;  %v3046_v55 = vadd.f32 %v21169_v2, %v3007_v60  ;;  %2863 = vperm.xlu1 %20393, %v21209_v7   ;;  %v1993_v7 = vld [vmem:[#allocation2 + $0xc2] sm:$0xff]  ;;  %v864_v60 = vmul.f32 %v21071_v3, %v21024_v43  ;;  %v1656_v43 = vmul.f32 %v21087_v9, %v21098_v15  ;;  %v2184_v15 = vmul.f32 %v21108_v13, %v21237_v39 }
 0x12d   : > { %2345 = vperm.xlu0 %20392, %v21247_v56  }
 0x12e   : > { %vm3078_vm9 = vcmp.gt.f32.partialorder %v3046_v55, 0.0  ;;  %v3110_v54 = vmul.f32 0.2, %v3046_v55  ;;  %v1160_v24 = vadd.f32 %v1128_v45, %v864_v60  ;;  %v2259_v60 = vld [vmem:[#allocation2 + $0xe0] sm:$0xff] }
 0x12f   : > { %v21294_v47 = vpop.permute.xlu1 %2045 }
 0x130   : > { %v21296_v35 = vpop.permute.xlu0 %1527  ;;  %v3142_v28 = vsel %vm3078_vm9, %v3046_v55, %v3110_v54  ;;  %1039 = vperm.xlu1 %20393, %v1729_v19   ;;  %v3247_v46 = vld [vmem:[#allocation3 + $0x31] sm:$0xff]  ;;  %v2183_v54 = vmul.f32 %v21108_v13, %v21200_v40 }
 0x131   : > { %775 = vperm.xlu0 %20392, %v21231_v22   ;;  %3174 = vst.msk [vmem:[#allocation3 + $0x39] sm:$0xff] %vm430_vm3, %v3142_v28  ;;  %17579 = vmatprep.mubr.msk.f32.mxu1 %vm430_vm3, %v3247_v46  ;;  %v1391_v22 = vmul.f32 %v21076_v4, %v21033_v48  ;;  %v1919_v48 = vmul.f32 %v21096_v14, %v21141_v23 }
 0x132   : > { %17832 = vmatprep.mubr.msk.f32.mxu0 %vm430_vm3, %v3247_v46  ;;  %v1392_v28 = vmul.f32 %v21076_v4, %v21037_v50  ;;  %v2258_v46 = vld [vmem:[#allocation2 + $0xd8] sm:$0xff] }
 0x133   : > { %v21302_v59 = vpop.permute.xlu1 %750 }
 0x134   : > { %v2565_v33 = vpop.permute.xlu0 %2564  ;;  %2604 = vperm.xlu1 %20393, %v1729_v19   ;;  %v1423_v19 = vadd.f32 %v1391_v22, %v1159_v62  ;;  %v1424_v50 = vadd.f32 %v1392_v28, %v1160_v24  ;;  %v1920_v62 = vmul.f32 %v21096_v14, %v21175_v12  ;;  %v2449_v12 = vmul.f32 %v21121_v25, %v21280_v30 }
 0x135   : > { %2085 = vperm.xlu0 %20392, %v1993_v7  }
 0x136   : > { %v1688_v53 = vadd.f32 %v1656_v43, %v1424_v50 }
 0x137   : > { %v21310_v49 = vpop.permute.xlu1 %1532 }
 0x138   : > { %v21312_v6 = vpop.permute.xlu0 %1014  ;;  %1044 = vperm.xlu1 %20393, %v1730_v31   ;;  %v3248_v36 = vld [vmem:[#allocation3 + $0x39] sm:$0xff] }
 0x139   : > { %780 = vperm.xlu0 %20392, %v21247_v56   ;;  %17580 = vmatmul.mubr.msk.f32.gmra.mrb[4].mxu1 %vm430_vm3, %v3248_v36  ;;  %v1687_v56 = vadd.f32 %v1655_v0, %v1423_v19 }
 0x13a   : > { %17833 = vmatmul.mubr.msk.f32.gmra.mrb[2].mxu0 %vm430_vm3, %v3248_v36 }
 0x13b   : > { %v2570_v61 = vpop.permute.xlu1 %2569  ;;  %v1951_v23 = vadd.f32 %v1919_v48, %v1687_v56  ;;  %v1952_v56 = vadd.f32 %v1920_v62, %v1688_v53  ;;  %v621_v53 = vld [vmem:[%s20685_s15 + $0xc8] sm:$0xff] }
 0x13c   : > { %v21325_v55 = vpop.permute.xlu0 %2050  ;;  %2609 = vperm.xlu1 %20393, %v1730_v31   ;;  %v2712_v31 = vmul.f32 %v21136_v8, %v2565_v33  ;;  %v620_v33 = vld [vmem:[%s20685_s15 + $0xc0] sm:$0xff]  ;;  %v2713_v39 = vmul.f32 %v21136_v8, %v2570_v61  ;;  %653 = vst.msk [vmem:[#allocation2 + $0x141] sm:$0xff] %vm387_vm0, %v621_v53  ;;  %v1130_v53 = vmul.f32 %v21064_v63, %v21100_v17 }
 0x13d   : > { %2090 = vperm.xlu0 %20392, %v1994_v37   ;;  %v2215_v40 = vadd.f32 %v2183_v54, %v1951_v23  ;;  %652 = vst.msk [vmem:[#allocation2 + $0x139] sm:$0xff] %vm387_vm0, %v620_v33 }
 0x13f   : > { %v21335_v34 = vpop.permute.xlu1 %1791  ;;  %v2480_v0 = vadd.f32 %v2448_v42, %v2215_v40  ;;  %v2216_v42 = vadd.f32 %v2184_v15, %v1952_v56 }
 0x140   : > { %v21337_v22 = vpop.permute.xlu0 %1273  ;;  %2350 = vperm.xlu1 %20393, %v2258_v46  }
 0x141   : > { %1303 = vperm.xlu0 %20392, %v1993_v7   ;;  %v2744_v48 = vadd.f32 %v2712_v31, %v2480_v0  ;;  %v2481_v43 = vadd.f32 %v2449_v12, %v2216_v42 }
 0x143   : > { %v2829_v36 = vpop.permute.xlu1 %2828  ;;  %v2745_v30 = vadd.f32 %v2713_v39, %v2481_v43  ;;  %v1129_v39 = vmul.f32 %v21064_v63, %v21049_v57  ;;  %v21381_v43 = vld [vmem:[#allocation2 + $0xda] sm:$0xff] }
 0x144   : > { %v21342_v19 = vpop.permute.xlu0 %2310  ;;  %v2976_v45 = vmul.f32 %v21151_v51, %v2829_v36  ;;  %1308 = vperm.xlu1 %20393, %v1994_v37  }
 0x145   : > { %2868 = vperm.xlu0 %20392, %v1993_v7   ;;  %v941_v7 = vld [vmem:[#allocation2 + $0xd9] sm:$0xff]  ;;  %v2450_v17 = vmul.f32 %v21121_v25, %v21342_v19  ;;  %v1922_v19 = vmul.f32 %v21096_v14, %v21273_v26 }
 0x146   : > { %v3008_v54 = vadd.f32 %v2976_v45, %v2744_v48  ;;  %v942_v48 = vld [vmem:[#allocation2 + $0xe1] sm:$0xff] }
 0x147   : > { %v21351_v28 = vpop.permute.xlu1 %1796 }
 0x148   : > { %v21353_v23 = vpop.permute.xlu0 %1278  ;;  %v3047_v24 = vadd.f32 %v21169_v2, %v3008_v54  ;;  %2873 = vperm.xlu1 %20393, %v1994_v37  }
 0x149   : > { %2355 = vperm.xlu0 %20392, %v2259_v60  }
 0x14a   : > { %vm3079_vm10 = vcmp.gt.f32.partialorder %v3047_v24, 0.0  ;;  %v3111_v40 = vmul.f32 0.2, %v3047_v24 }
 0x14b   : > { %v2834_v31 = vpop.permute.xlu1 %2833 }
 0x14c   : > { %v21357_v50 = vpop.permute.xlu0 %2315  ;;  %v3143_v62 = vsel %vm3079_vm10, %v3047_v24, %v3111_v40  ;;  %v2977_v0 = vmul.f32 %v21151_v51, %v2834_v31  ;;  %1049 = vperm.xlu1 %20393, %v941_v7   ;;  %v865_v24 = vmul.f32 %v21071_v3, %v21051_v58  ;;  %v1393_v40 = vmul.f32 %v21076_v4, %v21143_v29  ;;  %v21394_v58 = vld [vmem:[#allocation2 + $0xe2] sm:$0xff] }
 0x14d   : > { %785 = vperm.xlu0 %20392, %v2258_v46   ;;  %3175 = vst.msk [vmem:[#allocation3 + $0x49] sm:$0xff] %vm430_vm3, %v3143_v62  ;;  %v1921_v29 = vmul.f32 %v21096_v14, %v21253_v38  ;;  %v1394_v38 = vmul.f32 %v21076_v4, %v21177_v18  ;;  %v21420_v18 = vld [vmem:[#allocation2 + $0xf1] sm:$0xff] }
 0x14e   : > { %v3009_v37 = vadd.f32 %v2977_v0, %v2745_v30  ;;  %v1161_v62 = vadd.f32 %v1129_v39, %v865_v24  ;;  %v1657_v0 = vmul.f32 %v21087_v9, %v21202_v41  ;;  %v1658_v39 = vmul.f32 %v21087_v9, %v21221_v16 }
 0x14f   : > { %v21363_v61 = vpop.permute.xlu1 %1019 }
 0x150   : > { %v21365_v36 = vpop.permute.xlu0 %755  ;;  %v3048_v15 = vadd.f32 %v21169_v2, %v3009_v37  ;;  %2614 = vperm.xlu1 %20393, %v941_v7  }
 0x151   : > { %1567 = vperm.xlu0 %20392, %v2258_v46  }
 0x152   : > { %vm3080_vm11 = vcmp.gt.f32.partialorder %v3048_v15, 0.0  ;;  %v3112_v45 = vmul.f32 0.2, %v3048_v15 }
 0x153   : > { %v21368_v33 = vpop.permute.xlu1 %2055 }
 0x154   : > { %v21370_v56 = vpop.permute.xlu0 %1537  ;;  %v3144_v12 = vsel %vm3080_vm11, %v3048_v15, %v3112_v45  ;;  %1054 = vperm.xlu1 %20393, %v942_v48   ;;  %v3249_v54 = vld [vmem:[#allocation3 + $0x49] sm:$0xff]  ;;  %v866_v45 = vmul.f32 %v21071_v3, %v21078_v5 }
 0x155   : > { %790 = vperm.xlu0 %20392, %v2259_v60   ;;  %3176 = vst.msk [vmem:[#allocation3 + $0x51] sm:$0xff] %vm430_vm3, %v3144_v12  ;;  %17582 = vmatprep.mubr.msk.f32.mxu1 %vm430_vm3, %v3249_v54 }
 0x156   : > { %17835 = vmatprep.mubr.msk.f32.mxu0 %vm430_vm3, %v3249_v54  ;;  %v1162_v54 = vadd.f32 %v1130_v53, %v866_v45 }
 0x157   : > { %v21375_v42 = vpop.permute.xlu1 %760 }
 0x158   : > { %v2575_v46 = vpop.permute.xlu0 %2574  ;;  %2619 = vperm.xlu1 %20393, %v942_v48   ;;  %v1426_v5 = vadd.f32 %v1394_v38, %v1162_v54  ;;  %v2451_v38 = vmul.f32 %v21121_v25, %v21357_v50 }
 0x159   : > { %1572 = vperm.xlu0 %20392, %v2259_v60   ;;  %v1425_v60 = vadd.f32 %v1393_v40, %v1161_v62  ;;  %v2714_v62 = vmul.f32 %v21136_v8, %v2575_v46  ;;  %v15662_v46 = vld [vmem:[%s26237_s3 + $0x148] sm:$0xff] }
 0x15b   : > { %v21385_v31 = vpop.permute.xlu1 %1542  ;;  %v1689_v41 = vadd.f32 %v1657_v0, %v1425_v60  ;;  %v21422_v0 = vld [vmem:[#allocation2 + $0xf0] sm:$0xff]  ;;  %v2186_v60 = vmul.f32 %v21108_v13, %v21325_v55 }
 0x15c   : > { %v21387_v30 = vpop.permute.xlu0 %1024  ;;  %1831 = vperm.xlu1 %20393, %v941_v7   ;;  %v3250_v57 = vld [vmem:[#allocation3 + $0x51] sm:$0xff]  ;;  %v2185_v7 = vmul.f32 %v21108_v13, %v21294_v47  ;;  %v622_v55 = vld [vmem:[%s20685_s15 + $0xd0] sm:$0xff] }
 0x15d   : > { %1313 = vperm.xlu0 %20392, %v21381_v43   ;;  %17583 = vmatmul.mubr.msk.f32.gmra.mrb[6].mxu1 %vm430_vm3, %v3250_v57  ;;  %v1953_v12 = vadd.f32 %v1921_v29, %v1689_v41  ;;  %654 = vst.msk [vmem:[#allocation2 + $0x151] sm:$0xff] %vm387_vm0, %v622_v55  ;;  %v623_v55 = vld [vmem:[%s20685_s15 + $0xd8] sm:$0xff] }
 0x15e   : > { %17836 = vmatmul.mubr.msk.f32.gmra.mrb[4].mxu0 %vm430_vm3, %v3250_v57  ;;  %v1690_v57 = vadd.f32 %v1658_v39, %v1426_v5  ;;  %v15663_v39 = vld [vmem:[%s26237_s3 + $0x150] sm:$0xff]  ;;  %655 = vst.msk [vmem:[#allocation2 + $0x159] sm:$0xff] %vm387_vm0, %v623_v55  ;;  %v867_v55 = vmul.f32 %v21071_v3, %v21195_v44 }
 0x15f   : > { %v2580_v37 = vpop.permute.xlu1 %2579  ;;  %v2217_v40 = vadd.f32 %v2185_v7, %v1953_v12  ;;  %v21516_v44 = vld [vmem:[#allocation2 + $0x109] sm:$0xff] }
 0x160   : > { %v21400_v15 = vpop.permute.xlu0 %2060  ;;  %1318 = vperm.xlu1 %20393, %v21394_v58   ;;  %v1954_v45 = vadd.f32 %v1922_v19, %v1690_v57  ;;  %v2715_v5 = vmul.f32 %v21136_v8, %v2580_v37  ;;  %v21457_v19 = vld [vmem:[#allocation2 + $0xf9] sm:$0xff] }
 0x161   : > { %2878 = vperm.xlu0 %20392, %v21381_v43   ;;  %v2482_v16 = vadd.f32 %v2450_v17, %v2217_v40  ;;  %v15664_v40 = vld [vmem:[%s26237_s3 + $0x158] sm:$0xff]  ;;  %v15665_v37 = vld [vmem:[%s26237_s3 + $0x160] sm:$0xff] }
 0x162   : > { %v19297_v57 = vpack.c.bf16 %v15664_v40, %v15663_v39  ;;  %v15667_v40 = vld [vmem:[%s26237_s3 + $0x170] sm:$0xff] }
 0x163   : > { %v21414_v24 = vpop.permute.xlu1 %1801  ;;  %v2746_v41 = vadd.f32 %v2714_v62, %v2482_v16  ;;  %v2218_v62 = vadd.f32 %v2186_v60, %v1954_v45  ;;  %v681_v16 = vld [vmem:[#allocation2 + $0xf8] sm:$0xff] }
 0x164   : > { %v21416_v47 = vpop.permute.xlu0 %1283  ;;  %2883 = vperm.xlu1 %20393, %v21394_v58  }
 0x165   : > { %1836 = vperm.xlu0 %20392, %v942_v48   ;;  %v15661_v48 = vld [vmem:[%s26237_s3 + $0x140] sm:$0xff] }
 0x166   : > { %v19293_v26 = vpack.c.bf16 %v15662_v46, %v15661_v48 }
 0x167   : > { %v2839_v29 = vpop.permute.xlu1 %2838 }
 0x168   : > { %v21428_v53 = vpop.permute.xlu0 %2320  ;;  %v2978_v7 = vmul.f32 %v21151_v51, %v2839_v29  ;;  %1059 = vperm.xlu1 %20393, %v21420_v18   ;;  %19294 = vmatprep.subr.bf16.mxu0 %v19293_v26  ;;  %v2483_v29 = vadd.f32 %v2451_v38, %v2218_v62  ;;  %v15668_v62 = vld [vmem:[%s26237_s3 + $0x178] sm:$0xff] }
 0x169   : > { %795 = vperm.xlu0 %20392, %v21422_v0   ;;  %19296 = vmatpush3.bf16.msra.mxu0 %v19293_v26 }
 0x16a   : > { %v3010_v12 = vadd.f32 %v2978_v7, %v2746_v41  ;;  %19298 = vmatprep.subr.bf16.mxu0 %v19297_v57  ;;  %v2747_v60 = vadd.f32 %v2715_v5, %v2483_v29 }
 0x16b   : > { %v21443_v17 = vpop.permute.xlu1 %1806 }
 0x16c   : > { %v21445_v54 = vpop.permute.xlu0 %1288  ;;  %v3049_v50 = vadd.f32 %v21169_v2, %v3010_v12  ;;  %2095 = vperm.xlu1 %20393, %v21381_v43   ;;  %v15666_v43 = vld [vmem:[%s26237_s3 + $0x168] sm:$0xff] }
 0x16d   : > { %1577 = vperm.xlu0 %20392, %v21422_v0   ;;  %19300 = vmatpush3.bf16.msra.mxu0 %v19297_v57  ;;  %v19301_v45 = vpack.c.bf16 %v15666_v43, %v15665_v37  ;;  %v19305_v57 = vpack.c.bf16 %v15668_v62, %v15667_v40 }
 0x16e   : > { %vm3081_vm12 = vcmp.gt.f32.partialorder %v3049_v50, 0.0  ;;  %v3113_v48 = vmul.f32 0.2, %v3049_v50 }
 0x16f   : > { %v2844_v46 = vpop.permute.xlu1 %2843  ;;  %19302 = vmatprep.subr.bf16.mxu0 %v19301_v45 }
 0x170   : > { %v21459_v41 = vpop.permute.xlu0 %2325  ;;  %v3145_v7 = vsel %vm3081_vm12, %v3049_v50, %v3113_v48  ;;  %v2979_v26 = vmul.f32 %v21151_v51, %v2844_v46  ;;  %1064 = vperm.xlu1 %20393, %v21457_v19   ;;  %v21484_v50 = vld [vmem:[#allocation2 + $0xf2] sm:$0xff] }
 0x171   : > { %800 = vperm.xlu0 %20392, %v681_v16   ;;  %3177 = vst.msk [vmem:[#allocation3 + $0x61] sm:$0xff] %vm430_vm3, %v3145_v7  ;;  %19304 = vmatpush3.bf16.msra.mxu0 %v19301_v45  ;;  %v1395_v45 = vmul.f32 %v21076_v4, %v21255_v21 }
 0x172   : > { %v3011_v38 = vadd.f32 %v2979_v26, %v2747_v60  ;;  %19306 = vmatprep.subr.bf16.mxu0 %v19305_v57  ;;  %v1131_v26 = vmul.f32 %v21064_v63, %v21193_v11 }
 0x173   : > { %v21472_v12 = vpop.permute.xlu1 %1029 }
 0x174   : > { %v21474_v39 = vpop.permute.xlu0 %765  ;;  %v3050_v5 = vadd.f32 %v21169_v2, %v3011_v38  ;;  %2100 = vperm.xlu1 %20393, %v21394_v58   ;;  %v21495_v58 = vld [vmem:[#allocation2 + $0xfa] sm:$0xff]  ;;  %v1163_v62 = vadd.f32 %v1131_v26, %v867_v55  ;;  %v868_v26 = vmul.f32 %v21071_v3, %v21211_v27 }
 0x175   : > { %1582 = vperm.xlu0 %20392, %v681_v16   ;;  %19308 = vmatpush3.bf16.msra.mxu0 %v19305_v57  ;;  %v1923_v57 = vmul.f32 %v21096_v14, %v21335_v34  ;;  %v1396_v34 = vmul.f32 %v21076_v4, %v21275_v10  ;;  %v21545_v10 = vld [vmem:[#allocation2 + $0x110] sm:$0xff] }
 0x176   : > { %vm3082_vm13 = vcmp.gt.f32.partialorder %v3050_v5, 0.0  ;;  %v3114_v29 = vmul.f32 0.2, %v3050_v5  ;;  %v1427_v21 = vadd.f32 %v1395_v45, %v1163_v62  ;;  %v1660_v62 = vmul.f32 %v21087_v9, %v21310_v49 }
 0x177   : > { %v21486_v48 = vpop.permute.xlu1 %2065 }
 0x178   : > { %v21488_v46 = vpop.permute.xlu0 %1547  ;;  %v3146_v37 = vsel %vm3082_vm13, %v3050_v5, %v3114_v29  ;;  %1841 = vperm.xlu1 %20393, %v21420_v18   ;;  %v3251_v43 = vld [vmem:[#allocation3 + $0x61] sm:$0xff]  ;;  %v1659_v5 = vmul.f32 %v21087_v9, %v21296_v35  ;;  %v1132_v29 = vmul.f32 %v21064_v63, %v21223_v20  ;;  %v2452_v20 = vmul.f32 %v21121_v25, %v21428_v53 }
 0x179   : > { %1323 = vperm.xlu0 %20392, %v21484_v50   ;;  %3178 = vst.msk [vmem:[#allocation3 + $0x69] sm:$0xff] %vm430_vm3, %v3146_v37  ;;  %17585 = vmatprep.mubr.msk.f32.mxu1 %vm430_vm3, %v3251_v43  ;;  %v1924_v53 = vmul.f32 %v21096_v14, %v21351_v28 }
 0x17a   : > { %17838 = vmatprep.mubr.msk.f32.mxu0 %vm430_vm3, %v3251_v43  ;;  %v1691_v37 = vadd.f32 %v1659_v5, %v1427_v21  ;;  %v2187_v43 = vmul.f32 %v21108_v13, %v21368_v33  ;;  %v1164_v45 = vadd.f32 %v1132_v29, %v868_v26 }
 0x17b   : > { %v21497_v60 = vpop.permute.xlu1 %770 }
 0x17c   : > { %v2585_v7 = vpop.permute.xlu0 %2584  ;;  %1328 = vperm.xlu1 %20393, %v21495_v58   ;;  %v1955_v55 = vadd.f32 %v1923_v57, %v1691_v37  ;;  %v1428_v27 = vadd.f32 %v1396_v34, %v1164_v45  ;;  %v624_v34 = vld [vmem:[%s20685_s15 + $0xe0] sm:$0xff] }
 0x17d   : > { %2360 = vperm.xlu0 %20392, %v21422_v0   ;;  %v21518_v0 = vld [vmem:[#allocation2 + $0x108] sm:$0xff]  ;;  %v2716_v21 = vmul.f32 %v21136_v8, %v2585_v7  ;;  %656 = vst.msk [vmem:[#allocation2 + $0x169] sm:$0xff] %vm387_vm0, %v624_v34 }
 0x17e   : > { %v1692_v49 = vadd.f32 %v1660_v62, %v1428_v27 }
 0x17f   : > { %v21507_v38 = vpop.permute.xlu1 %1552 }
 0x180   : > { %v21509_v40 = vpop.permute.xlu0 %1034  ;;  %2365 = vperm.xlu1 %20393, %v681_v16   ;;  %v3252_v11 = vld [vmem:[#allocation3 + $0x69] sm:$0xff]  ;;  %v1956_v28 = vadd.f32 %v1924_v53, %v1692_v49 }
 0x181   : > { %1846 = vperm.xlu0 %20392, %v21457_v19   ;;  %17586 = vmatmul.mubr.msk.f32.gmra.mrb[8].mxu1 %vm430_vm3, %v3252_v11 }
 0x182   : > { %17839 = vmatmul.mubr.msk.f32.gmra.mrb[6].mxu0 %vm430_vm3, %v3252_v11  ;;  %v2219_v11 = vadd.f32 %v2187_v43, %v1955_v55  ;;  %v2188_v43 = vmul.f32 %v21108_v13, %v21400_v15  ;;  %v21557_v55 = vld [vmem:[#allocation2 + $0x111] sm:$0xff] }
 0x183   : > { %v2590_v35 = vpop.permute.xlu1 %2589 }
 0x184   : > { %v21524_v16 = vpop.permute.xlu0 %2070  ;;  %1069 = vperm.xlu1 %20393, %v21516_v44   ;;  %v2484_v57 = vadd.f32 %v2452_v20, %v2219_v11  ;;  %v2453_v20 = vmul.f32 %v21121_v25, %v21459_v41  ;;  %v2220_v11 = vadd.f32 %v2188_v43, %v1956_v28 }
 0x185   : > { %805 = vperm.xlu0 %20392, %v21518_v0  }
 0x186   : > { %v2748_v26 = vadd.f32 %v2716_v21, %v2484_v57  ;;  %v2717_v21 = vmul.f32 %v21136_v8, %v2590_v35  ;;  %v2485_v53 = vadd.f32 %v2453_v20, %v2220_v11  ;;  %v21578_v35 = vld [vmem:[#allocation2 + $0x10a] sm:$0xff]  ;;  %v1133_v20 = vmul.f32 %v21064_v63, %v21287_v1 }
 0x187   : > { %v21538_v5 = vpop.permute.xlu1 %1811 }
 0x188   : > { %v21540_v33 = vpop.permute.xlu0 %1293  ;;  %2105 = vperm.xlu1 %20393, %v21484_v50  }
 0x189   : > { %1587 = vperm.xlu0 %20392, %v21518_v0  }
 0x18b   : > { %v2849_v29 = vpop.permute.xlu1 %2848 }
 0x18c   : > { %v21549_v37 = vpop.permute.xlu0 %2330  ;;  %v2980_v7 = vmul.f32 %v21151_v51, %v2849_v29  ;;  %810 = vperm.xlu1 %20393, %v21545_v10   ;;  %v2749_v29 = vadd.f32 %v2717_v21, %v2485_v53 }
 0x18d   : > { %2624 = vperm.xlu0 %20392, %v21420_v18   ;;  %v625_v18 = vld [vmem:[%s20685_s15 + $0xe8] sm:$0xff] }
 0x18e   : > { %v3012_v45 = vadd.f32 %v2980_v7, %v2748_v26  ;;  %657 = vst.msk [vmem:[#allocation2 + $0x171] sm:$0xff] %vm387_vm0, %v625_v18 }
 0x18f   : > { %v21562_v62 = vpop.permute.xlu1 %1816 }
 0x190   : > { %v21564_v15 = vpop.permute.xlu0 %1298  ;;  %v3051_v27 = vadd.f32 %v21169_v2, %v3012_v45  ;;  %1592 = vperm.xlu1 %20393, %v21545_v10   ;;  %v869_v45 = vmul.f32 %v21071_v3, %v21289_v32  ;;  %v1661_v32 = vmul.f32 %v21087_v9, %v21370_v56  ;;  %v1925_v56 = vmul.f32 %v21096_v14, %v21414_v24  ;;  %v21623_v14 = vld [vmem:[%s26235_s1 + $0x4] ss:$0 sm:$0xff] }
 0x191   : > { %1074 = vperm.xlu0 %20392, %v21557_v55   ;;  %v2454_v24 = vmul.f32 %v21121_v25, %v21549_v37 }
 0x192   : > { %vm3083_vm14 = vcmp.gt.f32.partialorder %v3051_v27, 0.0  ;;  %v3115_v41 = vmul.f32 0.2, %v3051_v27  ;;  %v1165_v53 = vadd.f32 %v1133_v20, %v869_v45 }
 0x193   : > { %v2854_v57 = vpop.permute.xlu1 %2853 }
 0x194   : > { %v21572_v49 = vpop.permute.xlu0 %2335  ;;  %v3147_v26 = vsel %vm3083_vm14, %v3051_v27, %v3115_v41  ;;  %v2981_v43 = vmul.f32 %v21151_v51, %v2854_v57  ;;  %2629 = vperm.xlu1 %20393, %v21457_v19   ;;  %v1397_v19 = vmul.f32 %v21076_v4, %v21337_v22  ;;  %v1134_v27 = vmul.f32 %v21064_v63, %v21312_v6  ;;  %v21608_v63 = vld [vmem:[#allocation2 + $0x112] sm:$0xff] }
 0x195   : > { %2110 = vperm.xlu0 %20392, %v21495_v58   ;;  %3179 = vst.msk [vmem:[#allocation3 + $0x79] sm:$0xff] %vm430_vm3, %v3147_v26  ;;  %v870_v22 = vmul.f32 %v21071_v3, %v21302_v59 }
 0x196   : > { %v3013_v7 = vadd.f32 %v2981_v43, %v2749_v29  ;;  %v1398_v29 = vmul.f32 %v21076_v4, %v21353_v23  ;;  %v1429_v6 = vadd.f32 %v1397_v19, %v1165_v53  ;;  %v2189_v23 = vmul.f32 %v21108_v13, %v21486_v48  ;;  %v21632_v13 = vld [vmem:[%s26235_s1 + $0x5] ss:$0 sm:$0xff]  ;;  %v21661_v53 = vld [vmem:[%s26235_s1 + $0x7] ss:$0 sm:$0xff] }
 0x197   : > { %v21580_v34 = vpop.permute.xlu1 %2075  ;;  %v2190_v48 = vmul.f32 %v21632_v13, %v21524_v16  ;;  %v21647_v16 = vld [vmem:[#allocation2 + $0x120] sm:$0xff] }
 0x198   : > { %v21582_v28 = vpop.permute.xlu0 %1557  ;;  %v3052_v11 = vadd.f32 %v21169_v2, %v3013_v7  ;;  %1851 = vperm.xlu1 %20393, %v21516_v44   ;;  %v1693_v4 = vadd.f32 %v1661_v32, %v1429_v6 }
 0x199   : > { %1333 = vperm.xlu0 %20392, %v21578_v35  }
 0x19a   : > { %vm3084_vm15 = vcmp.gt.f32.partialorder %v3052_v11, 0.0  ;;  %v3116_v21 = vmul.f32 0.2, %v3052_v11 }
 0x19b   : > { %v21595_v18 = vpop.permute.xlu1 %1562 }
 0x19c   : > { %v2595_v1 = vpop.permute.xlu0 %2594  ;;  %v3148_v41 = vsel %vm3084_vm15, %v3052_v11, %v3116_v21  ;;  %2888 = vperm.xlu1 %20393, %v21484_v50   ;;  %v3253_v57 = vld [vmem:[#allocation3 + $0x79] sm:$0xff]  ;;  %v1166_v50 = vadd.f32 %v1134_v27, %v870_v22  ;;  %v21645_v11 = vld [vmem:[#allocation2 + $0x121] sm:$0xff] }
 0x19d   : > { %2370 = vperm.xlu0 %20392, %v21518_v0   ;;  %3180 = vst.msk [vmem:[#allocation3 + $0x81] sm:$0xff] %vm430_vm3, %v3148_v41  ;;  %17588 = vmatprep.mubr.msk.f32.mxu1 %vm430_vm3, %v3253_v57  ;;  %v1662_v0 = vmul.f32 %v21087_v9, %v21385_v31  ;;  %v1926_v9 = vmul.f32 %v21623_v14, %v21443_v17  ;;  %v21652_v21 = vld [vmem:[%s26235_s1 + $0x6] ss:$0 sm:$0xff] }
 0x19e   : > { %17841 = vmatprep.mubr.msk.f32.mxu0 %vm430_vm3, %v3253_v57  ;;  %v1430_v26 = vadd.f32 %v1398_v29, %v1166_v50  ;;  %v1957_v31 = vadd.f32 %v1925_v56, %v1693_v4  ;;  %v2718_v17 = vmul.f32 %v21136_v8, %v2595_v1  ;;  %v2455_v8 = vmul.f32 %v21652_v21, %v21572_v49  ;;  %v21673_v50 = vld [vmem:[%s26235_s1 + $0x8] ss:$0 sm:$0xff] }
 0x19f   : > { %v2600_v3 = vpop.permute.xlu1 %2599 }
 0x1a0   : > { %v21614_v59 = vpop.permute.xlu0 %2080  ;;  %1856 = vperm.xlu1 %20393, %v21557_v55   ;;  %v1694_v43 = vadd.f32 %v1662_v0, %v1430_v26  ;;  %v2221_v45 = vadd.f32 %v2189_v23, %v1957_v31  ;;  %v2719_v32 = vmul.f32 %v21661_v53, %v2600_v3  ;;  %v626_v0 = vld [vmem:[%s20685_s15 + $0xf0] sm:$0xff]  ;;  %v21679_v3 = vld [vmem:[#allocation2 + $0x128] sm:$0xff]  ;;  %v21689_v31 = vld [vmem:[%s26236_s2] ss:$0 sm:$0xff] }
 0x1a1   : > { %1338 = vperm.xlu0 %20392, %v21608_v63   ;;  %658 = vst.msk [vmem:[#allocation2 + $0x181] sm:$0xff] %vm387_vm0, %v626_v0 }
 0x1a2   : > { %v1958_v37 = vadd.f32 %v1926_v9, %v1694_v43  ;;  %v2486_v19 = vadd.f32 %v2454_v24, %v2221_v45  ;;  %v627_v43 = vld [vmem:[%s20685_s15 + $0xf8] sm:$0xff]  ;;  %v21697_v45 = vld [vmem:[#allocation2 + $0x129] sm:$0xff] }
 0x1a3   : > { %v21636_v7 = vpop.permute.xlu1 %2340  ;;  %659 = vst.msk [vmem:[#allocation2 + $0x189] sm:$0xff] %vm387_vm0, %v627_v43 }
 0x1a4   : > { %v21638_v20 = vpop.permute.xlu0 %1821  ;;  %2893 = vperm.xlu1 %20393, %v21495_v58   ;;  %v3254_v25 = vld [vmem:[#allocation3 + $0x81] sm:$0xff]  ;;  %v2222_v58 = vadd.f32 %v2190_v48, %v1958_v37  ;;  %v2750_v1 = vadd.f32 %v2718_v17, %v2486_v19  ;;  %v21704_v37 = vld [vmem:[%s26235_s1 + $0x1] ss:$0 sm:$0xff]  ;;  %v2456_v43 = vmul.f32 %v21652_v21, %v21636_v7 }
 0x1a5   : > { %2375 = vperm.xlu0 %20392, %v21545_v10   ;;  %17589 = vmatmul.mubr.msk.f32.gmra.mrb[10].mxu1 %vm430_vm3, %v3254_v25  ;;  %v1135_v19 = vmul.f32 %v21704_v37, %v21363_v61 }
 0x1a6   : > { %17842 = vmatmul.mubr.msk.f32.gmra.mrb[8].mxu0 %vm430_vm3, %v3254_v25  ;;  %v2487_v49 = vadd.f32 %v2455_v8, %v2222_v58 }
 0x1a7   : > { %v21656_v10 = vpop.permute.xlu1 %1826 }
 0x1a8   : > { %v2859_v27 = vpop.permute.xlu0 %2858  ;;  %1079 = vperm.xlu1 %20393, %v21645_v11   ;;  %v2751_v6 = vadd.f32 %v2719_v32, %v2487_v49  ;;  %v21734_v49 = vld [vmem:[%s26235_s1 + $0x3] ss:$0 sm:$0xff] }
 0x1a9   : > { %v2982_v41 = vmul.f32 %v21151_v51, %v2859_v27  ;;  %815 = vperm.xlu0 %20392, %v21647_v16   ;;  %v21721_v27 = vld [vmem:[%s26235_s1 + $0x2] ss:$0 sm:$0xff] }
 0x1aa   : > { %v1399_v61 = vmul.f32 %v21721_v27, %v21416_v47 }
 0x1ab   : > { %v3014_v57 = vadd.f32 %v2982_v41, %v2750_v1  ;;  %v2864_v22 = vpop.permute.xlu1 %2863  ;;  %v1136_v41 = vmul.f32 %v21704_v37, %v21387_v30  ;;  %v1400_v30 = vmul.f32 %v21721_v27, %v21445_v54 }
 0x1ac   : > { %v21667_v29 = vpop.permute.xlu0 %2345  ;;  %v2983_v51 = vmul.f32 %v21673_v50, %v2864_v22  ;;  %2115 = vperm.xlu1 %20393, %v21578_v35  }
 0x1ad   : > { %v3053_v56 = vadd.f32 %v21169_v2, %v3014_v57  ;;  %1597 = vperm.xlu0 %20392, %v21647_v16   ;;  %v1663_v57 = vmul.f32 %v21734_v49, %v21488_v46  ;;  %v21748_v46 = vld [vmem:[#allocation2 + $0x122] sm:$0xff]  ;;  %v2457_v7 = vmul.f32 %v21652_v21, %v21667_v29 }
 0x1ae   : > { %v3015_v2 = vadd.f32 %v2983_v51, %v2751_v6 }
 0x1af   : > { %vm3085_vm1 = vcmp.gt.f32.partialorder %v3053_v56, 0.0  ;;  %v3117_v4 = vmul.f32 0.2, %v3053_v56  ;;  %v21682_v23 = vpop.permute.xlu1 %1039 }
 0x1b0   : > { %v21684_v26 = vpop.permute.xlu0 %775  ;;  %v3054_v24 = vadd.f32 %v21689_v31, %v3015_v2  ;;  %820 = vperm.xlu1 %20393, %v21679_v3   ;;  %v1664_v2 = vmul.f32 %v21734_v49, %v21507_v38 }
 0x1b1   : > { %v3149_v9 = vsel %vm3085_vm1, %v3053_v56, %v3117_v4  ;;  %2634 = vperm.xlu0 %20392, %v21516_v44   ;;  %v21711_v44 = vld [vmem:[%s26235_s1] ss:$0 sm:$0xff]  ;;  %v1927_v56 = vmul.f32 %v21623_v14, %v21538_v5 }
 0x1b2   : > { %3181 = vst.msk [vmem:[#allocation3 + $0x91] sm:$0xff] %vm430_vm3, %v3149_v9  ;;  %vm3086_vm2 = vcmp.gt.f32.partialorder %v3054_v24, 0.0  ;;  %v3118_v48 = vmul.f32 0.2, %v3054_v24  ;;  %v871_v8 = vmul.f32 %v21711_v44, %v21365_v36  ;;  %v872_v47 = vmul.f32 %v21711_v44, %v21375_v42 }
 0x1b3   : > { %v2605_v17 = vpop.permute.xlu1 %2604  ;;  %v2191_v42 = vmul.f32 %v21632_v13, %v21580_v34 }
 0x1b4   : > { %v21699_v25 = vpop.permute.xlu0 %2085  ;;  %v3150_v58 = vsel %vm3086_vm2, %v3054_v24, %v3118_v48  ;;  %1602 = vperm.xlu1 %20393, %v21679_v3   ;;  %v1167_v36 = vadd.f32 %v1135_v19, %v871_v8  ;;  %v1168_v0 = vadd.f32 %v1136_v41, %v872_v47  ;;  %v1928_v24 = vmul.f32 %v21623_v14, %v21562_v62 }
 0x1b5   : > { %3182 = vst.msk [vmem:[#allocation3 + $0x99] sm:$0xff] %vm430_vm3, %v3150_v58  ;;  %1084 = vperm.xlu0 %20392, %v21697_v45   ;;  %v2192_v8 = vmul.f32 %v21632_v13, %v21614_v59  ;;  %v2720_v58 = vmul.f32 %v21661_v53, %v2605_v17 }
 0x1b6   : > { %v1431_v6 = vadd.f32 %v1399_v61, %v1167_v36  ;;  %v1432_v5 = vadd.f32 %v1400_v30, %v1168_v0  ;;  %v21775_v36 = vld [vmem:[#allocation2 + $0x12a] sm:$0xff] }
 0x1b7   : > { %v21725_v1 = vpop.permute.xlu1 %1044 }
 0x1b8   : > { %v21727_v32 = vpop.permute.xlu0 %780  ;;  %2639 = vperm.xlu1 %20393, %v21557_v55   ;;  %v1695_v4 = vadd.f32 %v1663_v57, %v1431_v6  ;;  %v1696_v48 = vadd.f32 %v1664_v2, %v1432_v5 }
 0x1b9   : > { %v3255_v22 = vld [vmem:[#allocation3 + $0x91] sm:$0xff]  ;;  %2120 = vperm.xlu0 %20392, %v21608_v63  }
 0x1ba   : > { %17591 = vmatprep.mubr.msk.f32.mxu1 %vm430_vm3, %v3255_v22  ;;  %17844 = vmatprep.mubr.msk.f32.mxu0 %vm430_vm3, %v3255_v22  ;;  %v1959_v9 = vadd.f32 %v1927_v56, %v1695_v4  ;;  %v1960_v62 = vadd.f32 %v1928_v24, %v1696_v48  ;;  %v1137_v48 = vmul.f32 %v21704_v37, %v21472_v12 }
 0x1bb   : > { %v2610_v55 = vpop.permute.xlu1 %2609 }
 0x1bc   : > { %v21750_v51 = vpop.permute.xlu0 %2090  ;;  %1861 = vperm.xlu1 %20393, %v21645_v11   ;;  %v3256_v54 = vld [vmem:[#allocation3 + $0x99] sm:$0xff]  ;;  %v2223_v19 = vadd.f32 %v2191_v42, %v1959_v9  ;;  %v2224_v22 = vadd.f32 %v2192_v8, %v1960_v62  ;;  %v2721_v59 = vmul.f32 %v21661_v53, %v2610_v55  ;;  %v21789_v55 = vld [vmem:[#allocation2 + $0x139] sm:$0xff]  ;;  %v1401_v62 = vmul.f32 %v21721_v27, %v21540_v33 }
 0x1bd   : > { %1343 = vperm.xlu0 %20392, %v21748_v46   ;;  %17592 = vmatmul.mubr.msk.f32.gmra.mrb[12].mxu1 %vm430_vm3, %v3256_v54  ;;  %v21791_v42 = vld [vmem:[#allocation2 + $0x138] sm:$0xff]  ;;  %v874_v33 = vmul.f32 %v21711_v44, %v21497_v60  ;;  %v2193_v60 = vmul.f32 %v21632_v13, %v21699_v25 }
 0x1be   : > { %17845 = vmatmul.mubr.msk.f32.gmra.mrb[10].mxu0 %vm430_vm3, %v3256_v54  ;;  %v2488_v61 = vadd.f32 %v2456_v43, %v2223_v19  ;;  %v873_v19 = vmul.f32 %v21711_v44, %v21474_v39  ;;  %v1138_v39 = vmul.f32 %v21704_v37, %v21509_v40  ;;  %v1929_v40 = vmul.f32 %v21623_v14, %v21638_v20 }
 0x1bf   : > { %v21764_v38 = vpop.permute.xlu1 %2350 }
 0x1c0   : > { %v21766_v34 = vpop.permute.xlu0 %1303  ;;  %2898 = vperm.xlu1 %20393, %v21578_v35   ;;  %v2752_v47 = vadd.f32 %v2720_v58, %v2488_v61  ;;  %v2489_v35 = vadd.f32 %v2457_v7, %v2224_v22  ;;  %v21810_v58 = vld [vmem:[#allocation2 + $0x140] sm:$0xff]  ;;  %v1169_v12 = vadd.f32 %v1137_v48, %v873_v19 }
 0x1c1   : > { %2380 = vperm.xlu0 %20392, %v21647_v16   ;;  %v21859_v48 = vld [vmem:[#allocation2 + $0x13a] sm:$0xff] }
 0x1c2   : > { %v2753_v29 = vadd.f32 %v2721_v59, %v2489_v35  ;;  %v1402_v59 = vmul.f32 %v21721_v27, %v21564_v15 }
 0x1c3   : > { %v21777_v41 = vpop.permute.xlu1 %1308 }
 0x1c4   : > { %v2869_v57 = vpop.permute.xlu0 %2868  ;;  %1866 = vperm.xlu1 %20393, %v21697_v45  }
 0x1c5   : > { %v2984_v17 = vmul.f32 %v21673_v50, %v2869_v57  ;;  %1348 = vperm.xlu0 %20392, %v21775_v36   ;;  %v1665_v57 = vmul.f32 %v21734_v49, %v21582_v28  ;;  %v21832_v28 = vld [vmem:[#allocation2 + $0x141] sm:$0xff] }
 0x1c7   : > { %v3016_v16 = vadd.f32 %v2984_v17, %v2752_v47  ;;  %v2874_v6 = vpop.permute.xlu1 %2873  ;;  %v1433_v47 = vadd.f32 %v1401_v62, %v1169_v12 }
 0x1c8   : > { %v21783_v30 = vpop.permute.xlu0 %2355  ;;  %v2985_v0 = vmul.f32 %v21673_v50, %v2874_v6  ;;  %2903 = vperm.xlu1 %20393, %v21608_v63   ;;  %v1666_v6 = vmul.f32 %v21734_v49, %v21595_v18 }
 0x1c9   : > { %v3055_v56 = vadd.f32 %v21689_v31, %v3016_v16  ;;  %2385 = vperm.xlu0 %20392, %v21679_v3   ;;  %v1697_v16 = vadd.f32 %v1665_v57, %v1433_v47 }
 0x1ca   : > { %v3017_v2 = vadd.f32 %v2985_v0, %v2753_v29  ;;  %v2458_v0 = vmul.f32 %v21652_v21, %v21764_v38  ;;  %v2459_v38 = vmul.f32 %v21652_v21, %v21783_v30 }
 0x1cb   : > { %vm3087_vm0 = vcmp.gt.f32.partialorder %v3055_v56, 0.0  ;;  %v3119_v4 = vmul.f32 0.2, %v3055_v56  ;;  %v21793_v54 = vpop.permute.xlu1 %1049  ;;  %v1961_v29 = vadd.f32 %v1929_v40, %v1697_v16 }
 0x1cc   : > { %v21795_v5 = vpop.permute.xlu0 %785  ;;  %v3056_v24 = vadd.f32 %v21689_v31, %v3017_v2  ;;  %1089 = vperm.xlu1 %20393, %v21789_v55  }
 0x1cd   : > { %v3151_v9 = vsel %vm3087_vm0, %v3055_v56, %v3119_v4  ;;  %825 = vperm.xlu0 %20392, %v21791_v42   ;;  %v1930_v56 = vmul.f32 %v21623_v14, %v21656_v10  ;;  %v2225_v2 = vadd.f32 %v2193_v60, %v1961_v29  ;;  %v21890_v29 = vld [vmem:[#allocation2 + $0x151] sm:$0xff] }
 0x1ce   : > { %3183 = vst.msk [vmem:[#allocation3 + $0xa9] sm:$0xff] %vm430_vm3, %v3151_v9  ;;  %vm3088_vm4 = vcmp.gt.f32.partialorder %v3056_v24, 0.0  ;;  %v3120_v63 = vmul.f32 0.2, %v3056_v24  ;;  %v2194_v9 = vmul.f32 %v21632_v13, %v21750_v51 }
 0x1cf   : > { %v2615_v3 = vpop.permute.xlu1 %2614 }
 0x1d0   : > { %v21801_v43 = vpop.permute.xlu0 %1567  ;;  %v3152_v8 = vsel %vm3088_vm4, %v3056_v24, %v3120_v63  ;;  %2125 = vperm.xlu1 %20393, %v21748_v46   ;;  %v2722_v24 = vmul.f32 %v21661_v53, %v2615_v3  ;;  %v2490_v63 = vadd.f32 %v2458_v0, %v2225_v2 }
 0x1d1   : > { %3184 = vst.msk [vmem:[#allocation3 + $0xb1] sm:$0xff] %vm430_vm3, %v3152_v8  ;;  %1607 = vperm.xlu0 %20392, %v21791_v42  }
 0x1d2   : > { %v2754_v12 = vadd.f32 %v2722_v24, %v2490_v63  ;;  %v689_v24 = vld [vmem:[#allocation2 + $0x158] sm:$0xff] }
 0x1d3   : > { %v21814_v61 = vpop.permute.xlu1 %1054 }
 0x1d4   : > { %v21816_v7 = vpop.permute.xlu0 %790  ;;  %830 = vperm.xlu1 %20393, %v21810_v58  }
 0x1d5   : > { %v3257_v22 = vld [vmem:[#allocation3 + $0xa9] sm:$0xff]  ;;  %2644 = vperm.xlu0 %20392, %v21645_v11   ;;  %v1170_v11 = vadd.f32 %v1138_v39, %v874_v33 }
 0x1d6   : > { %17594 = vmatprep.mubr.msk.f32.mxu1 %vm430_vm3, %v3257_v22  ;;  %17847 = vmatprep.mubr.msk.f32.mxu0 %vm430_vm3, %v3257_v22 }
 0x1d7   : > { %v2620_v17 = vpop.permute.xlu1 %2619  ;;  %v1434_v20 = vadd.f32 %v1402_v59, %v1170_v11 }
 0x1d8   : > { %v21834_v35 = vpop.permute.xlu0 %1572  ;;  %1612 = vperm.xlu1 %20393, %v21810_v58   ;;  %v3258_v15 = vld [vmem:[#allocation3 + $0xb1] sm:$0xff]  ;;  %v2723_v51 = vmul.f32 %v21661_v53, %v2620_v17 }
 0x1d9   : > { %1094 = vperm.xlu0 %20392, %v21832_v28   ;;  %17595 = vmatmul.mubr.msk.f32.gmra.mrb[14].mxu1 %vm430_vm3, %v3258_v15  ;;  %v1698_v4 = vadd.f32 %v1666_v6, %v1434_v20  ;;  %v21873_v17 = vld [vmem:[#allocation2 + $0x142] sm:$0xff] }
 0x1da   : > { %17848 = vmatmul.mubr.msk.f32.gmra.mrb[12].mxu0 %vm430_vm3, %v3258_v15 }
 0x1db   : > { %v21848_v18 = vpop.permute.xlu1 %1831  ;;  %v1962_v10 = vadd.f32 %v1930_v56, %v1698_v4  ;;  %v688_v56 = vld [vmem:[#allocation2 + $0x150] sm:$0xff] }
 0x1dc   : > { %v21850_v25 = vpop.permute.xlu0 %1313  ;;  %2649 = vperm.xlu1 %20393, %v21697_v45  }
 0x1dd   : > { %2130 = vperm.xlu0 %20392, %v21775_v36   ;;  %v2226_v62 = vadd.f32 %v2194_v9, %v1962_v10  ;;  %v5108_v10 = vld [vmem:[#allocation3 + $0x1a] sm:$0xff] }
 0x1df   : > { %v21861_v19 = vpop.permute.xlu1 %1318  ;;  %v2491_v45 = vadd.f32 %v2459_v38, %v2226_v62  ;;  %v5110_v62 = vld [vmem:[#allocation3 + $0x32] sm:$0xff] }
 0x1e0   : > { %v2879_v8 = vpop.permute.xlu0 %2878  ;;  %1871 = vperm.xlu1 %20393, %v21789_v55  }
 0x1e1   : > { %v2986_v3 = vmul.f32 %v21673_v50, %v2879_v8  ;;  %1353 = vperm.xlu0 %20392, %v21859_v48   ;;  %v2755_v30 = vadd.f32 %v2723_v51, %v2491_v45  ;;  %v5109_v8 = vld [vmem:[#allocation3 + $0x22] sm:$0xff]  ;;  %v5111_v45 = vld [vmem:[#allocation3 + $0x3a] sm:$0xff] }
 0x1e3   : > { %v3018_v39 = vadd.f32 %v2986_v3, %v2754_v12  ;;  %v2884_v57 = vpop.permute.xlu1 %2883  ;;  %v21913_v12 = vld [vmem:[#allocation2 + $0x159] sm:$0xff] }
 0x1e4   : > { %v21867_v22 = vpop.permute.xlu0 %1836  ;;  %v2987_v47 = vmul.f32 %v21673_v50, %v2884_v57  ;;  %2908 = vperm.xlu1 %20393, %v21748_v46  }
 0x1e5   : > { %v3057_v33 = vadd.f32 %v21689_v31, %v3018_v39  ;;  %2390 = vperm.xlu0 %20392, %v21791_v42   ;;  %v5112_v39 = vld [vmem:[#allocation3 + $0x4a] sm:$0xff] }
 0x1e6   : > { %v3019_v40 = vadd.f32 %v2987_v47, %v2755_v30  ;;  %v5113_v30 = vld [vmem:[#allocation3 + $0x52] sm:$0xff]  ;;  %v21930_v47 = vld [vmem:[#allocation2 + $0x152] sm:$0xff] }
 0x1e7   : > { %vm3089_vm5 = vcmp.gt.f32.partialorder %v3057_v33, 0.0  ;;  %v3121_v59 = vmul.f32 0.2, %v3057_v33  ;;  %v21875_v11 = vpop.permute.xlu1 %1059 }
 0x1e8   : > { %v21877_v16 = vpop.permute.xlu0 %795  ;;  %v3058_v60 = vadd.f32 %v21689_v31, %v3019_v40  ;;  %1876 = vperm.xlu1 %20393, %v21832_v28  }
 0x1e9   : > { %v3153_v6 = vsel %vm3089_vm5, %v3057_v33, %v3121_v59  ;;  %1358 = vperm.xlu0 %20392, %v21873_v17   ;;  %v5114_v33 = vld [vmem:[#allocation3 + $0x62] sm:$0xff] }
 0x1ea   : > { %3185 = vst.msk [vmem:[#allocation3 + $0xc1] sm:$0xff] %vm430_vm3, %v3153_v6  ;;  %vm3090_vm6 = vcmp.gt.f32.partialorder %v3058_v60, 0.0  ;;  %v3122_v46 = vmul.f32 0.2, %v3058_v60  ;;  %v5115_v6 = vld [vmem:[#allocation3 + $0x6a] sm:$0xff] }
 0x1eb   : > { %v21883_v42 = vpop.permute.xlu1 %2095 }
 0x1ec   : > { %v21885_v15 = vpop.permute.xlu0 %1577  ;;  %v3154_v20 = vsel %vm3090_vm6, %v3058_v60, %v3122_v46  ;;  %2913 = vperm.xlu1 %20393, %v21775_v36  }
 0x1ed   : > { %3186 = vst.msk [vmem:[#allocation3 + $0xc9] sm:$0xff] %vm430_vm3, %v3154_v20  ;;  %2395 = vperm.xlu0 %20392, %v21810_v58   ;;  %v5117_v20 = vld [vmem:[#allocation3 + $0x82] sm:$0xff] }
 0x1ef   : > { %v21892_v0 = vpop.permute.xlu1 %1064 }
 0x1f0   : > { %v21894_v4 = vpop.permute.xlu0 %800  ;;  %1099 = vperm.xlu1 %20393, %v21890_v29  }
 0x1f1   : > { %v3259_v2 = vld [vmem:[#allocation3 + $0xc1] sm:$0xff]  ;;  %835 = vperm.xlu0 %20392, %v688_v56  }
 0x1f2   : > { %17597 = vmatprep.mubr.msk.f32.mxu1 %vm430_vm3, %v3259_v2  ;;  %17850 = vmatprep.mubr.msk.f32.mxu0 %vm430_vm3, %v3259_v2  ;;  %v5118_v2 = vld [vmem:[#allocation3 + $0x92] sm:$0xff] }
 0x1f3   : > { %v21899_v36 = vpop.permute.xlu1 %2100 }
 0x1f4   : > { %v21901_v9 = vpop.permute.xlu0 %1582  ;;  %2135 = vperm.xlu1 %20393, %v21859_v48   ;;  %v3260_v58 = vld [vmem:[#allocation3 + $0xc9] sm:$0xff] }
 0x1f5   : > { %1617 = vperm.xlu0 %20392, %v688_v56   ;;  %17598 = vmatmul.mubr.msk.f32.gmra.mrb[16].mxu1 %vm430_vm3, %v3260_v58 }
 0x1f6   : > { %17851 = vmatmul.mubr.msk.f32.gmra.mrb[14].mxu0 %vm430_vm3, %v3260_v58  ;;  %v21947_v58 = vld [vmem:[#allocation2 + $0x15a] sm:$0xff] }
 0x1f7   : > { %17893 = vmatprep.mubr.msk.f32.mxu0 %vm430_vm3, %v5108_v10  ;;  %v21907_v63 = vpop.permute.xlu1 %1841 }
 0x1f8   : > { %v21909_v38 = vpop.permute.xlu0 %1323  ;;  %840 = vperm.xlu1 %20393, %v689_v24  }
 0x1f9   : > { %2654 = vperm.xlu0 %20392, %v21789_v55  }
 0x1fa   : > { %17894 = vmatmul.mubr.msk.f32.vlgmr.msra.gmra.mrb[0].mxu0 %vm430_vm3, %v5109_v8 }
 0x1fb   : > { %17896 = vmatprep.mubr.msk.f32.mxu0 %vm430_vm3, %v5110_v62  ;;  %v21916_v51 = vpop.permute.xlu1 %1328  ;;  %v1139_v62 = vmul.f32 %v21704_v37, %v21682_v23 }
 0x1fc   : > { %v21918_v3 = vpop.permute.xlu0 %2360  ;;  %1622 = vperm.xlu1 %20393, %v689_v24  }
 0x1fd   : > { %1104 = vperm.xlu0 %20392, %v21913_v12  }
 0x1fe   : > { %17897 = vmatmul.mubr.msk.f32.gmra.mrb[2].mxu0 %vm430_vm3, %v5111_v45  ;;  %v875_v45 = vmul.f32 %v21711_v44, %v21684_v26  ;;  %v1667_v26 = vmul.f32 %v21734_v49, %v21801_v43 }
 0x1ff   : > { %17899 = vmatprep.mubr.msk.f32.mxu0 %vm430_vm3, %v5112_v39  ;;  %v21923_v55 = vpop.permute.xlu1 %2365  ;;  %v5120_v39 = vld [vmem:[#allocation3 + $0xaa] sm:$0xff] }
 0x200   : > { %v21925_v57 = vpop.permute.xlu0 %1846  ;;  %2659 = vperm.xlu1 %20393, %v21832_v28   ;;  %v5116_v28 = vld [vmem:[#allocation3 + $0x7a] sm:$0xff]  ;;  %v1171_v23 = vadd.f32 %v1139_v62, %v875_v45  ;;  %v876_v62 = vmul.f32 %v21711_v44, %v21727_v32  ;;  %v1404_v45 = vmul.f32 %v21721_v27, %v21777_v41 }
 0x201   : > { %2140 = vperm.xlu0 %20392, %v21873_v17  }
 0x202   : > { %17900 = vmatmul.mubr.msk.f32.gmra.mrb[4].mxu0 %vm430_vm3, %v5113_v30 }
 0x203   : > { %17902 = vmatprep.mubr.msk.f32.mxu0 %vm430_vm3, %v5114_v33  ;;  %v21933_v59 = vpop.permute.xlu1 %1069 }
 0x204   : > { %v21935_v40 = vpop.permute.xlu0 %805  ;;  %1881 = vperm.xlu1 %20393, %v21890_v29  }
 0x205   : > { %1363 = vperm.xlu0 %20392, %v21930_v47  }
 0x206   : > { %17903 = vmatmul.mubr.msk.f32.gmra.mrb[6].mxu0 %vm430_vm3, %v5115_v6  ;;  %v5121_v6 = vld [vmem:[#allocation3 + $0xb2] sm:$0xff] }
 0x207   : > { %17905 = vmatprep.mubr.msk.f32.mxu0 %vm430_vm3, %v5116_v28  ;;  %v21941_v60 = vpop.permute.xlu1 %2105 }
 0x208   : > { %v21943_v46 = vpop.permute.xlu0 %1587  ;;  %2918 = vperm.xlu1 %20393, %v21859_v48   ;;  %v5119_v48 = vld [vmem:[#allocation3 + $0x9a] sm:$0xff] }
 0x209   : > { %2400 = vperm.xlu0 %20392, %v688_v56   ;;  %v1403_v56 = vmul.f32 %v21721_v27, %v21766_v34  ;;  %v1931_v34 = vmul.f32 %v21623_v14, %v21848_v18  ;;  %v2195_v18 = vmul.f32 %v21632_v13, %v21883_v42  ;;  %v1668_v42 = vmul.f32 %v21734_v49, %v21834_v35  ;;  %v3235_v35 = vld [vmem:[%s26237_s3] sm:$0xff] }
 0x20a   : > { %17906 = vmatmul.mubr.msk.f32.gmra.mrb[8].mxu0 %vm430_vm3, %v5117_v20  ;;  %v5122_v20 = vld [vmem:[#allocation3 + $0xc2] sm:$0xff] }
 0x20b   : > { %17908 = vmatprep.mubr.msk.f32.mxu0 %vm430_vm3, %v5118_v2  ;;  %v21950_v10 = vpop.permute.xlu1 %810  ;;  %v1435_v28 = vadd.f32 %v1403_v56, %v1171_v23  ;;  %v21972_v2 = vld [vmem:[#allocation2 + $0x168] sm:$0xff]  ;;  %v21987_v56 = vld [vmem:[#allocation2 + $0x170] sm:$0xff] }
 0x20c   : > { %v2625_v8 = vpop.permute.xlu0 %2624  ;;  %1886 = vperm.xlu1 %20393, %v21913_v12  }
 0x20d   : > { %1368 = vperm.xlu0 %20392, %v21947_v58  }
 0x20e   : > { %17909 = vmatmul.mubr.msk.f32.gmra.mrb[10].mxu0 %vm430_vm3, %v5119_v48  ;;  %v1140_v48 = vmul.f32 %v21704_v37, %v21725_v1  ;;  %v5123_v1 = vld [vmem:[#allocation3 + $0xca] sm:$0xff] }
 0x20f   : > { %17911 = vmatprep.mubr.msk.f32.mxu0 %vm430_vm3, %v5120_v39  ;;  %v21962_v30 = vpop.permute.xlu1 %1592  ;;  %v2460_v39 = vmul.f32 %v21652_v21, %v21918_v3  ;;  %v1932_v3 = vmul.f32 %v21623_v14, %v21867_v22 }
 0x210   : > { %v21964_v33 = vpop.permute.xlu0 %1074  ;;  %2923 = vperm.xlu1 %20393, %v21873_v17   ;;  %v1172_v23 = vadd.f32 %v1140_v48, %v876_v62 }
 0x211   : > { %2405 = vperm.xlu0 %20392, %v689_v24   ;;  %v1699_v24 = vadd.f32 %v1667_v26, %v1435_v28  ;;  %v2724_v28 = vmul.f32 %v21661_v53, %v2625_v8  ;;  %v3236_v8 = vld [vmem:[%s26237_s3 + $0x8] sm:$0xff] }
 0x212   : > { %17912 = vmatmul.mubr.msk.f32.gmra.mrb[12].mxu0 %vm430_vm3, %v5121_v6  ;;  %v19229_v22 = vpack.c.bf16 %v3236_v8, %v3235_v35 }
 0x213   : > { %17914 = vmatprep.mubr.msk.f32.mxu0 %vm430_vm3, %v5122_v20  ;;  %v2630_v43 = vpop.permute.xlu1 %2629  ;;  %v1963_v32 = vadd.f32 %v1931_v34, %v1699_v24  ;;  %v1436_v20 = vadd.f32 %v1404_v45, %v1172_v23  ;;  %v22018_v23 = vld [vmem:[#allocation2 + $0x169] sm:$0xff] }
 0x214   : > { %v21979_v17 = vpop.permute.xlu0 %2110  ;;  %2145 = vperm.xlu1 %20393, %v21930_v47   ;;  %19230 = vmatprep.subr.bf16.mxu1 %v19229_v22 }
 0x215   : > { %1627 = vperm.xlu0 %20392, %v21972_v2   ;;  %v2227_v41 = vadd.f32 %v2195_v18, %v1963_v32  ;;  %v1700_v48 = vadd.f32 %v1668_v42, %v1436_v20  ;;  %v2196_v18 = vmul.f32 %v21632_v13, %v21899_v36  ;;  %v2461_v32 = vmul.f32 %v21652_v21, %v21923_v55  ;;  %v22028_v20 = vld [vmem:[#allocation2 + $0x171] sm:$0xff] }
 0x216   : > { %17915 = vmatmul.mubr.msk.f32.gmra.mrb[14].mxu0 %vm430_vm3, %v5123_v1  ;;  %19232 = vmatpush3.bf16.msra.mxu1 %v19229_v22 }
 0x217   : > { %v21994_v26 = vpop.permute.xlu1 %1851  ;;  %v2492_v34 = vadd.f32 %v2460_v39, %v2227_v41  ;;  %v1964_v1 = vadd.f32 %v1932_v3, %v1700_v48 }
 0x218   : > { %v21996_v6 = vpop.permute.xlu0 %1333  ;;  %1632 = vperm.xlu1 %20393, %v21987_v56  }
 0x219   : > { %2664 = vperm.xlu0 %20392, %v21890_v29   ;;  %v2756_v29 = vadd.f32 %v2724_v28, %v2492_v34  ;;  %v2228_v36 = vadd.f32 %v2196_v18, %v1964_v1  ;;  %v2725_v28 = vmul.f32 %v21661_v53, %v2630_v43  ;;  %v22043_v1 = vld [vmem:[#allocation2 + $0x16a] sm:$0xff] }
 0x21b   : > { %v2889_v62 = vpop.permute.xlu1 %2888  ;;  %v2493_v55 = vadd.f32 %v2461_v32, %v2228_v36 }
 0x21c   : > { %v22003_v24 = vpop.permute.xlu0 %2370  ;;  %v2988_v45 = vmul.f32 %v21673_v50, %v2889_v62  ;;  %2669 = vperm.xlu1 %20393, %v21913_v12  }
 0x21d   : > { %2150 = vperm.xlu0 %20392, %v21947_v58   ;;  %v2757_v62 = vadd.f32 %v2725_v28, %v2493_v55  ;;  %v877_v55 = vmul.f32 %v21711_v44, %v21795_v5 }
 0x21e   : > { %v3020_v39 = vadd.f32 %v2988_v45, %v2756_v29 }
 0x21f   : > { %v22020_v42 = vpop.permute.xlu1 %1856 }
 0x220   : > { %v22022_v41 = vpop.permute.xlu0 %1338  ;;  %v3059_v12 = vadd.f32 %v21689_v31, %v3020_v39  ;;  %2410 = vperm.xlu1 %20393, %v21972_v2  }
 0x221   : > { %1891 = vperm.xlu0 %20392, %v22018_v23  }
 0x222   : > { %vm3091_vm7 = vcmp.gt.f32.partialorder %v3059_v12, 0.0  ;;  %v3123_v3 = vmul.f32 0.2, %v3059_v12 }
 0x223   : > { %v2894_v34 = vpop.permute.xlu1 %2893 }
 0x224   : > { %v22030_v48 = vpop.permute.xlu0 %2375  ;;  %v3155_v35 = vsel %vm3091_vm7, %v3059_v12, %v3123_v3  ;;  %v2989_v8 = vmul.f32 %v21673_v50, %v2894_v34  ;;  %1896 = vperm.xlu1 %20393, %v22028_v20   ;;  %v1141_v12 = vmul.f32 %v21704_v37, %v21793_v54  ;;  %v3237_v34 = vld [vmem:[%s26237_s3 + $0x10] sm:$0xff]  ;;  %v22071_v54 = vld [vmem:[#allocation2 + $0x180] sm:$0xff] }
 0x225   : > { %3187 = vst.msk [vmem:[#allocation3 + $0xd9] sm:$0xff] %vm430_vm3, %v3155_v35  ;;  %2928 = vperm.xlu0 %20392, %v21930_v47   ;;  %v1405_v35 = vmul.f32 %v21721_v27, %v21850_v25 }
 0x226   : > { %v3021_v43 = vadd.f32 %v2989_v8, %v2757_v62  ;;  %v3238_v62 = vld [vmem:[%s26237_s3 + $0x18] sm:$0xff] }
 0x227   : > { %v22036_v18 = vpop.permute.xlu1 %1079  ;;  %v19233_v8 = vpack.c.bf16 %v3238_v62, %v3237_v34  ;;  %v1933_v34 = vmul.f32 %v21623_v14, %v21907_v63  ;;  %v878_v62 = vmul.f32 %v21711_v44, %v21816_v7  ;;  %v22098_v63 = vld [vmem:[#allocation2 + $0x189] sm:$0xff]  ;;  %v22104_v7 = vld [vmem:[#allocation2 + $0x181] sm:$0xff] }
 0x228   : > { %v22038_v29 = vpop.permute.xlu0 %815  ;;  %v3060_v45 = vadd.f32 %v21689_v31, %v3021_v43  ;;  %2933 = vperm.xlu1 %20393, %v21947_v58   ;;  %v22053_v58 = vld [vmem:[#allocation2 + $0x172] sm:$0xff]  ;;  %v1173_v43 = vadd.f32 %v1141_v12, %v877_v55  ;;  %v22085_v12 = vld [vmem:[#allocation2 + $0x188] sm:$0xff]  ;;  %v1142_v55 = vmul.f32 %v21704_v37, %v21814_v61  ;;  %v2462_v61 = vmul.f32 %v21652_v21, %v22003_v24 }
 0x229   : > { %26399 = vst [vmem:[#allocation15_spill] sm:$0xff] %v22038_v29  ;;  %2415 = vperm.xlu0 %20392, %v21987_v56   ;;  %19234 = vmatprep.subr.bf16.mxu1 %v19233_v8 }
 0x22a   : > { %vm3092_vm8 = vcmp.gt.f32.partialorder %v3060_v45, 0.0  ;;  %v3124_v22 = vmul.f32 0.2, %v3060_v45  ;;  %v1437_v25 = vadd.f32 %v1405_v35, %v1173_v43  ;;  %19236 = vmatpush3.bf16.msra.mxu1 %v19233_v8  ;;  %v2197_v35 = vmul.f32 %v21632_v13, %v21941_v60 }
 0x22b   : > { %v22045_v32 = vpop.permute.xlu1 %2115  ;;  %v1174_v60 = vadd.f32 %v1142_v55, %v878_v62  ;;  %v22119_v55 = vld [vmem:[#allocation2 + $0x182] sm:$0xff] }
 0x22c   : > { %v22047_v39 = vpop.permute.xlu0 %1597  ;;  %v3156_v47 = vsel %vm3092_vm8, %v3060_v45, %v3124_v22  ;;  %2674 = vperm.xlu1 %20393, %v22018_v23   ;;  %v3261_v36 = vld [vmem:[#allocation3 + $0xd9] sm:$0xff]  ;;  %v1669_v45 = vmul.f32 %v21734_v49, %v21885_v15 }
 0x22d   : > { %3188 = vst.msk [vmem:[#allocation3 + $0xe1] sm:$0xff] %vm430_vm3, %v3156_v47  ;;  %2155 = vperm.xlu0 %20392, %v22043_v1   ;;  %17600 = vmatprep.mubr.msk.f32.mxu1 %vm430_vm3, %v3261_v36 }
 0x22f   : > { %v22055_v28 = vpop.permute.xlu1 %820 }
 0x230   : > { %26400 = vst [vmem:[#allocation16_spill] sm:$0xff] %v22055_v28  ;;  %v2635_v3 = vpop.permute.xlu0 %2634  ;;  %2679 = vperm.xlu1 %20393, %v22028_v20   ;;  %v1701_v28 = vadd.f32 %v1669_v45, %v1437_v25 }
 0x231   : > { %2160 = vperm.xlu0 %20392, %v22053_v58   ;;  %v2726_v25 = vmul.f32 %v21661_v53, %v2635_v3  ;;  %v2198_v3 = vmul.f32 %v21632_v13, %v21979_v17  ;;  %v15701_v13 = vld [vmem:[%s26237_s3 + $0x180] sm:$0xff] }
 0x232   : > { %v1965_v8 = vadd.f32 %v1933_v34, %v1701_v28  ;;  %v1934_v28 = vmul.f32 %v21623_v14, %v21925_v57  ;;  %v3239_v14 = vld [vmem:[%s26237_s3 + $0x20] sm:$0xff]  ;;  %v3240_v57 = vld [vmem:[%s26237_s3 + $0x28] sm:$0xff] }
 0x233   : > { %v22073_v5 = vpop.permute.xlu1 %1602 }
 0x234   : > { %v22077_v22 = vpop.permute.xlu0 %1084  ;;  %2938 = vperm.xlu1 %20393, %v22043_v1   ;;  %v3262_v47 = vld [vmem:[#allocation3 + $0xe1] sm:$0xff] }
 0x235   : > { %26401 = vst [vmem:[#allocation17_spill] sm:$0xff] %v22077_v22  ;;  %v5124_v36 = vld [vmem:[#allocation3 + $0xda] sm:$0xff]  ;;  %v5125_v52 = vld [vmem:[#allocation3 + $0xe2] sm:$0xff]  ;;  %2420 = vperm.xlu0 %20392, %v22071_v54   ;;  %17601 = vmatmul.mubr.msk.f32.gmra.mrb[18].mxu1 %vm430_vm3, %v3262_v47  ;;  %v1670_v47 = vmul.f32 %v21734_v49, %v21901_v9 }
 0x236   : > { %17917 = vmatprep.mubr.msk.f32.mxu0 %vm430_vm3, %v5124_v36  ;;  %v2229_v36 = vadd.f32 %v2197_v35, %v1965_v8 }
 0x237   : > { %17918 = vmatmul.mubr.msk.f32.gmra.mrb[16].mxu0 %vm430_vm3, %v5125_v52  ;;  %v2640_v15 = vpop.permute.xlu1 %2639  ;;  %v1406_v52 = vmul.f32 %v21721_v27, %v21861_v19  ;;  %v22115_v19 = vld [vmem:[#allocation2 + $0x18a] sm:$0xff] }
 0x238   : > { %v22094_v43 = vpop.permute.xlu0 %2120  ;;  %2943 = vperm.xlu1 %20393, %v22053_v58   ;;  %v2494_v34 = vadd.f32 %v2462_v61, %v2229_v36 }
 0x239   : > { %2425 = vperm.xlu0 %20392, %v22085_v12   ;;  %v1438_v24 = vadd.f32 %v1406_v52, %v1174_v60  ;;  %v2463_v52 = vmul.f32 %v21652_v21, %v22030_v48  ;;  %v19237_v60 = vpack.c.bf16 %v3240_v57, %v3239_v14  ;;  %v15704_v57 = vld [vmem:[%s26237_s3 + $0x198] sm:$0xff] }
 0x23a   : > { %v2758_v35 = vadd.f32 %v2726_v25, %v2494_v34  ;;  %v2727_v34 = vmul.f32 %v21661_v53, %v2640_v15 }
 0x23b   : > { %v22106_v45 = vpop.permute.xlu1 %1861  ;;  %v1702_v9 = vadd.f32 %v1670_v47, %v1438_v24  ;;  %v15702_v47 = vld [vmem:[%s26237_s3 + $0x188] sm:$0xff]  ;;  %19238 = vmatprep.subr.bf16.mxu1 %v19237_v60 }
 0x23c   : > { %v22111_v22 = vpop.permute.xlu0 %1343  ;;  %2689 = vperm.xlu1 %20393, %v22098_v63   ;;  %v19309_v25 = vpack.c.bf16 %v15702_v47, %v15701_v13  ;;  %19240 = vmatpush3.bf16.msra.mxu1 %v19237_v60  ;;  %v1143_v60 = vmul.f32 %v21704_v37, %v21875_v11  ;;  %v879_v47 = vmul.f32 %v21711_v44, %v21877_v16 }
 0x23d   : > { %26402 = vst [vmem:[#allocation18_spill] sm:$0xff] %v22111_v22  ;;  %2684 = vperm.xlu0 %20392, %v22104_v7   ;;  %v1966_v17 = vadd.f32 %v1934_v28, %v1702_v9 }
 0x23e   : > { %19310 = vmatprep.subr.bf16.mxu0 %v19309_v25 }
 0x23f   : > { %v2899_v62 = vpop.permute.xlu1 %2898  ;;  %v2230_v24 = vadd.f32 %v2198_v3, %v1966_v17  ;;  %19312 = vmatpush3.bf16.msra.mxu0 %v19309_v25 }
 0x240   : > { %v2990_v8 = vmul.f32 %v21673_v50, %v2899_v62  ;;  %v22124_v22 = vpop.permute.xlu0 %2380  ;;  %2953 = vperm.xlu1 %20393, %v22115_v19  }
 0x241   : > { %2948 = vperm.xlu0 %20392, %v22119_v55   ;;  %v2495_v21 = vadd.f32 %v2463_v52, %v2230_v24 }
 0x242   : > { %v3022_v61 = vadd.f32 %v2990_v8, %v2758_v35  ;;  %v3241_v35 = vld [vmem:[%s26237_s3 + $0x30] sm:$0xff]  ;;  %v3242_v8 = vld [vmem:[%s26237_s3 + $0x38] sm:$0xff] }
 0x243   : > { %v22142_v36 = vpop.permute.xlu1 %1866  ;;  %v2759_v9 = vadd.f32 %v2727_v34, %v2495_v21  ;;  %v1671_v34 = vmul.f32 %v21734_v49, %v21943_v46 }
 0x244   : > { %v3061_v62 = vadd.f32 %v21689_v31, %v3022_v61  ;;  %v22146_v29 = vpop.permute.xlu0 %1348  ;;  %850 = vperm.xlu1 %20393, %v21987_v56  }
 0x245   : > { %845 = vperm.xlu0 %20392, %v21972_v2  }
 0x246   : > { %vm3093_vm9 = vcmp.gt.f32.partialorder %v3061_v62, 0.0  ;;  %v3125_v48 = vmul.f32 0.2, %v3061_v62 }
 0x247   : > { %v2904_v28 = vpop.permute.xlu1 %2903 }
 0x248   : > { %v3157_v3 = vsel %vm3093_vm9, %v3061_v62, %v3125_v48  ;;  %v2991_v53 = vmul.f32 %v21673_v50, %v2904_v28  ;;  %v22151_v15 = vpop.permute.xlu0 %2385  ;;  %1114 = vperm.xlu1 %20393, %v22028_v20   ;;  %v15703_v50 = vld [vmem:[%s26237_s3 + $0x190] sm:$0xff]  ;;  %v1144_v48 = vmul.f32 %v21704_v37, %v21892_v0  ;;  %v22227_v37 = vld [vmem:[%s26235_s1 + $0x5] ss:$0 sm:$0xff] }
 0x249   : > { %3189 = vst.msk [vmem:[#allocation3 + $0xf1] sm:$0xff] %vm430_vm3, %v3157_v3  ;;  %1109 = vperm.xlu0 %20392, %v22018_v23   ;;  %v19241_v23 = vpack.c.bf16 %v3242_v8, %v3241_v35  ;;  %v19313_v13 = vpack.c.bf16 %v15704_v57, %v15703_v50  ;;  %v15705_v3 = vld [vmem:[%s26237_s3 + $0x1a0] sm:$0xff]  ;;  %v1408_v50 = vmul.f32 %v21721_v27, %v21916_v51 }
 0x24a   : > { %v3023_v2 = vadd.f32 %v2991_v53, %v2759_v9  ;;  %v15541_v9 = vld [vmem:[%s26237_s3 + $0x80] sm:$0xff] }
 0x24b   : > { %v22156_v56 = vpop.permute.xlu1 %1089  ;;  %19242 = vmatprep.subr.bf16.mxu1 %v19241_v23  ;;  %19314 = vmatprep.subr.bf16.mxu0 %v19313_v13  ;;  %v2539_v35 = vld [vmem:[#allocation2 + $0x1a1] sm:$0xff]  ;;  %v2538_v57 = vld [vmem:[#allocation2 + $0x199] sm:$0xff] }
 0x24c   : > { %v3062_v20 = vadd.f32 %v21689_v31, %v3023_v2  ;;  %v22168_v14 = vpop.permute.xlu0 %825  ;;  %1378 = vperm.xlu1 %20393, %v22053_v58   ;;  %19244 = vmatpush3.bf16.msra.mxu1 %v19241_v23  ;;  %v15706_v2 = vld [vmem:[%s26237_s3 + $0x1a8] sm:$0xff]  ;;  %v22255_v51 = vld [vmem:[%s26235_s1 + $0x7] ss:$0 sm:$0xff] }
 0x24d   : > { %1373 = vperm.xlu0 %20392, %v22043_v1   ;;  %19316 = vmatpush3.bf16.msra.mxu0 %v19313_v13  ;;  %v19317_v8 = vpack.c.bf16 %v15706_v2, %v15705_v3 }
 0x24e   : > { %vm3094_vm10 = vcmp.gt.f32.partialorder %v3062_v20, 0.0  ;;  %v3126_v17 = vmul.f32 0.2, %v3062_v20 }
 0x24f   : > { %v22175_v52 = vpop.permute.xlu1 %2125  ;;  %19318 = vmatprep.subr.bf16.mxu0 %v19317_v8 }
 0x250   : > { %v3158_v31 = vsel %vm3094_vm10, %v3062_v20, %v3126_v17  ;;  %v22177_v61 = vpop.permute.xlu0 %1607  ;;  %1642 = vperm.xlu1 %20393, %v22085_v12   ;;  %v3263_v58 = vld [vmem:[#allocation3 + $0xf1] sm:$0xff]  ;;  %v1407_v12 = vmul.f32 %v21721_v27, %v21909_v38 }
 0x251   : > { %3190 = vst.msk [vmem:[#allocation3 + $0xf9] sm:$0xff] %vm430_vm3, %v3158_v31  ;;  %1637 = vperm.xlu0 %20392, %v22071_v54   ;;  %17603 = vmatprep.mubr.msk.f32.mxu1 %vm430_vm3, %v3263_v58  ;;  %v1175_v54 = vadd.f32 %v1143_v60, %v879_v47  ;;  %v22205_v38 = vld [vmem:[%s26235_s1 + $0x4] ss:$0 sm:$0xff]  ;;  %v1672_v31 = vmul.f32 %v21734_v49, %v21962_v30  ;;  %v2802_v49 = vld [vmem:[#allocation2 + $0x19a] sm:$0xff] }
 0x252   : > { %v1935_v46 = vmul.f32 %v22205_v38, %v21994_v26  ;;  %v15542_v26 = vld [vmem:[%s26237_s3 + $0x88] sm:$0xff]  ;;  %19320 = vmatpush3.bf16.msra.mxu0 %v19317_v8 }
 0x253   : > { %v22183_v1 = vpop.permute.xlu1 %830 }
 0x254   : > { %v2645_v25 = vpop.permute.xlu0 %2644  ;;  %1906 = vperm.xlu1 %20393, %v22098_v63   ;;  %v2275_v63 = vld [vmem:[#allocation2 + $0x1a0] sm:$0xff] }
 0x255   : > { %1901 = vperm.xlu0 %20392, %v22104_v7   ;;  %v1439_v7 = vadd.f32 %v1407_v12, %v1175_v54  ;;  %v2728_v58 = vmul.f32 %v22255_v51, %v2645_v25  ;;  %v1936_v12 = vmul.f32 %v22205_v38, %v22020_v42  ;;  %v22267_v25 = vld [vmem:[%s26235_s1 + $0x8] ss:$0 sm:$0xff] }
 0x257   : > { %v22193_v24 = vpop.permute.xlu1 %1612  ;;  %v1703_v53 = vadd.f32 %v1671_v34, %v1439_v7 }
 0x258   : > { %v22197_v62 = vpop.permute.xlu0 %1094  ;;  %2170 = vperm.xlu1 %20393, %v22115_v19   ;;  %v3264_v11 = vld [vmem:[#allocation3 + $0xf9] sm:$0xff]  ;;  %v2274_v19 = vld [vmem:[#allocation2 + $0x198] sm:$0xff] }
 0x259   : > { %v5126_v16 = vld [vmem:[#allocation3 + $0xf2] sm:$0xff]  ;;  %v5127_v21 = vld [vmem:[#allocation3 + $0xfa] sm:$0xff]  ;;  %2165 = vperm.xlu0 %20392, %v22119_v55   ;;  %17604 = vmatmul.mubr.msk.f32.gmra.mrb[20].mxu1 %vm430_vm3, %v3264_v11  ;;  %v880_v55 = vmul.f32 %v21711_v44, %v21894_v4  ;;  %v2199_v44 = vmul.f32 %v22227_v37, %v22045_v32  ;;  %v22233_v4 = vpack.c.bf16 %v15542_v26, %v15541_v9 }
 0x25a   : > { %17920 = vmatprep.mubr.msk.f32.mxu0 %vm430_vm3, %v5126_v16  ;;  %v1967_v20 = vadd.f32 %v1935_v46, %v1703_v53  ;;  %v22243_v32 = vld [vmem:[%s26235_s1 + $0x6] ss:$0 sm:$0xff]  ;;  %v2200_v11 = vmul.f32 %v22227_v37, %v22094_v43 }
 0x25b   : > { %17921 = vmatmul.mubr.msk.f32.gmra.mrb[18].mxu0 %vm430_vm3, %v5127_v21  ;;  %v2650_v28 = vpop.permute.xlu1 %2649  ;;  %v2464_v23 = vmul.f32 %v22243_v32, %v22124_v22  ;;  %19246 = vmatprep.subr.bf16.mxu1 %v22233_v4  ;;  %v1176_v13 = vadd.f32 %v1144_v48, %v880_v55  ;;  %v2803_v22 = vld [vmem:[#allocation2 + $0x1a2] sm:$0xff]  ;;  %v2465_v7 = vmul.f32 %v22243_v32, %v22151_v15  ;;  %v22280_v55 = vld [vmem:[%s26236_s2] ss:$0 sm:$0xff] }
 0x25c   : > { %v22231_v0 = vpop.permute.xlu0 %2130  ;;  %2435 = vperm.xlu1 %20393, %v2275_v63   ;;  %v2231_v27 = vadd.f32 %v2199_v44, %v1967_v20  ;;  %v2729_v48 = vmul.f32 %v22255_v51, %v2650_v28 }
 0x25d   : > { %2430 = vperm.xlu0 %20392, %v2274_v19   ;;  %v1440_v47 = vadd.f32 %v1408_v50, %v1176_v13  ;;  %v15707_v50 = vld [vmem:[%s26237_s3 + $0x1b0] sm:$0xff]  ;;  %v22299_v13 = vld [vmem:[%s26235_s1 + $0x1] ss:$0 sm:$0xff] }
 0x25e   : > { %v2496_v54 = vadd.f32 %v2464_v23, %v2231_v27  ;;  %v15708_v23 = vld [vmem:[%s26237_s3 + $0x1b8] sm:$0xff] }
 0x25f   : > { %v22248_v17 = vpop.permute.xlu1 %1871  ;;  %v1704_v34 = vadd.f32 %v1672_v31, %v1440_v47 }
 0x260   : > { %v22258_v60 = vpop.permute.xlu0 %1353  ;;  %2699 = vperm.xlu1 %20393, %v2539_v35   ;;  %v2760_v16 = vadd.f32 %v2728_v58, %v2496_v54  ;;  %v19321_v58 = vpack.c.bf16 %v15708_v23, %v15707_v50  ;;  %v1937_v50 = vmul.f32 %v22205_v38, %v22106_v45 }
 0x261   : > { %2694 = vperm.xlu0 %20392, %v2538_v57   ;;  %v1968_v42 = vadd.f32 %v1936_v12, %v1704_v34 }
 0x262   : > { %19322 = vmatprep.subr.bf16.mxu0 %v19321_v58 }
 0x263   : > { %v2909_v30 = vpop.permute.xlu1 %2908  ;;  %v2232_v43 = vadd.f32 %v2200_v11, %v1968_v42  ;;  %19324 = vmatpush3.bf16.msra.mxu0 %v19321_v58 }
 0x264   : > { %v2992_v21 = vmul.f32 %v22267_v25, %v2909_v30  ;;  %v22270_v63 = vpop.permute.xlu0 %2390  ;;  %2963 = vperm.xlu1 %20393, %v2803_v22   ;;  %v22305_v22 = vld [vmem:[%s26235_s1] ss:$0 sm:$0xff] }
 0x265   : > { %2958 = vperm.xlu0 %20392, %v2802_v49   ;;  %v2497_v3 = vadd.f32 %v2465_v7, %v2232_v43  ;;  %v881_v42 = vmul.f32 %v22305_v22, %v21935_v40  ;;  %v15742_v43 = vld [vmem:[%s26237_s3 + $0x1c8] sm:$0xff]  ;;  %v2466_v45 = vmul.f32 %v22243_v32, %v22270_v63  ;;  %v2202_v63 = vmul.f32 %v22227_v37, %v22231_v0 }
 0x266   : > { %v3024_v46 = vadd.f32 %v2992_v21, %v2760_v16  ;;  %v1145_v21 = vmul.f32 %v22299_v13, %v21933_v59 }
 0x267   : > { %v22274_v19 = vpop.permute.xlu1 %1876  ;;  %v2761_v15 = vadd.f32 %v2729_v48, %v2497_v3  ;;  %v22331_v48 = vld [vmem:[%s26235_s1 + $0x2] ss:$0 sm:$0xff] }
 0x268   : > { %v3063_v9 = vadd.f32 %v22280_v55, %v3024_v46  ;;  %v22283_v26 = vpop.permute.xlu0 %1358  ;;  %v15741_v46 = vld [vmem:[%s26237_s3 + $0x1c0] sm:$0xff]  ;;  %v1409_v59 = vmul.f32 %v22331_v48, %v21996_v6  ;;  %v1177_v3 = vadd.f32 %v1145_v21, %v881_v42  ;;  %v1410_v58 = vmul.f32 %v22331_v48, %v22022_v41 }
 0x26a   : > { %vm3095_vm11 = vcmp.gt.f32.partialorder %v3063_v9, 0.0  ;;  %v3127_v53 = vmul.f32 0.2, %v3063_v9  ;;  %v1441_v6 = vadd.f32 %v1409_v59, %v1177_v3 }
 0x26b   : > { %v2914_v44 = vpop.permute.xlu1 %2913 }
 0x26c   : > { %v3159_v2 = vsel %vm3095_vm11, %v3063_v9, %v3127_v53  ;;  %v2993_v35 = vmul.f32 %v22267_v25, %v2914_v44  ;;  %v22286_v8 = vpop.permute.xlu0 %2395  ;;  %v22335_v9 = vpack.c.bf16 %v15742_v43, %v15741_v46  ;;  %v22342_v53 = vld [vmem:[%s26235_s1 + $0x3] ss:$0 sm:$0xff] }
 0x26d   : > { %3191 = vst.msk [vmem:[#allocation3 + $0x109] sm:$0xff] %vm430_vm3, %v3159_v2  ;;  %v1673_v44 = vmul.f32 %v22342_v53, %v22047_v39  ;;  %v1146_v39 = vmul.f32 %v22299_v13, %v21964_v33  ;;  %v1674_v33 = vmul.f32 %v22342_v53, %v22073_v5 }
 0x26e   : > { %v3025_v28 = vadd.f32 %v2993_v35, %v2761_v15  ;;  %19326 = vmatprep.subr.bf16.mxu0 %v22335_v9 }
 0x26f   : > { %v1100_v20 = vpop.permute.xlu1 %1099  ;;  %v1705_v23 = vadd.f32 %v1673_v44, %v1441_v6 }
 0x270   : > { %v3064_v57 = vadd.f32 %v22280_v55, %v3025_v28  ;;  %v1151_v31 = vmul.f32 %v22299_v13, %v1100_v20  ;;  %v836_v27 = vpop.permute.xlu0 %835 }
 0x271   : > { %v887_v47 = vmul.f32 %v22305_v22, %v836_v27  ;;  %v882_v27 = vmul.f32 %v22305_v22, %v21950_v10  ;;  %v1938_v10 = vmul.f32 %v22205_v38, %v22142_v36 }
 0x272   : > { %vm3096_vm12 = vcmp.gt.f32.partialorder %v3064_v57, 0.0  ;;  %v3128_v12 = vmul.f32 0.2, %v3064_v57 }
 0x273   : > { %v22308_v54 = vadd.f32 %v1151_v31, %v887_v47  ;;  %v22310_v49 = vpop.permute.xlu1 %2135  ;;  %v1969_v47 = vadd.f32 %v1937_v50, %v1705_v23 }
 0x274   : > { %v3160_v30 = vsel %vm3096_vm12, %v3064_v57, %v3128_v12  ;;  %v22312_v34 = vpop.permute.xlu0 %1617  ;;  %v3265_v11 = vld [vmem:[#allocation3 + $0x109] sm:$0xff]  ;;  %v2201_v57 = vmul.f32 %v22227_v37, %v22175_v52 }
 0x275   : > { %3192 = vst.msk [vmem:[#allocation3 + $0x111] sm:$0xff] %vm430_vm3, %v3160_v30  ;;  %17606 = vmatprep.mubr.msk.f32.mxu1 %vm430_vm3, %v3265_v11  ;;  %v1178_v30 = vadd.f32 %v1146_v39, %v882_v27 }
 0x276   : > { %v2233_v11 = vadd.f32 %v2201_v57, %v1969_v47 }
 0x277   : > { %v22316_v16 = vpop.permute.xlu1 %840  ;;  %v1442_v42 = vadd.f32 %v1410_v58, %v1178_v30 }
 0x278   : > { %v2655_v7 = vpop.permute.xlu0 %2654  ;;  %v2498_v41 = vadd.f32 %v2466_v45, %v2233_v11  ;;  %v26403_v11 = vld [vmem:[#allocation15_spill] sm:$0xff] }
 0x279   : > { %v2730_v52 = vmul.f32 %v22255_v51, %v2655_v7  ;;  %v1706_v43 = vadd.f32 %v1674_v33, %v1442_v42  ;;  %v2467_v7 = vmul.f32 %v22243_v32, %v22286_v8  ;;  %v1147_v33 = vmul.f32 %v22299_v13, %v22036_v18 }
 0x27a   : > { %v1675_v18 = vmul.f32 %v22342_v53, %v22177_v61 }
 0x27b   : > { %v22337_v40 = vpop.permute.xlu1 %1622  ;;  %v2762_v59 = vadd.f32 %v2730_v52, %v2498_v41  ;;  %v1970_v5 = vadd.f32 %v1938_v10, %v1706_v43  ;;  %v883_v52 = vmul.f32 %v22305_v22, %v26403_v11  ;;  %v26404_v10 = vld [vmem:[#allocation18_spill] sm:$0xff]  ;;  %v26405_v43 = vld [vmem:[#allocation17_spill] sm:$0xff] }
 0x27c   : > { %v22346_v15 = vpop.permute.xlu0 %1104  ;;  %v3266_v2 = vld [vmem:[#allocation3 + $0x111] sm:$0xff]  ;;  %v1411_v41 = vmul.f32 %v22331_v48, %v26404_v10 }
 0x27d   : > { %v5128_v35 = vld [vmem:[#allocation3 + $0x10a] sm:$0xff]  ;;  %v5129_v28 = vld [vmem:[#allocation3 + $0x112] sm:$0xff]  ;;  %17607 = vmatmul.mubr.msk.f32.gmra.mrb[22].mxu1 %vm430_vm3, %v3266_v2 }
 0x27e   : > { %17923 = vmatprep.mubr.msk.f32.mxu0 %vm430_vm3, %v5128_v35 }
 0x27f   : > { %17924 = vmatmul.mubr.msk.f32.gmra.mrb[20].mxu0 %vm430_vm3, %v5129_v28  ;;  %v2660_v20 = vpop.permute.xlu1 %2659  ;;  %v2234_v28 = vadd.f32 %v2202_v63, %v1970_v5  ;;  %v1148_v63 = vmul.f32 %v22299_v13, %v26405_v43 }
 0x280   : > { %v22358_v31 = vpop.permute.xlu0 %2140  ;;  %v2731_v36 = vmul.f32 %v22255_v51, %v2660_v20 }
 0x281   : > { %v2499_v39 = vadd.f32 %v2467_v7, %v2234_v28  ;;  %v1179_v7 = vadd.f32 %v1147_v33, %v883_v52  ;;  %v2204_v52 = vmul.f32 %v22227_v37, %v22358_v31  ;;  %v1149_v31 = vmul.f32 %v22299_v13, %v22156_v56 }
 0x283   : > { %v22366_v12 = vpop.permute.xlu1 %1881  ;;  %v2763_v57 = vadd.f32 %v2731_v36, %v2499_v39  ;;  %v1412_v36 = vmul.f32 %v22331_v48, %v22146_v29  ;;  %v1939_v39 = vmul.f32 %v22205_v38, %v22248_v17 }
 0x284   : > { %v22371_v21 = vpop.permute.xlu0 %1363 }
 0x287   : > { %v2919_v46 = vpop.permute.xlu1 %2918 }
 0x288   : > { %v2994_v3 = vmul.f32 %v22267_v25, %v2919_v46  ;;  %v2401_v44 = vpop.permute.xlu0 %2400 }
 0x289   : > { %v2468_v33 = vmul.f32 %v22243_v32, %v2401_v44 }
 0x28a   : > { %v3026_v2 = vadd.f32 %v2994_v3, %v2762_v59 }
 0x28b   : > { %v22380_v35 = vpop.permute.xlu1 %1886 }
 0x28c   : > { %v3065_v6 = vadd.f32 %v22280_v55, %v3026_v2  ;;  %v22384_v50 = vpop.permute.xlu0 %1368  ;;  %v26406_v2 = vld [vmem:[#allocation16_spill] sm:$0xff] }
 0x28d   : > { %v884_v28 = vmul.f32 %v22305_v22, %v26406_v2  ;;  %v1413_v2 = vmul.f32 %v22331_v48, %v22258_v60 }
 0x28e   : > { %vm3097_vm13 = vcmp.gt.f32.partialorder %v3065_v6, 0.0  ;;  %v3129_v0 = vmul.f32 0.2, %v3065_v6 }
 0x28f   : > { %v2924_v23 = vpop.permute.xlu1 %2923 }
 0x290   : > { %v3161_v27 = vsel %vm3097_vm13, %v3065_v6, %v3129_v0  ;;  %v2995_v58 = vmul.f32 %v22267_v25, %v2924_v23  ;;  %v2406_v47 = vpop.permute.xlu0 %2405  ;;  %v1443_v6 = vadd.f32 %v1411_v41, %v1179_v7  ;;  %v1180_v23 = vadd.f32 %v1148_v63, %v884_v28 }
 0x291   : > { %3193 = vst.msk [vmem:[#allocation3 + $0x121] sm:$0xff] %vm430_vm3, %v3161_v27  ;;  %v2469_v44 = vmul.f32 %v22243_v32, %v2406_v47  ;;  %v885_v63 = vmul.f32 %v22305_v22, %v22168_v14  ;;  %v1677_v14 = vmul.f32 %v22342_v53, %v22312_v34 }
 0x292   : > { %v3027_v8 = vadd.f32 %v2995_v58, %v2763_v57  ;;  %v1676_v57 = vmul.f32 %v22342_v53, %v22193_v24  ;;  %v1707_v27 = vadd.f32 %v1675_v18, %v1443_v6  ;;  %v2203_v58 = vmul.f32 %v22227_v37, %v22310_v49 }
 0x293   : > { %v22388_v45 = vpop.permute.xlu1 %2145  ;;  %v1181_v6 = vadd.f32 %v1149_v31, %v885_v63 }
 0x294   : > { %v3066_v20 = vadd.f32 %v22280_v55, %v3027_v8  ;;  %v22391_v30 = vpop.permute.xlu0 %1627  ;;  %v1444_v8 = vadd.f32 %v1412_v36, %v1180_v23  ;;  %v1971_v29 = vadd.f32 %v1939_v39, %v1707_v27  ;;  %v1150_v36 = vmul.f32 %v22299_v13, %v22197_v62 }
 0x295   : > { %v1941_v62 = vmul.f32 %v22205_v38, %v22366_v12 }
 0x296   : > { %vm3098_vm14 = vcmp.gt.f32.partialorder %v3066_v20, 0.0  ;;  %v3130_v42 = vmul.f32 0.2, %v3066_v20  ;;  %v1708_v17 = vadd.f32 %v1676_v57, %v1444_v8  ;;  %v2235_v49 = vadd.f32 %v2203_v58, %v1971_v29 }
 0x297   : > { %v22399_v46 = vpop.permute.xlu1 %1632  ;;  %v1445_v58 = vadd.f32 %v1413_v2, %v1181_v6  ;;  %v1414_v8 = vmul.f32 %v22331_v48, %v22283_v26 }
 0x298   : > { %v3162_v59 = vsel %vm3098_vm14, %v3066_v20, %v3130_v42  ;;  %v2665_v3 = vpop.permute.xlu0 %2664  ;;  %v3267_v5 = vld [vmem:[#allocation3 + $0x121] sm:$0xff]  ;;  %v1940_v20 = vmul.f32 %v22205_v38, %v22274_v19  ;;  %v1680_v6 = vmul.f32 %v22342_v53, %v22399_v46 }
 0x299   : > { %3194 = vst.msk [vmem:[#allocation3 + $0x129] sm:$0xff] %vm430_vm3, %v3162_v59  ;;  %17609 = vmatprep.mubr.msk.f32.mxu1 %vm430_vm3, %v3267_v5  ;;  %v2732_v43 = vmul.f32 %v22255_v51, %v2665_v3  ;;  %v2500_v59 = vadd.f32 %v2468_v33, %v2235_v49  ;;  %v1709_v33 = vadd.f32 %v1677_v14, %v1445_v58 }
 0x29a   : > { %v1972_v19 = vadd.f32 %v1940_v20, %v1708_v17  ;;  %v1678_v17 = vmul.f32 %v22342_v53, %v22337_v40 }
 0x29b   : > { %v2670_v0 = vpop.permute.xlu1 %2669  ;;  %v2764_v47 = vadd.f32 %v2732_v43, %v2500_v59  ;;  %v1152_v59 = vmul.f32 %v22299_v13, %v22346_v15 }
 0x29c   : > { %v22415_v61 = vpop.permute.xlu0 %2150  ;;  %v2236_v3 = vadd.f32 %v2204_v52, %v1972_v19  ;;  %v2733_v7 = vmul.f32 %v22255_v51, %v2670_v0  ;;  %v886_v0 = vmul.f32 %v22305_v22, %v22183_v1  ;;  %v1973_v19 = vadd.f32 %v1941_v62, %v1709_v33 }
 0x29e   : > { %v2501_v56 = vadd.f32 %v2469_v44, %v2236_v3  ;;  %v1182_v29 = vadd.f32 %v1150_v36, %v886_v0  ;;  %v1942_v44 = vmul.f32 %v22205_v38, %v22380_v35  ;;  %v888_v35 = vmul.f32 %v22305_v22, %v22316_v16 }
 0x29f   : > { %v2411_v11 = vpop.permute.xlu1 %2410 }
 0x2a0   : > { %v22424_v42 = vpop.permute.xlu0 %1891  ;;  %v3268_v24 = vld [vmem:[#allocation3 + $0x129] sm:$0xff]  ;;  %v2765_v57 = vadd.f32 %v2733_v7, %v2501_v56  ;;  %v1446_v43 = vadd.f32 %v1414_v8, %v1182_v29  ;;  %v2470_v31 = vmul.f32 %v22243_v32, %v2411_v11  ;;  %v2206_v7 = vmul.f32 %v22227_v37, %v22415_v61 }
 0x2a1   : > { %v22426_v10 = vld [vmem:[#allocation3 + $0x122] sm:$0xff]  ;;  %v22428_v41 = vld [vmem:[#allocation3 + $0x12a] sm:$0xff]  ;;  %17610 = vmatmul.mubr.msk.f32.gmra.mrb[24].mxu1 %vm430_vm3, %v3268_v24  ;;  %v2205_v24 = vmul.f32 %v22227_v37, %v22388_v45  ;;  %v1416_v11 = vmul.f32 %v22331_v48, %v22384_v50  ;;  %v1184_v56 = vadd.f32 %v1152_v59, %v888_v35  ;;  %v1415_v61 = vmul.f32 %v22331_v48, %v22371_v21 }
 0x2a2   : > { %17926 = vmatprep.mubr.msk.f32.mxu0 %vm430_vm3, %v22426_v10  ;;  %v1710_v63 = vadd.f32 %v1678_v17, %v1446_v43 }
 0x2a3   : > { %17927 = vmatmul.mubr.msk.f32.gmra.mrb[22].mxu0 %vm430_vm3, %v22428_v41  ;;  %v22441_v5 = vpop.permute.xlu1 %1896  ;;  %v2237_v3 = vadd.f32 %v2205_v24, %v1973_v19  ;;  %v1447_v46 = vadd.f32 %v1415_v61, %v22308_v54 }
 0x2a4   : > { %v2929_v18 = vpop.permute.xlu0 %2928 }
 0x2a5   : > { %v2996_v28 = vmul.f32 %v22267_v25, %v2929_v18  ;;  %v2502_v36 = vadd.f32 %v2470_v31, %v2237_v3 }
 0x2a7   : > { %v3028_v39 = vadd.f32 %v2996_v28, %v2764_v47  ;;  %v2934_v23 = vpop.permute.xlu1 %2933  ;;  %v1974_v28 = vadd.f32 %v1942_v44, %v1710_v63 }
 0x2a8   : > { %v2997_v27 = vmul.f32 %v22267_v25, %v2934_v23  ;;  %v2416_v60 = vpop.permute.xlu0 %2415 }
 0x2a9   : > { %v3067_v20 = vadd.f32 %v22280_v55, %v3028_v39  ;;  %v2471_v15 = vmul.f32 %v22243_v32, %v2416_v60  ;;  %v2238_v39 = vadd.f32 %v2206_v7, %v1974_v28  ;;  %v1944_v60 = vmul.f32 %v22205_v38, %v22441_v5 }
 0x2aa   : > { %v3029_v34 = vadd.f32 %v2997_v27, %v2765_v57  ;;  %v1448_v57 = vadd.f32 %v1416_v11, %v1184_v56  ;;  %v1679_v27 = vmul.f32 %v22342_v53, %v22391_v30 }
 0x2ab   : > { %vm3099_vm15 = vcmp.gt.f32.partialorder %v3067_v20, 0.0  ;;  %v3131_v1 = vmul.f32 0.2, %v3067_v20  ;;  %v2675_v52 = vpop.permute.xlu1 %2674  ;;  %v2503_v21 = vadd.f32 %v2471_v15, %v2238_v39 }
 0x2ac   : > { %v3068_v49 = vadd.f32 %v22280_v55, %v3029_v34  ;;  %v2156_v26 = vpop.permute.xlu0 %2155  ;;  %v2734_v2 = vmul.f32 %v22255_v51, %v2675_v52  ;;  %v1712_v62 = vadd.f32 %v1680_v6, %v1448_v57  ;;  %v1711_v54 = vadd.f32 %v1679_v27, %v1447_v46 }
 0x2ad   : > { %v3163_v12 = vsel %vm3099_vm15, %v3067_v20, %v3131_v1  ;;  %v1943_v20 = vmul.f32 %v22205_v38, %v22424_v42  ;;  %v2207_v43 = vmul.f32 %v22227_v37, %v2156_v26 }
 0x2ae   : > { %3195 = vst.msk [vmem:[#allocation3 + $0x139] sm:$0xff] %vm430_vm3, %v3163_v12  ;;  %vm3100_vm1 = vcmp.gt.f32.partialorder %v3068_v49, 0.0  ;;  %v3132_v40 = vmul.f32 0.2, %v3068_v49  ;;  %v2766_v23 = vadd.f32 %v2734_v2, %v2502_v36 }
 0x2af   : > { %v2680_v45 = vpop.permute.xlu1 %2679  ;;  %v1975_v44 = vadd.f32 %v1943_v20, %v1711_v54 }
 0x2b0   : > { %v3164_v18 = vsel %vm3100_vm1, %v3068_v49, %v3132_v40  ;;  %v2161_v47 = vpop.permute.xlu0 %2160  ;;  %v2735_v16 = vmul.f32 %v22255_v51, %v2680_v45  ;;  %v1976_v49 = vadd.f32 %v1944_v60, %v1712_v62 }
 0x2b1   : > { %3196 = vst.msk [vmem:[#allocation3 + $0x141] sm:$0xff] %vm430_vm3, %v3164_v18  ;;  %v2208_v30 = vmul.f32 %v22227_v37, %v2161_v47  ;;  %v2239_v7 = vadd.f32 %v2207_v43, %v1975_v44  ;;  %v15544_v44 = vld [vmem:[%s26237_s3 + $0x98] sm:$0xff] }
 0x2b2   : > { %v2767_v34 = vadd.f32 %v2735_v16, %v2503_v21 }
 0x2b3   : > { %v2939_v14 = vpop.permute.xlu1 %2938  ;;  %v2240_v63 = vadd.f32 %v2208_v30, %v1976_v49 }
 0x2b4   : > { %v2998_v50 = vmul.f32 %v22267_v25, %v2939_v14  ;;  %v2421_v0 = vpop.permute.xlu0 %2420 }
 0x2b5   : > { %v22489_v58 = vld [vmem:[#allocation3 + $0x139] sm:$0xff]  ;;  %v2472_v31 = vmul.f32 %v22243_v32, %v2421_v0 }
 0x2b6   : > { %v3030_v8 = vadd.f32 %v2998_v50, %v2766_v23  ;;  %17612 = vmatprep.mubr.msk.f32.mxu1 %vm430_vm3, %v22489_v58 }
 0x2b7   : > { %v2944_v29 = vpop.permute.xlu1 %2943  ;;  %v2504_v35 = vadd.f32 %v2472_v31, %v2239_v7 }
 0x2b8   : > { %v3069_v33 = vadd.f32 %v22280_v55, %v3030_v8  ;;  %v2999_v5 = vmul.f32 %v22267_v25, %v2944_v29  ;;  %v2426_v17 = vpop.permute.xlu0 %2425  ;;  %v22499_v1 = vld [vmem:[#allocation3 + $0x141] sm:$0xff] }
 0x2b9   : > { %v22501_v52 = vld [vmem:[#allocation3 + $0x13a] sm:$0xff]  ;;  %v22503_v24 = vld [vmem:[#allocation3 + $0x142] sm:$0xff]  ;;  %17613 = vmatmul.mubr.msk.f32.gmra.mrb[26].mxu1 %vm430_vm3, %v22499_v1  ;;  %v2473_v12 = vmul.f32 %v22243_v32, %v2426_v17 }
 0x2ba   : > { %17929 = vmatprep.mubr.msk.f32.mxu0 %vm430_vm3, %v22501_v52  ;;  %vm3101_vm2 = vcmp.gt.f32.partialorder %v3069_v33, 0.0  ;;  %v3133_v42 = vmul.f32 0.2, %v3069_v33  ;;  %v3031_v19 = vadd.f32 %v2999_v5, %v2767_v34 }
 0x2bb   : > { %17930 = vmatmul.mubr.msk.f32.gmra.mrb[24].mxu0 %vm430_vm3, %v22503_v24  ;;  %v2690_v40 = vpop.permute.xlu1 %2689  ;;  %v2505_v47 = vadd.f32 %v2473_v12, %v2240_v63  ;;  %v15543_v12 = vld [vmem:[%s26237_s3 + $0x90] sm:$0xff] }
 0x2bc   : > { %v3165_v26 = vsel %vm3101_vm2, %v3069_v33, %v3133_v42  ;;  %v3070_v59 = vadd.f32 %v22280_v55, %v3031_v19  ;;  %v2737_v45 = vmul.f32 %v22255_v51, %v2690_v40  ;;  %v2685_v3 = vpop.permute.xlu0 %2684  ;;  %v3203_v19 = vld [vmem:[#allocation3] sm:$0xff] }
 0x2bd   : > { %3197 = vst.msk [vmem:[#allocation3 + $0x151] sm:$0xff] %vm430_vm3, %v3165_v26  ;;  %v2736_v18 = vmul.f32 %v22255_v51, %v2685_v3  ;;  %v3204_v26 = vld [vmem:[#allocation3 + $0x8] sm:$0xff] }
 0x2be   : > { %vm3102_vm0 = vcmp.gt.f32.partialorder %v3070_v59, 0.0  ;;  %v3134_v2 = vmul.f32 0.2, %v3070_v59  ;;  %v2769_v36 = vadd.f32 %v2737_v45, %v2505_v47  ;;  %v19249_v45 = vpack.c.bf16 %v15544_v44, %v15543_v12  ;;  %v22614_v12 = vld [vmem:[#allocation3 + $0x48] sm:$0xff] }
 0x2bf   : > { %v2954_v11 = vpop.permute.xlu1 %2953  ;;  %v2768_v61 = vadd.f32 %v2736_v18, %v2504_v35  ;;  %v15545_v18 = vld [vmem:[%s26237_s3 + $0xa0] sm:$0xff] }
 0x2c0   : > { %v3166_v28 = vsel %vm3102_vm0, %v3070_v59, %v3134_v2  ;;  %v3001_v15 = vmul.f32 %v22267_v25, %v2954_v11  ;;  %v2949_v56 = vpop.permute.xlu0 %2948  ;;  %v15546_v2 = vld [vmem:[%s26237_s3 + $0xa8] sm:$0xff] }
 0x2c1   : > { %3198 = vst.msk [vmem:[#allocation3 + $0x159] sm:$0xff] %vm430_vm3, %v3166_v28  ;;  %v3000_v6 = vmul.f32 %v22267_v25, %v2949_v56  ;;  %v22577_v11 = vld [vmem:[#allocation3 + $0x18] sm:$0xff] }
 0x2c2   : > { %v3033_v14 = vadd.f32 %v3001_v15, %v2769_v36 }
 0x2c3   : > { %v3032_v39 = vadd.f32 %v3000_v6, %v2768_v61  ;;  %v851_v23 = vpop.permute.xlu1 %850 }
 0x2c4   : > { %v3072_v16 = vadd.f32 %v22280_v55, %v3033_v14  ;;  %v846_v50 = vpop.permute.xlu0 %845  ;;  %v22522_v0 = vld [vmem:[#allocation3 + $0x151] sm:$0xff]  ;;  %v890_v3 = vmul.f32 %v22305_v22, %v851_v23  ;;  %v22585_v14 = vld [vmem:[#allocation3 + $0x20] sm:$0xff]  ;;  %v15548_v23 = vld [vmem:[%s26237_s3 + $0xb8] sm:$0xff] }
 0x2c5   : > { %v3071_v57 = vadd.f32 %v22280_v55, %v3032_v39  ;;  %17615 = vmatprep.mubr.msk.f32.mxu1 %vm430_vm3, %v22522_v0  ;;  %v889_v47 = vmul.f32 %v22305_v22, %v846_v50  ;;  %v19253_v22 = vpack.c.bf16 %v15546_v2, %v15545_v18  ;;  %v15547_v39 = vld [vmem:[%s26237_s3 + $0xb0] sm:$0xff]  ;;  %v22596_v50 = vld [vmem:[#allocation3 + $0x30] sm:$0xff] }
 0x2c6   : > { %vm3104_vm4 = vcmp.gt.f32.partialorder %v3072_v16, 0.0  ;;  %v3136_v27 = vmul.f32 0.2, %v3072_v16  ;;  %v22626_v18 = vld [vmem:[#allocation3 + $0x60] sm:$0xff] }
 0x2c7   : > { %vm3103_vm5 = vcmp.gt.f32.partialorder %v3071_v57, 0.0  ;;  %v3135_v60 = vmul.f32 0.2, %v3071_v57  ;;  %v1115_v21 = vpop.permute.xlu1 %1114 }
 0x2c8   : > { %v3168_v8 = vsel %vm3104_vm4, %v3072_v16, %v3136_v27  ;;  %v1110_v46 = vpop.permute.xlu0 %1109  ;;  %v22527_v62 = vld [vmem:[#allocation3 + $0x159] sm:$0xff]  ;;  %v1154_v40 = vmul.f32 %v22299_v13, %v1115_v21 }
 0x2c9   : > { %v22529_v20 = vld [vmem:[#allocation3 + $0x152] sm:$0xff]  ;;  %v22531_v29 = vld [vmem:[#allocation3 + $0x15a] sm:$0xff]  ;;  %3200 = vst.msk [vmem:[#allocation3 + $0x171] sm:$0xff] %vm430_vm3, %v3168_v8  ;;  %v3167_v34 = vsel %vm3103_vm5, %v3071_v57, %v3135_v60  ;;  %17616 = vmatmul.mubr.msk.f32.gmra.mrb[28].mxu1 %vm430_vm3, %v22527_v62  ;;  %v1153_v59 = vmul.f32 %v22299_v13, %v1110_v46  ;;  %v19257_v46 = vpack.c.bf16 %v15548_v23, %v15547_v39 }
 0x2ca   : > { %17932 = vmatprep.mubr.msk.f32.mxu0 %vm430_vm3, %v22529_v20  ;;  %3199 = vst.msk [vmem:[#allocation3 + $0x169] sm:$0xff] %vm430_vm3, %v3167_v34  ;;  %v1186_v28 = vadd.f32 %v1154_v40, %v890_v3  ;;  %v22647_v39 = vld [vmem:[#allocation3 + $0x90] sm:$0xff] }
 0x2cb   : > { %17933 = vmatmul.mubr.msk.f32.gmra.mrb[26].mxu0 %vm430_vm3, %v22531_v29  ;;  %v1379_v30 = vpop.permute.xlu1 %1378  ;;  %v1185_v56 = vadd.f32 %v1153_v59, %v889_v47 }
 0x2cc   : > { %v1374_v33 = vpop.permute.xlu0 %1373  ;;  %v1418_v7 = vmul.f32 %v22331_v48, %v1379_v30  ;;  %v22603_v30 = vld [vmem:[#allocation3 + $0x38] sm:$0xff] }
 0x2cd   : > { %v1417_v35 = vmul.f32 %v22331_v48, %v1374_v33  ;;  %v15581_v33 = vld [vmem:[%s26237_s3 + $0xc0] sm:$0xff] }
 0x2ce   : > { %v1450_v48 = vadd.f32 %v1418_v7, %v1186_v28 }
 0x2cf   : > { %v1643_v5 = vpop.permute.xlu1 %1642  ;;  %v1449_v16 = vadd.f32 %v1417_v35, %v1185_v56  ;;  %v22637_v56 = vld [vmem:[#allocation3 + $0x78] sm:$0xff] }
 0x2d0   : > { %v1638_v17 = vpop.permute.xlu0 %1637  ;;  %v22541_v54 = vld [vmem:[#allocation3 + $0x171] sm:$0xff]  ;;  %v1682_v36 = vmul.f32 %v22342_v53, %v1643_v5 }
 0x2d1   : > { %v22543_v49 = vld [vmem:[#allocation3 + $0x172] sm:$0xff]  ;;  %v22545_v43 = vld [vmem:[#allocation3 + $0x169] sm:$0xff]  ;;  %v1681_v61 = vmul.f32 %v22342_v53, %v1638_v17 }
 0x2d2   : > { %v22547_v42 = vld [vmem:[#allocation3 + $0x16a] sm:$0xff]  ;;  %17618 = vmatprep.mubr.msk.f32.mxu1 %vm430_vm3, %v22545_v43  ;;  %v1714_v57 = vadd.f32 %v1682_v36, %v1450_v48  ;;  %v15582_v5 = vld [vmem:[%s26237_s3 + $0xc8] sm:$0xff]  ;;  %v22643_v48 = vld [vmem:[#allocation3 + $0x80] sm:$0xff] }
 0x2d3   : > { %17935 = vmatprep.mubr.msk.f32.mxu0 %vm430_vm3, %v22547_v42  ;;  %17619 = vmatmul.mubr.msk.f32.gmra.mrb[30].mxu1 %vm430_vm3, %v22541_v54  ;;  %v1907_v31 = vpop.permute.xlu1 %1906  ;;  %v1713_v21 = vadd.f32 %v1681_v61, %v1449_v16  ;;  %v22620_v59 = vpack.c.bf16 %v15582_v5, %v15581_v33  ;;  %v22633_v36 = vld [vmem:[#allocation3 + $0x68] sm:$0xff]  ;;  %v22693_v33 = vld [vmem:[#allocation3 + $0xe0] sm:$0xff]  ;;  %v22699_v5 = vld [vmem:[#allocation3 + $0xf0] sm:$0xff] }
 0x2d4   : > { %17936 = vmatmul.mubr.msk.f32.gmra.mrb[28].mxu0 %vm430_vm3, %v22543_v49  ;;  %v1902_v63 = vpop.permute.xlu0 %1901  ;;  %17637 = vmatprep.mubr.msk.f32.mxu1 %vm430_vm3, %v3203_v19  ;;  %v1946_v6 = vmul.f32 %v22205_v38, %v1907_v31 }
 0x2d7   : > { %17638 = vmatmul.mubr.msk.f32.vlgmr.msra.gmra.mrb[0].mxu1 %vm430_vm3, %v3204_v26  ;;  %v2171_v13 = vpop.permute.xlu1 %2170 }
 0x2d8   : > { %17640 = vmatprep.mubr.msk.f32.mxu1 %vm430_vm3, %v22577_v11  ;;  %v2166_v15 = vpop.permute.xlu0 %2165  ;;  %19248 = vmatpush3.bf16.msra.mxu1 %v22233_v4  ;;  %v1945_v4 = vmul.f32 %v22205_v38, %v1902_v63  ;;  %v2210_v27 = vmul.f32 %v22227_v37, %v2171_v13  ;;  %v1978_v38 = vadd.f32 %v1946_v6, %v1714_v57  ;;  %v22665_v57 = vld [vmem:[#allocation3 + $0xc0] sm:$0xff] }
 0x2d9   : > { %19250 = vmatprep.subr.bf16.mxu1 %v19249_v45  ;;  %v2209_v8 = vmul.f32 %v22227_v37, %v2166_v15 }
 0x2da   : > { %v1977_v17 = vadd.f32 %v1945_v4, %v1713_v21  ;;  %v2242_v44 = vadd.f32 %v2210_v27, %v1978_v38  ;;  %v22657_v4 = vld [vmem:[#allocation3 + $0xa8] sm:$0xff]  ;;  %v22687_v38 = vld [vmem:[#allocation3 + $0xd8] sm:$0xff] }
 0x2db   : > { %17641 = vmatmul.mubr.msk.f32.gmra.mrb[2].mxu1 %vm430_vm3, %v22585_v14  ;;  %v2436_v53 = vpop.permute.xlu1 %2435  ;;  %v22675_v21 = vld [vmem:[#allocation3 + $0xc8] sm:$0xff] }
 0x2dc   : > { %17643 = vmatprep.mubr.msk.f32.mxu1 %vm430_vm3, %v22596_v50  ;;  %v2431_v60 = vpop.permute.xlu0 %2430  ;;  %19252 = vmatpush3.bf16.msra.mxu1 %v19249_v45  ;;  %v2475_v34 = vmul.f32 %v22243_v32, %v2436_v53  ;;  %v2241_v63 = vadd.f32 %v2209_v8, %v1977_v17  ;;  %v22622_v45 = vld [vmem:[#allocation3 + $0x50] sm:$0xff]  ;;  %v15743_v8 = vld [vmem:[%s26237_s3 + $0x1d0] sm:$0xff] }
 0x2dd   : > { %19254 = vmatprep.subr.bf16.mxu1 %v19253_v22  ;;  %v2474_v19 = vmul.f32 %v22243_v32, %v2431_v60  ;;  %v22661_v53 = vld [vmem:[#allocation3 + $0xb0] sm:$0xff] }
 0x2de   : > { %v2507_v32 = vadd.f32 %v2475_v34, %v2242_v44  ;;  %v15745_v17 = vld [vmem:[%s26237_s3 + $0x1e0] sm:$0xff] }
 0x2df   : > { %17644 = vmatmul.mubr.msk.f32.gmra.mrb[4].mxu1 %vm430_vm3, %v22603_v30  ;;  %v2700_v37 = vpop.permute.xlu1 %2699  ;;  %v2506_v3 = vadd.f32 %v2474_v19, %v2241_v63  ;;  %v15746_v19 = vld [vmem:[%s26237_s3 + $0x1e8] sm:$0xff]  ;;  %v22730_v63 = vld [vmem:[#allocation3 + $0x110] sm:$0xff] }
 0x2e0   : > { %v2739_v31 = vmul.f32 %v22255_v51, %v2700_v37  ;;  %17646 = vmatprep.mubr.msk.f32.mxu1 %vm430_vm3, %v22614_v12  ;;  %v2695_v40 = vpop.permute.xlu0 %2694  ;;  %19256 = vmatpush3.bf16.msra.mxu1 %v19253_v22  ;;  %v22712_v37 = vld [vmem:[#allocation3 + $0xf8] sm:$0xff]  ;;  %v19333_v44 = vpack.c.bf16 %v15746_v19, %v15745_v17  ;;  %v3929_v17 = vld [vmem:[#allocation3 + $0x22] sm:$0xff] }
 0x2e1   : > { %v2738_v26 = vmul.f32 %v22255_v51, %v2695_v40  ;;  %19258 = vmatprep.subr.bf16.mxu1 %v19257_v46  ;;  %v15748_v40 = vld [vmem:[%s26237_s3 + $0x1f8] sm:$0xff] }
 0x2e2   : > { %v2771_v2 = vadd.f32 %v2739_v31, %v2507_v32  ;;  %v22718_v31 = vld [vmem:[#allocation3 + $0x108] sm:$0xff]  ;;  %v22736_v32 = vld [vmem:[#allocation3 + $0x120] sm:$0xff] }
 0x2e3   : > { %17647 = vmatmul.mubr.msk.f32.gmra.mrb[6].mxu1 %vm430_vm3, %v22622_v45  ;;  %v2964_v7 = vpop.permute.xlu1 %2963  ;;  %v2770_v35 = vadd.f32 %v2738_v26, %v2506_v3  ;;  %v15781_v3 = vld [vmem:[%s26237_s3 + $0x200] sm:$0xff] }
 0x2e4   : > { %v3003_v47 = vmul.f32 %v22267_v25, %v2964_v7  ;;  %17649 = vmatprep.mubr.msk.f32.mxu1 %vm430_vm3, %v22626_v18  ;;  %v2959_v51 = vpop.permute.xlu0 %2958  ;;  %19260 = vmatpush3.bf16.msra.mxu1 %v19257_v46  ;;  %v15744_v46 = vld [vmem:[%s26237_s3 + $0x1d8] sm:$0xff]  ;;  %v15782_v7 = vld [vmem:[%s26237_s3 + $0x208] sm:$0xff] }
 0x2e5   : > { %v3002_v13 = vmul.f32 %v22267_v25, %v2959_v51  ;;  %19262 = vmatprep.subr.bf16.mxu1 %v22620_v59  ;;  %v19329_v34 = vpack.c.bf16 %v15744_v46, %v15743_v8  ;;  %v22756_v51 = vld [vmem:[#allocation3 + $0x138] sm:$0xff]  ;;  %v15585_v46 = vld [vmem:[%s26237_s3 + $0xe0] sm:$0xff] }
 0x2e6   : > { %v3035_v28 = vadd.f32 %v3003_v47, %v2771_v2  ;;  %v22748_v2 = vld [vmem:[#allocation3 + $0x128] sm:$0xff]  ;;  %v22750_v47 = vpack.c.bf16 %v15782_v7, %v15781_v3  ;;  %v3928_v8 = vld [vmem:[#allocation3 + $0x1a] sm:$0xff]  ;;  %v22842_v7 = vld [vmem:[#allocation3 + $0x52] sm:$0xff] }
 0x2e7   : > { %v3034_v15 = vadd.f32 %v3002_v13, %v2770_v35  ;;  %17650 = vmatmul.mubr.msk.f32.gmra.mrb[8].mxu1 %vm430_vm3, %v22633_v36  ;;  %v22762_v35 = vld [vmem:[#allocation3 + $0x140] sm:$0xff]  ;;  %v22769_v13 = vld [vmem:[#allocation3 + $0x150] sm:$0xff] }
 0x2e8   : > { %v3074_v61 = vadd.f32 %v22280_v55, %v3035_v28  ;;  %17652 = vmatprep.mubr.msk.f32.mxu1 %vm430_vm3, %v22637_v56  ;;  %v22775_v28 = vld [vmem:[#allocation3 + $0x158] sm:$0xff]  ;;  %v22836_v3 = vld [vmem:[#allocation3 + $0x4a] sm:$0xff] }
 0x2e9   : > { %v3073_v22 = vadd.f32 %v22280_v55, %v3034_v15  ;;  %v22653_v55 = vld [vmem:[#allocation3 + $0x98] sm:$0xff]  ;;  %v22781_v15 = vld [vmem:[#allocation3 + $0x168] sm:$0xff] }
 0x2ea   : > { %vm3106_vm6 = vcmp.gt.f32.partialorder %v3074_v61, 0.0  ;;  %v3138_v25 = vmul.f32 0.2, %v3074_v61  ;;  %26409 = vst [vmem:[#allocation17_spill] sm:$0xff] %v22781_v15 }
 0x2eb   : > { %vm3105_vm7 = vcmp.gt.f32.partialorder %v3073_v22, 0.0  ;;  %v3137_v6 = vmul.f32 0.2, %v3073_v22  ;;  %17653 = vmatmul.mubr.msk.f32.gmra.mrb[10].mxu1 %vm430_vm3, %v22643_v48 }
 0x2ec   : > { %v3170_v23 = vsel %vm3106_vm6, %v3074_v61, %v3138_v25  ;;  %17655 = vmatprep.mubr.msk.f32.mxu1 %vm430_vm3, %v22647_v39  ;;  %v3926_v61 = vld [vmem:[#allocation3 + $0x2] sm:$0xff] }
 0x2ed   : > { %3202 = vst.msk [vmem:[#allocation3 + $0x189] sm:$0xff] %vm430_vm3, %v3170_v23  ;;  %v3169_v16 = vsel %vm3105_vm7, %v3073_v22, %v3137_v6  ;;  %v22787_v22 = vld [vmem:[#allocation3 + $0x170] sm:$0xff]  ;;  %v15583_v25 = vld [vmem:[%s26237_s3 + $0xd0] sm:$0xff]  ;;  %v15584_v6 = vld [vmem:[%s26237_s3 + $0xd8] sm:$0xff] }
 0x2ee   : > { %3201 = vst.msk [vmem:[#allocation3 + $0x181] sm:$0xff] %vm430_vm3, %v3169_v16  ;;  %26410 = vst [vmem:[#allocation16_spill] sm:$0xff] %v22787_v22  ;;  %v3927_v23 = vld [vmem:[#allocation3 + $0xa] sm:$0xff]  ;;  %v19265_v16 = vpack.c.bf16 %v15584_v6, %v15583_v25  ;;  %v26411_v6 = vld [vmem:[#allocation11_spill] sm:$0xff] }
 0x2ef   : > { %17656 = vmatmul.mubr.msk.f32.gmra.mrb[12].mxu1 %vm430_vm3, %v22653_v55  ;;  %v22854_v25 = vld [vmem:[#allocation3 + $0x6a] sm:$0xff] }
 0x2f0   : > { %17658 = vmatprep.mubr.msk.f32.mxu1 %vm430_vm3, %v22657_v4 }
 0x2f3   : > { %17659 = vmatmul.mubr.msk.f32.gmra.mrb[14].mxu1 %vm430_vm3, %v22661_v53 }
 0x2f4   : > { %17661 = vmatprep.mubr.msk.f32.mxu1 %vm430_vm3, %v22665_v57  ;;  %v22669_v27 = vld [vmem:[#allocation3 + $0x18a] sm:$0xff] }
 0x2f5   : > { %26407 = vst [vmem:[#allocation15_spill] sm:$0xff] %v22669_v27  ;;  %v22671_v60 = vld [vmem:[#allocation3 + $0x182] sm:$0xff] }
 0x2f6   : > { %26408 = vst [vmem:[#allocation18_spill] sm:$0xff] %v22671_v60  ;;  %17938 = vmatprep.mubr.msk.f32.mxu0 %vm430_vm3, %v22671_v60  ;;  %v22906_v60 = vld [vmem:[#allocation3 + $0xca] sm:$0xff] }
 0x2f7   : > { %17662 = vmatmul.mubr.msk.f32.gmra.mrb[16].mxu1 %vm430_vm3, %v22675_v21  ;;  %17939 = vmatmul.mubr.msk.f32.gmra.mrb[30].mxu0 %vm430_vm3, %v22669_v27  ;;  %v5534_v27 = vld [vmem:[#allocation3 + $0x1a0] sm:$0xff]  ;;  %26417 = vst [vmem:[#allocation23_spill] sm:$0xff] %v22906_v60 }
 0x2f8   : > { %17664 = vmatprep.mubr.msk.f32.mxu1 %vm430_vm3, %v22687_v38  ;;  %17957 = vmatprep.mubr.msk.f32.mxu0 %vm430_vm3, %v22596_v50 }
 0x2fb   : > { %17665 = vmatmul.mubr.msk.f32.gmra.mrb[18].mxu1 %vm430_vm3, %v22693_v33  ;;  %17958 = vmatmul.mubr.msk.f32.vlgmr.msra.gmra.mrb[0].mxu0 %vm430_vm3, %v22603_v30 }
 0x2fc   : > { %19328 = vmatpush3.bf16.msra.mxu0 %v22335_v9  ;;  %17667 = vmatprep.mubr.msk.f32.mxu1 %vm430_vm3, %v22699_v5  ;;  %v15747_v9 = vld [vmem:[%s26237_s3 + $0x1f0] sm:$0xff] }
 0x2fd   : > { %17960 = vmatprep.mubr.msk.f32.mxu0 %vm430_vm3, %v22614_v12  ;;  %19330 = vmatprep.subr.bf16.mxu0 %v19329_v34  ;;  %v19337_v26 = vpack.c.bf16 %v15748_v40, %v15747_v9  ;;  %v15587_v9 = vld [vmem:[%s26237_s3 + $0xf0] sm:$0xff]  ;;  %v15588_v40 = vld [vmem:[%s26237_s3 + $0xf8] sm:$0xff] }
 0x2ff   : > { %17668 = vmatmul.mubr.msk.f32.gmra.mrb[20].mxu1 %vm430_vm3, %v22712_v37  ;;  %17961 = vmatmul.mubr.msk.f32.gmra.mrb[2].mxu0 %vm430_vm3, %v22622_v45 }
 0x300   : > { %17670 = vmatprep.mubr.msk.f32.mxu1 %vm430_vm3, %v22718_v31  ;;  %17963 = vmatprep.mubr.msk.f32.mxu0 %vm430_vm3, %v22626_v18 }
 0x301   : > { %19332 = vmatpush3.bf16.msra.mxu0 %v19329_v34  ;;  %v15586_v34 = vld [vmem:[%s26237_s3 + $0xe8] sm:$0xff] }
 0x302   : > { %19334 = vmatprep.subr.bf16.mxu0 %v19333_v44  ;;  %v19269_v19 = vpack.c.bf16 %v15586_v34, %v15585_v46  ;;  %v22879_v46 = vld [vmem:[#allocation3 + $0x9a] sm:$0xff]  ;;  %v22885_v34 = vld [vmem:[#allocation3 + $0xaa] sm:$0xff] }
 0x303   : > { %17671 = vmatmul.mubr.msk.f32.gmra.mrb[22].mxu1 %vm430_vm3, %v22730_v63  ;;  %17964 = vmatmul.mubr.msk.f32.gmra.mrb[4].mxu0 %vm430_vm3, %v22633_v36  ;;  %26412 = vst [vmem:[#allocation11_spill] sm:$0xff] %v22885_v34 }
 0x304   : > { %17673 = vmatprep.mubr.msk.f32.mxu1 %vm430_vm3, %v22736_v32  ;;  %17966 = vmatprep.mubr.msk.f32.mxu0 %vm430_vm3, %v22637_v56 }
 0x305   : > { %19336 = vmatpush3.bf16.msra.mxu0 %v19333_v44  ;;  %v22818_v44 = vld [vmem:[#allocation3 + $0x32] sm:$0xff] }
 0x306   : > { %19338 = vmatprep.subr.bf16.mxu0 %v19337_v26 }
 0x307   : > { %17674 = vmatmul.mubr.msk.f32.gmra.mrb[24].mxu1 %vm430_vm3, %v22748_v2  ;;  %17967 = vmatmul.mubr.msk.f32.gmra.mrb[6].mxu0 %vm430_vm3, %v22643_v48 }
 0x308   : > { %17676 = vmatprep.mubr.msk.f32.mxu1 %vm430_vm3, %v22756_v51  ;;  %17969 = vmatprep.mubr.msk.f32.mxu0 %vm430_vm3, %v22647_v39 }
 0x309   : > { %19340 = vmatpush3.bf16.msra.mxu0 %v19337_v26  ;;  %v19273_v26 = vpack.c.bf16 %v15588_v40, %v15587_v9  ;;  %v22893_v9 = vld [vmem:[#allocation3 + $0xb2] sm:$0xff]  ;;  %v22895_v40 = vld [vmem:[#allocation3 + $0x188] sm:$0xff] }
 0x30a   : > { %19342 = vmatprep.subr.bf16.mxu0 %v22750_v47  ;;  %26414 = vst [vmem:[#allocation20_spill] sm:$0xff] %v22893_v9  ;;  %26415 = vst [vmem:[#allocation21_spill] sm:$0xff] %v22895_v40 }
 0x30b   : > { %17677 = vmatmul.mubr.msk.f32.gmra.mrb[26].mxu1 %vm430_vm3, %v22762_v35  ;;  %17970 = vmatmul.mubr.msk.f32.gmra.mrb[8].mxu0 %vm430_vm3, %v22653_v55 }
 0x30c   : > { %17679 = vmatprep.mubr.msk.f32.mxu1 %vm430_vm3, %v22769_v13  ;;  %17972 = vmatprep.mubr.msk.f32.mxu0 %vm430_vm3, %v22657_v4 }
 0x30f   : > { %17680 = vmatmul.mubr.msk.f32.gmra.mrb[28].mxu1 %vm430_vm3, %v22775_v28  ;;  %17973 = vmatmul.mubr.msk.f32.gmra.mrb[10].mxu0 %vm430_vm3, %v22661_v53 }
 0x310   : > { %17682 = vmatprep.mubr.msk.f32.mxu1 %vm430_vm3, %v22781_v15  ;;  %17975 = vmatprep.mubr.msk.f32.mxu0 %vm430_vm3, %v22665_v57 }
 0x313   : > { %17683 = vmatmul.mubr.msk.f32.gmra.mrb[30].mxu1 %vm430_vm3, %v22787_v22  ;;  %17976 = vmatmul.mubr.msk.f32.gmra.mrb[12].mxu0 %vm430_vm3, %v22675_v21 }
 0x314   : > { %17978 = vmatprep.mubr.msk.f32.mxu0 %vm430_vm3, %v22687_v38  ;;  %17701 = vmatprep.mubr.msk.f32.mxu1 %vm430_vm3, %v3926_v61  ;;  %v22848_v61 = vld [vmem:[#allocation3 + $0x62] sm:$0xff] }
 0x317   : > { %17702 = vmatmul.mubr.msk.f32.vlgmr.msra.gmra.mrb[0].mxu1 %vm430_vm3, %v3927_v23  ;;  %17979 = vmatmul.mubr.msk.f32.gmra.mrb[14].mxu0 %vm430_vm3, %v22693_v33  ;;  %v22861_v23 = vld [vmem:[#allocation3 + $0x7a] sm:$0xff] }
 0x318   : > { %17704 = vmatprep.mubr.msk.f32.mxu1 %vm430_vm3, %v3928_v8  ;;  %17981 = vmatprep.mubr.msk.f32.mxu0 %vm430_vm3, %v22699_v5  ;;  %v22873_v8 = vld [vmem:[#allocation3 + $0x92] sm:$0xff] }
 0x319   : > { %19264 = vmatpush3.bf16.msra.mxu1 %v22620_v59  ;;  %v22830_v59 = vld [vmem:[#allocation3 + $0x3a] sm:$0xff] }
 0x31a   : > { %19266 = vmatprep.subr.bf16.mxu1 %v19265_v16 }
 0x31b   : > { %17705 = vmatmul.mubr.msk.f32.gmra.mrb[2].mxu1 %vm430_vm3, %v3929_v17  ;;  %17982 = vmatmul.mubr.msk.f32.gmra.mrb[16].mxu0 %vm430_vm3, %v22712_v37  ;;  %v22887_v17 = vld [vmem:[#allocation3 + $0x180] sm:$0xff] }
 0x31c   : > { %17707 = vmatprep.mubr.msk.f32.mxu1 %vm430_vm3, %v22818_v44  ;;  %17984 = vmatprep.mubr.msk.f32.mxu0 %vm430_vm3, %v22718_v31  ;;  %26413 = vst [vmem:[#allocation19_spill] sm:$0xff] %v22887_v17 }
 0x31d   : > { %19268 = vmatpush3.bf16.msra.mxu1 %v19265_v16  ;;  %v22867_v16 = vld [vmem:[#allocation3 + $0x82] sm:$0xff] }
 0x31e   : > { %19270 = vmatprep.subr.bf16.mxu1 %v19269_v19 }
 0x31f   : > { %17708 = vmatmul.mubr.msk.f32.gmra.mrb[4].mxu1 %vm430_vm3, %v22830_v59  ;;  %17985 = vmatmul.mubr.msk.f32.gmra.mrb[18].mxu0 %vm430_vm3, %v22730_v63 }
 0x320   : > { %17710 = vmatprep.mubr.msk.f32.mxu1 %vm430_vm3, %v22836_v3  ;;  %17987 = vmatprep.mubr.msk.f32.mxu0 %vm430_vm3, %v22736_v32 }
 0x321   : > { %19272 = vmatpush3.bf16.msra.mxu1 %v19269_v19  ;;  %v5533_v19 = vld [vmem:[#allocation3 + $0x198] sm:$0xff] }
 0x322   : > { %19274 = vmatprep.subr.bf16.mxu1 %v19273_v26 }
 0x323   : > { %17711 = vmatmul.mubr.msk.f32.gmra.mrb[6].mxu1 %vm430_vm3, %v22842_v7  ;;  %17988 = vmatmul.mubr.msk.f32.gmra.mrb[20].mxu0 %vm430_vm3, %v22748_v2 }
 0x324   : > { %17713 = vmatprep.mubr.msk.f32.mxu1 %vm430_vm3, %v22848_v61  ;;  %17990 = vmatprep.mubr.msk.f32.mxu0 %vm430_vm3, %v22756_v51 }
 0x325   : > { %19276 = vmatpush3.bf16.msra.mxu1 %v19273_v26  ;;  %v22901_v26 = vld [vmem:[#allocation3 + $0xc2] sm:$0xff] }
 0x326   : > { %19573 = vmatprep.subr.bf16.mxu1 %v26411_v6  ;;  %26416 = vst [vmem:[#allocation22_spill] sm:$0xff] %v22901_v26 }
 0x327   : > { %17714 = vmatmul.mubr.msk.f32.gmra.mrb[8].mxu1 %vm430_vm3, %v22854_v25  ;;  %17991 = vmatmul.mubr.msk.f32.gmra.mrb[22].mxu0 %vm430_vm3, %v22762_v35 }
 0x328   : > { %17716 = vmatprep.mubr.msk.f32.mxu1 %vm430_vm3, %v22861_v23  ;;  %17993 = vmatprep.mubr.msk.f32.mxu0 %vm430_vm3, %v22769_v13 }
 0x32b   : > { %17717 = vmatmul.mubr.msk.f32.gmra.mrb[10].mxu1 %vm430_vm3, %v22867_v16  ;;  %17994 = vmatmul.mubr.msk.f32.gmra.mrb[24].mxu0 %vm430_vm3, %v22775_v28 }
 0x32c   : > { %17719 = vmatprep.mubr.msk.f32.mxu1 %vm430_vm3, %v22873_v8  ;;  %17996 = vmatprep.mubr.msk.f32.mxu0 %vm430_vm3, %v22781_v15  ;;  %v22944_v15 = vld [vmem:[#allocation3 + $0x10a] sm:$0xff] }
 0x32d   : > { %26421 = vst [vmem:[#allocation27_spill] sm:$0xff] %v22944_v15 }
 0x32f   : > { %17720 = vmatmul.mubr.msk.f32.gmra.mrb[12].mxu1 %vm430_vm3, %v22879_v46  ;;  %17997 = vmatmul.mubr.msk.f32.gmra.mrb[26].mxu0 %vm430_vm3, %v22787_v22  ;;  %v22922_v22 = vld [vmem:[#allocation3 + $0xe2] sm:$0xff] }
 0x330   : > { %17722 = vmatprep.mubr.msk.f32.mxu1 %vm430_vm3, %v22885_v34  ;;  %17999 = vmatprep.mubr.msk.f32.mxu0 %vm430_vm3, %v22887_v17  ;;  %v15783_v17 = vld [vmem:[%s26237_s3 + $0x210] sm:$0xff]  ;;  %26419 = vst [vmem:[#allocation25_spill] sm:$0xff] %v22922_v22 }
 0x331   : > { %v5898_v34 = vld [vmem:[#allocation3 + $0x39] sm:$0xff] }
 0x333   : > { %17723 = vmatmul.mubr.msk.f32.gmra.mrb[14].mxu1 %vm430_vm3, %v22893_v9  ;;  %18000 = vmatmul.mubr.msk.f32.gmra.mrb[28].mxu0 %vm430_vm3, %v22895_v40  ;;  %v15784_v9 = vld [vmem:[%s26237_s3 + $0x218] sm:$0xff]  ;;  %v22917_v40 = vld [vmem:[#allocation3 + $0xda] sm:$0xff] }
 0x334   : > { %17725 = vmatprep.mubr.msk.f32.mxu1 %vm430_vm3, %v22901_v26  ;;  %18002 = vmatprep.mubr.msk.f32.mxu0 %vm430_vm3, %v5533_v19  ;;  %26418 = vst [vmem:[#allocation24_spill] sm:$0xff] %v22917_v40  ;;  %v5897_v26 = vld [vmem:[#allocation3 + $0x31] sm:$0xff]  ;;  %v19345_v19 = vpack.c.bf16 %v15784_v9, %v15783_v17  ;;  %v5899_v17 = vld [vmem:[#allocation3 + $0x49] sm:$0xff] }
 0x335   : > { %v5900_v9 = vld [vmem:[#allocation3 + $0x51] sm:$0xff] }
 0x337   : > { %17726 = vmatmul.mubr.msk.f32.gmra.mrb[16].mxu1 %vm430_vm3, %v22906_v60  ;;  %18003 = vmatmul.mubr.msk.f32.gmra.mrb[30].mxu0 %vm430_vm3, %v5534_v27  ;;  %v22927_v60 = vld [vmem:[#allocation3 + $0xf2] sm:$0xff] }
 0x338   : > { %17728 = vmatprep.mubr.msk.f32.mxu1 %vm430_vm3, %v22917_v40  ;;  %18021 = vmatprep.mubr.msk.f32.mxu0 %vm430_vm3, %v5897_v26  ;;  %v15785_v27 = vld [vmem:[%s26237_s3 + $0x220] sm:$0xff]  ;;  %v15786_v40 = vld [vmem:[%s26237_s3 + $0x228] sm:$0xff]  ;;  %v5901_v26 = vld [vmem:[#allocation3 + $0x61] sm:$0xff] }
 0x33b   : > { %17729 = vmatmul.mubr.msk.f32.gmra.mrb[18].mxu1 %vm430_vm3, %v22922_v22  ;;  %18022 = vmatmul.mubr.msk.f32.vlgmr.msra.gmra.mrb[0].mxu0 %vm430_vm3, %v5898_v34  ;;  %v22939_v34 = vld [vmem:[#allocation3 + $0xfa] sm:$0xff]  ;;  %v19349_v22 = vpack.c.bf16 %v15786_v40, %v15785_v27  ;;  %v22955_v40 = vld [vmem:[#allocation3 + $0x112] sm:$0xff]  ;;  %v5902_v27 = vld [vmem:[#allocation3 + $0x69] sm:$0xff] }
 0x33c   : > { %19344 = vmatpush3.bf16.msra.mxu0 %v22750_v47  ;;  %17731 = vmatprep.mubr.msk.f32.mxu1 %vm430_vm3, %v22927_v60  ;;  %26420 = vst [vmem:[#allocation26_spill] sm:$0xff] %v22939_v34  ;;  %v15787_v47 = vld [vmem:[%s26237_s3 + $0x230] sm:$0xff] }
 0x33d   : > { %18024 = vmatprep.mubr.msk.f32.mxu0 %vm430_vm3, %v5899_v17  ;;  %19346 = vmatprep.subr.bf16.mxu0 %v19345_v19  ;;  %v15788_v17 = vld [vmem:[%s26237_s3 + $0x238] sm:$0xff] }
 0x33f   : > { %17732 = vmatmul.mubr.msk.f32.gmra.mrb[20].mxu1 %vm430_vm3, %v22939_v34  ;;  %18025 = vmatmul.mubr.msk.f32.gmra.mrb[2].mxu0 %vm430_vm3, %v5900_v9  ;;  %v19353_v9 = vpack.c.bf16 %v15788_v17, %v15787_v47  ;;  %v5903_v34 = vld [vmem:[#allocation3 + $0x79] sm:$0xff] }
 0x340   : > { %17734 = vmatprep.mubr.msk.f32.mxu1 %vm430_vm3, %v22944_v15  ;;  %18027 = vmatprep.mubr.msk.f32.mxu0 %vm430_vm3, %v5901_v26  ;;  %v5904_v15 = vld [vmem:[#allocation3 + $0x81] sm:$0xff]  ;;  %v5906_v26 = vld [vmem:[#allocation3 + $0x99] sm:$0xff] }
 0x341   : > { %19348 = vmatpush3.bf16.msra.mxu0 %v19345_v19  ;;  %v5905_v19 = vld [vmem:[#allocation3 + $0x91] sm:$0xff]  ;;  %v15828_v17 = vld [vmem:[%s26239_s5 + $0x70] sm:$0xff] }
 0x342   : > { %19350 = vmatprep.subr.bf16.mxu0 %v19349_v22 }
 0x343   : > { %17735 = vmatmul.mubr.msk.f32.gmra.mrb[22].mxu1 %vm430_vm3, %v22955_v40  ;;  %18028 = vmatmul.mubr.msk.f32.gmra.mrb[4].mxu0 %vm430_vm3, %v5902_v27 }
 0x344   : > { %17737 = vmatprep.mubr.msk.f32.mxu1 %vm430_vm3, %v22426_v10  ;;  %18030 = vmatprep.mubr.msk.f32.mxu0 %vm430_vm3, %v5903_v34  ;;  %v5907_v10 = vld [vmem:[#allocation3 + $0xa9] sm:$0xff]  ;;  %v15827_v34 = vld [vmem:[%s26239_s5 + $0x68] sm:$0xff] }
 0x345   : > { %19352 = vmatpush3.bf16.msra.mxu0 %v19349_v22  ;;  %v26424_v22 = vld [vmem:[#allocation14_spill] sm:$0xff] }
 0x346   : > { %19354 = vmatprep.subr.bf16.mxu0 %v19353_v9 }
 0x347   : > { %17738 = vmatmul.mubr.msk.f32.gmra.mrb[24].mxu1 %vm430_vm3, %v22428_v41  ;;  %18031 = vmatmul.mubr.msk.f32.gmra.mrb[6].mxu0 %vm430_vm3, %v5904_v15  ;;  %v5908_v41 = vld [vmem:[#allocation3 + $0xb1] sm:$0xff] }
 0x348   : > { %17740 = vmatprep.mubr.msk.f32.mxu1 %vm430_vm3, %v22501_v52  ;;  %18033 = vmatprep.mubr.msk.f32.mxu0 %vm430_vm3, %v5905_v19  ;;  %v5909_v52 = vld [vmem:[#allocation3 + $0xc1] sm:$0xff]  ;;  %v26423_v15 = vld [vmem:[#allocation13_spill] sm:$0xff]  ;;  %v6893_v19 = vld [vmem:[#allocation4 + $0x9] sm:$0xff] }
 0x349   : > { %19356 = vmatpush3.bf16.msra.mxu0 %v19353_v9  ;;  %v6892_v9 = vld [vmem:[#allocation4 + $0x1] sm:$0xff] }
 0x34b   : > { %17741 = vmatmul.mubr.msk.f32.gmra.mrb[26].mxu1 %vm430_vm3, %v22503_v24  ;;  %18034 = vmatmul.mubr.msk.f32.gmra.mrb[8].mxu0 %vm430_vm3, %v5906_v26  ;;  %v5910_v24 = vld [vmem:[#allocation3 + $0xc9] sm:$0xff] }
 0x34c   : > { %17743 = vmatprep.mubr.msk.f32.mxu1 %vm430_vm3, %v22529_v20  ;;  %18036 = vmatprep.mubr.msk.f32.mxu0 %vm430_vm3, %v5907_v10  ;;  %v22984_v20 = vld [vmem:[#allocation3 + $0xd9] sm:$0xff]  ;;  %v6884_v26 = vld [vmem:[%s26239_s5] sm:$0xff] }
 0x34d   : > { %v6885_v10 = vld [vmem:[%s26239_s5 + $0x8] sm:$0xff] }
 0x34f   : > { %17744 = vmatmul.mubr.msk.f32.gmra.mrb[28].mxu1 %vm430_vm3, %v22531_v29  ;;  %18037 = vmatmul.mubr.msk.f32.gmra.mrb[10].mxu0 %vm430_vm3, %v5908_v41  ;;  %v22990_v29 = vld [vmem:[#allocation3 + $0xe1] sm:$0xff]  ;;  %v19373_v41 = vpack.c.bf16 %v6885_v10, %v6884_v26 }
 0x350   : > { %17746 = vmatprep.mubr.msk.f32.mxu1 %vm430_vm3, %v22547_v42  ;;  %18039 = vmatprep.mubr.msk.f32.mxu0 %vm430_vm3, %v5909_v52  ;;  %v22996_v42 = vld [vmem:[#allocation3 + $0xf1] sm:$0xff]  ;;  %v6886_v52 = vld [vmem:[%s26239_s5 + $0x10] sm:$0xff] }
 0x353   : > { %17747 = vmatmul.mubr.msk.f32.gmra.mrb[30].mxu1 %vm430_vm3, %v22543_v49  ;;  %18040 = vmatmul.mubr.msk.f32.gmra.mrb[12].mxu0 %vm430_vm3, %v5910_v24  ;;  %v23003_v49 = vld [vmem:[#allocation3 + $0xf9] sm:$0xff]  ;;  %v6887_v24 = vld [vmem:[%s26239_s5 + $0x18] sm:$0xff] }
 0x354   : > { %17765 = vmatprep.mubr.msk.f32.mxu1 %vm430_vm3, %v22577_v11  ;;  %18042 = vmatprep.mubr.msk.f32.mxu0 %vm430_vm3, %v22984_v20  ;;  %v26422_v11 = vld [vmem:[#allocation12_spill] sm:$0xff] }
 0x357   : > { %17766 = vmatmul.mubr.msk.f32.vlgmr.msra.gmra.mrb[0].mxu1 %vm430_vm3, %v22585_v14  ;;  %18043 = vmatmul.mubr.msk.f32.gmra.mrb[14].mxu0 %vm430_vm3, %v22990_v29  ;;  %v23010_v14 = vld [vmem:[#allocation3 + $0x109] sm:$0xff] }
 0x358   : > { %17768 = vmatprep.mubr.msk.f32.mxu1 %vm430_vm3, %v22596_v50  ;;  %18045 = vmatprep.mubr.msk.f32.mxu0 %vm430_vm3, %v22996_v42  ;;  %v23017_v50 = vld [vmem:[#allocation3 + $0x111] sm:$0xff] }
 0x359   : > { %19577 = vmatpush3.bf16.msra.mxu1 %v26411_v6 }
 0x35a   : > { %19574 = vmatprep.subr.bf16.mxu1 %v26422_v11 }
 0x35b   : > { %17769 = vmatmul.mubr.msk.f32.gmra.mrb[2].mxu1 %vm430_vm3, %v22603_v30  ;;  %18046 = vmatmul.mubr.msk.f32.gmra.mrb[16].mxu0 %vm430_vm3, %v23003_v49  ;;  %v23024_v30 = vld [vmem:[#allocation3 + $0x121] sm:$0xff] }
 0x35c   : > { %17771 = vmatprep.mubr.msk.f32.mxu1 %vm430_vm3, %v22614_v12  ;;  %18048 = vmatprep.mubr.msk.f32.mxu0 %vm430_vm3, %v23010_v14  ;;  %v23031_v12 = vld [vmem:[#allocation3 + $0x129] sm:$0xff] }
 0x35d   : > { %19578 = vmatpush3.bf16.msra.mxu1 %v26422_v11  ;;  %v6890_v11 = vld [vmem:[%s26239_s5 + $0x30] sm:$0xff] }
 0x35e   : > { %19575 = vmatprep.subr.bf16.mxu1 %v26423_v15 }
 0x35f   : > { %17772 = vmatmul.mubr.msk.f32.gmra.mrb[4].mxu1 %vm430_vm3, %v22622_v45  ;;  %18049 = vmatmul.mubr.msk.f32.gmra.mrb[18].mxu0 %vm430_vm3, %v23017_v50  ;;  %v26427_v45 = vld [vmem:[#allocation16_spill] sm:$0xff] }
 0x360   : > { %17774 = vmatprep.mubr.msk.f32.mxu1 %vm430_vm3, %v22626_v18  ;;  %18051 = vmatprep.mubr.msk.f32.mxu0 %vm430_vm3, %v23024_v30  ;;  %v26428_v18 = vld [vmem:[#allocation20_spill] sm:$0xff] }
 0x361   : > { %19579 = vmatpush3.bf16.msra.mxu1 %v26423_v15  ;;  %v15894_v15 = vld [vmem:[%s26239_s5 + $0x80] sm:$0xff] }
 0x362   : > { %19576 = vmatprep.subr.bf16.mxu1 %v26424_v22 }
 0x363   : > { %17775 = vmatmul.mubr.msk.f32.gmra.mrb[6].mxu1 %vm430_vm3, %v22633_v36  ;;  %18052 = vmatmul.mubr.msk.f32.gmra.mrb[20].mxu0 %vm430_vm3, %v23031_v12  ;;  %v26429_v36 = vld [vmem:[#allocation19_spill] sm:$0xff] }
 0x364   : > { %17777 = vmatprep.mubr.msk.f32.mxu1 %vm430_vm3, %v22637_v56  ;;  %18054 = vmatprep.mubr.msk.f32.mxu0 %vm430_vm3, %v22489_v58  ;;  %v23063_v58 = vld [vmem:[#allocation3 + $0x181] sm:$0xff]  ;;  %v26430_v56 = vld [vmem:[#allocation22_spill] sm:$0xff] }
 0x365   : > { %19580 = vmatpush3.bf16.msra.mxu1 %v26424_v22 }
 0x367   : > { %17778 = vmatmul.mubr.msk.f32.gmra.mrb[8].mxu1 %vm430_vm3, %v22643_v48  ;;  %18055 = vmatmul.mubr.msk.f32.gmra.mrb[22].mxu0 %vm430_vm3, %v22499_v1  ;;  %v5927_v1 = vld [vmem:[#allocation3 + $0x199] sm:$0xff]  ;;  %v26431_v48 = vld [vmem:[#allocation21_spill] sm:$0xff] }
 0x368   : > { %17780 = vmatprep.mubr.msk.f32.mxu1 %vm430_vm3, %v22647_v39  ;;  %18057 = vmatprep.mubr.msk.f32.mxu0 %vm430_vm3, %v22522_v0  ;;  %v23069_v0 = vld [vmem:[#allocation3 + $0x189] sm:$0xff]  ;;  %v26432_v39 = vld [vmem:[#allocation23_spill] sm:$0xff] }
 0x36b   : > { %17781 = vmatmul.mubr.msk.f32.gmra.mrb[10].mxu1 %vm430_vm3, %v22653_v55  ;;  %18058 = vmatmul.mubr.msk.f32.gmra.mrb[24].mxu0 %vm430_vm3, %v22527_v62  ;;  %v5928_v62 = vld [vmem:[#allocation3 + $0x1a1] sm:$0xff]  ;;  %v26433_v55 = vld [vmem:[#allocation24_spill] sm:$0xff] }
 0x36c   : > { %17783 = vmatprep.mubr.msk.f32.mxu1 %vm430_vm3, %v22657_v4  ;;  %18060 = vmatprep.mubr.msk.f32.mxu0 %vm430_vm3, %v22545_v43  ;;  %v26426_v43 = vld [vmem:[#allocation11_spill] sm:$0xff]  ;;  %v26434_v4 = vld [vmem:[#allocation25_spill] sm:$0xff] }
 0x36f   : > { %17784 = vmatmul.mubr.msk.f32.gmra.mrb[12].mxu1 %vm430_vm3, %v22661_v53  ;;  %18061 = vmatmul.mubr.msk.f32.gmra.mrb[26].mxu0 %vm430_vm3, %v22541_v54  ;;  %v26425_v54 = vld [vmem:[#allocation17_spill] sm:$0xff]  ;;  %v26435_v53 = vld [vmem:[#allocation26_spill] sm:$0xff] }
 0x370   : > { %17786 = vmatprep.mubr.msk.f32.mxu1 %vm430_vm3, %v22665_v57  ;;  %18063 = vmatprep.mubr.msk.f32.mxu0 %vm430_vm3, %v23063_v58  ;;  %v26436_v57 = vld [vmem:[#allocation27_spill] sm:$0xff] }
 0x373   : > { %17787 = vmatmul.mubr.msk.f32.gmra.mrb[14].mxu1 %vm430_vm3, %v22675_v21  ;;  %18064 = vmatmul.mubr.msk.f32.gmra.mrb[28].mxu0 %vm430_vm3, %v23069_v0  ;;  %v6311_v21 = vld [vmem:[#allocation3 + $0x122] sm:$0xff] }
 0x374   : > { %17789 = vmatprep.mubr.msk.f32.mxu1 %vm430_vm3, %v22687_v38  ;;  %18066 = vmatprep.mubr.msk.f32.mxu0 %vm430_vm3, %v5927_v1  ;;  %v4738_v38 = vld [vmem:[#allocation3 + $0x139] sm:$0xff] }
 0x377   : > { %17790 = vmatmul.mubr.msk.f32.gmra.mrb[16].mxu1 %vm430_vm3, %v22693_v33  ;;  %18067 = vmatmul.mubr.msk.f32.gmra.mrb[30].mxu0 %vm430_vm3, %v5928_v62  ;;  %v6313_v33 = vld [vmem:[#allocation3 + $0x13a] sm:$0xff] }
 0x378   : > { %17792 = vmatprep.mubr.msk.f32.mxu1 %vm430_vm3, %v22699_v5  ;;  %18085 = vmatprep.mubr.msk.f32.mxu0 %vm430_vm3, %v22818_v44  ;;  %v4739_v5 = vld [vmem:[#allocation3 + $0x141] sm:$0xff]  ;;  %v26437_v44 = vld [vmem:[#allocation18_spill] sm:$0xff] }
 0x37b   : > { %17793 = vmatmul.mubr.msk.f32.gmra.mrb[18].mxu1 %vm430_vm3, %v22712_v37  ;;  %18086 = vmatmul.mubr.msk.f32.vlgmr.msra.gmra.mrb[0].mxu0 %vm430_vm3, %v22830_v59  ;;  %v6314_v37 = vld [vmem:[#allocation3 + $0x142] sm:$0xff]  ;;  %v6321_v59 = vld [vmem:[#allocation3 + $0x19a] sm:$0xff] }
 0x37c   : > { %17795 = vmatprep.mubr.msk.f32.mxu1 %vm430_vm3, %v22718_v31  ;;  %18088 = vmatprep.mubr.msk.f32.mxu0 %vm430_vm3, %v22836_v3  ;;  %v4740_v31 = vld [vmem:[#allocation3 + $0x151] sm:$0xff]  ;;  %v26438_v3 = vld [vmem:[#allocation15_spill] sm:$0xff] }
 0x37f   : > { %17796 = vmatmul.mubr.msk.f32.gmra.mrb[20].mxu1 %vm430_vm3, %v22730_v63  ;;  %18089 = vmatmul.mubr.msk.f32.gmra.mrb[2].mxu0 %vm430_vm3, %v22842_v7  ;;  %v6315_v63 = vld [vmem:[#allocation3 + $0x152] sm:$0xff]  ;;  %v6322_v7 = vld [vmem:[#allocation3 + $0x1a2] sm:$0xff] }
 0x380   : > { %17798 = vmatprep.mubr.msk.f32.mxu1 %vm430_vm3, %v22736_v32  ;;  %18091 = vmatprep.mubr.msk.f32.mxu0 %vm430_vm3, %v22848_v61  ;;  %v4741_v32 = vld [vmem:[#allocation3 + $0x159] sm:$0xff]  ;;  %v15822_v61 = vld [vmem:[%s26239_s5 + $0x40] sm:$0xff] }
 0x383   : > { %17799 = vmatmul.mubr.msk.f32.gmra.mrb[22].mxu1 %vm430_vm3, %v22748_v2  ;;  %18092 = vmatmul.mubr.msk.f32.gmra.mrb[4].mxu0 %vm430_vm3, %v22854_v25  ;;  %v6316_v2 = vld [vmem:[#allocation3 + $0x15a] sm:$0xff] }
 0x384   : > { %17801 = vmatprep.mubr.msk.f32.mxu1 %vm430_vm3, %v22756_v51  ;;  %18094 = vmatprep.mubr.msk.f32.mxu0 %vm430_vm3, %v22861_v23  ;;  %v4742_v51 = vld [vmem:[#allocation3 + $0x169] sm:$0xff]  ;;  %v15823_v25 = vld [vmem:[%s26239_s5 + $0x48] sm:$0xff]  ;;  %v15824_v23 = vld [vmem:[%s26239_s5 + $0x50] sm:$0xff] }
 0x385   : > { %v19357_v6 = vpack.c.bf16 %v15823_v25, %v15822_v61 }
 0x387   : > { %17802 = vmatmul.mubr.msk.f32.gmra.mrb[24].mxu1 %vm430_vm3, %v22762_v35  ;;  %18095 = vmatmul.mubr.msk.f32.gmra.mrb[6].mxu0 %vm430_vm3, %v22867_v16  ;;  %v6317_v35 = vld [vmem:[#allocation3 + $0x16a] sm:$0xff] }
 0x388   : > { %17804 = vmatprep.mubr.msk.f32.mxu1 %vm430_vm3, %v22769_v13  ;;  %18097 = vmatprep.mubr.msk.f32.mxu0 %vm430_vm3, %v22873_v8  ;;  %v4743_v13 = vld [vmem:[#allocation3 + $0x171] sm:$0xff]  ;;  %v15825_v16 = vld [vmem:[%s26239_s5 + $0x58] sm:$0xff] }
 0x389   : > { %19358 = vmatprep.subr.bf16.mxu1 %v19357_v6  ;;  %v19361_v8 = vpack.c.bf16 %v15825_v16, %v15824_v23 }
 0x38b   : > { %17805 = vmatmul.mubr.msk.f32.gmra.mrb[26].mxu1 %vm430_vm3, %v22775_v28  ;;  %18098 = vmatmul.mubr.msk.f32.gmra.mrb[8].mxu0 %vm430_vm3, %v22879_v46  ;;  %v6318_v28 = vld [vmem:[#allocation3 + $0x172] sm:$0xff] }
 0x38c   : > { %17807 = vmatprep.mubr.msk.f32.mxu1 %vm430_vm3, %v26425_v54  ;;  %18100 = vmatprep.mubr.msk.f32.mxu0 %vm430_vm3, %v26426_v43  ;;  %v15826_v46 = vld [vmem:[%s26239_s5 + $0x60] sm:$0xff] }
 0x38d   : > { %v19365_v47 = vpack.c.bf16 %v15827_v34, %v15826_v46 }
 0x38f   : > { %17808 = vmatmul.mubr.msk.f32.gmra.mrb[28].mxu1 %vm430_vm3, %v26427_v45  ;;  %18101 = vmatmul.mubr.msk.f32.gmra.mrb[10].mxu0 %vm430_vm3, %v26428_v18 }
 0x390   : > { %17810 = vmatprep.mubr.msk.f32.mxu1 %vm430_vm3, %v26429_v36  ;;  %18103 = vmatprep.mubr.msk.f32.mxu0 %vm430_vm3, %v26430_v56 }
 0x393   : > { %17811 = vmatmul.mubr.msk.f32.gmra.mrb[30].mxu1 %vm430_vm3, %v26431_v48  ;;  %18104 = vmatmul.mubr.msk.f32.gmra.mrb[12].mxu0 %vm430_vm3, %v26432_v39 }
 0x394   : > { %17853 = vmatprep.mubr.msk.f32.mxu1 %vm430_vm3, %v22984_v20  ;;  %18106 = vmatprep.mubr.msk.f32.mxu0 %vm430_vm3, %v26433_v55  ;;  %v19377_v20 = vpack.c.bf16 %v6887_v24, %v6886_v52 }
 0x397   : > { %17854 = vmatmul.mubr.msk.f32.vlgmr.msra.gmra.mrb[16].mxu1 %vm430_vm3, %v22990_v29  ;;  %18107 = vmatmul.mubr.msk.f32.gmra.mrb[14].mxu0 %vm430_vm3, %v26434_v4  ;;  %v6888_v29 = vld [vmem:[%s26239_s5 + $0x20] sm:$0xff] }
 0x398   : > { %17856 = vmatprep.mubr.msk.f32.mxu1 %vm430_vm3, %v22996_v42  ;;  %18109 = vmatprep.mubr.msk.f32.mxu0 %vm430_vm3, %v22927_v60  ;;  %v6312_v60 = vld [vmem:[#allocation3 + $0x12a] sm:$0xff]  ;;  %v6889_v42 = vld [vmem:[%s26239_s5 + $0x28] sm:$0xff] }
 0x399   : > { %19360 = vmatpush3.bf16.msra.mxu1 %v19357_v6 }
 0x39a   : > { %19362 = vmatprep.subr.bf16.mxu1 %v19361_v8 }
 0x39b   : > { %17857 = vmatmul.mubr.msk.f32.gmra.mrb[18].mxu1 %vm430_vm3, %v23003_v49  ;;  %18110 = vmatmul.mubr.msk.f32.gmra.mrb[16].mxu0 %vm430_vm3, %v26435_v53  ;;  %v19381_v49 = vpack.c.bf16 %v6889_v42, %v6888_v29 }
 0x39c   : > { %17859 = vmatprep.mubr.msk.f32.mxu1 %vm430_vm3, %v23010_v14  ;;  %18112 = vmatprep.mubr.msk.f32.mxu0 %vm430_vm3, %v26436_v57  ;;  %v6891_v14 = vld [vmem:[%s26239_s5 + $0x38] sm:$0xff] }
 0x39d   : > { %19364 = vmatpush3.bf16.msra.mxu1 %v19361_v8 }
 0x39e   : > { %19366 = vmatprep.subr.bf16.mxu1 %v19365_v47 }
 0x39f   : > { %17860 = vmatmul.mubr.msk.f32.gmra.mrb[20].mxu1 %vm430_vm3, %v23017_v50  ;;  %18113 = vmatmul.mubr.msk.f32.gmra.mrb[18].mxu0 %vm430_vm3, %v22955_v40  ;;  %v15829_v40 = vld [vmem:[%s26239_s5 + $0x78] sm:$0xff]  ;;  %v19385_v50 = vpack.c.bf16 %v6891_v14, %v6890_v11 }
 0x3a0   : > { %17862 = vmatprep.mubr.msk.f32.mxu1 %vm430_vm3, %v23024_v30  ;;  %18115 = vmatprep.mubr.msk.f32.mxu0 %vm430_vm3, %v6311_v21  ;;  %v19369_v27 = vpack.c.bf16 %v15829_v40, %v15828_v17  ;;  %v15895_v30 = vld [vmem:[%s26239_s5 + $0x88] sm:$0xff]  ;;  %v23265_v21 = vld [vmem:[%s26238_s4] ss:$0 sm:$0xff] }
 0x3a1   : > { %19368 = vmatpush3.bf16.msra.mxu1 %v19365_v47 }
 0x3a2   : > { %19370 = vmatprep.subr.bf16.mxu1 %v19369_v27 }
 0x3a3   : > { %17863 = vmatmul.mubr.msk.f32.gmra.mrb[22].mxu1 %vm430_vm3, %v23031_v12  ;;  %18116 = vmatmul.mubr.msk.f32.gmra.mrb[20].mxu0 %vm430_vm3, %v6312_v60  ;;  %v23245_v12 = vpack.c.bf16 %v15895_v30, %v15894_v15 }
 0x3a4   : > { %17865 = vmatprep.mubr.msk.f32.mxu1 %vm430_vm3, %v4738_v38  ;;  %18118 = vmatprep.mubr.msk.f32.mxu0 %vm430_vm3, %v6313_v33 }
 0x3a5   : > { %19372 = vmatpush3.bf16.msra.mxu1 %v19369_v27 }
 0x3a6   : > { %19374 = vmatprep.subr.bf16.mxu1 %v19373_v41 }
 0x3a7   : > { %17866 = vmatmul.mubr.msk.f32.gmra.mrb[24].mxu1 %vm430_vm3, %v4739_v5  ;;  %18119 = vmatmul.mubr.msk.f32.gmra.mrb[22].mxu0 %vm430_vm3, %v6314_v37 }
 0x3a8   : > { %17868 = vmatprep.mubr.msk.f32.mxu1 %vm430_vm3, %v4740_v31  ;;  %18121 = vmatprep.mubr.msk.f32.mxu0 %vm430_vm3, %v6315_v63 }
 0x3ab   : > { %17869 = vmatmul.mubr.msk.f32.gmra.mrb[26].mxu1 %vm430_vm3, %v4741_v32  ;;  %18122 = vmatmul.mubr.msk.f32.gmra.mrb[24].mxu0 %vm430_vm3, %v6316_v2 }
 0x3ac   : > { %17871 = vmatprep.mubr.msk.f32.mxu1 %vm430_vm3, %v4742_v51  ;;  %18124 = vmatprep.mubr.msk.f32.mxu0 %vm430_vm3, %v6317_v35 }
 0x3af   : > { %17872 = vmatmul.mubr.msk.f32.gmra.mrb[28].mxu1 %vm430_vm3, %v4743_v13  ;;  %18125 = vmatmul.mubr.msk.f32.gmra.mrb[26].mxu0 %vm430_vm3, %v6318_v28 }
 0x3b0   : > { %17874 = vmatprep.mubr.msk.f32.mxu1 %vm430_vm3, %v23063_v58  ;;  %18127 = vmatprep.mubr.msk.f32.mxu0 %vm430_vm3, %v26437_v44 }
 0x3b3   : > { %17875 = vmatmul.mubr.msk.f32.gmra.mrb[30].mxu1 %vm430_vm3, %v23069_v0  ;;  %18128 = vmatmul.mubr.msk.f32.gmra.mrb[28].mxu0 %vm430_vm3, %v26438_v3 }
 0x3b4   : > { %18130 = vmatprep.mubr.msk.f32.mxu0 %vm430_vm3, %v6321_v59  ;;  %18149 = vmatprep.mubr.msk.f32.mxu1 %vm430_vm3, %v6892_v9 }
 0x3b7   : > { %18131 = vmatmul.mubr.msk.f32.gmra.mrb[30].mxu0 %vm430_vm3, %v6322_v7  ;;  %18150 = vmatmul.mubr.msk.f32.vlgmr.msra.gmra.mrb[32].mxu1 %vm430_vm3, %v6893_v19 }
 0x3b8   : > { %19376 = vmatpush3.bf16.msra.mxu1 %v19373_v41 }
 0x3b9   : > { %19378 = vmatprep.subr.bf16.mxu1 %v19377_v20 }
 0x3bc   : > { %19380 = vmatpush3.bf16.msra.mxu1 %v19377_v20 }
 0x3bd   : > { %19382 = vmatprep.subr.bf16.mxu1 %v19381_v49 }
 0x3c0   : > { %19384 = vmatpush3.bf16.msra.mxu1 %v19381_v49 }
 0x3c1   : > { %19386 = vmatprep.subr.bf16.mxu1 %v19385_v50 }
 0x3c4   : > { %19388 = vmatpush3.bf16.msra.mxu1 %v19385_v50 }
 0x3c5   : > { %19390 = vmatprep.subr.bf16.mxu1 %v23245_v12 }
 0x42a   : > { %v17767_v22 = vpop.f32.mrb[0].mxu1 }
 0x42b   : > { %v4523_v58 = vpop.f32.mrb[1].mxu1 }
 0x42e   : > { %v17770_v1 = vpop.f32.mrb[2].mxu1 }
 0x42f   : > { %v4533_v0 = vpop.f32.mrb[3].mxu1 }
 0x432   : > { %v17773_v62 = vpop.f32.mrb[4].mxu1 }
 0x433   : > { %v4543_v54 = vpop.f32.mrb[5].mxu1 }
 0x436   : > { %v17776_v43 = vpop.f32.mrb[6].mxu1 }
 0x437   : > { %v4553_v45 = vpop.f32.mrb[7].mxu1 }
 0x43a   : > { %v17779_v18 = vpop.f32.mrb[8].mxu1 }
 0x43b   : > { %v23248_v36 = vpop.f32.mrb[9].mxu1 }
 0x43e   : > { %v23250_v56 = vpop.f32.mrb[10].mxu1 }
 0x43f   : > { %v23252_v48 = vpop.f32.mrb[11].mxu1 }
 0x442   : > { %v23254_v39 = vpop.f32.mrb[12].mxu1 }
 0x443   : > { %v23256_v55 = vpop.f32.mrb[13].mxu1 }
 0x446   : > { %v23258_v4 = vpop.f32.mrb[14].mxu1 }
 0x447   : > { %v23260_v53 = vpop.f32.mrb[15].mxu1 }
 0x44e   : > { %v18087_v57 = vpop.f32.mrb[0].mxu0 }
 0x44f   : > { %v19581_v60 = vadd.f32 %v18087_v57, %v17767_v22  ;;  %v6494_v38 = vpop.f32.mrb[1].mxu0 }
 0x450   : > { %v19582_v33 = vadd.f32 %v6494_v38, %v4523_v58 }
 0x451   : > { %v6693_v5 = vadd.f32 %v19581_v60, %v23265_v21 }
 0x452   : > { %v6692_v37 = vadd.f32 %v19582_v33, %v23265_v21  ;;  %v18090_v31 = vpop.f32.mrb[2].mxu0 }
 0x453   : > { %vm6725_vm8 = vcmp.gt.f32.partialorder %v6693_v5, 0.0  ;;  %v6757_v63 = vmul.f32 0.2, %v6693_v5  ;;  %v19583_v32 = vadd.f32 %v18090_v31, %v17770_v1  ;;  %v6504_v2 = vpop.f32.mrb[3].mxu0 }
 0x454   : > { %vm6724_vm9 = vcmp.gt.f32.partialorder %v6692_v37, 0.0  ;;  %v6756_v51 = vmul.f32 0.2, %v6692_v37  ;;  %v19584_v35 = vadd.f32 %v6504_v2, %v4533_v0 }
 0x455   : > { %v6789_v13 = vsel %vm6725_vm8, %v6693_v5, %v6757_v63  ;;  %v6695_v28 = vadd.f32 %v19583_v32, %v23265_v21 }
 0x456   : > { %6821 = vst.msk [vmem:[#allocation4 + $0x21] sm:$0xff] %vm430_vm3, %v6789_v13  ;;  %v6788_v44 = vsel %vm6724_vm9, %v6692_v37, %v6756_v51  ;;  %v6694_v59 = vadd.f32 %v19584_v35, %v23265_v21  ;;  %v18093_v3 = vpop.f32.mrb[4].mxu0 }
 0x457   : > { %6820 = vst.msk [vmem:[#allocation4 + $0x19] sm:$0xff] %vm430_vm3, %v6788_v44  ;;  %vm6727_vm10 = vcmp.gt.f32.partialorder %v6695_v28, 0.0  ;;  %v6759_v7 = vmul.f32 0.2, %v6695_v28  ;;  %v19585_v61 = vadd.f32 %v18093_v3, %v17773_v62  ;;  %v6514_v25 = vpop.f32.mrb[5].mxu0 }
 0x458   : > { %vm6726_vm11 = vcmp.gt.f32.partialorder %v6694_v59, 0.0  ;;  %v6758_v6 = vmul.f32 0.2, %v6694_v59  ;;  %v19586_v23 = vadd.f32 %v6514_v25, %v4543_v54 }
 0x459   : > { %v6791_v16 = vsel %vm6727_vm10, %v6695_v28, %v6759_v7  ;;  %v6697_v8 = vadd.f32 %v19585_v61, %v23265_v21 }
 0x45a   : > { %6823 = vst.msk [vmem:[#allocation4 + $0x39] sm:$0xff] %vm430_vm3, %v6791_v16  ;;  %v6790_v46 = vsel %vm6726_vm11, %v6694_v59, %v6758_v6  ;;  %v6696_v34 = vadd.f32 %v19586_v23, %v23265_v21  ;;  %v18096_v47 = vpop.f32.mrb[6].mxu0 }
 0x45b   : > { %6822 = vst.msk [vmem:[#allocation4 + $0x31] sm:$0xff] %vm430_vm3, %v6790_v46  ;;  %vm6729_vm12 = vcmp.gt.f32.partialorder %v6697_v8, 0.0  ;;  %v6761_v17 = vmul.f32 0.2, %v6697_v8  ;;  %v19587_v40 = vadd.f32 %v18096_v47, %v17776_v43  ;;  %v6524_v27 = vpop.f32.mrb[7].mxu0 }
 0x45c   : > { %vm6728_vm13 = vcmp.gt.f32.partialorder %v6696_v34, 0.0  ;;  %v6760_v9 = vmul.f32 0.2, %v6696_v34  ;;  %v19588_v19 = vadd.f32 %v6524_v27, %v4553_v45 }
 0x45d   : > { %v6793_v26 = vsel %vm6729_vm12, %v6697_v8, %v6761_v17  ;;  %v6699_v10 = vadd.f32 %v19587_v40, %v23265_v21  ;;  %v23285_v11 = vld [vmem:[#allocation4 + $0x21] sm:$0xff] }
 0x45e   : > { %6825 = vst.msk [vmem:[#allocation4 + $0x51] sm:$0xff] %vm430_vm3, %v6793_v26  ;;  %v6792_v41 = vsel %vm6728_vm13, %v6696_v34, %v6760_v9  ;;  %v6698_v52 = vadd.f32 %v19588_v19, %v23265_v21  ;;  %v18099_v24 = vpop.f32.mrb[8].mxu0  ;;  %v23280_v20 = vld [vmem:[#allocation4 + $0x19] sm:$0xff] }
 0x45f   : > { %6824 = vst.msk [vmem:[#allocation4 + $0x49] sm:$0xff] %vm430_vm3, %v6792_v41  ;;  %vm6731_vm14 = vcmp.gt.f32.partialorder %v6699_v10, 0.0  ;;  %v6763_v29 = vmul.f32 0.2, %v6699_v10  ;;  %v19589_v42 = vadd.f32 %v18099_v24, %v17779_v18  ;;  %v6534_v49 = vpop.f32.mrb[9].mxu0  ;;  %18152 = vmatprep.mubr.msk.f32.mxu1 %vm430_vm3, %v23280_v20 }
 0x460   : > { %vm6730_vm15 = vcmp.gt.f32.partialorder %v6698_v52, 0.0  ;;  %v6762_v14 = vmul.f32 0.2, %v6698_v52  ;;  %v19590_v50 = vadd.f32 %v6534_v49, %v23248_v36  ;;  %18153 = vmatmul.mubr.msk.f32.gmra.mrb[34].mxu1 %vm430_vm3, %v23285_v11 }
 0x461   : > { %v6795_v15 = vsel %vm6731_vm14, %v6699_v10, %v6763_v29  ;;  %v6701_v30 = vadd.f32 %v19589_v42, %v23265_v21  ;;  %v23299_v45 = vld [vmem:[#allocation4 + $0x39] sm:$0xff] }
 0x462   : > { %6827 = vst.msk [vmem:[#allocation4 + $0x69] sm:$0xff] %vm430_vm3, %v6795_v15  ;;  %v6794_v22 = vsel %vm6730_vm15, %v6698_v52, %v6762_v14  ;;  %v6700_v58 = vadd.f32 %v19590_v50, %v23265_v21  ;;  %v18102_v1 = vpop.f32.mrb[10].mxu0  ;;  %v23293_v0 = vld [vmem:[#allocation4 + $0x31] sm:$0xff] }
 0x463   : > { %6826 = vst.msk [vmem:[#allocation4 + $0x61] sm:$0xff] %vm430_vm3, %v6794_v22  ;;  %vm6733_vm1 = vcmp.gt.f32.partialorder %v6701_v30, 0.0  ;;  %v6765_v62 = vmul.f32 0.2, %v6701_v30  ;;  %v19591_v54 = vadd.f32 %v18102_v1, %v23250_v56  ;;  %v6544_v43 = vpop.f32.mrb[11].mxu0  ;;  %18155 = vmatprep.mubr.msk.f32.mxu1 %vm430_vm3, %v23293_v0 }
 0x464   : > { %vm6732_vm2 = vcmp.gt.f32.partialorder %v6700_v58, 0.0  ;;  %v6764_v18 = vmul.f32 0.2, %v6700_v58  ;;  %v19592_v36 = vadd.f32 %v6544_v43, %v23252_v48  ;;  %18156 = vmatmul.mubr.msk.f32.gmra.mrb[36].mxu1 %vm430_vm3, %v23299_v45 }
 0x465   : > { %v6797_v57 = vsel %vm6733_vm1, %v6701_v30, %v6765_v62  ;;  %v6703_v60 = vadd.f32 %v19591_v54, %v23265_v21  ;;  %v23313_v63 = vld [vmem:[#allocation4 + $0x51] sm:$0xff] }
 0x466   : > { %6829 = vst.msk [vmem:[#allocation4 + $0x81] sm:$0xff] %vm430_vm3, %v6797_v57  ;;  %v6796_v38 = vsel %vm6732_vm2, %v6700_v58, %v6764_v18  ;;  %v6702_v56 = vadd.f32 %v19592_v36, %v23265_v21  ;;  %v18105_v33 = vpop.f32.mrb[12].mxu0  ;;  %v23307_v5 = vld [vmem:[#allocation4 + $0x49] sm:$0xff] }
 0x467   : > { %6828 = vst.msk [vmem:[#allocation4 + $0x79] sm:$0xff] %vm430_vm3, %v6796_v38  ;;  %vm6735_vm0 = vcmp.gt.f32.partialorder %v6703_v60, 0.0  ;;  %v6767_v37 = vmul.f32 0.2, %v6703_v60  ;;  %v19593_v48 = vadd.f32 %v18105_v33, %v23254_v39  ;;  %v6554_v31 = vpop.f32.mrb[13].mxu0  ;;  %18158 = vmatprep.mubr.msk.f32.mxu1 %vm430_vm3, %v23307_v5 }
 0x468   : > { %vm6734_vm4 = vcmp.gt.f32.partialorder %v6702_v56, 0.0  ;;  %v6766_v32 = vmul.f32 0.2, %v6702_v56  ;;  %v19594_v2 = vadd.f32 %v6554_v31, %v23256_v55  ;;  %18159 = vmatmul.mubr.msk.f32.gmra.mrb[38].mxu1 %vm430_vm3, %v23313_v63 }
 0x469   : > { %v6799_v51 = vsel %vm6735_vm0, %v6703_v60, %v6767_v37  ;;  %v6705_v35 = vadd.f32 %v19593_v48, %v23265_v21  ;;  %v23327_v25 = vld [vmem:[#allocation4 + $0x69] sm:$0xff] }
 0x46a   : > { %6831 = vst.msk [vmem:[#allocation4 + $0x99] sm:$0xff] %vm430_vm3, %v6799_v51  ;;  %v6798_v13 = vsel %vm6734_vm4, %v6702_v56, %v6766_v32  ;;  %v6704_v39 = vadd.f32 %v19594_v2, %v23265_v21  ;;  %v17855_v28 = vpop.f32.mrb[16].mxu1  ;;  %v18108_v44 = vpop.f32.mrb[14].mxu0  ;;  %v23321_v59 = vld [vmem:[#allocation4 + $0x61] sm:$0xff] }
 0x46b   : > { %6830 = vst.msk [vmem:[#allocation4 + $0x91] sm:$0xff] %vm430_vm3, %v6798_v13  ;;  %vm6737_vm5 = vcmp.gt.f32.partialorder %v6705_v35, 0.0  ;;  %v6769_v3 = vmul.f32 0.2, %v6705_v35  ;;  %v19595_v55 = vadd.f32 %v18108_v44, %v23258_v4  ;;  %v4997_v7 = vpop.f32.mrb[17].mxu1  ;;  %v6564_v61 = vpop.f32.mrb[15].mxu0  ;;  %18161 = vmatprep.mubr.msk.f32.mxu1 %vm430_vm3, %v23321_v59 }
 0x46c   : > { %vm6736_vm6 = vcmp.gt.f32.partialorder %v6704_v39, 0.0  ;;  %v6768_v6 = vmul.f32 0.2, %v6704_v39  ;;  %v19596_v23 = vadd.f32 %v6564_v61, %v23260_v53  ;;  %18162 = vmatmul.mubr.msk.f32.gmra.mrb[40].mxu1 %vm430_vm3, %v23327_v25 }
 0x46d   : > { %v6801_v16 = vsel %vm6737_vm5, %v6705_v35, %v6769_v3  ;;  %v6707_v8 = vadd.f32 %v19595_v55, %v23265_v21  ;;  %v23340_v19 = vld [vmem:[#allocation4 + $0x81] sm:$0xff] }
 0x46e   : > { %6833 = vst.msk [vmem:[#allocation4 + $0xb1] sm:$0xff] %vm430_vm3, %v6801_v16  ;;  %v6800_v4 = vsel %vm6736_vm6, %v6704_v39, %v6768_v6  ;;  %v6706_v46 = vadd.f32 %v19596_v23, %v23265_v21  ;;  %v17858_v34 = vpop.f32.mrb[18].mxu1  ;;  %v18111_v47 = vpop.f32.mrb[16].mxu0  ;;  %v23335_v17 = vld [vmem:[#allocation4 + $0x79] sm:$0xff] }
 0x46f   : > { %6832 = vst.msk [vmem:[#allocation4 + $0xa9] sm:$0xff] %vm430_vm3, %v6800_v4  ;;  %vm6739_vm7 = vcmp.gt.f32.partialorder %v6707_v8, 0.0  ;;  %v6771_v40 = vmul.f32 0.2, %v6707_v8  ;;  %v19597_v53 = vadd.f32 %v18111_v47, %v17855_v28  ;;  %v5007_v27 = vpop.f32.mrb[19].mxu1  ;;  %v6574_v9 = vpop.f32.mrb[17].mxu0  ;;  %18164 = vmatprep.mubr.msk.f32.mxu1 %vm430_vm3, %v23335_v17 }
 0x470   : > { %vm6738_vm8 = vcmp.gt.f32.partialorder %v6706_v46, 0.0  ;;  %v6770_v26 = vmul.f32 0.2, %v6706_v46  ;;  %v19598_v10 = vadd.f32 %v6574_v9, %v4997_v7  ;;  %18165 = vmatmul.mubr.msk.f32.gmra.mrb[42].mxu1 %vm430_vm3, %v23340_v19 }
 0x471   : > { %v6803_v41 = vsel %vm6739_vm7, %v6707_v8, %v6771_v40  ;;  %v6709_v52 = vadd.f32 %v19597_v53, %v23265_v21  ;;  %v23352_v58 = vld [vmem:[#allocation4 + $0x99] sm:$0xff] }
 0x472   : > { %6835 = vst.msk [vmem:[#allocation4 + $0xc9] sm:$0xff] %vm430_vm3, %v6803_v41  ;;  %v6802_v24 = vsel %vm6738_vm8, %v6706_v46, %v6770_v26  ;;  %v6708_v29 = vadd.f32 %v19598_v10, %v23265_v21  ;;  %v17861_v42 = vpop.f32.mrb[20].mxu1  ;;  %v18114_v49 = vpop.f32.mrb[18].mxu0  ;;  %v23347_v14 = vld [vmem:[#allocation4 + $0x91] sm:$0xff] }
 0x473   : > { %6834 = vst.msk [vmem:[#allocation4 + $0xc1] sm:$0xff] %vm430_vm3, %v6802_v24  ;;  %vm6741_vm9 = vcmp.gt.f32.partialorder %v6709_v52, 0.0  ;;  %v6773_v50 = vmul.f32 0.2, %v6709_v52  ;;  %v19599_v15 = vadd.f32 %v18114_v49, %v17858_v34  ;;  %v5017_v30 = vpop.f32.mrb[21].mxu1  ;;  %v6584_v22 = vpop.f32.mrb[19].mxu0  ;;  %18167 = vmatprep.mubr.msk.f32.mxu1 %vm430_vm3, %v23347_v14 }
 0x474   : > { %vm6740_vm10 = vcmp.gt.f32.partialorder %v6708_v29, 0.0  ;;  %v6772_v1 = vmul.f32 0.2, %v6708_v29  ;;  %v19600_v62 = vadd.f32 %v6584_v22, %v5007_v27  ;;  %18168 = vmatmul.mubr.msk.f32.gmra.mrb[44].mxu1 %vm430_vm3, %v23352_v58 }
 0x475   : > { %v6805_v54 = vsel %vm6741_vm9, %v6709_v52, %v6773_v50  ;;  %v6711_v43 = vadd.f32 %v19599_v15, %v23265_v21  ;;  %v23364_v31 = vld [vmem:[#allocation4 + $0xb1] sm:$0xff] }
 0x476   : > { %6837 = vst.msk [vmem:[#allocation4 + $0xe1] sm:$0xff] %vm430_vm3, %v6805_v54  ;;  %v6804_v18 = vsel %vm6740_vm10, %v6708_v29, %v6772_v1  ;;  %v6710_v36 = vadd.f32 %v19600_v62, %v23265_v21  ;;  %v17864_v57 = vpop.f32.mrb[22].mxu1  ;;  %v18117_v60 = vpop.f32.mrb[20].mxu0  ;;  %v23359_v38 = vld [vmem:[#allocation4 + $0xa9] sm:$0xff]  ;;  %vm513_vm10 = vcmask 261120  }
 0x477   : > { %6836 = vst.msk [vmem:[#allocation4 + $0xd9] sm:$0xff] %vm430_vm3, %v6804_v18  ;;  %vm6743_vm11 = vcmp.gt.f32.partialorder %v6711_v43, 0.0  ;;  %v6775_v56 = vmul.f32 0.2, %v6711_v43  ;;  %v19601_v33 = vadd.f32 %v18117_v60, %v17861_v42  ;;  %v5027_v37 = vpop.f32.mrb[23].mxu1  ;;  %v6594_v48 = vpop.f32.mrb[21].mxu0  ;;  %18170 = vmatprep.mubr.msk.f32.mxu1 %vm430_vm3, %v23359_v38 }
 0x478   : > { %vm6742_vm12 = vcmp.gt.f32.partialorder %v6710_v36, 0.0  ;;  %v6774_v32 = vmul.f32 0.2, %v6710_v36  ;;  %v19602_v2 = vadd.f32 %v6594_v48, %v5017_v30  ;;  %18171 = vmatmul.mubr.msk.f32.gmra.mrb[46].mxu1 %vm430_vm3, %v23364_v31 }
 0x479   : > { %v6807_v51 = vsel %vm6743_vm11, %v6711_v43, %v6775_v56  ;;  %v6713_v35 = vadd.f32 %v19601_v33, %v23265_v21  ;;  %v23376_v23 = vld [vmem:[#allocation4 + $0xc9] sm:$0xff]  ;;  %vm516_vm11 = vcmask 254976  }
 0x47a   : > { %6839 = vst.msk [vmem:[#allocation4 + $0xf9] sm:$0xff] %vm430_vm3, %v6807_v51  ;;  %v6806_v13 = vsel %vm6742_vm12, %v6710_v36, %v6774_v32  ;;  %v6712_v39 = vadd.f32 %v19602_v2, %v23265_v21  ;;  %v17867_v28 = vpop.f32.mrb[24].mxu1  ;;  %v18120_v44 = vpop.f32.mrb[22].mxu0  ;;  %v23371_v3 = vld [vmem:[#allocation4 + $0xc1] sm:$0xff]  ;;  %vm523_vm12 = vcmask 253952  }
 0x47b   : > { %6838 = vst.msk [vmem:[#allocation4 + $0xf1] sm:$0xff] %vm430_vm3, %v6806_v13  ;;  %vm6745_vm13 = vcmp.gt.f32.partialorder %v6713_v35, 0.0  ;;  %v6777_v55 = vmul.f32 0.2, %v6713_v35  ;;  %v19603_v7 = vadd.f32 %v18120_v44, %v17864_v57  ;;  %v5037_v61 = vpop.f32.mrb[25].mxu1  ;;  %v6604_v6 = vpop.f32.mrb[23].mxu0  ;;  %18173 = vmatprep.mubr.msk.f32.mxu1 %vm430_vm3, %v23371_v3 }
 0x47c   : > { %vm6744_vm14 = vcmp.gt.f32.partialorder %v6712_v39, 0.0  ;;  %v6776_v16 = vmul.f32 0.2, %v6712_v39  ;;  %v19604_v8 = vadd.f32 %v6604_v6, %v5027_v37  ;;  %18174 = vmatmul.mubr.msk.f32.gmra.mrb[48].mxu1 %vm430_vm3, %v23376_v23 }
 0x47d   : > { %v6809_v4 = vsel %vm6745_vm13, %v6713_v35, %v6777_v55  ;;  %v6715_v46 = vadd.f32 %v19603_v7, %v23265_v21  ;;  %v23388_v52 = vld [vmem:[#allocation4 + $0xe1] sm:$0xff] }
 0x47e   : > { %6841 = vst.msk [vmem:[#allocation4 + $0x111] sm:$0xff] %vm430_vm3, %v6809_v4  ;;  %v6808_v34 = vsel %vm6744_vm14, %v6712_v39, %v6776_v16  ;;  %v6714_v47 = vadd.f32 %v19604_v8, %v23265_v21  ;;  %v17870_v40 = vpop.f32.mrb[26].mxu1  ;;  %v18123_v53 = vpop.f32.mrb[24].mxu0  ;;  %v23383_v27 = vld [vmem:[#allocation4 + $0xd9] sm:$0xff] }
 0x47f   : > { %6840 = vst.msk [vmem:[#allocation4 + $0x109] sm:$0xff] %vm430_vm3, %v6808_v34  ;;  %vm6747_vm15 = vcmp.gt.f32.partialorder %v6715_v46, 0.0  ;;  %v6779_v9 = vmul.f32 0.2, %v6715_v46  ;;  %v19605_v26 = vadd.f32 %v18123_v53, %v17867_v28  ;;  %v5047_v10 = vpop.f32.mrb[27].mxu1  ;;  %v6614_v41 = vpop.f32.mrb[25].mxu0  ;;  %18176 = vmatprep.mubr.msk.f32.mxu1 %vm430_vm3, %v23383_v27 }
 0x480   : > { %vm6746_vm1 = vcmp.gt.f32.partialorder %v6714_v47, 0.0  ;;  %v6778_v24 = vmul.f32 0.2, %v6714_v47  ;;  %v19606_v29 = vadd.f32 %v6614_v41, %v5037_v61  ;;  %18177 = vmatmul.mubr.msk.f32.gmra.mrb[50].mxu1 %vm430_vm3, %v23388_v52 }
 0x481   : > { %v6811_v42 = vsel %vm6747_vm15, %v6715_v46, %v6779_v9  ;;  %v6717_v49 = vadd.f32 %v19605_v26, %v23265_v21  ;;  %v23400_v36 = vld [vmem:[#allocation4 + $0xf9] sm:$0xff] }
 0x482   : > { %6843 = vst.msk [vmem:[#allocation4 + $0x129] sm:$0xff] %vm430_vm3, %v6811_v42  ;;  %v6810_v50 = vsel %vm6746_vm1, %v6714_v47, %v6778_v24  ;;  %v6716_v15 = vadd.f32 %v19606_v29, %v23265_v21  ;;  %v17873_v30 = vpop.f32.mrb[28].mxu1  ;;  %v18126_v22 = vpop.f32.mrb[26].mxu0  ;;  %v23395_v1 = vld [vmem:[#allocation4 + $0xf1] sm:$0xff] }
 0x483   : > { %6842 = vst.msk [vmem:[#allocation4 + $0x121] sm:$0xff] %vm430_vm3, %v6810_v50  ;;  %vm6749_vm2 = vcmp.gt.f32.partialorder %v6717_v49, 0.0  ;;  %v6781_v62 = vmul.f32 0.2, %v6717_v49  ;;  %v19607_v54 = vadd.f32 %v18126_v22, %v17870_v40  ;;  %v5057_v43 = vpop.f32.mrb[29].mxu1  ;;  %v6624_v18 = vpop.f32.mrb[27].mxu0  ;;  %18179 = vmatprep.mubr.msk.f32.mxu1 %vm430_vm3, %v23395_v1 }
 0x484   : > { %vm6748_vm0 = vcmp.gt.f32.partialorder %v6716_v15, 0.0  ;;  %v6780_v57 = vmul.f32 0.2, %v6716_v15  ;;  %v19608_v60 = vadd.f32 %v6624_v18, %v5047_v10  ;;  %18180 = vmatmul.mubr.msk.f32.gmra.mrb[52].mxu1 %vm430_vm3, %v23400_v36 }
 0x485   : > { %v6813_v56 = vsel %vm6749_vm2, %v6717_v49, %v6781_v62  ;;  %v6719_v33 = vadd.f32 %v19607_v54, %v23265_v21  ;;  %v23412_v44 = vld [vmem:[#allocation4 + $0x111] sm:$0xff] }
 0x486   : > { %6845 = vst.msk [vmem:[#allocation4 + $0x141] sm:$0xff] %vm430_vm3, %v6813_v56  ;;  %v6812_v37 = vsel %vm6748_vm0, %v6716_v15, %v6780_v57  ;;  %v6718_v48 = vadd.f32 %v19608_v60, %v23265_v21  ;;  %v17876_v32 = vpop.f32.mrb[30].mxu1  ;;  %v18129_v2 = vpop.f32.mrb[28].mxu0  ;;  %v23407_v51 = vld [vmem:[#allocation4 + $0x109] sm:$0xff]  ;;  %v15897_v60 = vld [vmem:[%s26239_s5 + $0x98] sm:$0xff] }
 0x487   : > { %6844 = vst.msk [vmem:[#allocation4 + $0x139] sm:$0xff] %vm430_vm3, %v6812_v37  ;;  %vm6751_vm4 = vcmp.gt.f32.partialorder %v6719_v33, 0.0  ;;  %v6783_v35 = vmul.f32 0.2, %v6719_v33  ;;  %v19609_v13 = vadd.f32 %v18129_v2, %v17873_v30  ;;  %v5067_v39 = vpop.f32.mrb[31].mxu1  ;;  %v6634_v28 = vpop.f32.mrb[29].mxu0  ;;  %18182 = vmatprep.mubr.msk.f32.mxu1 %vm430_vm3, %v23407_v51 }
 0x488   : > { %vm6750_vm5 = vcmp.gt.f32.partialorder %v6718_v48, 0.0  ;;  %v6782_v55 = vmul.f32 0.2, %v6718_v48  ;;  %v19610_v7 = vadd.f32 %v6634_v28, %v5057_v43  ;;  %18183 = vmatmul.mubr.msk.f32.gmra.mrb[54].mxu1 %vm430_vm3, %v23412_v44  ;;  %v6852_v43 = vld [vmem:[#allocation4] sm:$0xff]  ;;  %v15896_v57 = vld [vmem:[%s26239_s5 + $0x90] sm:$0xff]  ;;  %v6853_v56 = vld [vmem:[#allocation4 + $0x8] sm:$0xff] }
 0x489   : > { %v6815_v61 = vsel %vm6751_vm4, %v6719_v33, %v6783_v35  ;;  %v6721_v6 = vadd.f32 %v19609_v13, %v23265_v21  ;;  %v23424_v53 = vld [vmem:[#allocation4 + $0x129] sm:$0xff]  ;;  %v19393_v33 = vpack.c.bf16 %v15897_v60, %v15896_v57  ;;  %v15898_v37 = vld [vmem:[%s26239_s5 + $0xa0] sm:$0xff] }
 0x48a   : > { %6847 = vst.msk [vmem:[#allocation4 + $0x159] sm:$0xff] %vm430_vm3, %v6815_v61  ;;  %v6814_v16 = vsel %vm6750_vm5, %v6718_v48, %v6782_v55  ;;  %v6720_v8 = vadd.f32 %v19610_v7, %v23265_v21  ;;  %v18132_v4 = vpop.f32.mrb[30].mxu0  ;;  %v23419_v46 = vld [vmem:[#allocation4 + $0x121] sm:$0xff]  ;;  %v15900_v13 = vld [vmem:[%s26239_s5 + $0xb0] sm:$0xff]  ;;  %v23491_v55 = vld [vmem:[#allocation4 + $0x38] sm:$0xff] }
 0x48b   : > { %6846 = vst.msk [vmem:[#allocation4 + $0x151] sm:$0xff] %vm430_vm3, %v6814_v16  ;;  %vm6753_vm6 = vcmp.gt.f32.partialorder %v6721_v6, 0.0  ;;  %v6785_v34 = vmul.f32 0.2, %v6721_v6  ;;  %v19611_v47 = vadd.f32 %v18132_v4, %v17876_v32  ;;  %v6644_v40 = vpop.f32.mrb[31].mxu0  ;;  %18185 = vmatprep.mubr.msk.f32.mxu1 %vm430_vm3, %v23419_v46  ;;  %v15899_v48 = vld [vmem:[%s26239_s5 + $0xa8] sm:$0xff] }
 0x48c   : > { %vm6752_vm7 = vcmp.gt.f32.partialorder %v6720_v8, 0.0  ;;  %v6784_v9 = vmul.f32 0.2, %v6720_v8  ;;  %v19612_v26 = vadd.f32 %v6644_v40, %v5067_v39  ;;  %18186 = vmatmul.mubr.msk.f32.gmra.mrb[56].mxu1 %vm430_vm3, %v23424_v53  ;;  %v23472_v32 = vld [vmem:[#allocation4 + $0x18] sm:$0xff]  ;;  %v19397_v2 = vpack.c.bf16 %v15899_v48, %v15898_v37  ;;  %v23477_v35 = vld [vmem:[#allocation4 + $0x20] sm:$0xff]  ;;  %v23487_v28 = vld [vmem:[#allocation4 + $0x30] sm:$0xff] }
 0x48d   : > { %v6817_v10 = vsel %vm6753_vm6, %v6721_v6, %v6785_v34  ;;  %v6723_v41 = vadd.f32 %v19611_v47, %v23265_v21  ;;  %v23436_v50 = vld [vmem:[#allocation4 + $0x141] sm:$0xff]  ;;  %v15901_v39 = vld [vmem:[%s26239_s5 + $0xb8] sm:$0xff]  ;;  %v23569_v57 = vld [vmem:[#allocation4 + $0x110] sm:$0xff] }
 0x48e   : > { %6849 = vst.msk [vmem:[#allocation4 + $0x171] sm:$0xff] %vm430_vm3, %v6817_v10  ;;  %v6816_v24 = vsel %vm6752_vm7, %v6720_v8, %v6784_v9  ;;  %v6722_v29 = vadd.f32 %v19612_v26, %v23265_v21  ;;  %v23431_v42 = vld [vmem:[#allocation4 + $0x139] sm:$0xff]  ;;  %26440 = vst [vmem:[#allocation13_spill] sm:$0xff] %v23436_v50  ;;  %v15935_v61 = vld [vmem:[%s26239_s5 + $0xc8] sm:$0xff] }
 0x48f   : > { %26439 = vst [vmem:[#allocation12_spill] sm:$0xff] %v23431_v42  ;;  %6848 = vst.msk [vmem:[#allocation4 + $0x169] sm:$0xff] %vm430_vm3, %v6816_v24  ;;  %vm6755_vm8 = vcmp.gt.f32.partialorder %v6723_v41, 0.0  ;;  %v6787_v49 = vmul.f32 0.2, %v6723_v41  ;;  %18188 = vmatprep.mubr.msk.f32.mxu1 %vm430_vm3, %v23431_v42  ;;  %v15934_v7 = vld [vmem:[%s26239_s5 + $0xc0] sm:$0xff] }
 0x490   : > { %vm6754_vm9 = vcmp.gt.f32.partialorder %v6722_v29, 0.0  ;;  %v6786_v15 = vmul.f32 0.2, %v6722_v29  ;;  %18189 = vmatmul.mubr.msk.f32.gmra.mrb[58].mxu1 %vm430_vm3, %v23436_v50  ;;  %v23501_v6 = vld [vmem:[#allocation4 + $0x48] sm:$0xff]  ;;  %v19405_v16 = vpack.c.bf16 %v15935_v61, %v15934_v7  ;;  %v23505_v8 = vld [vmem:[#allocation4 + $0x50] sm:$0xff]  ;;  %v23509_v4 = vld [vmem:[#allocation4 + $0x60] sm:$0xff] }
 0x491   : > { %v6819_v30 = vsel %vm6755_vm8, %v6723_v41, %v6787_v49  ;;  %v23446_v62 = vld [vmem:[#allocation4 + $0x159] sm:$0xff]  ;;  %v23513_v34 = vld [vmem:[#allocation4 + $0x68] sm:$0xff]  ;;  %v23525_v9 = vld [vmem:[#allocation4 + $0x90] sm:$0xff] }
 0x492   : > { %6851 = vst.msk [vmem:[#allocation4 + $0x189] sm:$0xff] %vm430_vm3, %v6819_v30  ;;  %v6818_v21 = vsel %vm6754_vm9, %v6722_v29, %v6786_v15  ;;  %v23441_v22 = vld [vmem:[#allocation4 + $0x151] sm:$0xff]  ;;  %26442 = vst [vmem:[#allocation17_spill] sm:$0xff] %v23446_v62  ;;  %v23521_v40 = vld [vmem:[#allocation4 + $0x80] sm:$0xff] }
 0x493   : > { %26441 = vst [vmem:[#allocation14_spill] sm:$0xff] %v23441_v22  ;;  %6850 = vst.msk [vmem:[#allocation4 + $0x181] sm:$0xff] %vm430_vm3, %v6818_v21  ;;  %18191 = vmatprep.mubr.msk.f32.mxu1 %vm430_vm3, %v23441_v22  ;;  %v23517_v47 = vld [vmem:[#allocation4 + $0x78] sm:$0xff]  ;;  %v23533_v10 = vld [vmem:[#allocation4 + $0xa8] sm:$0xff] }
 0x494   : > { %18192 = vmatmul.mubr.msk.f32.gmra.mrb[60].mxu1 %vm430_vm3, %v23446_v62  ;;  %v23529_v26 = vld [vmem:[#allocation4 + $0x98] sm:$0xff]  ;;  %v23537_v41 = vld [vmem:[#allocation4 + $0xb0] sm:$0xff]  ;;  %v23541_v24 = vld [vmem:[#allocation4 + $0xc0] sm:$0xff] }
 0x495   : > { %v23454_v18 = vld [vmem:[#allocation4 + $0x171] sm:$0xff]  ;;  %v23545_v29 = vld [vmem:[#allocation4 + $0xc8] sm:$0xff]  ;;  %v23553_v15 = vld [vmem:[#allocation4 + $0xe0] sm:$0xff] }
 0x496   : > { %v23450_v54 = vld [vmem:[#allocation4 + $0x169] sm:$0xff]  ;;  %26444 = vst [vmem:[#allocation16_spill] sm:$0xff] %v23454_v18  ;;  %v23549_v49 = vld [vmem:[#allocation4 + $0xd8] sm:$0xff]  ;;  %v23573_v60 = vld [vmem:[#allocation4 + $0x120] sm:$0xff] }
 0x497   : > { %26443 = vst [vmem:[#allocation11_spill] sm:$0xff] %v23450_v54  ;;  %18194 = vmatprep.mubr.msk.f32.mxu1 %vm430_vm3, %v23450_v54  ;;  %v23557_v30 = vld [vmem:[#allocation4 + $0xf0] sm:$0xff]  ;;  %v23561_v21 = vld [vmem:[#allocation4 + $0xf8] sm:$0xff]  ;;  %v23585_v37 = vld [vmem:[#allocation4 + $0x140] sm:$0xff] }
 0x498   : > { %18195 = vmatmul.mubr.msk.f32.gmra.mrb[62].mxu1 %vm430_vm3, %v23454_v18  ;;  %v23589_v48 = vld [vmem:[#allocation4 + $0x150] sm:$0xff]  ;;  %v15937_v61 = vld [vmem:[%s26239_s5 + $0xd8] sm:$0xff]  ;;  %v15938_v62 = vld [vmem:[%s26239_s5 + $0xe0] sm:$0xff] }
 0x499   : > { %18213 = vmatprep.mubr.msk.f32.mxu1 %vm430_vm3, %v6852_v43  ;;  %v23565_v43 = vld [vmem:[#allocation4 + $0x108] sm:$0xff]  ;;  %v15936_v7 = vld [vmem:[%s26239_s5 + $0xd0] sm:$0xff]  ;;  %v23619_v50 = vld [vmem:[#allocation4 + $0x1a] sm:$0xff] }
 0x49a   : > { %v7576_v18 = vld [vmem:[#allocation4 + $0xa] sm:$0xff]  ;;  %v19409_v54 = vpack.c.bf16 %v15937_v61, %v15936_v7  ;;  %26445 = vst [vmem:[#allocation20_spill] sm:$0xff] %v23619_v50  ;;  %v23623_v42 = vld [vmem:[#allocation4 + $0x22] sm:$0xff]  ;;  %v15941_v61 = vld [vmem:[%s26239_s5 + $0xf8] sm:$0xff] }
 0x49b   : > { %v15939_v22 = vld [vmem:[%s26239_s5 + $0xe8] sm:$0xff]  ;;  %26446 = vst [vmem:[#allocation19_spill] sm:$0xff] %v23623_v42  ;;  %v15940_v7 = vld [vmem:[%s26239_s5 + $0xf0] sm:$0xff] }
 0x49c   : > { %18214 = vmatmul.mubr.msk.f32.vlgmr.msra.gmra.mrb[32].mxu1 %vm430_vm3, %v6853_v56  ;;  %v23577_v56 = vld [vmem:[#allocation4 + $0x128] sm:$0xff] }
 0x49d   : > { %19392 = vmatpush3.bf16.msra.mxu1 %v23245_v12  ;;  %18216 = vmatprep.mubr.msk.f32.mxu1 %vm430_vm3, %v23472_v32  ;;  %v19401_v12 = vpack.c.bf16 %v15901_v39, %v15900_v13  ;;  %v23597_v13 = vld [vmem:[#allocation4 + $0x168] sm:$0xff] }
 0x49e   : > { %19394 = vmatprep.subr.bf16.mxu1 %v19393_v33  ;;  %v7575_v39 = vld [vmem:[#allocation4 + $0x2] sm:$0xff] }
 0x4a0   : > { %18217 = vmatmul.mubr.msk.f32.gmra.mrb[34].mxu1 %vm430_vm3, %v23477_v35 }
 0x4a1   : > { %18219 = vmatprep.mubr.msk.f32.mxu1 %vm430_vm3, %v23487_v28  ;;  %19396 = vmatpush3.bf16.msra.mxu1 %v19393_v33  ;;  %v23581_v33 = vld [vmem:[#allocation4 + $0x138] sm:$0xff] }
 0x4a2   : > { %19398 = vmatprep.subr.bf16.mxu1 %v19397_v2 }
 0x4a4   : > { %18220 = vmatmul.mubr.msk.f32.gmra.mrb[36].mxu1 %vm430_vm3, %v23491_v55 }
 0x4a5   : > { %18222 = vmatprep.mubr.msk.f32.mxu1 %vm430_vm3, %v23501_v6  ;;  %19400 = vmatpush3.bf16.msra.mxu1 %v19397_v2  ;;  %v23593_v2 = vld [vmem:[#allocation4 + $0x158] sm:$0xff] }
 0x4a6   : > { %19402 = vmatprep.subr.bf16.mxu1 %v19401_v12 }
 0x4a8   : > { %18223 = vmatmul.mubr.msk.f32.gmra.mrb[38].mxu1 %vm430_vm3, %v23505_v8 }
 0x4a9   : > { %18225 = vmatprep.mubr.msk.f32.mxu1 %vm430_vm3, %v23509_v4  ;;  %19404 = vmatpush3.bf16.msra.mxu1 %v19401_v12  ;;  %v23601_v12 = vld [vmem:[#allocation4 + $0x170] sm:$0xff] }
 0x4aa   : > { %19406 = vmatprep.subr.bf16.mxu1 %v19405_v16 }
 0x4ac   : > { %18226 = vmatmul.mubr.msk.f32.gmra.mrb[40].mxu1 %vm430_vm3, %v23513_v34 }
 0x4ad   : > { %18228 = vmatprep.mubr.msk.f32.mxu1 %vm430_vm3, %v23517_v47 }
 0x4b0   : > { %18229 = vmatmul.mubr.msk.f32.gmra.mrb[42].mxu1 %vm430_vm3, %v23521_v40 }
 0x4b1   : > { %18231 = vmatprep.mubr.msk.f32.mxu1 %vm430_vm3, %v23525_v9 }
 0x4b4   : > { %18232 = vmatmul.mubr.msk.f32.gmra.mrb[44].mxu1 %vm430_vm3, %v23529_v26 }
 0x4b5   : > { %18234 = vmatprep.mubr.msk.f32.mxu1 %vm430_vm3, %v23533_v10 }
 0x4b8   : > { %18235 = vmatmul.mubr.msk.f32.gmra.mrb[46].mxu1 %vm430_vm3, %v23537_v41 }
 0x4b9   : > { %18237 = vmatprep.mubr.msk.f32.mxu1 %vm430_vm3, %v23541_v24 }
 0x4bc   : > { %18238 = vmatmul.mubr.msk.f32.gmra.mrb[48].mxu1 %vm430_vm3, %v23545_v29 }
 0x4bd   : > { %18240 = vmatprep.mubr.msk.f32.mxu1 %vm430_vm3, %v23549_v49 }
 0x4c0   : > { %18241 = vmatmul.mubr.msk.f32.gmra.mrb[50].mxu1 %vm430_vm3, %v23553_v15 }
 0x4c1   : > { %18243 = vmatprep.mubr.msk.f32.mxu1 %vm430_vm3, %v23557_v30 }
 0x4c4   : > { %18244 = vmatmul.mubr.msk.f32.gmra.mrb[52].mxu1 %vm430_vm3, %v23561_v21 }
 0x4c5   : > { %18246 = vmatprep.mubr.msk.f32.mxu1 %vm430_vm3, %v23565_v43 }
 0x4c8   : > { %18247 = vmatmul.mubr.msk.f32.gmra.mrb[54].mxu1 %vm430_vm3, %v23569_v57 }
 0x4c9   : > { %18249 = vmatprep.mubr.msk.f32.mxu1 %vm430_vm3, %v23573_v60 }
 0x4cc   : > { %18250 = vmatmul.mubr.msk.f32.gmra.mrb[56].mxu1 %vm430_vm3, %v23577_v56 }
 0x4cd   : > { %18252 = vmatprep.mubr.msk.f32.mxu1 %vm430_vm3, %v23581_v33 }
 0x4d0   : > { %18253 = vmatmul.mubr.msk.f32.gmra.mrb[58].mxu1 %vm430_vm3, %v23585_v37 }
 0x4d1   : > { %18255 = vmatprep.mubr.msk.f32.mxu1 %vm430_vm3, %v23589_v48 }
 0x4d4   : > { %18256 = vmatmul.mubr.msk.f32.gmra.mrb[60].mxu1 %vm430_vm3, %v23593_v2 }
 0x4d5   : > { %18258 = vmatprep.mubr.msk.f32.mxu1 %vm430_vm3, %v23597_v13 }
 0x4d8   : > { %18259 = vmatmul.mubr.msk.f32.gmra.mrb[62].mxu1 %vm430_vm3, %v23601_v12 }
 0x4d9   : > { %18277 = vmatprep.mubr.msk.f32.mxu1 %vm430_vm3, %v7575_v39  ;;  %v19413_v39 = vpack.c.bf16 %v15939_v22, %v15938_v62  ;;  %v19417_v22 = vpack.c.bf16 %v15941_v61, %v15940_v7  ;;  %v23637_v62 = vld [vmem:[#allocation4 + $0x3a] sm:$0xff]  ;;  %v23651_v7 = vld [vmem:[#allocation4 + $0x52] sm:$0xff]  ;;  %v23655_v61 = vld [vmem:[#allocation4 + $0x62] sm:$0xff] }
 0x4da   : > { %26447 = vst [vmem:[#allocation22_spill] sm:$0xff] %v23637_v62  ;;  %26448 = vst [vmem:[#allocation21_spill] sm:$0xff] %v23655_v61 }
 0x4dc   : > { %18278 = vmatmul.mubr.msk.f32.vlgmr.msra.gmra.mrb[32].mxu1 %vm430_vm3, %v7576_v18  ;;  %v23633_v18 = vld [vmem:[#allocation4 + $0x32] sm:$0xff] }
 0x4dd   : > { %19408 = vmatpush3.bf16.msra.mxu1 %v19405_v16  ;;  %18280 = vmatprep.mubr.msk.f32.mxu1 %vm430_vm3, %v23619_v50  ;;  %v15974_v16 = vld [vmem:[%s26239_s5 + $0x100] sm:$0xff]  ;;  %v15975_v50 = vld [vmem:[%s26239_s5 + $0x108] sm:$0xff] }
 0x4de   : > { %19410 = vmatprep.subr.bf16.mxu1 %v19409_v54 }
 0x4e0   : > { %18281 = vmatmul.mubr.msk.f32.gmra.mrb[34].mxu1 %vm430_vm3, %v23623_v42  ;;  %v23647_v42 = vld [vmem:[#allocation4 + $0x4a] sm:$0xff] }
 0x4e1   : > { %18283 = vmatprep.mubr.msk.f32.mxu1 %vm430_vm3, %v23633_v18  ;;  %19412 = vmatpush3.bf16.msra.mxu1 %v19409_v54  ;;  %v19421_v54 = vpack.c.bf16 %v15975_v50, %v15974_v16  ;;  %v23667_v50 = vld [vmem:[#allocation4 + $0x82] sm:$0xff]  ;;  %v23671_v16 = vld [vmem:[#allocation4 + $0x92] sm:$0xff] }
 0x4e2   : > { %19414 = vmatprep.subr.bf16.mxu1 %v19413_v39  ;;  %26451 = vst [vmem:[#allocation25_spill] sm:$0xff] %v23667_v50  ;;  %26452 = vst [vmem:[#allocation26_spill] sm:$0xff] %v23671_v16 }
 0x4e4   : > { %18284 = vmatmul.mubr.msk.f32.gmra.mrb[36].mxu1 %vm430_vm3, %v23637_v62  ;;  %v23659_v62 = vld [vmem:[#allocation4 + $0x6a] sm:$0xff] }
 0x4e5   : > { %18286 = vmatprep.mubr.msk.f32.mxu1 %vm430_vm3, %v23647_v42  ;;  %19416 = vmatpush3.bf16.msra.mxu1 %v19413_v39  ;;  %26449 = vst [vmem:[#allocation23_spill] sm:$0xff] %v23659_v62  ;;  %v23663_v39 = vld [vmem:[#allocation4 + $0x7a] sm:$0xff] }
 0x4e6   : > { %19418 = vmatprep.subr.bf16.mxu1 %v19417_v22  ;;  %26450 = vst [vmem:[#allocation24_spill] sm:$0xff] %v23663_v39 }
 0x4e8   : > { %18287 = vmatmul.mubr.msk.f32.gmra.mrb[38].mxu1 %vm430_vm3, %v23651_v7 }
 0x4e9   : > { %18289 = vmatprep.mubr.msk.f32.mxu1 %vm430_vm3, %v23655_v61  ;;  %19420 = vmatpush3.bf16.msra.mxu1 %v19417_v22  ;;  %v23675_v22 = vld [vmem:[#allocation4 + $0x9a] sm:$0xff]  ;;  %v15979_v61 = vld [vmem:[%s26239_s5 + $0x128] sm:$0xff] }
 0x4ea   : > { %19422 = vmatprep.subr.bf16.mxu1 %v19421_v54  ;;  %26453 = vst [vmem:[#allocation27_spill] sm:$0xff] %v23675_v22 }
 0x4ec   : > { %18290 = vmatmul.mubr.msk.f32.gmra.mrb[40].mxu1 %vm430_vm3, %v23659_v62  ;;  %v23679_v62 = vld [vmem:[#allocation4 + $0xaa] sm:$0xff] }
 0x4ed   : > { %18292 = vmatprep.mubr.msk.f32.mxu1 %vm430_vm3, %v23663_v39  ;;  %26454 = vst [vmem:[#allocation18_spill] sm:$0xff] %v23679_v62  ;;  %v23683_v39 = vld [vmem:[#allocation4 + $0xb2] sm:$0xff] }
 0x4ee   : > { %26455 = vst [vmem:[#allocation15_spill] sm:$0xff] %v23683_v39 }
 0x4f0   : > { %18293 = vmatmul.mubr.msk.f32.gmra.mrb[42].mxu1 %vm430_vm3, %v23667_v50  ;;  %v23687_v50 = vld [vmem:[#allocation4 + $0xc2] sm:$0xff] }
 0x4f1   : > { %18295 = vmatprep.mubr.msk.f32.mxu1 %vm430_vm3, %v23671_v16  ;;  %26456 = vst [vmem:[#allocation28_spill] sm:$0xff] %v23687_v50  ;;  %v23691_v16 = vld [vmem:[#allocation4 + $0xca] sm:$0xff] }
 0x4f2   : > { %26457 = vst [vmem:[#allocation29_spill] sm:$0xff] %v23691_v16 }
 0x4f4   : > { %18296 = vmatmul.mubr.msk.f32.gmra.mrb[44].mxu1 %vm430_vm3, %v23675_v22  ;;  %v23695_v22 = vld [vmem:[#allocation4 + $0xda] sm:$0xff] }
 0x4f5   : > { %18298 = vmatprep.mubr.msk.f32.mxu1 %vm430_vm3, %v23679_v62  ;;  %26458 = vst [vmem:[#allocation30_spill] sm:$0xff] %v23695_v22  ;;  %v23699_v62 = vld [vmem:[#allocation4 + $0xe2] sm:$0xff] }
 0x4f6   : > { %26459 = vst [vmem:[#allocation31_spill] sm:$0xff] %v23699_v62 }
 0x4f8   : > { %18299 = vmatmul.mubr.msk.f32.gmra.mrb[46].mxu1 %vm430_vm3, %v23683_v39  ;;  %v23703_v39 = vld [vmem:[#allocation4 + $0xf2] sm:$0xff] }
 0x4f9   : > { %18301 = vmatprep.mubr.msk.f32.mxu1 %vm430_vm3, %v23687_v50  ;;  %26460 = vst [vmem:[#allocation32_spill] sm:$0xff] %v23703_v39  ;;  %v23707_v50 = vld [vmem:[#allocation4 + $0xfa] sm:$0xff] }
 0x4fa   : > { %26461 = vst [vmem:[#allocation33_spill] sm:$0xff] %v23707_v50 }
 0x4fc   : > { %18302 = vmatmul.mubr.msk.f32.gmra.mrb[48].mxu1 %vm430_vm3, %v23691_v16  ;;  %v23711_v16 = vld [vmem:[#allocation4 + $0x10a] sm:$0xff] }
 0x4fd   : > { %18304 = vmatprep.mubr.msk.f32.mxu1 %vm430_vm3, %v23695_v22  ;;  %26462 = vst [vmem:[#allocation34_spill] sm:$0xff] %v23711_v16  ;;  %v23715_v22 = vld [vmem:[#allocation4 + $0x112] sm:$0xff] }
 0x4fe   : > { %26463 = vst [vmem:[#allocation35_spill] sm:$0xff] %v23715_v22 }
 0x500   : > { %18305 = vmatmul.mubr.msk.f32.gmra.mrb[50].mxu1 %vm430_vm3, %v23699_v62  ;;  %v23719_v62 = vld [vmem:[#allocation4 + $0x122] sm:$0xff] }
 0x501   : > { %18307 = vmatprep.mubr.msk.f32.mxu1 %vm430_vm3, %v23703_v39  ;;  %26464 = vst [vmem:[#allocation36_spill] sm:$0xff] %v23719_v62  ;;  %v23723_v39 = vld [vmem:[#allocation4 + $0x12a] sm:$0xff] }
 0x502   : > { %26465 = vst [vmem:[#allocation37_spill] sm:$0xff] %v23723_v39 }
 0x504   : > { %18308 = vmatmul.mubr.msk.f32.gmra.mrb[52].mxu1 %vm430_vm3, %v23707_v50  ;;  %v23727_v50 = vld [vmem:[#allocation4 + $0x13a] sm:$0xff] }
 0x505   : > { %18310 = vmatprep.mubr.msk.f32.mxu1 %vm430_vm3, %v23711_v16  ;;  %26466 = vst [vmem:[#allocation38_spill] sm:$0xff] %v23727_v50  ;;  %v23731_v16 = vld [vmem:[#allocation4 + $0x142] sm:$0xff] }
 0x506   : > { %26467 = vst [vmem:[#allocation39_spill] sm:$0xff] %v23731_v16 }
 0x508   : > { %18311 = vmatmul.mubr.msk.f32.gmra.mrb[54].mxu1 %vm430_vm3, %v23715_v22  ;;  %v23735_v22 = vld [vmem:[#allocation4 + $0x152] sm:$0xff] }
 0x509   : > { %18313 = vmatprep.mubr.msk.f32.mxu1 %vm430_vm3, %v23719_v62  ;;  %26468 = vst [vmem:[#allocation40_spill] sm:$0xff] %v23735_v22  ;;  %v23739_v62 = vld [vmem:[#allocation4 + $0x15a] sm:$0xff] }
 0x50a   : > { %26469 = vst [vmem:[#allocation41_spill] sm:$0xff] %v23739_v62 }
 0x50c   : > { %18314 = vmatmul.mubr.msk.f32.gmra.mrb[56].mxu1 %vm430_vm3, %v23723_v39  ;;  %v23743_v39 = vld [vmem:[#allocation4 + $0x16a] sm:$0xff] }
 0x50d   : > { %18316 = vmatprep.mubr.msk.f32.mxu1 %vm430_vm3, %v23727_v50  ;;  %26470 = vst [vmem:[#allocation42_spill] sm:$0xff] %v23743_v39  ;;  %v23747_v50 = vld [vmem:[#allocation4 + $0x172] sm:$0xff] }
 0x50e   : > { %26471 = vst [vmem:[#allocation43_spill] sm:$0xff] %v23747_v50 }
 0x510   : > { %18317 = vmatmul.mubr.msk.f32.gmra.mrb[58].mxu1 %vm430_vm3, %v23731_v16  ;;  %v15976_v16 = vld [vmem:[%s26239_s5 + $0x110] sm:$0xff] }
 0x511   : > { %18319 = vmatprep.mubr.msk.f32.mxu1 %vm430_vm3, %v23735_v22  ;;  %v15977_v22 = vld [vmem:[%s26239_s5 + $0x118] sm:$0xff] }
 0x514   : > { %18320 = vmatmul.mubr.msk.f32.gmra.mrb[60].mxu1 %vm430_vm3, %v23739_v62  ;;  %v19425_v62 = vpack.c.bf16 %v15977_v22, %v15976_v16  ;;  %v15981_v16 = vld [vmem:[%s26239_s5 + $0x138] sm:$0xff]  ;;  %v16016_v22 = vld [vmem:[%s26239_s5 + $0x150] sm:$0xff] }
 0x515   : > { %18322 = vmatprep.mubr.msk.f32.mxu1 %vm430_vm3, %v23743_v39  ;;  %v15978_v39 = vld [vmem:[%s26239_s5 + $0x120] sm:$0xff] }
 0x518   : > { %18323 = vmatmul.mubr.msk.f32.gmra.mrb[62].mxu1 %vm430_vm3, %v23747_v50  ;;  %v19429_v50 = vpack.c.bf16 %v15979_v61, %v15978_v39  ;;  %v16015_v61 = vld [vmem:[%s26239_s5 + $0x148] sm:$0xff] }
 0x519   : > { %18341 = vmatprep.mubr.msk.f32.mxu1 %vm430_vm3, %v23472_v32  ;;  %v15980_v32 = vld [vmem:[%s26239_s5 + $0x130] sm:$0xff] }
 0x51c   : > { %18342 = vmatmul.mubr.msk.f32.vlgmr.msra.gmra.mrb[32].mxu1 %vm430_vm3, %v23477_v35  ;;  %v19433_v35 = vpack.c.bf16 %v15981_v16, %v15980_v32  ;;  %v16017_v32 = vld [vmem:[%s26239_s5 + $0x158] sm:$0xff] }
 0x51d   : > { %19424 = vmatpush3.bf16.msra.mxu1 %v19421_v54  ;;  %18344 = vmatprep.mubr.msk.f32.mxu1 %vm430_vm3, %v23487_v28  ;;  %v16014_v54 = vld [vmem:[%s26239_s5 + $0x140] sm:$0xff]  ;;  %v19441_v16 = vpack.c.bf16 %v16017_v32, %v16016_v22  ;;  %v16021_v22 = vld [vmem:[%s26239_s5 + $0x178] sm:$0xff] }
 0x51e   : > { %19426 = vmatprep.subr.bf16.mxu1 %v19425_v62  ;;  %v19437_v39 = vpack.c.bf16 %v16015_v61, %v16014_v54  ;;  %v16019_v54 = vld [vmem:[%s26239_s5 + $0x168] sm:$0xff]  ;;  %v16094_v32 = vld [vmem:[%s26239_s5 + $0x1c0] sm:$0xff] }
 0x520   : > { %18345 = vmatmul.mubr.msk.f32.gmra.mrb[34].mxu1 %vm430_vm3, %v23491_v55 }
 0x521   : > { %18347 = vmatprep.mubr.msk.f32.mxu1 %vm430_vm3, %v23501_v6  ;;  %19428 = vmatpush3.bf16.msra.mxu1 %v19425_v62  ;;  %v23835_v62 = vld [vmem:[#allocation4 + $0x180] sm:$0xff] }
 0x522   : > { %19430 = vmatprep.subr.bf16.mxu1 %v19429_v50 }
 0x524   : > { %18348 = vmatmul.mubr.msk.f32.gmra.mrb[36].mxu1 %vm430_vm3, %v23505_v8 }
 0x525   : > { %18350 = vmatprep.mubr.msk.f32.mxu1 %vm430_vm3, %v23509_v4  ;;  %19432 = vmatpush3.bf16.msra.mxu1 %v19429_v50  ;;  %v23839_v50 = vld [vmem:[#allocation4 + $0x188] sm:$0xff] }
 0x526   : > { %19434 = vmatprep.subr.bf16.mxu1 %v19433_v35 }
 0x528   : > { %18351 = vmatmul.mubr.msk.f32.gmra.mrb[38].mxu1 %vm430_vm3, %v23513_v34 }
 0x529   : > { %18353 = vmatprep.mubr.msk.f32.mxu1 %vm430_vm3, %v23517_v47  ;;  %19436 = vmatpush3.bf16.msra.mxu1 %v19433_v35  ;;  %v16018_v35 = vld [vmem:[%s26239_s5 + $0x160] sm:$0xff] }
 0x52a   : > { %19438 = vmatprep.subr.bf16.mxu1 %v19437_v39  ;;  %v19445_v61 = vpack.c.bf16 %v16019_v54, %v16018_v35  ;;  %v26481_v35 = vld [vmem:[#allocation21_spill] sm:$0xff] }
 0x52c   : > { %18354 = vmatmul.mubr.msk.f32.gmra.mrb[40].mxu1 %vm430_vm3, %v23521_v40 }
 0x52d   : > { %18356 = vmatprep.mubr.msk.f32.mxu1 %vm430_vm3, %v23525_v9 }
 0x530   : > { %18357 = vmatmul.mubr.msk.f32.gmra.mrb[42].mxu1 %vm430_vm3, %v23529_v26 }
 0x531   : > { %18359 = vmatprep.mubr.msk.f32.mxu1 %vm430_vm3, %v23533_v10 }
 0x534   : > { %18360 = vmatmul.mubr.msk.f32.gmra.mrb[44].mxu1 %vm430_vm3, %v23537_v41 }
 0x535   : > { %18362 = vmatprep.mubr.msk.f32.mxu1 %vm430_vm3, %v23541_v24 }
 0x538   : > { %18363 = vmatmul.mubr.msk.f32.gmra.mrb[46].mxu1 %vm430_vm3, %v23545_v29 }
 0x539   : > { %18365 = vmatprep.mubr.msk.f32.mxu1 %vm430_vm3, %v23549_v49 }
 0x53c   : > { %18366 = vmatmul.mubr.msk.f32.gmra.mrb[48].mxu1 %vm430_vm3, %v23553_v15 }
 0x53d   : > { %18368 = vmatprep.mubr.msk.f32.mxu1 %vm430_vm3, %v23557_v30 }
 0x540   : > { %18369 = vmatmul.mubr.msk.f32.gmra.mrb[50].mxu1 %vm430_vm3, %v23561_v21 }
 0x541   : > { %18371 = vmatprep.mubr.msk.f32.mxu1 %vm430_vm3, %v23565_v43 }
 0x544   : > { %18372 = vmatmul.mubr.msk.f32.gmra.mrb[52].mxu1 %vm430_vm3, %v23569_v57 }
 0x545   : > { %18374 = vmatprep.mubr.msk.f32.mxu1 %vm430_vm3, %v23573_v60 }
 0x548   : > { %18375 = vmatmul.mubr.msk.f32.gmra.mrb[54].mxu1 %vm430_vm3, %v23577_v56 }
 0x549   : > { %18377 = vmatprep.mubr.msk.f32.mxu1 %vm430_vm3, %v23581_v33 }
 0x54c   : > { %18378 = vmatmul.mubr.msk.f32.gmra.mrb[56].mxu1 %vm430_vm3, %v23585_v37 }
 0x54d   : > { %18380 = vmatprep.mubr.msk.f32.mxu1 %vm430_vm3, %v23589_v48 }
 0x550   : > { %18381 = vmatmul.mubr.msk.f32.gmra.mrb[58].mxu1 %vm430_vm3, %v23593_v2 }
 0x551   : > { %18383 = vmatprep.mubr.msk.f32.mxu1 %vm430_vm3, %v23597_v13 }
 0x554   : > { %18384 = vmatmul.mubr.msk.f32.gmra.mrb[60].mxu1 %vm430_vm3, %v23601_v12 }
 0x555   : > { %18386 = vmatprep.mubr.msk.f32.mxu1 %vm430_vm3, %v23835_v62 }
 0x558   : > { %18387 = vmatmul.mubr.msk.f32.gmra.mrb[62].mxu1 %vm430_vm3, %v23839_v50 }
 0x559   : > { %18405 = vmatprep.mubr.msk.f32.mxu1 %vm430_vm3, %v23280_v20  ;;  %v16020_v20 = vld [vmem:[%s26239_s5 + $0x170] sm:$0xff] }
 0x55c   : > { %18406 = vmatmul.mubr.msk.f32.vlgmr.msra.gmra.mrb[32].mxu1 %vm430_vm3, %v23285_v11  ;;  %v19449_v11 = vpack.c.bf16 %v16021_v22, %v16020_v20  ;;  %v26483_v20 = vld [vmem:[#allocation24_spill] sm:$0xff]  ;;  %v26484_v22 = vld [vmem:[#allocation25_spill] sm:$0xff] }
 0x55d   : > { %19440 = vmatpush3.bf16.msra.mxu1 %v19437_v39  ;;  %18408 = vmatprep.mubr.msk.f32.mxu1 %vm430_vm3, %v23293_v0  ;;  %v16054_v0 = vld [vmem:[%s26239_s5 + $0x180] sm:$0xff]  ;;  %v16055_v39 = vld [vmem:[%s26239_s5 + $0x188] sm:$0xff] }
 0x55e   : > { %19442 = vmatprep.subr.bf16.mxu1 %v19441_v16 }
 0x560   : > { %18409 = vmatmul.mubr.msk.f32.gmra.mrb[34].mxu1 %vm430_vm3, %v23299_v45  ;;  %v19453_v45 = vpack.c.bf16 %v16055_v39, %v16054_v0  ;;  %v26486_v0 = vld [vmem:[#allocation27_spill] sm:$0xff]  ;;  %v26487_v39 = vld [vmem:[#allocation18_spill] sm:$0xff] }
 0x561   : > { %18411 = vmatprep.mubr.msk.f32.mxu1 %vm430_vm3, %v23307_v5  ;;  %19444 = vmatpush3.bf16.msra.mxu1 %v19441_v16  ;;  %v26472_v5 = vld [vmem:[#allocation12_spill] sm:$0xff]  ;;  %v16095_v16 = vld [vmem:[%s26239_s5 + $0x1c8] sm:$0xff] }
 0x562   : > { %19446 = vmatprep.subr.bf16.mxu1 %v19445_v61  ;;  %v19469_v54 = vpack.c.bf16 %v16095_v16, %v16094_v32  ;;  %v24023_v32 = vld [vmem:[#allocation4 + $0x18a] sm:$0xff] }
 0x563   : > { %v16096_v16 = vld [vmem:[%s26239_s5 + $0x1d0] sm:$0xff] }
 0x564   : > { %18412 = vmatmul.mubr.msk.f32.gmra.mrb[36].mxu1 %vm430_vm3, %v23313_v63  ;;  %v26473_v63 = vld [vmem:[#allocation13_spill] sm:$0xff] }
 0x565   : > { %18414 = vmatprep.mubr.msk.f32.mxu1 %vm430_vm3, %v23321_v59  ;;  %19448 = vmatpush3.bf16.msra.mxu1 %v19445_v61  ;;  %v26474_v59 = vld [vmem:[#allocation14_spill] sm:$0xff]  ;;  %v26482_v61 = vld [vmem:[#allocation23_spill] sm:$0xff]  ;;  %26506 = vst [vmem:[#allocation13_spill] sm:$0xff] %v24023_v32 }
 0x566   : > { %19450 = vmatprep.subr.bf16.mxu1 %v19449_v11 }
 0x568   : > { %18415 = vmatmul.mubr.msk.f32.gmra.mrb[38].mxu1 %vm430_vm3, %v23327_v25  ;;  %v26475_v25 = vld [vmem:[#allocation17_spill] sm:$0xff] }
 0x569   : > { %18417 = vmatprep.mubr.msk.f32.mxu1 %vm430_vm3, %v23335_v17  ;;  %19452 = vmatpush3.bf16.msra.mxu1 %v19449_v11  ;;  %v26476_v17 = vld [vmem:[#allocation11_spill] sm:$0xff]  ;;  %v26485_v11 = vld [vmem:[#allocation26_spill] sm:$0xff] }
 0x56a   : > { %19454 = vmatprep.subr.bf16.mxu1 %v19453_v45 }
 0x56c   : > { %18418 = vmatmul.mubr.msk.f32.gmra.mrb[40].mxu1 %vm430_vm3, %v23340_v19  ;;  %v26477_v19 = vld [vmem:[#allocation16_spill] sm:$0xff] }
 0x56d   : > { %18420 = vmatprep.mubr.msk.f32.mxu1 %vm430_vm3, %v23347_v14  ;;  %v23927_v14 = vld [vmem:[#allocation4 + $0x181] sm:$0xff] }
 0x570   : > { %18421 = vmatmul.mubr.msk.f32.gmra.mrb[42].mxu1 %vm430_vm3, %v23352_v58  ;;  %v23931_v58 = vld [vmem:[#allocation4 + $0x189] sm:$0xff] }
 0x571   : > { %18423 = vmatprep.mubr.msk.f32.mxu1 %vm430_vm3, %v23359_v38  ;;  %v16056_v38 = vld [vmem:[%s26239_s5 + $0x190] sm:$0xff] }
 0x574   : > { %18424 = vmatmul.mubr.msk.f32.gmra.mrb[44].mxu1 %vm430_vm3, %v23364_v31  ;;  %v16057_v31 = vld [vmem:[%s26239_s5 + $0x198] sm:$0xff] }
 0x575   : > { %18426 = vmatprep.mubr.msk.f32.mxu1 %vm430_vm3, %v23371_v3  ;;  %v26478_v3 = vld [vmem:[#allocation20_spill] sm:$0xff] }
 0x578   : > { %18427 = vmatmul.mubr.msk.f32.gmra.mrb[46].mxu1 %vm430_vm3, %v23376_v23  ;;  %v19457_v23 = vpack.c.bf16 %v16057_v31, %v16056_v38  ;;  %v26495_v38 = vld [vmem:[#allocation34_spill] sm:$0xff]  ;;  %v26496_v31 = vld [vmem:[#allocation35_spill] sm:$0xff] }
 0x579   : > { %18429 = vmatprep.mubr.msk.f32.mxu1 %vm430_vm3, %v23383_v27  ;;  %v16058_v27 = vld [vmem:[%s26239_s5 + $0x1a0] sm:$0xff] }
 0x57c   : > { %18430 = vmatmul.mubr.msk.f32.gmra.mrb[48].mxu1 %vm430_vm3, %v23388_v52  ;;  %v16059_v52 = vld [vmem:[%s26239_s5 + $0x1a8] sm:$0xff] }
 0x57d   : > { %18432 = vmatprep.mubr.msk.f32.mxu1 %vm430_vm3, %v23395_v1  ;;  %v26479_v1 = vld [vmem:[#allocation19_spill] sm:$0xff] }
 0x580   : > { %18433 = vmatmul.mubr.msk.f32.gmra.mrb[50].mxu1 %vm430_vm3, %v23400_v36  ;;  %v19461_v36 = vpack.c.bf16 %v16059_v52, %v16058_v27  ;;  %v26499_v27 = vld [vmem:[#allocation38_spill] sm:$0xff]  ;;  %v26500_v52 = vld [vmem:[#allocation39_spill] sm:$0xff] }
 0x581   : > { %18435 = vmatprep.mubr.msk.f32.mxu1 %vm430_vm3, %v23407_v51  ;;  %v16060_v51 = vld [vmem:[%s26239_s5 + $0x1b0] sm:$0xff] }
 0x584   : > { %18436 = vmatmul.mubr.msk.f32.gmra.mrb[52].mxu1 %vm430_vm3, %v23412_v44  ;;  %v16061_v44 = vld [vmem:[%s26239_s5 + $0x1b8] sm:$0xff] }
 0x585   : > { %18438 = vmatprep.mubr.msk.f32.mxu1 %vm430_vm3, %v23419_v46  ;;  %v26480_v46 = vld [vmem:[#allocation22_spill] sm:$0xff] }
 0x588   : > { %18439 = vmatmul.mubr.msk.f32.gmra.mrb[54].mxu1 %vm430_vm3, %v23424_v53  ;;  %v19465_v53 = vpack.c.bf16 %v16061_v44, %v16060_v51  ;;  %v26503_v51 = vld [vmem:[#allocation42_spill] sm:$0xff]  ;;  %v26504_v44 = vld [vmem:[#allocation43_spill] sm:$0xff] }
 0x589   : > { %18441 = vmatprep.mubr.msk.f32.mxu1 %vm430_vm3, %v26472_v5  ;;  %v26489_v5 = vld [vmem:[#allocation28_spill] sm:$0xff] }
 0x58c   : > { %18442 = vmatmul.mubr.msk.f32.gmra.mrb[56].mxu1 %vm430_vm3, %v26473_v63  ;;  %v26490_v63 = vld [vmem:[#allocation29_spill] sm:$0xff] }
 0x58d   : > { %18444 = vmatprep.mubr.msk.f32.mxu1 %vm430_vm3, %v26474_v59  ;;  %v26491_v59 = vld [vmem:[#allocation30_spill] sm:$0xff] }
 0x590   : > { %18445 = vmatmul.mubr.msk.f32.gmra.mrb[58].mxu1 %vm430_vm3, %v26475_v25  ;;  %v26492_v25 = vld [vmem:[#allocation31_spill] sm:$0xff] }
 0x591   : > { %18447 = vmatprep.mubr.msk.f32.mxu1 %vm430_vm3, %v26476_v17  ;;  %v26493_v17 = vld [vmem:[#allocation32_spill] sm:$0xff] }
 0x594   : > { %18448 = vmatmul.mubr.msk.f32.gmra.mrb[60].mxu1 %vm430_vm3, %v26477_v19  ;;  %v26494_v19 = vld [vmem:[#allocation33_spill] sm:$0xff] }
 0x595   : > { %18450 = vmatprep.mubr.msk.f32.mxu1 %vm430_vm3, %v23927_v14 }
 0x598   : > { %18451 = vmatmul.mubr.msk.f32.gmra.mrb[62].mxu1 %vm430_vm3, %v23931_v58 }
 0x599   : > { %18469 = vmatprep.mubr.msk.f32.mxu1 %vm430_vm3, %v26478_v3  ;;  %v26497_v3 = vld [vmem:[#allocation36_spill] sm:$0xff] }
 0x59c   : > { %18470 = vmatmul.mubr.msk.f32.vlgmr.msra.gmra.mrb[32].mxu1 %vm430_vm3, %v26479_v1  ;;  %v26501_v1 = vld [vmem:[#allocation40_spill] sm:$0xff] }
 0x59d   : > { %19456 = vmatpush3.bf16.msra.mxu1 %v19453_v45  ;;  %18472 = vmatprep.mubr.msk.f32.mxu1 %vm430_vm3, %v23633_v18  ;;  %v26488_v45 = vld [vmem:[#allocation15_spill] sm:$0xff] }
 0x59e   : > { %19458 = vmatprep.subr.bf16.mxu1 %v19457_v23 }
 0x5a0   : > { %18473 = vmatmul.mubr.msk.f32.gmra.mrb[34].mxu1 %vm430_vm3, %v26480_v46 }
 0x5a1   : > { %18475 = vmatprep.mubr.msk.f32.mxu1 %vm430_vm3, %v23647_v42  ;;  %19460 = vmatpush3.bf16.msra.mxu1 %v19457_v23  ;;  %v26498_v23 = vld [vmem:[#allocation37_spill] sm:$0xff] }
 0x5a2   : > { %19462 = vmatprep.subr.bf16.mxu1 %v19461_v36 }
 0x5a4   : > { %18476 = vmatmul.mubr.msk.f32.gmra.mrb[36].mxu1 %vm430_vm3, %v23651_v7 }
 0x5a5   : > { %18478 = vmatprep.mubr.msk.f32.mxu1 %vm430_vm3, %v26481_v35  ;;  %19464 = vmatpush3.bf16.msra.mxu1 %v19461_v36  ;;  %v26502_v36 = vld [vmem:[#allocation41_spill] sm:$0xff] }
 0x5a6   : > { %19466 = vmatprep.subr.bf16.mxu1 %v19465_v53 }
 0x5a8   : > { %18479 = vmatmul.mubr.msk.f32.gmra.mrb[38].mxu1 %vm430_vm3, %v26482_v61 }
 0x5a9   : > { %18481 = vmatprep.mubr.msk.f32.mxu1 %vm430_vm3, %v26483_v20  ;;  %19468 = vmatpush3.bf16.msra.mxu1 %v19465_v53  ;;  %v24019_v53 = vld [vmem:[#allocation4 + $0x182] sm:$0xff] }
 0x5aa   : > { %19470 = vmatprep.subr.bf16.mxu1 %v19469_v54  ;;  %26505 = vst [vmem:[#allocation12_spill] sm:$0xff] %v24019_v53 }
 0x5ac   : > { %18482 = vmatmul.mubr.msk.f32.gmra.mrb[40].mxu1 %vm430_vm3, %v26484_v22 }
 0x5ad   : > { %18484 = vmatprep.mubr.msk.f32.mxu1 %vm430_vm3, %v26485_v11 }
 0x5b0   : > { %18485 = vmatmul.mubr.msk.f32.gmra.mrb[42].mxu1 %vm430_vm3, %v26486_v0 }
 0x5b1   : > { %18487 = vmatprep.mubr.msk.f32.mxu1 %vm430_vm3, %v26487_v39 }
 0x5b4   : > { %18488 = vmatmul.mubr.msk.f32.gmra.mrb[44].mxu1 %vm430_vm3, %v26488_v45 }
 0x5b5   : > { %18490 = vmatprep.mubr.msk.f32.mxu1 %vm430_vm3, %v26489_v5 }
 0x5b8   : > { %18491 = vmatmul.mubr.msk.f32.gmra.mrb[46].mxu1 %vm430_vm3, %v26490_v63 }
 0x5b9   : > { %18493 = vmatprep.mubr.msk.f32.mxu1 %vm430_vm3, %v26491_v59 }
 0x5bc   : > { %18494 = vmatmul.mubr.msk.f32.gmra.mrb[48].mxu1 %vm430_vm3, %v26492_v25 }
 0x5bd   : > { %18496 = vmatprep.mubr.msk.f32.mxu1 %vm430_vm3, %v26493_v17 }
 0x5c0   : > { %18497 = vmatmul.mubr.msk.f32.gmra.mrb[50].mxu1 %vm430_vm3, %v26494_v19 }
 0x5c1   : > { %18499 = vmatprep.mubr.msk.f32.mxu1 %vm430_vm3, %v26495_v38 }
 0x5c4   : > { %18500 = vmatmul.mubr.msk.f32.gmra.mrb[52].mxu1 %vm430_vm3, %v26496_v31 }
 0x5c5   : > { %18502 = vmatprep.mubr.msk.f32.mxu1 %vm430_vm3, %v26497_v3 }
 0x5c8   : > { %18503 = vmatmul.mubr.msk.f32.gmra.mrb[54].mxu1 %vm430_vm3, %v26498_v23 }
 0x5c9   : > { %18505 = vmatprep.mubr.msk.f32.mxu1 %vm430_vm3, %v26499_v27 }
 0x5cc   : > { %18506 = vmatmul.mubr.msk.f32.gmra.mrb[56].mxu1 %vm430_vm3, %v26500_v52 }
 0x5cd   : > { %18508 = vmatprep.mubr.msk.f32.mxu1 %vm430_vm3, %v26501_v1 }
 0x5d0   : > { %18509 = vmatmul.mubr.msk.f32.gmra.mrb[58].mxu1 %vm430_vm3, %v26502_v36  ;;  %v16097_v36 = vld [vmem:[%s26239_s5 + $0x1d8] sm:$0xff] }
 0x5d1   : > { %18511 = vmatprep.mubr.msk.f32.mxu1 %vm430_vm3, %v26503_v51  ;;  %v16099_v51 = vld [vmem:[%s26239_s5 + $0x1e8] sm:$0xff] }
 0x5d4   : > { %18512 = vmatmul.mubr.msk.f32.gmra.mrb[60].mxu1 %vm430_vm3, %v26504_v44  ;;  %v19473_v44 = vpack.c.bf16 %v16097_v36, %v16096_v16  ;;  %v16101_v36 = vld [vmem:[%s26239_s5 + $0x1f8] sm:$0xff]  ;;  %v9558_v16 = vld [vmem:[#allocation4 + $0xc1] sm:$0xff] }
 0x5d5   : > { %18514 = vmatprep.mubr.msk.f32.mxu1 %vm430_vm3, %v24019_v53  ;;  %v16098_v53 = vld [vmem:[%s26239_s5 + $0x1e0] sm:$0xff] }
 0x5d8   : > { %18515 = vmatmul.mubr.msk.f32.gmra.mrb[62].mxu1 %vm430_vm3, %v24023_v32  ;;  %v19477_v32 = vpack.c.bf16 %v16099_v51, %v16098_v53  ;;  %v9554_v51 = vld [vmem:[#allocation4 + $0x91] sm:$0xff]  ;;  %v9556_v53 = vld [vmem:[#allocation4 + $0xa9] sm:$0xff] }
 0x5d9   : > { %18533 = vmatprep.mubr.msk.f32.mxu1 %vm430_vm3, %v23487_v28  ;;  %v16100_v28 = vld [vmem:[%s26239_s5 + $0x1f0] sm:$0xff] }
 0x5dc   : > { %18534 = vmatmul.mubr.msk.f32.vlgmr.msra.gmra.mrb[32].mxu1 %vm430_vm3, %v23491_v55  ;;  %v19481_v55 = vpack.c.bf16 %v16101_v36, %v16100_v28  ;;  %v9559_v28 = vld [vmem:[#allocation4 + $0xc9] sm:$0xff]  ;;  %v9560_v36 = vld [vmem:[#allocation4 + $0xd9] sm:$0xff] }
 0x5dd   : > { %19472 = vmatpush3.bf16.msra.mxu1 %v19469_v54  ;;  %18536 = vmatprep.mubr.msk.f32.mxu1 %vm430_vm3, %v23501_v6  ;;  %v16134_v6 = vld [vmem:[%s26239_s5 + $0x200] sm:$0xff]  ;;  %v16135_v54 = vld [vmem:[%s26239_s5 + $0x208] sm:$0xff] }
 0x5de   : > { %19474 = vmatprep.subr.bf16.mxu1 %v19473_v44 }
 0x5e0   : > { %18537 = vmatmul.mubr.msk.f32.gmra.mrb[34].mxu1 %vm430_vm3, %v23505_v8  ;;  %v19485_v8 = vpack.c.bf16 %v16135_v54, %v16134_v6  ;;  %v9562_v6 = vld [vmem:[#allocation4 + $0xf1] sm:$0xff]  ;;  %v9563_v54 = vld [vmem:[#allocation4 + $0xf9] sm:$0xff] }
 0x5e1   : > { %18539 = vmatprep.mubr.msk.f32.mxu1 %vm430_vm3, %v23509_v4  ;;  %19476 = vmatpush3.bf16.msra.mxu1 %v19473_v44  ;;  %v9182_v4 = vld [vmem:[#allocation4 + $0x198] sm:$0xff] }
 0x5e2   : > { %19478 = vmatprep.subr.bf16.mxu1 %v19477_v32  ;;  %v9555_v44 = vld [vmem:[#allocation4 + $0x99] sm:$0xff] }
 0x5e4   : > { %18540 = vmatmul.mubr.msk.f32.gmra.mrb[36].mxu1 %vm430_vm3, %v23513_v34  ;;  %v9183_v34 = vld [vmem:[#allocation4 + $0x1a0] sm:$0xff] }
 0x5e5   : > { %18542 = vmatprep.mubr.msk.f32.mxu1 %vm430_vm3, %v23517_v47  ;;  %19480 = vmatpush3.bf16.msra.mxu1 %v19477_v32  ;;  %v9546_v47 = vld [vmem:[#allocation4 + $0x31] sm:$0xff] }
 0x5e6   : > { %19482 = vmatprep.subr.bf16.mxu1 %v19481_v55  ;;  %v9557_v32 = vld [vmem:[#allocation4 + $0xb1] sm:$0xff] }
 0x5e8   : > { %18543 = vmatmul.mubr.msk.f32.gmra.mrb[38].mxu1 %vm430_vm3, %v23521_v40  ;;  %v16136_v40 = vld [vmem:[%s26239_s5 + $0x210] sm:$0xff] }
 0x5e9   : > { %18545 = vmatprep.mubr.msk.f32.mxu1 %vm430_vm3, %v23525_v9  ;;  %19484 = vmatpush3.bf16.msra.mxu1 %v19481_v55  ;;  %v16137_v9 = vld [vmem:[%s26239_s5 + $0x218] sm:$0xff]  ;;  %v9561_v55 = vld [vmem:[#allocation4 + $0xe1] sm:$0xff] }
 0x5ea   : > { %19486 = vmatprep.subr.bf16.mxu1 %v19485_v8 }
 0x5ec   : > { %18546 = vmatmul.mubr.msk.f32.gmra.mrb[40].mxu1 %vm430_vm3, %v23529_v26  ;;  %v16175_v26 = vld [vmem:[%s26241_s7 + $0x20] sm:$0xff] }
 0x5ed   : > { %18548 = vmatprep.mubr.msk.f32.mxu1 %vm430_vm3, %v23533_v10  ;;  %v16176_v10 = vld [vmem:[%s26241_s7 + $0x28] sm:$0xff] }
 0x5f0   : > { %18549 = vmatmul.mubr.msk.f32.gmra.mrb[42].mxu1 %vm430_vm3, %v23537_v41  ;;  %v16177_v41 = vld [vmem:[%s26241_s7 + $0x30] sm:$0xff] }
 0x5f1   : > { %18551 = vmatprep.mubr.msk.f32.mxu1 %vm430_vm3, %v23541_v24  ;;  %v19501_v24 = vpack.c.bf16 %v16176_v10, %v16175_v26  ;;  %v9570_v26 = vld [vmem:[#allocation4 + $0x151] sm:$0xff]  ;;  %v9571_v10 = vld [vmem:[#allocation4 + $0x159] sm:$0xff] }
 0x5f3   : > { %19502 = vmatprep.subr.bf16.mxu0 %v19501_v24 }
 0x5f4   : > { %18552 = vmatmul.mubr.msk.f32.gmra.mrb[44].mxu1 %vm430_vm3, %v23545_v29  ;;  %v16178_v29 = vld [vmem:[%s26241_s7 + $0x38] sm:$0xff]  ;;  %19504 = vmatpush3.bf16.msra.mxu0 %v19501_v24 }
 0x5f5   : > { %18554 = vmatprep.mubr.msk.f32.mxu1 %vm430_vm3, %v23549_v49  ;;  %v26507_v49 = vmov 0.0   ;;  %v9573_v24 = vld [vmem:[#allocation4 + $0x171] sm:$0xff] }
 0x5f6   : > { %514 = vst.msk [vmem:[#allocation5] sm:$0xff] %vm513_vm10, %v26507_v49  ;;  %515 = vst.msk [vmem:[#allocation5 + $0x8] sm:$0xff] %vm513_vm10, %v26507_v49 }
 0x5f7   : > { %519 = vst.msk [vmem:[#allocation5 + $0x198] sm:$0xff] %vm513_vm10, %v26507_v49  ;;  %520 = vst.msk [vmem:[#allocation5 + $0x1a0] sm:$0xff] %vm513_vm10, %v26507_v49 }
 0x5f8   : > { %18555 = vmatmul.mubr.msk.f32.gmra.mrb[46].mxu1 %vm430_vm3, %v23553_v15  ;;  %556 = vst.msk [vmem:[#allocation6] sm:$0xff] %vm513_vm10, %v26507_v49  ;;  %557 = vst.msk [vmem:[#allocation6 + $0x8] sm:$0xff] %vm513_vm10, %v26507_v49  ;;  %v19489_v15 = vpack.c.bf16 %v16137_v9, %v16136_v40  ;;  %v9568_v40 = vld [vmem:[#allocation4 + $0x139] sm:$0xff]  ;;  %v9569_v9 = vld [vmem:[#allocation4 + $0x141] sm:$0xff] }
 0x5f9   : > { %18557 = vmatprep.mubr.msk.f32.mxu1 %vm430_vm3, %v23557_v30  ;;  %560 = vst.msk [vmem:[#allocation6 + $0x198] sm:$0xff] %vm513_vm10, %v26507_v49  ;;  %561 = vst.msk [vmem:[#allocation6 + $0x1a0] sm:$0xff] %vm513_vm10, %v26507_v49  ;;  %v19505_v30 = vpack.c.bf16 %v16178_v29, %v16177_v41  ;;  %v9572_v41 = vld [vmem:[#allocation4 + $0x169] sm:$0xff]  ;;  %v9576_v29 = vld [vmem:[#allocation4 + $0x199] sm:$0xff] }
 0x5fa   : > { %517 = vst.msk [vmem:[#allocation5 + $0x10] sm:$0x3] %vm516_vm11, %v26507_v49  ;;  %558 = vst.msk [vmem:[#allocation6 + $0x10] sm:$0x3] %vm516_vm11, %v26507_v49 }
 0x5fb   : > { %19506 = vmatprep.subr.bf16.mxu0 %v19505_v30  ;;  %521 = vst.msk [vmem:[#allocation5 + $0x1a8] sm:$0x3] %vm516_vm11, %v26507_v49  ;;  %562 = vst.msk [vmem:[#allocation6 + $0x1a8] sm:$0x3] %vm516_vm11, %v26507_v49 }
 0x5fc   : > { %18558 = vmatmul.mubr.msk.f32.gmra.mrb[48].mxu1 %vm430_vm3, %v23561_v21  ;;  %v9547_v21 = vld [vmem:[#allocation4 + $0x39] sm:$0xff]  ;;  %19508 = vmatpush3.bf16.msra.mxu0 %v19505_v30  ;;  %524 = vst.msk [vmem:[#allocation5 + $0x18] sm:$0x1] %vm523_vm12, %v26507_v49  ;;  %525 = vst.msk [vmem:[#allocation5 + $0x30] sm:$0x1] %vm523_vm12, %v26507_v49 }
 0x5fd   : > { %18560 = vmatprep.mubr.msk.f32.mxu1 %vm430_vm3, %v23565_v43  ;;  %v16138_v43 = vld [vmem:[%s26239_s5 + $0x220] sm:$0xff]  ;;  %526 = vst.msk [vmem:[#allocation5 + $0x48] sm:$0x1] %vm523_vm12, %v26507_v49  ;;  %527 = vst.msk [vmem:[#allocation5 + $0x60] sm:$0x1] %vm523_vm12, %v26507_v49 }
 0x5fe   : > { %528 = vst.msk [vmem:[#allocation5 + $0x78] sm:$0x1] %vm523_vm12, %v26507_v49  ;;  %529 = vst.msk [vmem:[#allocation5 + $0x90] sm:$0x1] %vm523_vm12, %v26507_v49 }
 0x5ff   : > { %530 = vst.msk [vmem:[#allocation5 + $0xa8] sm:$0x1] %vm523_vm12, %v26507_v49  ;;  %531 = vst.msk [vmem:[#allocation5 + $0xc0] sm:$0x1] %vm523_vm12, %v26507_v49 }
 0x600   : > { %18561 = vmatmul.mubr.msk.f32.gmra.mrb[50].mxu1 %vm430_vm3, %v23569_v57  ;;  %v16139_v57 = vld [vmem:[%s26239_s5 + $0x228] sm:$0xff]  ;;  %532 = vst.msk [vmem:[#allocation5 + $0xd8] sm:$0x1] %vm523_vm12, %v26507_v49  ;;  %533 = vst.msk [vmem:[#allocation5 + $0xf0] sm:$0x1] %vm523_vm12, %v26507_v49 }
 0x601   : > { %18563 = vmatprep.mubr.msk.f32.mxu1 %vm430_vm3, %v23573_v60  ;;  %v9548_v60 = vld [vmem:[#allocation4 + $0x49] sm:$0xff]  ;;  %534 = vst.msk [vmem:[#allocation5 + $0x108] sm:$0x1] %vm523_vm12, %v26507_v49  ;;  %535 = vst.msk [vmem:[#allocation5 + $0x120] sm:$0x1] %vm523_vm12, %v26507_v49 }
 0x602   : > { %536 = vst.msk [vmem:[#allocation5 + $0x138] sm:$0x1] %vm523_vm12, %v26507_v49  ;;  %537 = vst.msk [vmem:[#allocation5 + $0x150] sm:$0x1] %vm523_vm12, %v26507_v49 }
 0x603   : > { %538 = vst.msk [vmem:[#allocation5 + $0x168] sm:$0x1] %vm523_vm12, %v26507_v49  ;;  %539 = vst.msk [vmem:[#allocation5 + $0x180] sm:$0x1] %vm523_vm12, %v26507_v49 }
 0x604   : > { %18564 = vmatmul.mubr.msk.f32.gmra.mrb[52].mxu1 %vm430_vm3, %v23577_v56  ;;  %v19493_v56 = vpack.c.bf16 %v16139_v57, %v16138_v43  ;;  %540 = vst.msk [vmem:[#allocation5 + $0x29] sm:$0x1] %vm523_vm12, %v26507_v49  ;;  %541 = vst.msk [vmem:[#allocation5 + $0x41] sm:$0x1] %vm523_vm12, %v26507_v49 }
 0x605   : > { %18566 = vmatprep.mubr.msk.f32.mxu1 %vm430_vm3, %v23581_v33  ;;  %v9549_v33 = vld [vmem:[#allocation4 + $0x51] sm:$0xff]  ;;  %542 = vst.msk [vmem:[#allocation5 + $0x59] sm:$0x1] %vm523_vm12, %v26507_v49  ;;  %543 = vst.msk [vmem:[#allocation5 + $0x71] sm:$0x1] %vm523_vm12, %v26507_v49 }
 0x606   : > { %544 = vst.msk [vmem:[#allocation5 + $0x89] sm:$0x1] %vm523_vm12, %v26507_v49  ;;  %545 = vst.msk [vmem:[#allocation5 + $0xa1] sm:$0x1] %vm523_vm12, %v26507_v49 }
 0x607   : > { %546 = vst.msk [vmem:[#allocation5 + $0xb9] sm:$0x1] %vm523_vm12, %v26507_v49  ;;  %547 = vst.msk [vmem:[#allocation5 + $0xd1] sm:$0x1] %vm523_vm12, %v26507_v49 }
 0x608   : > { %18567 = vmatmul.mubr.msk.f32.gmra.mrb[54].mxu1 %vm430_vm3, %v23585_v37  ;;  %v16140_v37 = vld [vmem:[%s26239_s5 + $0x230] sm:$0xff]  ;;  %548 = vst.msk [vmem:[#allocation5 + $0xe9] sm:$0x1] %vm523_vm12, %v26507_v49  ;;  %549 = vst.msk [vmem:[#allocation5 + $0x101] sm:$0x1] %vm523_vm12, %v26507_v49 }
 0x609   : > { %18569 = vmatprep.mubr.msk.f32.mxu1 %vm430_vm3, %v23589_v48  ;;  %v16141_v48 = vld [vmem:[%s26239_s5 + $0x238] sm:$0xff]  ;;  %550 = vst.msk [vmem:[#allocation5 + $0x119] sm:$0x1] %vm523_vm12, %v26507_v49  ;;  %551 = vst.msk [vmem:[#allocation5 + $0x131] sm:$0x1] %vm523_vm12, %v26507_v49 }
 0x60a   : > { %552 = vst.msk [vmem:[#allocation5 + $0x149] sm:$0x1] %vm523_vm12, %v26507_v49  ;;  %553 = vst.msk [vmem:[#allocation5 + $0x161] sm:$0x1] %vm523_vm12, %v26507_v49 }
 0x60b   : > { %554 = vst.msk [vmem:[#allocation5 + $0x179] sm:$0x1] %vm523_vm12, %v26507_v49  ;;  %555 = vst.msk [vmem:[#allocation5 + $0x191] sm:$0x1] %vm523_vm12, %v26507_v49 }
 0x60c   : > { %18570 = vmatmul.mubr.msk.f32.gmra.mrb[56].mxu1 %vm430_vm3, %v23593_v2  ;;  %v9550_v2 = vld [vmem:[#allocation4 + $0x61] sm:$0xff]  ;;  %564 = vst.msk [vmem:[#allocation6 + $0x18] sm:$0x1] %vm523_vm12, %v26507_v49  ;;  %565 = vst.msk [vmem:[#allocation6 + $0x30] sm:$0x1] %vm523_vm12, %v26507_v49 }
 0x60d   : > { %18572 = vmatprep.mubr.msk.f32.mxu1 %vm430_vm3, %v23597_v13  ;;  %v19497_v13 = vpack.c.bf16 %v16141_v48, %v16140_v37  ;;  %566 = vst.msk [vmem:[#allocation6 + $0x48] sm:$0x1] %vm523_vm12, %v26507_v49  ;;  %567 = vst.msk [vmem:[#allocation6 + $0x60] sm:$0x1] %vm523_vm12, %v26507_v49 }
 0x60e   : > { %568 = vst.msk [vmem:[#allocation6 + $0x78] sm:$0x1] %vm523_vm12, %v26507_v49  ;;  %569 = vst.msk [vmem:[#allocation6 + $0x90] sm:$0x1] %vm523_vm12, %v26507_v49 }
 0x60f   : > { %570 = vst.msk [vmem:[#allocation6 + $0xa8] sm:$0x1] %vm523_vm12, %v26507_v49  ;;  %571 = vst.msk [vmem:[#allocation6 + $0xc0] sm:$0x1] %vm523_vm12, %v26507_v49 }
 0x610   : > { %18573 = vmatmul.mubr.msk.f32.gmra.mrb[58].mxu1 %vm430_vm3, %v23601_v12  ;;  %v9551_v12 = vld [vmem:[#allocation4 + $0x69] sm:$0xff]  ;;  %572 = vst.msk [vmem:[#allocation6 + $0xd8] sm:$0x1] %vm523_vm12, %v26507_v49  ;;  %573 = vst.msk [vmem:[#allocation6 + $0xf0] sm:$0x1] %vm523_vm12, %v26507_v49 }
 0x611   : > { %18575 = vmatprep.mubr.msk.f32.mxu1 %vm430_vm3, %v23835_v62  ;;  %v9552_v62 = vld [vmem:[#allocation4 + $0x79] sm:$0xff]  ;;  %574 = vst.msk [vmem:[#allocation6 + $0x108] sm:$0x1] %vm523_vm12, %v26507_v49  ;;  %575 = vst.msk [vmem:[#allocation6 + $0x120] sm:$0x1] %vm523_vm12, %v26507_v49 }
 0x612   : > { %576 = vst.msk [vmem:[#allocation6 + $0x138] sm:$0x1] %vm523_vm12, %v26507_v49  ;;  %577 = vst.msk [vmem:[#allocation6 + $0x150] sm:$0x1] %vm523_vm12, %v26507_v49 }
 0x613   : > { %578 = vst.msk [vmem:[#allocation6 + $0x168] sm:$0x1] %vm523_vm12, %v26507_v49  ;;  %579 = vst.msk [vmem:[#allocation6 + $0x180] sm:$0x1] %vm523_vm12, %v26507_v49 }
 0x614   : > { %18576 = vmatmul.mubr.msk.f32.gmra.mrb[60].mxu1 %vm430_vm3, %v23839_v50  ;;  %v9553_v50 = vld [vmem:[#allocation4 + $0x81] sm:$0xff]  ;;  %580 = vst.msk [vmem:[#allocation6 + $0x29] sm:$0x1] %vm523_vm12, %v26507_v49  ;;  %581 = vst.msk [vmem:[#allocation6 + $0x41] sm:$0x1] %vm523_vm12, %v26507_v49 }
 0x615   : > { %18578 = vmatprep.mubr.msk.f32.mxu1 %vm430_vm3, %v9182_v4  ;;  %v9565_v4 = vld [vmem:[#allocation4 + $0x111] sm:$0xff]  ;;  %582 = vst.msk [vmem:[#allocation6 + $0x59] sm:$0x1] %vm523_vm12, %v26507_v49  ;;  %583 = vst.msk [vmem:[#allocation6 + $0x71] sm:$0x1] %vm523_vm12, %v26507_v49 }
 0x616   : > { %584 = vst.msk [vmem:[#allocation6 + $0x89] sm:$0x1] %vm523_vm12, %v26507_v49  ;;  %585 = vst.msk [vmem:[#allocation6 + $0xa1] sm:$0x1] %vm523_vm12, %v26507_v49 }
 0x617   : > { %586 = vst.msk [vmem:[#allocation6 + $0xb9] sm:$0x1] %vm523_vm12, %v26507_v49  ;;  %587 = vst.msk [vmem:[#allocation6 + $0xd1] sm:$0x1] %vm523_vm12, %v26507_v49 }
 0x618   : > { %18579 = vmatmul.mubr.msk.f32.gmra.mrb[62].mxu1 %vm430_vm3, %v9183_v34  ;;  %v9566_v34 = vld [vmem:[#allocation4 + $0x121] sm:$0xff]  ;;  %588 = vst.msk [vmem:[#allocation6 + $0xe9] sm:$0x1] %vm523_vm12, %v26507_v49  ;;  %589 = vst.msk [vmem:[#allocation6 + $0x101] sm:$0x1] %vm523_vm12, %v26507_v49 }
 0x619   : > { %18597 = vmatprep.mubr.msk.f32.mxu1 %vm430_vm3, %v9546_v47  ;;  %v9567_v47 = vld [vmem:[#allocation4 + $0x129] sm:$0xff]  ;;  %590 = vst.msk [vmem:[#allocation6 + $0x119] sm:$0x1] %vm523_vm12, %v26507_v49  ;;  %591 = vst.msk [vmem:[#allocation6 + $0x131] sm:$0x1] %vm523_vm12, %v26507_v49 }
 0x61a   : > { %592 = vst.msk [vmem:[#allocation6 + $0x149] sm:$0x1] %vm523_vm12, %v26507_v49  ;;  %593 = vst.msk [vmem:[#allocation6 + $0x161] sm:$0x1] %vm523_vm12, %v26507_v49 }
 0x61b   : > { %594 = vst.msk [vmem:[#allocation6 + $0x179] sm:$0x1] %vm523_vm12, %v26507_v49  ;;  %595 = vst.msk [vmem:[#allocation6 + $0x191] sm:$0x1] %vm523_vm12, %v26507_v49 }
 0x61c   : > { %18598 = vmatmul.mubr.msk.f32.vlgmr.msra.gmra.mrb[32].mxu1 %vm430_vm3, %v9547_v21 }
 0x61d   : > { %19488 = vmatpush3.bf16.msra.mxu1 %v19485_v8  ;;  %18600 = vmatprep.mubr.msk.f32.mxu1 %vm430_vm3, %v9548_v60  ;;  %v9564_v8 = vld [vmem:[#allocation4 + $0x109] sm:$0xff] }
 0x61e   : > { %19490 = vmatprep.subr.bf16.mxu1 %v19489_v15 }
 0x620   : > { %18601 = vmatmul.mubr.msk.f32.gmra.mrb[34].mxu1 %vm430_vm3, %v9549_v33 }
 0x621   : > { %18603 = vmatprep.mubr.msk.f32.mxu1 %vm430_vm3, %v9550_v2  ;;  %19492 = vmatpush3.bf16.msra.mxu1 %v19489_v15  ;;  %v9577_v15 = vld [vmem:[#allocation4 + $0x1a1] sm:$0xff] }
 0x622   : > { %19494 = vmatprep.subr.bf16.mxu1 %v19493_v56 }
 0x624   : > { %18604 = vmatmul.mubr.msk.f32.gmra.mrb[36].mxu1 %vm430_vm3, %v9551_v12 }
 0x625   : > { %18606 = vmatprep.mubr.msk.f32.mxu1 %vm430_vm3, %v9552_v62  ;;  %19496 = vmatpush3.bf16.msra.mxu1 %v19493_v56 }
 0x626   : > { %19498 = vmatprep.subr.bf16.mxu1 %v19497_v13 }
 0x628   : > { %18607 = vmatmul.mubr.msk.f32.gmra.mrb[38].mxu1 %vm430_vm3, %v9553_v50 }
 0x629   : > { %18609 = vmatprep.mubr.msk.f32.mxu1 %vm430_vm3, %v9554_v51  ;;  %19500 = vmatpush3.bf16.msra.mxu1 %v19497_v13 }
 0x62c   : > { %18610 = vmatmul.mubr.msk.f32.gmra.mrb[40].mxu1 %vm430_vm3, %v9555_v44 }
 0x62d   : > { %18612 = vmatprep.mubr.msk.f32.mxu1 %vm430_vm3, %v9556_v53 }
 0x630   : > { %18613 = vmatmul.mubr.msk.f32.gmra.mrb[42].mxu1 %vm430_vm3, %v9557_v32 }
 0x631   : > { %18615 = vmatprep.mubr.msk.f32.mxu1 %vm430_vm3, %v9558_v16 }
 0x634   : > { %18616 = vmatmul.mubr.msk.f32.gmra.mrb[44].mxu1 %vm430_vm3, %v9559_v28 }
 0x635   : > { %18618 = vmatprep.mubr.msk.f32.mxu1 %vm430_vm3, %v9560_v36 }
 0x638   : > { %18619 = vmatmul.mubr.msk.f32.gmra.mrb[46].mxu1 %vm430_vm3, %v9561_v55 }
 0x639   : > { %18621 = vmatprep.mubr.msk.f32.mxu1 %vm430_vm3, %v9562_v6 }
 0x63c   : > { %18622 = vmatmul.mubr.msk.f32.gmra.mrb[48].mxu1 %vm430_vm3, %v9563_v54 }
 0x63d   : > { %18624 = vmatprep.mubr.msk.f32.mxu1 %vm430_vm3, %v9564_v8 }
 0x640   : > { %18625 = vmatmul.mubr.msk.f32.gmra.mrb[50].mxu1 %vm430_vm3, %v9565_v4 }
 0x641   : > { %18627 = vmatprep.mubr.msk.f32.mxu1 %vm430_vm3, %v9566_v34 }
 0x644   : > { %18628 = vmatmul.mubr.msk.f32.gmra.mrb[52].mxu1 %vm430_vm3, %v9567_v47 }
 0x645   : > { %18630 = vmatprep.mubr.msk.f32.mxu1 %vm430_vm3, %v9568_v40 }
 0x648   : > { %18631 = vmatmul.mubr.msk.f32.gmra.mrb[54].mxu1 %vm430_vm3, %v9569_v9 }
 0x649   : > { %18633 = vmatprep.mubr.msk.f32.mxu1 %vm430_vm3, %v9570_v26 }
 0x64c   : > { %18634 = vmatmul.mubr.msk.f32.gmra.mrb[56].mxu1 %vm430_vm3, %v9571_v10 }
 0x64d   : > { %18636 = vmatprep.mubr.msk.f32.mxu1 %vm430_vm3, %v9572_v41 }
 0x650   : > { %18637 = vmatmul.mubr.msk.f32.gmra.mrb[58].mxu1 %vm430_vm3, %v9573_v24 }
 0x651   : > { %18639 = vmatprep.mubr.msk.f32.mxu1 %vm430_vm3, %v23927_v14  ;;  %v26511_v14 = vld [vmem:[#allocation12_spill] sm:$0xff] }
 0x654   : > { %18640 = vmatmul.mubr.msk.f32.gmra.mrb[60].mxu1 %vm430_vm3, %v23931_v58  ;;  %v9970_v58 = vld [vmem:[#allocation4 + $0x19a] sm:$0xff] }
 0x655   : > { %18642 = vmatprep.mubr.msk.f32.mxu1 %vm430_vm3, %v9576_v29 }
 0x658   : > { %18643 = vmatmul.mubr.msk.f32.gmra.mrb[62].mxu1 %vm430_vm3, %v9577_v15 }
 0x659   : > { %18661 = vmatprep.mubr.msk.f32.mxu1 %vm430_vm3, %v23633_v18  ;;  %v26509_v18 = vld [vmem:[#allocation42_spill] sm:$0xff] }
 0x65c   : > { %18662 = vmatmul.mubr.msk.f32.vlgmr.msra.gmra.mrb[32].mxu1 %vm430_vm3, %v26480_v46  ;;  %v26512_v46 = vld [vmem:[#allocation13_spill] sm:$0xff] }
 0x65d   : > { %18664 = vmatprep.mubr.msk.f32.mxu1 %vm430_vm3, %v23647_v42  ;;  %v26508_v42 = vld [vmem:[#allocation41_spill] sm:$0xff] }
 0x660   : > { %18665 = vmatmul.mubr.msk.f32.gmra.mrb[34].mxu1 %vm430_vm3, %v23651_v7  ;;  %v26510_v7 = vld [vmem:[#allocation43_spill] sm:$0xff] }
 0x661   : > { %18667 = vmatprep.mubr.msk.f32.mxu1 %vm430_vm3, %v26481_v35  ;;  %v9971_v35 = vld [vmem:[#allocation4 + $0x1a2] sm:$0xff] }
 0x664   : > { %18668 = vmatmul.mubr.msk.f32.gmra.mrb[36].mxu1 %vm430_vm3, %v26482_v61  ;;  %v10537_v61 = vld [vmem:[#allocation5 + $0x1] sm:$0xff] }
 0x665   : > { %18670 = vmatprep.mubr.msk.f32.mxu1 %vm430_vm3, %v26483_v20  ;;  %18717 = vmatprep.mubr.msk.f32.mxu0 %vm513_vm10, %v10537_v61  ;;  %v10538_v20 = vld [vmem:[#allocation5 + $0x9] sm:$0xff] }
 0x666   : > { %18718 = vmatmul.mubr.msk.f32.vlgmr.msra.gmra.mrb[32].mxu0 %vm513_vm10, %v10538_v20 }
 0x668   : > { %18671 = vmatmul.mubr.msk.f32.gmra.mrb[38].mxu1 %vm430_vm3, %v26484_v22  ;;  %v10533_v22 = vld [vmem:[%s26241_s7] sm:$0xff] }
 0x669   : > { %18673 = vmatprep.mubr.msk.f32.mxu1 %vm430_vm3, %v26485_v11  ;;  %v10534_v11 = vld [vmem:[%s26241_s7 + $0x8] sm:$0xff] }
 0x66c   : > { %18674 = vmatmul.mubr.msk.f32.gmra.mrb[40].mxu1 %vm430_vm3, %v26486_v0  ;;  %v19509_v0 = vpack.c.bf16 %v10534_v11, %v10533_v22 }
 0x66d   : > { %18676 = vmatprep.mubr.msk.f32.mxu1 %vm430_vm3, %v26487_v39  ;;  %v10535_v39 = vld [vmem:[%s26241_s7 + $0x10] sm:$0xff] }
 0x66e   : > { %19510 = vmatprep.subr.bf16.mxu0 %v19509_v0 }
 0x66f   : > { %19512 = vmatpush3.bf16.msra.mxu0 %v19509_v0 }
 0x670   : > { %18677 = vmatmul.mubr.msk.f32.gmra.mrb[42].mxu1 %vm430_vm3, %v26488_v45  ;;  %v10536_v45 = vld [vmem:[%s26241_s7 + $0x18] sm:$0xff] }
 0x671   : > { %18679 = vmatprep.mubr.msk.f32.mxu1 %vm430_vm3, %v26489_v5  ;;  %v19513_v5 = vpack.c.bf16 %v10536_v45, %v10535_v39 }
 0x673   : > { %19514 = vmatprep.subr.bf16.mxu0 %v19513_v5 }
 0x674   : > { %18680 = vmatmul.mubr.msk.f32.gmra.mrb[44].mxu1 %vm430_vm3, %v26490_v63  ;;  %19516 = vmatpush3.bf16.msra.mxu0 %v19513_v5  ;;  %v16243_v63 = vld [vmem:[%s26241_s7 + $0x40] sm:$0xff] }
 0x675   : > { %18682 = vmatprep.mubr.msk.f32.mxu1 %vm430_vm3, %v26491_v59  ;;  %v16244_v59 = vld [vmem:[%s26241_s7 + $0x48] sm:$0xff] }
 0x678   : > { %18683 = vmatmul.mubr.msk.f32.gmra.mrb[46].mxu1 %vm430_vm3, %v26492_v25  ;;  %v24407_v25 = vpack.c.bf16 %v16244_v59, %v16243_v63 }
 0x679   : > { %18685 = vmatprep.mubr.msk.f32.mxu1 %vm430_vm3, %v26493_v17  ;;  %v24413_v17 = vld [vmem:[%s26240_s6] ss:$0 sm:$0xff] }
 0x67a   : > { %19518 = vmatprep.subr.bf16.mxu0 %v24407_v25 }
 0x67c   : > { %18686 = vmatmul.mubr.msk.f32.gmra.mrb[48].mxu1 %vm430_vm3, %v26494_v19 }
 0x67d   : > { %18688 = vmatprep.mubr.msk.f32.mxu1 %vm430_vm3, %v26495_v38 }
 0x680   : > { %18689 = vmatmul.mubr.msk.f32.gmra.mrb[50].mxu1 %vm430_vm3, %v26496_v31 }
 0x681   : > { %18691 = vmatprep.mubr.msk.f32.mxu1 %vm430_vm3, %v26497_v3 }
 0x684   : > { %18692 = vmatmul.mubr.msk.f32.gmra.mrb[52].mxu1 %vm430_vm3, %v26498_v23 }
 0x685   : > { %18694 = vmatprep.mubr.msk.f32.mxu1 %vm430_vm3, %v26499_v27 }
 0x688   : > { %18695 = vmatmul.mubr.msk.f32.gmra.mrb[54].mxu1 %vm430_vm3, %v26500_v52 }
 0x689   : > { %18697 = vmatprep.mubr.msk.f32.mxu1 %vm430_vm3, %v26501_v1 }
 0x68c   : > { %18698 = vmatmul.mubr.msk.f32.gmra.mrb[56].mxu1 %vm430_vm3, %v26508_v42 }
 0x68d   : > { %18700 = vmatprep.mubr.msk.f32.mxu1 %vm430_vm3, %v26509_v18 }
 0x690   : > { %18701 = vmatmul.mubr.msk.f32.gmra.mrb[58].mxu1 %vm430_vm3, %v26510_v7 }
 0x691   : > { %18703 = vmatprep.mubr.msk.f32.mxu1 %vm430_vm3, %v26511_v14 }
 0x694   : > { %18704 = vmatmul.mubr.msk.f32.gmra.mrb[60].mxu1 %vm430_vm3, %v26512_v46 }
 0x695   : > { %18706 = vmatprep.mubr.msk.f32.mxu1 %vm430_vm3, %v9970_v58 }
 0x698   : > { %18707 = vmatmul.mubr.msk.f32.gmra.mrb[62].mxu1 %vm430_vm3, %v9971_v35 }
 0x72f   : > { %v18663_v19 = vpop.f32.mrb[32].mxu1 }
 0x730   : > { %v10342_v38 = vadd.f32 %v18663_v19, %v24413_v17  ;;  %v10143_v31 = vpop.f32.mrb[33].mxu1 }
 0x731   : > { %v10341_v3 = vadd.f32 %v24413_v17, %v10143_v31 }
 0x732   : > { %vm10374_vm3 = vcmp.gt.f32.partialorder %v10342_v38, 0.0  ;;  %v10406_v23 = vmul.f32 0.2, %v10342_v38 }
 0x733   : > { %vm10373_vm13 = vcmp.gt.f32.partialorder %v10341_v3, 0.0  ;;  %v10405_v27 = vmul.f32 0.2, %v10341_v3  ;;  %v18666_v52 = vpop.f32.mrb[34].mxu1 }
 0x734   : > { %v10438_v1 = vsel %vm10374_vm3, %v10342_v38, %v10406_v23  ;;  %v10344_v49 = vadd.f32 %v18666_v52, %v24413_v17  ;;  %v10153_v30 = vpop.f32.mrb[35].mxu1 }
 0x735   : > { %10470 = vst.msk [vmem:[#allocation5 + $0x21] sm:$0xff] %vm513_vm10, %v10438_v1  ;;  %v10437_v21 = vsel %vm10373_vm13, %v10341_v3, %v10405_v27  ;;  %v10343_v43 = vadd.f32 %v24413_v17, %v10153_v30 }
 0x736   : > { %10469 = vst.msk [vmem:[#allocation5 + $0x19] sm:$0xff] %vm513_vm10, %v10437_v21  ;;  %vm10376_vm14 = vcmp.gt.f32.partialorder %v10344_v49, 0.0  ;;  %v10408_v57 = vmul.f32 0.2, %v10344_v49 }
 0x737   : > { %vm10375_vm15 = vcmp.gt.f32.partialorder %v10343_v43, 0.0  ;;  %v10407_v60 = vmul.f32 0.2, %v10343_v43  ;;  %v18669_v56 = vpop.f32.mrb[36].mxu1 }
 0x738   : > { %v10440_v33 = vsel %vm10376_vm14, %v10344_v49, %v10408_v57  ;;  %v10346_v37 = vadd.f32 %v18669_v56, %v24413_v17  ;;  %v10163_v48 = vpop.f32.mrb[37].mxu1 }
 0x739   : > { %10472 = vst.msk [vmem:[#allocation5 + $0x39] sm:$0xff] %vm513_vm10, %v10440_v33  ;;  %v10439_v2 = vsel %vm10375_vm15, %v10343_v43, %v10407_v60  ;;  %v10345_v13 = vadd.f32 %v24413_v17, %v10163_v48 }
 0x73a   : > { %10471 = vst.msk [vmem:[#allocation5 + $0x31] sm:$0xff] %vm513_vm10, %v10439_v2  ;;  %vm10378_vm1 = vcmp.gt.f32.partialorder %v10346_v37, 0.0  ;;  %v10410_v12 = vmul.f32 0.2, %v10346_v37 }
 0x73b   : > { %vm10377_vm2 = vcmp.gt.f32.partialorder %v10345_v13, 0.0  ;;  %v10409_v62 = vmul.f32 0.2, %v10345_v13  ;;  %v18672_v50 = vpop.f32.mrb[38].mxu1 }
 0x73c   : > { %v10442_v51 = vsel %vm10378_vm1, %v10346_v37, %v10410_v12  ;;  %v10348_v44 = vadd.f32 %v18672_v50, %v24413_v17  ;;  %v10173_v53 = vpop.f32.mrb[39].mxu1  ;;  %v24433_v55 = vld [vmem:[#allocation5 + $0x21] sm:$0xff] }
 0x73d   : > { %10474 = vst.msk [vmem:[#allocation5 + $0x51] sm:$0xff] %vm513_vm10, %v10442_v51  ;;  %v10441_v32 = vsel %vm10377_vm2, %v10345_v13, %v10409_v62  ;;  %v10347_v16 = vadd.f32 %v24413_v17, %v10173_v53  ;;  %v24428_v28 = vld [vmem:[#allocation5 + $0x19] sm:$0xff] }
 0x73e   : > { %10473 = vst.msk [vmem:[#allocation5 + $0x49] sm:$0xff] %vm513_vm10, %v10441_v32  ;;  %vm10380_vm0 = vcmp.gt.f32.partialorder %v10348_v44, 0.0  ;;  %v10412_v36 = vmul.f32 0.2, %v10348_v44  ;;  %18720 = vmatprep.mubr.msk.f32.mxu0 %vm513_vm10, %v24428_v28 }
 0x73f   : > { %vm10379_vm4 = vcmp.gt.f32.partialorder %v10347_v16, 0.0  ;;  %v10411_v6 = vmul.f32 0.2, %v10347_v16  ;;  %v18675_v54 = vpop.f32.mrb[40].mxu1  ;;  %18721 = vmatmul.mubr.msk.f32.gmra.mrb[34].mxu0 %vm513_vm10, %v24433_v55 }
 0x740   : > { %v10444_v8 = vsel %vm10380_vm0, %v10348_v44, %v10412_v36  ;;  %v10350_v4 = vadd.f32 %v18675_v54, %v24413_v17  ;;  %v10183_v34 = vpop.f32.mrb[41].mxu1  ;;  %v24445_v10 = vld [vmem:[#allocation5 + $0x39] sm:$0xff] }
 0x741   : > { %10476 = vst.msk [vmem:[#allocation5 + $0x69] sm:$0xff] %vm513_vm10, %v10444_v8  ;;  %v10443_v47 = vsel %vm10379_vm4, %v10347_v16, %v10411_v6  ;;  %v10349_v40 = vadd.f32 %v24413_v17, %v10183_v34  ;;  %v24440_v9 = vld [vmem:[#allocation5 + $0x31] sm:$0xff] }
 0x742   : > { %10475 = vst.msk [vmem:[#allocation5 + $0x61] sm:$0xff] %vm513_vm10, %v10443_v47  ;;  %vm10382_vm5 = vcmp.gt.f32.partialorder %v10350_v4, 0.0  ;;  %v10414_v26 = vmul.f32 0.2, %v10350_v4  ;;  %18723 = vmatprep.mubr.msk.f32.mxu0 %vm513_vm10, %v24440_v9 }
 0x743   : > { %vm10381_vm6 = vcmp.gt.f32.partialorder %v10349_v40, 0.0  ;;  %v10413_v41 = vmul.f32 0.2, %v10349_v40  ;;  %v18678_v24 = vpop.f32.mrb[42].mxu1  ;;  %18724 = vmatmul.mubr.msk.f32.gmra.mrb[36].mxu0 %vm513_vm10, %v24445_v10 }
 0x744   : > { %v10446_v29 = vsel %vm10382_vm5, %v10350_v4, %v10414_v26  ;;  %v10352_v15 = vadd.f32 %v18678_v24, %v24413_v17  ;;  %v10193_v42 = vpop.f32.mrb[43].mxu1  ;;  %v24457_v46 = vld [vmem:[#allocation5 + $0x51] sm:$0xff] }
 0x745   : > { %10478 = vst.msk [vmem:[#allocation5 + $0x81] sm:$0xff] %vm513_vm10, %v10446_v29  ;;  %v10445_v18 = vsel %vm10381_vm6, %v10349_v40, %v10413_v41  ;;  %v10351_v7 = vadd.f32 %v24413_v17, %v10193_v42  ;;  %v24452_v14 = vld [vmem:[#allocation5 + $0x49] sm:$0xff] }
 0x746   : > { %10477 = vst.msk [vmem:[#allocation5 + $0x79] sm:$0xff] %vm513_vm10, %v10445_v18  ;;  %vm10384_vm7 = vcmp.gt.f32.partialorder %v10352_v15, 0.0  ;;  %v10416_v58 = vmul.f32 0.2, %v10352_v15  ;;  %18726 = vmatprep.mubr.msk.f32.mxu0 %vm513_vm10, %v24452_v14 }
 0x747   : > { %vm10383_vm8 = vcmp.gt.f32.partialorder %v10351_v7, 0.0  ;;  %v10415_v35 = vmul.f32 0.2, %v10351_v7  ;;  %v18681_v61 = vpop.f32.mrb[44].mxu1  ;;  %18727 = vmatmul.mubr.msk.f32.gmra.mrb[38].mxu0 %vm513_vm10, %v24457_v46 }
 0x748   : > { %v10448_v20 = vsel %vm10384_vm7, %v10352_v15, %v10416_v58  ;;  %v10354_v22 = vadd.f32 %v18681_v61, %v24413_v17  ;;  %v10203_v11 = vpop.f32.mrb[45].mxu1  ;;  %v24469_v63 = vld [vmem:[#allocation5 + $0x69] sm:$0xff] }
 0x749   : > { %10480 = vst.msk [vmem:[#allocation5 + $0x99] sm:$0xff] %vm513_vm10, %v10448_v20  ;;  %v10447_v0 = vsel %vm10383_vm8, %v10351_v7, %v10415_v35  ;;  %v10353_v39 = vadd.f32 %v24413_v17, %v10203_v11  ;;  %v24464_v45 = vld [vmem:[#allocation5 + $0x61] sm:$0xff] }
 0x74a   : > { %10479 = vst.msk [vmem:[#allocation5 + $0x91] sm:$0xff] %vm513_vm10, %v10447_v0  ;;  %vm10386_vm9 = vcmp.gt.f32.partialorder %v10354_v22, 0.0  ;;  %v10418_v5 = vmul.f32 0.2, %v10354_v22  ;;  %18729 = vmatprep.mubr.msk.f32.mxu0 %vm513_vm10, %v24464_v45 }
 0x74b   : > { %vm10385_vm11 = vcmp.gt.f32.partialorder %v10353_v39, 0.0  ;;  %v10417_v59 = vmul.f32 0.2, %v10353_v39  ;;  %v18684_v19 = vpop.f32.mrb[46].mxu1  ;;  %18730 = vmatmul.mubr.msk.f32.gmra.mrb[40].mxu0 %vm513_vm10, %v24469_v63 }
 0x74c   : > { %v10450_v38 = vsel %vm10386_vm9, %v10354_v22, %v10418_v5  ;;  %v10356_v31 = vadd.f32 %v18684_v19, %v24413_v17  ;;  %v10213_v3 = vpop.f32.mrb[47].mxu1  ;;  %v24481_v49 = vld [vmem:[#allocation5 + $0x81] sm:$0xff] }
 0x74d   : > { %10482 = vst.msk [vmem:[#allocation5 + $0xb1] sm:$0xff] %vm513_vm10, %v10450_v38  ;;  %v10449_v23 = vsel %vm10385_vm11, %v10353_v39, %v10417_v59  ;;  %v10355_v27 = vadd.f32 %v24413_v17, %v10213_v3  ;;  %v24476_v52 = vld [vmem:[#allocation5 + $0x79] sm:$0xff] }
 0x74e   : > { %10481 = vst.msk [vmem:[#allocation5 + $0xa9] sm:$0xff] %vm513_vm10, %v10449_v23  ;;  %vm10388_vm12 = vcmp.gt.f32.partialorder %v10356_v31, 0.0  ;;  %v10420_v1 = vmul.f32 0.2, %v10356_v31  ;;  %18732 = vmatprep.mubr.msk.f32.mxu0 %vm513_vm10, %v24476_v52 }
 0x74f   : > { %vm10387_vm3 = vcmp.gt.f32.partialorder %v10355_v27, 0.0  ;;  %v10419_v30 = vmul.f32 0.2, %v10355_v27  ;;  %v18687_v21 = vpop.f32.mrb[48].mxu1  ;;  %18733 = vmatmul.mubr.msk.f32.gmra.mrb[42].mxu0 %vm513_vm10, %v24481_v49 }
 0x750   : > { %v10452_v43 = vsel %vm10388_vm12, %v10356_v31, %v10420_v1  ;;  %v10358_v57 = vadd.f32 %v18687_v21, %v24413_v17  ;;  %v10223_v60 = vpop.f32.mrb[49].mxu1  ;;  %v24493_v2 = vld [vmem:[#allocation5 + $0x99] sm:$0xff] }
 0x751   : > { %10484 = vst.msk [vmem:[#allocation5 + $0xc9] sm:$0xff] %vm513_vm10, %v10452_v43  ;;  %v10451_v56 = vsel %vm10387_vm3, %v10355_v27, %v10419_v30  ;;  %v10357_v33 = vadd.f32 %v24413_v17, %v10223_v60  ;;  %v24488_v37 = vld [vmem:[#allocation5 + $0x91] sm:$0xff] }
 0x752   : > { %10483 = vst.msk [vmem:[#allocation5 + $0xc1] sm:$0xff] %vm513_vm10, %v10451_v56  ;;  %vm10390_vm13 = vcmp.gt.f32.partialorder %v10358_v57, 0.0  ;;  %v10422_v48 = vmul.f32 0.2, %v10358_v57  ;;  %18735 = vmatprep.mubr.msk.f32.mxu0 %vm513_vm10, %v24488_v37 }
 0x753   : > { %vm10389_vm14 = vcmp.gt.f32.partialorder %v10357_v33, 0.0  ;;  %v10421_v13 = vmul.f32 0.2, %v10357_v33  ;;  %v18690_v12 = vpop.f32.mrb[50].mxu1  ;;  %18736 = vmatmul.mubr.msk.f32.gmra.mrb[44].mxu0 %vm513_vm10, %v24493_v2 }
 0x754   : > { %v10454_v62 = vsel %vm10390_vm13, %v10358_v57, %v10422_v48  ;;  %v10360_v50 = vadd.f32 %v18690_v12, %v24413_v17  ;;  %v10233_v51 = vpop.f32.mrb[51].mxu1  ;;  %v24505_v36 = vld [vmem:[#allocation5 + $0xb1] sm:$0xff] }
 0x755   : > { %10486 = vst.msk [vmem:[#allocation5 + $0xe1] sm:$0xff] %vm513_vm10, %v10454_v62  ;;  %v10453_v44 = vsel %vm10389_vm14, %v10357_v33, %v10421_v13  ;;  %v10359_v53 = vadd.f32 %v24413_v17, %v10233_v51  ;;  %v24500_v32 = vld [vmem:[#allocation5 + $0xa9] sm:$0xff] }
 0x756   : > { %10485 = vst.msk [vmem:[#allocation5 + $0xd9] sm:$0xff] %vm513_vm10, %v10453_v44  ;;  %vm10392_vm15 = vcmp.gt.f32.partialorder %v10360_v50, 0.0  ;;  %v10424_v16 = vmul.f32 0.2, %v10360_v50  ;;  %18738 = vmatprep.mubr.msk.f32.mxu0 %vm513_vm10, %v24500_v32 }
 0x757   : > { %vm10391_vm1 = vcmp.gt.f32.partialorder %v10359_v53, 0.0  ;;  %v10423_v6 = vmul.f32 0.2, %v10359_v53  ;;  %v18693_v54 = vpop.f32.mrb[52].mxu1  ;;  %18739 = vmatmul.mubr.msk.f32.gmra.mrb[46].mxu0 %vm513_vm10, %v24505_v36 }
 0x758   : > { %v10456_v8 = vsel %vm10392_vm15, %v10360_v50, %v10424_v16  ;;  %v10362_v4 = vadd.f32 %v18693_v54, %v24413_v17  ;;  %v10243_v34 = vpop.f32.mrb[53].mxu1  ;;  %v24517_v24 = vld [vmem:[#allocation5 + $0xc9] sm:$0xff] }
 0x759   : > { %10488 = vst.msk [vmem:[#allocation5 + $0xf9] sm:$0xff] %vm513_vm10, %v10456_v8  ;;  %v10455_v47 = vsel %vm10391_vm1, %v10359_v53, %v10423_v6  ;;  %v10361_v40 = vadd.f32 %v24413_v17, %v10243_v34  ;;  %v24512_v26 = vld [vmem:[#allocation5 + $0xc1] sm:$0xff] }
 0x75a   : > { %10487 = vst.msk [vmem:[#allocation5 + $0xf1] sm:$0xff] %vm513_vm10, %v10455_v47  ;;  %vm10394_vm2 = vcmp.gt.f32.partialorder %v10362_v4, 0.0  ;;  %v10426_v41 = vmul.f32 0.2, %v10362_v4  ;;  %18741 = vmatprep.mubr.msk.f32.mxu0 %vm513_vm10, %v24512_v26 }
 0x75b   : > { %vm10393_vm0 = vcmp.gt.f32.partialorder %v10361_v40, 0.0  ;;  %v10425_v29 = vmul.f32 0.2, %v10361_v40  ;;  %v18696_v15 = vpop.f32.mrb[54].mxu1  ;;  %18742 = vmatmul.mubr.msk.f32.gmra.mrb[48].mxu0 %vm513_vm10, %v24517_v24 }
 0x75c   : > { %v10458_v42 = vsel %vm10394_vm2, %v10362_v4, %v10426_v41  ;;  %v10364_v18 = vadd.f32 %v18696_v15, %v24413_v17  ;;  %v10253_v7 = vpop.f32.mrb[55].mxu1  ;;  %v24529_v22 = vld [vmem:[#allocation5 + $0xe1] sm:$0xff] }
 0x75d   : > { %10490 = vst.msk [vmem:[#allocation5 + $0x111] sm:$0xff] %vm513_vm10, %v10458_v42  ;;  %v10457_v58 = vsel %vm10393_vm0, %v10361_v40, %v10425_v29  ;;  %v10363_v35 = vadd.f32 %v24413_v17, %v10253_v7  ;;  %v24524_v61 = vld [vmem:[#allocation5 + $0xd9] sm:$0xff] }
 0x75e   : > { %10489 = vst.msk [vmem:[#allocation5 + $0x109] sm:$0xff] %vm513_vm10, %v10457_v58  ;;  %vm10396_vm4 = vcmp.gt.f32.partialorder %v10364_v18, 0.0  ;;  %v10428_v20 = vmul.f32 0.2, %v10364_v18  ;;  %18744 = vmatprep.mubr.msk.f32.mxu0 %vm513_vm10, %v24524_v61 }
 0x75f   : > { %vm10395_vm5 = vcmp.gt.f32.partialorder %v10363_v35, 0.0  ;;  %v10427_v11 = vmul.f32 0.2, %v10363_v35  ;;  %v18699_v0 = vpop.f32.mrb[56].mxu1  ;;  %18745 = vmatmul.mubr.msk.f32.gmra.mrb[50].mxu0 %vm513_vm10, %v24529_v22 }
 0x760   : > { %v10460_v39 = vsel %vm10396_vm4, %v10364_v18, %v10428_v20  ;;  %v10366_v5 = vadd.f32 %v18699_v0, %v24413_v17  ;;  %v10263_v59 = vpop.f32.mrb[57].mxu1  ;;  %v24541_v23 = vld [vmem:[#allocation5 + $0xf9] sm:$0xff] }
 0x761   : > { %10492 = vst.msk [vmem:[#allocation5 + $0x129] sm:$0xff] %vm513_vm10, %v10460_v39  ;;  %v10459_v19 = vsel %vm10395_vm5, %v10363_v35, %v10427_v11  ;;  %v10365_v38 = vadd.f32 %v24413_v17, %v10263_v59  ;;  %v24536_v31 = vld [vmem:[#allocation5 + $0xf1] sm:$0xff]  ;;  %v10501_v0 = vld [vmem:[#allocation5] sm:$0xff]  ;;  %v16246_v59 = vld [vmem:[%s26241_s7 + $0x58] sm:$0xff] }
 0x762   : > { %10491 = vst.msk [vmem:[#allocation5 + $0x121] sm:$0xff] %vm513_vm10, %v10459_v19  ;;  %vm10398_vm6 = vcmp.gt.f32.partialorder %v10366_v5, 0.0  ;;  %v10430_v3 = vmul.f32 0.2, %v10366_v5  ;;  %18747 = vmatprep.mubr.msk.f32.mxu0 %vm513_vm10, %v24536_v31  ;;  %v10502_v19 = vld [vmem:[#allocation5 + $0x8] sm:$0xff] }
 0x763   : > { %vm10397_vm7 = vcmp.gt.f32.partialorder %v10365_v38, 0.0  ;;  %v10429_v27 = vmul.f32 0.2, %v10365_v38  ;;  %v18702_v1 = vpop.f32.mrb[58].mxu1  ;;  %18748 = vmatmul.mubr.msk.f32.gmra.mrb[52].mxu0 %vm513_vm10, %v24541_v23 }
 0x764   : > { %v10462_v30 = vsel %vm10398_vm6, %v10366_v5, %v10430_v3  ;;  %v10368_v21 = vadd.f32 %v18702_v1, %v24413_v17  ;;  %v10273_v43 = vpop.f32.mrb[59].mxu1  ;;  %v24553_v48 = vld [vmem:[#allocation5 + $0x111] sm:$0xff]  ;;  %v16245_v5 = vld [vmem:[%s26241_s7 + $0x50] sm:$0xff] }
 0x765   : > { %10494 = vst.msk [vmem:[#allocation5 + $0x141] sm:$0xff] %vm513_vm10, %v10462_v30  ;;  %v10461_v57 = vsel %vm10397_vm7, %v10365_v38, %v10429_v27  ;;  %v10367_v60 = vadd.f32 %v24413_v17, %v10273_v43  ;;  %v24548_v56 = vld [vmem:[#allocation5 + $0x109] sm:$0xff]  ;;  %v19521_v38 = vpack.c.bf16 %v16246_v59, %v16245_v5  ;;  %v16280_v27 = vld [vmem:[%s26241_s7 + $0x68] sm:$0xff] }
 0x766   : > { %10493 = vst.msk [vmem:[#allocation5 + $0x139] sm:$0xff] %vm513_vm10, %v10461_v57  ;;  %vm10400_vm8 = vcmp.gt.f32.partialorder %v10368_v21, 0.0  ;;  %v10432_v33 = vmul.f32 0.2, %v10368_v21  ;;  %18750 = vmatprep.mubr.msk.f32.mxu0 %vm513_vm10, %v24548_v56  ;;  %v16279_v3 = vld [vmem:[%s26241_s7 + $0x60] sm:$0xff]  ;;  %v24613_v1 = vld [vmem:[#allocation5 + $0x18] sm:$0xff] }
 0x767   : > { %vm10399_vm9 = vcmp.gt.f32.partialorder %v10367_v60, 0.0  ;;  %v10431_v13 = vmul.f32 0.2, %v10367_v60  ;;  %v18705_v12 = vpop.f32.mrb[60].mxu1  ;;  %18751 = vmatmul.mubr.msk.f32.gmra.mrb[54].mxu0 %vm513_vm10, %v24553_v48  ;;  %v24618_v30 = vpack.c.bf16 %v16280_v27, %v16279_v3  ;;  %v24624_v43 = vld [vmem:[#allocation5 + $0x30] sm:$0xff]  ;;  %v24633_v57 = vld [vmem:[#allocation5 + $0x48] sm:$0xff] }
 0x768   : > { %v10464_v62 = vsel %vm10400_vm8, %v10368_v21, %v10432_v33  ;;  %v10370_v50 = vadd.f32 %v18705_v12, %v24413_v17  ;;  %v10283_v51 = vpop.f32.mrb[61].mxu1  ;;  %v24565_v54 = vld [vmem:[#allocation5 + $0x129] sm:$0xff]  ;;  %v24620_v21 = vld [vmem:[#allocation5 + $0x20] sm:$0xff]  ;;  %v24649_v12 = vld [vmem:[#allocation5 + $0x78] sm:$0xff] }
 0x769   : > { %10496 = vst.msk [vmem:[#allocation5 + $0x159] sm:$0xff] %vm513_vm10, %v10464_v62  ;;  %v10463_v44 = vsel %vm10399_vm9, %v10367_v60, %v10431_v13  ;;  %v10369_v53 = vadd.f32 %v24413_v17, %v10283_v51  ;;  %v24560_v16 = vld [vmem:[#allocation5 + $0x121] sm:$0xff]  ;;  %v24637_v60 = vld [vmem:[#allocation5 + $0x50] sm:$0xff]  ;;  %v24661_v51 = vld [vmem:[#allocation5 + $0x98] sm:$0xff] }
 0x76a   : > { %10495 = vst.msk [vmem:[#allocation5 + $0x151] sm:$0xff] %vm513_vm10, %v10463_v44  ;;  %vm10402_vm11 = vcmp.gt.f32.partialorder %v10370_v50, 0.0  ;;  %v10434_v6 = vmul.f32 0.2, %v10370_v50  ;;  %18753 = vmatprep.mubr.msk.f32.mxu0 %vm513_vm10, %v24560_v16  ;;  %v24641_v33 = vld [vmem:[#allocation5 + $0x60] sm:$0xff]  ;;  %v24645_v13 = vld [vmem:[#allocation5 + $0x68] sm:$0xff] }
 0x76b   : > { %vm10401_vm12 = vcmp.gt.f32.partialorder %v10369_v53, 0.0  ;;  %v10433_v8 = vmul.f32 0.2, %v10369_v53  ;;  %v18708_v4 = vpop.f32.mrb[62].mxu1  ;;  %18754 = vmatmul.mubr.msk.f32.gmra.mrb[56].mxu0 %vm513_vm10, %v24565_v54  ;;  %v24653_v62 = vld [vmem:[#allocation5 + $0x80] sm:$0xff]  ;;  %v24665_v44 = vld [vmem:[#allocation5 + $0xa8] sm:$0xff] }
 0x76c   : > { %v10466_v34 = vsel %vm10402_vm11, %v10370_v50, %v10434_v6  ;;  %v10372_v47 = vadd.f32 %v18708_v4, %v24413_v17  ;;  %v10293_v40 = vpop.f32.mrb[63].mxu1  ;;  %v24577_v18 = vld [vmem:[#allocation5 + $0x141] sm:$0xff]  ;;  %v24657_v50 = vld [vmem:[#allocation5 + $0x90] sm:$0xff]  ;;  %v24681_v4 = vld [vmem:[#allocation5 + $0xd8] sm:$0xff] }
 0x76d   : > { %10498 = vst.msk [vmem:[#allocation5 + $0x171] sm:$0xff] %vm513_vm10, %v10466_v34  ;;  %v10465_v41 = vsel %vm10401_vm12, %v10369_v53, %v10433_v8  ;;  %v10371_v29 = vadd.f32 %v24413_v17, %v10293_v40  ;;  %v24572_v15 = vld [vmem:[#allocation5 + $0x139] sm:$0xff]  ;;  %26513 = vst [vmem:[#allocation14_spill] sm:$0xff] %v24577_v18  ;;  %v24669_v53 = vld [vmem:[#allocation5 + $0xb0] sm:$0xff] }
 0x76e   : > { %10497 = vst.msk [vmem:[#allocation5 + $0x169] sm:$0xff] %vm513_vm10, %v10465_v41  ;;  %vm10404_vm3 = vcmp.gt.f32.partialorder %v10372_v47, 0.0  ;;  %v10436_v42 = vmul.f32 0.2, %v10372_v47  ;;  %18756 = vmatprep.mubr.msk.f32.mxu0 %vm513_vm10, %v24572_v15  ;;  %v24673_v6 = vld [vmem:[#allocation5 + $0xc0] sm:$0xff]  ;;  %v24677_v8 = vld [vmem:[#allocation5 + $0xc8] sm:$0xff] }
 0x76f   : > { %vm10403_vm13 = vcmp.gt.f32.partialorder %v10371_v29, 0.0  ;;  %v10435_v7 = vmul.f32 0.2, %v10371_v29  ;;  %18757 = vmatmul.mubr.msk.f32.gmra.mrb[58].mxu0 %vm513_vm10, %v24577_v18  ;;  %v24685_v34 = vld [vmem:[#allocation5 + $0xe0] sm:$0xff]  ;;  %v24693_v40 = vld [vmem:[#allocation5 + $0xf8] sm:$0xff]  ;;  %v24697_v41 = vld [vmem:[#allocation5 + $0x108] sm:$0xff] }
 0x770   : > { %v10468_v58 = vsel %vm10404_vm3, %v10372_v47, %v10436_v42  ;;  %v24587_v20 = vld [vmem:[#allocation5 + $0x159] sm:$0xff]  ;;  %v24689_v47 = vld [vmem:[#allocation5 + $0xf0] sm:$0xff]  ;;  %v16282_v27 = vld [vmem:[%s26241_s7 + $0x78] sm:$0xff] }
 0x771   : > { %10500 = vst.msk [vmem:[#allocation5 + $0x189] sm:$0xff] %vm513_vm10, %v10468_v58  ;;  %v10467_v17 = vsel %vm10403_vm13, %v10371_v29, %v10435_v7  ;;  %v24582_v35 = vld [vmem:[#allocation5 + $0x151] sm:$0xff]  ;;  %26515 = vst [vmem:[#allocation11_spill] sm:$0xff] %v24587_v20  ;;  %v24705_v42 = vld [vmem:[#allocation5 + $0x120] sm:$0xff] }
 0x772   : > { %26514 = vst [vmem:[#allocation17_spill] sm:$0xff] %v24582_v35  ;;  %10499 = vst.msk [vmem:[#allocation5 + $0x181] sm:$0xff] %vm513_vm10, %v10467_v17  ;;  %18759 = vmatprep.mubr.msk.f32.mxu0 %vm513_vm10, %v24582_v35  ;;  %v24701_v29 = vld [vmem:[#allocation5 + $0x110] sm:$0xff]  ;;  %v24709_v7 = vld [vmem:[#allocation5 + $0x128] sm:$0xff] }
 0x773   : > { %18760 = vmatmul.mubr.msk.f32.gmra.mrb[60].mxu0 %vm513_vm10, %v24587_v20  ;;  %v24713_v58 = vld [vmem:[#allocation5 + $0x138] sm:$0xff]  ;;  %v24717_v17 = vld [vmem:[#allocation5 + $0x140] sm:$0xff]  ;;  %v16315_v20 = vld [vmem:[%s26241_s7 + $0x80] sm:$0xff] }
 0x774   : > { %v24595_v39 = vld [vmem:[#allocation5 + $0x171] sm:$0xff]  ;;  %v16281_v3 = vld [vmem:[%s26241_s7 + $0x70] sm:$0xff] }
 0x775   : > { %v24591_v11 = vld [vmem:[#allocation5 + $0x169] sm:$0xff]  ;;  %26517 = vst [vmem:[#allocation20_spill] sm:$0xff] %v24595_v39  ;;  %v24725_v5 = vld [vmem:[#allocation5 + $0x158] sm:$0xff] }
 0x776   : > { %26516 = vst [vmem:[#allocation16_spill] sm:$0xff] %v24591_v11  ;;  %18762 = vmatprep.mubr.msk.f32.mxu0 %vm513_vm10, %v24591_v11  ;;  %v24729_v59 = vld [vmem:[#allocation5 + $0x168] sm:$0xff]  ;;  %v19529_v11 = vpack.c.bf16 %v16282_v27, %v16281_v3  ;;  %v16316_v35 = vld [vmem:[%s26241_s7 + $0x88] sm:$0xff] }
 0x777   : > { %18763 = vmatmul.mubr.msk.f32.gmra.mrb[62].mxu0 %vm513_vm10, %v24595_v39  ;;  %v11217_v39 = vld [vmem:[#allocation5 + $0xa] sm:$0xff]  ;;  %v24751_v18 = vld [vmem:[#allocation5 + $0x1a] sm:$0xff]  ;;  %v24758_v3 = vld [vmem:[#allocation5 + $0x22] sm:$0xff] }
 0x778   : > { %18773 = vmatprep.mubr.msk.f32.mxu0 %vm513_vm10, %v10501_v0  ;;  %v24721_v0 = vld [vmem:[#allocation5 + $0x150] sm:$0xff] }
 0x779   : > { %v24762_v27 = vld [vmem:[#allocation5 + $0x32] sm:$0xff] }
 0x77a   : > { %26518 = vst [vmem:[#allocation19_spill] sm:$0xff] %v24762_v27 }
 0x77b   : > { %18774 = vmatmul.mubr.msk.f32.vlgmr.msra.gmra.mrb[32].mxu0 %vm513_vm10, %v10502_v19  ;;  %v11216_v19 = vld [vmem:[#allocation5 + $0x2] sm:$0xff] }
 0x77c   : > { %19520 = vmatpush3.bf16.msra.mxu0 %v24407_v25  ;;  %18776 = vmatprep.mubr.msk.f32.mxu0 %vm513_vm10, %v24613_v1  ;;  %v24629_v25 = vld [vmem:[#allocation5 + $0x38] sm:$0xff] }
 0x77d   : > { %19522 = vmatprep.subr.bf16.mxu0 %v19521_v38 }
 0x77f   : > { %18777 = vmatmul.mubr.msk.f32.gmra.mrb[34].mxu0 %vm513_vm10, %v24620_v21 }
 0x780   : > { %18779 = vmatprep.mubr.msk.f32.mxu0 %vm513_vm10, %v24624_v43  ;;  %19524 = vmatpush3.bf16.msra.mxu0 %v19521_v38  ;;  %v24733_v38 = vld [vmem:[#allocation5 + $0x170] sm:$0xff] }
 0x781   : > { %19526 = vmatprep.subr.bf16.mxu0 %v24618_v30 }
 0x783   : > { %18780 = vmatmul.mubr.msk.f32.gmra.mrb[36].mxu0 %vm513_vm10, %v24629_v25 }
 0x784   : > { %18782 = vmatprep.mubr.msk.f32.mxu0 %vm513_vm10, %v24633_v57 }
 0x787   : > { %18783 = vmatmul.mubr.msk.f32.gmra.mrb[38].mxu0 %vm513_vm10, %v24637_v60 }
 0x788   : > { %18785 = vmatprep.mubr.msk.f32.mxu0 %vm513_vm10, %v24641_v33 }
 0x78b   : > { %18786 = vmatmul.mubr.msk.f32.gmra.mrb[40].mxu0 %vm513_vm10, %v24645_v13 }
 0x78c   : > { %18788 = vmatprep.mubr.msk.f32.mxu0 %vm513_vm10, %v24649_v12 }
 0x78f   : > { %18789 = vmatmul.mubr.msk.f32.gmra.mrb[42].mxu0 %vm513_vm10, %v24653_v62 }
 0x790   : > { %18791 = vmatprep.mubr.msk.f32.mxu0 %vm513_vm10, %v24657_v50 }
 0x793   : > { %18792 = vmatmul.mubr.msk.f32.gmra.mrb[44].mxu0 %vm513_vm10, %v24661_v51 }
 0x794   : > { %18794 = vmatprep.mubr.msk.f32.mxu0 %vm513_vm10, %v24665_v44 }
 0x797   : > { %18795 = vmatmul.mubr.msk.f32.gmra.mrb[46].mxu0 %vm513_vm10, %v24669_v53 }
 0x798   : > { %18797 = vmatprep.mubr.msk.f32.mxu0 %vm513_vm10, %v24673_v6 }
 0x79b   : > { %18798 = vmatmul.mubr.msk.f32.gmra.mrb[48].mxu0 %vm513_vm10, %v24677_v8 }
 0x79c   : > { %18800 = vmatprep.mubr.msk.f32.mxu0 %vm513_vm10, %v24681_v4 }
 0x79f   : > { %18801 = vmatmul.mubr.msk.f32.gmra.mrb[50].mxu0 %vm513_vm10, %v24685_v34 }
 0x7a0   : > { %18803 = vmatprep.mubr.msk.f32.mxu0 %vm513_vm10, %v24689_v47 }
 0x7a3   : > { %18804 = vmatmul.mubr.msk.f32.gmra.mrb[52].mxu0 %vm513_vm10, %v24693_v40 }
 0x7a4   : > { %18806 = vmatprep.mubr.msk.f32.mxu0 %vm513_vm10, %v24697_v41 }
 0x7a7   : > { %18807 = vmatmul.mubr.msk.f32.gmra.mrb[54].mxu0 %vm513_vm10, %v24701_v29 }
 0x7a8   : > { %18809 = vmatprep.mubr.msk.f32.mxu0 %vm513_vm10, %v24705_v42 }
 0x7ab   : > { %18810 = vmatmul.mubr.msk.f32.gmra.mrb[56].mxu0 %vm513_vm10, %v24709_v7 }
 0x7ac   : > { %18812 = vmatprep.mubr.msk.f32.mxu0 %vm513_vm10, %v24713_v58 }
 0x7af   : > { %18813 = vmatmul.mubr.msk.f32.gmra.mrb[58].mxu0 %vm513_vm10, %v24717_v17 }
 0x7b0   : > { %18815 = vmatprep.mubr.msk.f32.mxu0 %vm513_vm10, %v24721_v0 }
 0x7b3   : > { %18816 = vmatmul.mubr.msk.f32.gmra.mrb[60].mxu0 %vm513_vm10, %v24725_v5 }
 0x7b4   : > { %18818 = vmatprep.mubr.msk.f32.mxu0 %vm513_vm10, %v24729_v59 }
 0x7b7   : > { %18819 = vmatmul.mubr.msk.f32.gmra.mrb[62].mxu0 %vm513_vm10, %v24733_v38 }
 0x7b8   : > { %18829 = vmatprep.mubr.msk.f32.mxu0 %vm513_vm10, %v11216_v19  ;;  %v24756_v19 = vpack.c.bf16 %v16316_v35, %v16315_v20  ;;  %v24771_v35 = vld [vmem:[#allocation5 + $0x4a] sm:$0xff]  ;;  %v24775_v20 = vld [vmem:[#allocation5 + $0x52] sm:$0xff] }
 0x7b9   : > { %26520 = vst [vmem:[#allocation21_spill] sm:$0xff] %v24771_v35  ;;  %26521 = vst [vmem:[#allocation23_spill] sm:$0xff] %v24775_v20 }
 0x7bb   : > { %18830 = vmatmul.mubr.msk.f32.vlgmr.msra.gmra.mrb[32].mxu0 %vm513_vm10, %v11217_v39  ;;  %v24767_v39 = vld [vmem:[#allocation5 + $0x3a] sm:$0xff] }
 0x7bc   : > { %19528 = vmatpush3.bf16.msra.mxu0 %v24618_v30  ;;  %18832 = vmatprep.mubr.msk.f32.mxu0 %vm513_vm10, %v24751_v18  ;;  %26519 = vst [vmem:[#allocation22_spill] sm:$0xff] %v24767_v39  ;;  %v24779_v30 = vld [vmem:[#allocation5 + $0x62] sm:$0xff] }
 0x7bd   : > { %19530 = vmatprep.subr.bf16.mxu0 %v19529_v11  ;;  %26522 = vst [vmem:[#allocation24_spill] sm:$0xff] %v24779_v30 }
 0x7bf   : > { %18833 = vmatmul.mubr.msk.f32.gmra.mrb[34].mxu0 %vm513_vm10, %v24758_v3 }
 0x7c0   : > { %18835 = vmatprep.mubr.msk.f32.mxu0 %vm513_vm10, %v24762_v27  ;;  %19532 = vmatpush3.bf16.msra.mxu0 %v19529_v11  ;;  %v24783_v11 = vld [vmem:[#allocation5 + $0x6a] sm:$0xff]  ;;  %v16352_v27 = vld [vmem:[%s26241_s7 + $0xa8] sm:$0xff] }
 0x7c1   : > { %19534 = vmatprep.subr.bf16.mxu0 %v24756_v19  ;;  %26523 = vst [vmem:[#allocation25_spill] sm:$0xff] %v24783_v11 }
 0x7c3   : > { %18836 = vmatmul.mubr.msk.f32.gmra.mrb[36].mxu0 %vm513_vm10, %v24767_v39  ;;  %v24787_v39 = vld [vmem:[#allocation5 + $0x7a] sm:$0xff] }
 0x7c4   : > { %18838 = vmatprep.mubr.msk.f32.mxu0 %vm513_vm10, %v24771_v35  ;;  %26524 = vst [vmem:[#allocation26_spill] sm:$0xff] %v24787_v39  ;;  %v24791_v35 = vld [vmem:[#allocation5 + $0x82] sm:$0xff] }
 0x7c5   : > { %26525 = vst [vmem:[#allocation27_spill] sm:$0xff] %v24791_v35 }
 0x7c7   : > { %18839 = vmatmul.mubr.msk.f32.gmra.mrb[38].mxu0 %vm513_vm10, %v24775_v20  ;;  %v24795_v20 = vld [vmem:[#allocation5 + $0x92] sm:$0xff] }
 0x7c8   : > { %18841 = vmatprep.mubr.msk.f32.mxu0 %vm513_vm10, %v24779_v30  ;;  %26526 = vst [vmem:[#allocation18_spill] sm:$0xff] %v24795_v20  ;;  %v24799_v30 = vld [vmem:[#allocation5 + $0x9a] sm:$0xff] }
 0x7c9   : > { %26527 = vst [vmem:[#allocation15_spill] sm:$0xff] %v24799_v30 }
 0x7cb   : > { %18842 = vmatmul.mubr.msk.f32.gmra.mrb[40].mxu0 %vm513_vm10, %v24783_v11  ;;  %v24803_v11 = vld [vmem:[#allocation5 + $0xaa] sm:$0xff] }
 0x7cc   : > { %18844 = vmatprep.mubr.msk.f32.mxu0 %vm513_vm10, %v24787_v39  ;;  %26528 = vst [vmem:[#allocation28_spill] sm:$0xff] %v24803_v11  ;;  %v24807_v39 = vld [vmem:[#allocation5 + $0xb2] sm:$0xff] }
 0x7cd   : > { %26529 = vst [vmem:[#allocation29_spill] sm:$0xff] %v24807_v39 }
 0x7cf   : > { %18845 = vmatmul.mubr.msk.f32.gmra.mrb[42].mxu0 %vm513_vm10, %v24791_v35  ;;  %v24811_v35 = vld [vmem:[#allocation5 + $0xc2] sm:$0xff] }
 0x7d0   : > { %18847 = vmatprep.mubr.msk.f32.mxu0 %vm513_vm10, %v24795_v20  ;;  %26530 = vst [vmem:[#allocation30_spill] sm:$0xff] %v24811_v35  ;;  %v24815_v20 = vld [vmem:[#allocation5 + $0xca] sm:$0xff] }
 0x7d1   : > { %26531 = vst [vmem:[#allocation31_spill] sm:$0xff] %v24815_v20 }
 0x7d3   : > { %18848 = vmatmul.mubr.msk.f32.gmra.mrb[44].mxu0 %vm513_vm10, %v24799_v30  ;;  %v24819_v30 = vld [vmem:[#allocation5 + $0xda] sm:$0xff] }
 0x7d4   : > { %18850 = vmatprep.mubr.msk.f32.mxu0 %vm513_vm10, %v24803_v11  ;;  %26532 = vst [vmem:[#allocation32_spill] sm:$0xff] %v24819_v30  ;;  %v24823_v11 = vld [vmem:[#allocation5 + $0xe2] sm:$0xff] }
 0x7d5   : > { %26533 = vst [vmem:[#allocation33_spill] sm:$0xff] %v24823_v11 }
 0x7d7   : > { %18851 = vmatmul.mubr.msk.f32.gmra.mrb[46].mxu0 %vm513_vm10, %v24807_v39  ;;  %v24827_v39 = vld [vmem:[#allocation5 + $0xf2] sm:$0xff] }
 0x7d8   : > { %18853 = vmatprep.mubr.msk.f32.mxu0 %vm513_vm10, %v24811_v35  ;;  %26534 = vst [vmem:[#allocation34_spill] sm:$0xff] %v24827_v39  ;;  %v24831_v35 = vld [vmem:[#allocation5 + $0xfa] sm:$0xff] }
 0x7d9   : > { %26535 = vst [vmem:[#allocation35_spill] sm:$0xff] %v24831_v35 }
 0x7db   : > { %18854 = vmatmul.mubr.msk.f32.gmra.mrb[48].mxu0 %vm513_vm10, %v24815_v20  ;;  %v24835_v20 = vld [vmem:[#allocation5 + $0x10a] sm:$0xff] }
 0x7dc   : > { %18856 = vmatprep.mubr.msk.f32.mxu0 %vm513_vm10, %v24819_v30  ;;  %26536 = vst [vmem:[#allocation36_spill] sm:$0xff] %v24835_v20  ;;  %v24839_v30 = vld [vmem:[#allocation5 + $0x112] sm:$0xff] }
 0x7dd   : > { %26537 = vst [vmem:[#allocation37_spill] sm:$0xff] %v24839_v30 }
 0x7df   : > { %18857 = vmatmul.mubr.msk.f32.gmra.mrb[50].mxu0 %vm513_vm10, %v24823_v11  ;;  %v24843_v11 = vld [vmem:[#allocation5 + $0x122] sm:$0xff] }
 0x7e0   : > { %18859 = vmatprep.mubr.msk.f32.mxu0 %vm513_vm10, %v24827_v39  ;;  %26538 = vst [vmem:[#allocation38_spill] sm:$0xff] %v24843_v11  ;;  %v24847_v39 = vld [vmem:[#allocation5 + $0x12a] sm:$0xff] }
 0x7e1   : > { %26539 = vst [vmem:[#allocation39_spill] sm:$0xff] %v24847_v39 }
 0x7e3   : > { %18860 = vmatmul.mubr.msk.f32.gmra.mrb[52].mxu0 %vm513_vm10, %v24831_v35  ;;  %v24851_v35 = vld [vmem:[#allocation5 + $0x13a] sm:$0xff] }
 0x7e4   : > { %18862 = vmatprep.mubr.msk.f32.mxu0 %vm513_vm10, %v24835_v20  ;;  %26540 = vst [vmem:[#allocation40_spill] sm:$0xff] %v24851_v35  ;;  %v24855_v20 = vld [vmem:[#allocation5 + $0x142] sm:$0xff] }
 0x7e5   : > { %26541 = vst [vmem:[#allocation41_spill] sm:$0xff] %v24855_v20 }
 0x7e7   : > { %18863 = vmatmul.mubr.msk.f32.gmra.mrb[54].mxu0 %vm513_vm10, %v24839_v30  ;;  %v24859_v30 = vld [vmem:[#allocation5 + $0x152] sm:$0xff] }
 0x7e8   : > { %18865 = vmatprep.mubr.msk.f32.mxu0 %vm513_vm10, %v24843_v11  ;;  %26542 = vst [vmem:[#allocation42_spill] sm:$0xff] %v24859_v30  ;;  %v24863_v11 = vld [vmem:[#allocation5 + $0x15a] sm:$0xff] }
 0x7e9   : > { %26543 = vst [vmem:[#allocation43_spill] sm:$0xff] %v24863_v11 }
 0x7eb   : > { %18866 = vmatmul.mubr.msk.f32.gmra.mrb[56].mxu0 %vm513_vm10, %v24847_v39  ;;  %v24867_v39 = vld [vmem:[#allocation5 + $0x16a] sm:$0xff] }
 0x7ec   : > { %18868 = vmatprep.mubr.msk.f32.mxu0 %vm513_vm10, %v24851_v35  ;;  %26544 = vst [vmem:[#allocation12_spill] sm:$0xff] %v24867_v39  ;;  %v24871_v35 = vld [vmem:[#allocation5 + $0x172] sm:$0xff] }
 0x7ed   : > { %26545 = vst [vmem:[#allocation13_spill] sm:$0xff] %v24871_v35 }
 0x7ef   : > { %18869 = vmatmul.mubr.msk.f32.gmra.mrb[58].mxu0 %vm513_vm10, %v24855_v20  ;;  %v16317_v20 = vld [vmem:[%s26241_s7 + $0x90] sm:$0xff] }
 0x7f0   : > { %18871 = vmatprep.mubr.msk.f32.mxu0 %vm513_vm10, %v24859_v30  ;;  %v16318_v30 = vld [vmem:[%s26241_s7 + $0x98] sm:$0xff] }
 0x7f3   : > { %18872 = vmatmul.mubr.msk.f32.gmra.mrb[60].mxu0 %vm513_vm10, %v24863_v11  ;;  %v19537_v11 = vpack.c.bf16 %v16318_v30, %v16317_v20  ;;  %v16387_v20 = vld [vmem:[%s26241_s7 + $0xc0] sm:$0xff]  ;;  %v16388_v30 = vld [vmem:[%s26241_s7 + $0xc8] sm:$0xff] }
 0x7f4   : > { %18874 = vmatprep.mubr.msk.f32.mxu0 %vm513_vm10, %v24867_v39  ;;  %v16351_v39 = vld [vmem:[%s26241_s7 + $0xa0] sm:$0xff] }
 0x7f7   : > { %18875 = vmatmul.mubr.msk.f32.gmra.mrb[62].mxu0 %vm513_vm10, %v24871_v35  ;;  %v19541_v35 = vpack.c.bf16 %v16352_v27, %v16351_v39  ;;  %v16354_v27 = vld [vmem:[%s26241_s7 + $0xb8] sm:$0xff] }
 0x7f8   : > { %18885 = vmatprep.mubr.msk.f32.mxu0 %vm513_vm10, %v24613_v1  ;;  %v24948_v1 = vld [vmem:[#allocation5 + $0x180] sm:$0xff] }
 0x7fb   : > { %18886 = vmatmul.mubr.msk.f32.vlgmr.msra.gmra.mrb[32].mxu0 %vm513_vm10, %v24620_v21  ;;  %v24952_v21 = vld [vmem:[#allocation5 + $0x188] sm:$0xff] }
 0x7fc   : > { %19536 = vmatpush3.bf16.msra.mxu0 %v24756_v19  ;;  %18888 = vmatprep.mubr.msk.f32.mxu0 %vm513_vm10, %v24624_v43  ;;  %v16353_v19 = vld [vmem:[%s26241_s7 + $0xb0] sm:$0xff] }
 0x7fd   : > { %19538 = vmatprep.subr.bf16.mxu0 %v19537_v11  ;;  %v19545_v39 = vpack.c.bf16 %v16354_v27, %v16353_v19  ;;  %v26566_v19 = vld [vmem:[#allocation33_spill] sm:$0xff]  ;;  %v26567_v27 = vld [vmem:[#allocation34_spill] sm:$0xff] }
 0x7ff   : > { %18889 = vmatmul.mubr.msk.f32.gmra.mrb[34].mxu0 %vm513_vm10, %v24629_v25 }
 0x800   : > { %18891 = vmatprep.mubr.msk.f32.mxu0 %vm513_vm10, %v24633_v57  ;;  %19540 = vmatpush3.bf16.msra.mxu0 %v19537_v11  ;;  %v19549_v11 = vpack.c.bf16 %v16388_v30, %v16387_v20  ;;  %v26569_v20 = vld [vmem:[#allocation36_spill] sm:$0xff]  ;;  %v26570_v30 = vld [vmem:[#allocation37_spill] sm:$0xff] }
 0x801   : > { %19542 = vmatprep.subr.bf16.mxu0 %v19541_v35 }
 0x803   : > { %18892 = vmatmul.mubr.msk.f32.gmra.mrb[36].mxu0 %vm513_vm10, %v24637_v60 }
 0x804   : > { %18894 = vmatprep.mubr.msk.f32.mxu0 %vm513_vm10, %v24641_v33 }
 0x807   : > { %18895 = vmatmul.mubr.msk.f32.gmra.mrb[38].mxu0 %vm513_vm10, %v24645_v13 }
 0x808   : > { %18897 = vmatprep.mubr.msk.f32.mxu0 %vm513_vm10, %v24649_v12 }
 0x80b   : > { %18898 = vmatmul.mubr.msk.f32.gmra.mrb[40].mxu0 %vm513_vm10, %v24653_v62 }
 0x80c   : > { %18900 = vmatprep.mubr.msk.f32.mxu0 %vm513_vm10, %v24657_v50 }
 0x80f   : > { %18901 = vmatmul.mubr.msk.f32.gmra.mrb[42].mxu0 %vm513_vm10, %v24661_v51 }
 0x810   : > { %18903 = vmatprep.mubr.msk.f32.mxu0 %vm513_vm10, %v24665_v44 }
 0x813   : > { %18904 = vmatmul.mubr.msk.f32.gmra.mrb[44].mxu0 %vm513_vm10, %v24669_v53 }
 0x814   : > { %18906 = vmatprep.mubr.msk.f32.mxu0 %vm513_vm10, %v24673_v6 }
 0x817   : > { %18907 = vmatmul.mubr.msk.f32.gmra.mrb[46].mxu0 %vm513_vm10, %v24677_v8 }
 0x818   : > { %18909 = vmatprep.mubr.msk.f32.mxu0 %vm513_vm10, %v24681_v4 }
 0x81b   : > { %18910 = vmatmul.mubr.msk.f32.gmra.mrb[48].mxu0 %vm513_vm10, %v24685_v34 }
 0x81c   : > { %18912 = vmatprep.mubr.msk.f32.mxu0 %vm513_vm10, %v24689_v47 }
 0x81f   : > { %18913 = vmatmul.mubr.msk.f32.gmra.mrb[50].mxu0 %vm513_vm10, %v24693_v40 }
 0x820   : > { %18915 = vmatprep.mubr.msk.f32.mxu0 %vm513_vm10, %v24697_v41 }
 0x823   : > { %18916 = vmatmul.mubr.msk.f32.gmra.mrb[52].mxu0 %vm513_vm10, %v24701_v29 }
 0x824   : > { %18918 = vmatprep.mubr.msk.f32.mxu0 %vm513_vm10, %v24705_v42 }
 0x827   : > { %18919 = vmatmul.mubr.msk.f32.gmra.mrb[54].mxu0 %vm513_vm10, %v24709_v7 }
 0x828   : > { %18921 = vmatprep.mubr.msk.f32.mxu0 %vm513_vm10, %v24713_v58 }
 0x82b   : > { %18922 = vmatmul.mubr.msk.f32.gmra.mrb[56].mxu0 %vm513_vm10, %v24717_v17 }
 0x82c   : > { %18924 = vmatprep.mubr.msk.f32.mxu0 %vm513_vm10, %v24721_v0 }
 0x82f   : > { %18925 = vmatmul.mubr.msk.f32.gmra.mrb[58].mxu0 %vm513_vm10, %v24725_v5 }
 0x830   : > { %18927 = vmatprep.mubr.msk.f32.mxu0 %vm513_vm10, %v24729_v59 }
 0x833   : > { %18928 = vmatmul.mubr.msk.f32.gmra.mrb[60].mxu0 %vm513_vm10, %v24733_v38 }
 0x834   : > { %18930 = vmatprep.mubr.msk.f32.mxu0 %vm513_vm10, %v24948_v1 }
 0x837   : > { %18931 = vmatmul.mubr.msk.f32.gmra.mrb[62].mxu0 %vm513_vm10, %v24952_v21 }
 0x838   : > { %18941 = vmatprep.mubr.msk.f32.mxu0 %vm513_vm10, %v24428_v28  ;;  %v26546_v28 = vld [vmem:[#allocation14_spill] sm:$0xff] }
 0x83b   : > { %18942 = vmatmul.mubr.msk.f32.vlgmr.msra.gmra.mrb[32].mxu0 %vm513_vm10, %v24433_v55  ;;  %v26547_v55 = vld [vmem:[#allocation17_spill] sm:$0xff] }
 0x83c   : > { %19544 = vmatpush3.bf16.msra.mxu0 %v19541_v35  ;;  %18944 = vmatprep.mubr.msk.f32.mxu0 %vm513_vm10, %v24440_v9  ;;  %v26548_v9 = vld [vmem:[#allocation11_spill] sm:$0xff]  ;;  %v26565_v35 = vld [vmem:[#allocation32_spill] sm:$0xff] }
 0x83d   : > { %19546 = vmatprep.subr.bf16.mxu0 %v19545_v39 }
 0x83f   : > { %18945 = vmatmul.mubr.msk.f32.gmra.mrb[34].mxu0 %vm513_vm10, %v24445_v10  ;;  %v26549_v10 = vld [vmem:[#allocation16_spill] sm:$0xff] }
 0x840   : > { %18947 = vmatprep.mubr.msk.f32.mxu0 %vm513_vm10, %v24452_v14  ;;  %19548 = vmatpush3.bf16.msra.mxu0 %v19545_v39  ;;  %v26550_v14 = vld [vmem:[#allocation20_spill] sm:$0xff]  ;;  %v26568_v39 = vld [vmem:[#allocation35_spill] sm:$0xff] }
 0x841   : > { %19550 = vmatprep.subr.bf16.mxu0 %v19549_v11 }
 0x843   : > { %18948 = vmatmul.mubr.msk.f32.gmra.mrb[36].mxu0 %vm513_vm10, %v24457_v46  ;;  %v25028_v46 = vld [vmem:[#allocation5 + $0x181] sm:$0xff] }
 0x844   : > { %18950 = vmatprep.mubr.msk.f32.mxu0 %vm513_vm10, %v24464_v45  ;;  %v25032_v45 = vld [vmem:[#allocation5 + $0x189] sm:$0xff] }
 0x847   : > { %18951 = vmatmul.mubr.msk.f32.gmra.mrb[38].mxu0 %vm513_vm10, %v24469_v63  ;;  %v16389_v63 = vld [vmem:[%s26241_s7 + $0xd0] sm:$0xff] }
 0x848   : > { %18953 = vmatprep.mubr.msk.f32.mxu0 %vm513_vm10, %v24476_v52  ;;  %v16390_v52 = vld [vmem:[%s26241_s7 + $0xd8] sm:$0xff] }
 0x84b   : > { %18954 = vmatmul.mubr.msk.f32.gmra.mrb[40].mxu0 %vm513_vm10, %v24481_v49  ;;  %v19553_v49 = vpack.c.bf16 %v16390_v52, %v16389_v63  ;;  %v26577_v63 = vld [vmem:[#allocation12_spill] sm:$0xff]  ;;  %v26578_v52 = vld [vmem:[#allocation13_spill] sm:$0xff] }
 0x84c   : > { %18956 = vmatprep.mubr.msk.f32.mxu0 %vm513_vm10, %v24488_v37  ;;  %v16423_v37 = vld [vmem:[%s26241_s7 + $0xe0] sm:$0xff] }
 0x84f   : > { %18957 = vmatmul.mubr.msk.f32.gmra.mrb[42].mxu0 %vm513_vm10, %v24493_v2  ;;  %v16424_v2 = vld [vmem:[%s26241_s7 + $0xe8] sm:$0xff] }
 0x850   : > { %18959 = vmatprep.mubr.msk.f32.mxu0 %vm513_vm10, %v24500_v32  ;;  %v26551_v32 = vld [vmem:[#allocation19_spill] sm:$0xff] }
 0x853   : > { %18960 = vmatmul.mubr.msk.f32.gmra.mrb[44].mxu0 %vm513_vm10, %v24505_v36  ;;  %v19557_v36 = vpack.c.bf16 %v16424_v2, %v16423_v37  ;;  %v25112_v37 = vld [vmem:[#allocation5 + $0x18a] sm:$0xff]  ;;  %v16425_v2 = vld [vmem:[%s26241_s7 + $0xf0] sm:$0xff] }
 0x854   : > { %18962 = vmatprep.mubr.msk.f32.mxu0 %vm513_vm10, %v24512_v26  ;;  %v26552_v26 = vld [vmem:[#allocation22_spill] sm:$0xff]  ;;  %26580 = vst [vmem:[#allocation17_spill] sm:$0xff] %v25112_v37 }
 0x857   : > { %18963 = vmatmul.mubr.msk.f32.gmra.mrb[46].mxu0 %vm513_vm10, %v24517_v24  ;;  %v26553_v24 = vld [vmem:[#allocation21_spill] sm:$0xff] }
 0x858   : > { %18965 = vmatprep.mubr.msk.f32.mxu0 %vm513_vm10, %v24524_v61  ;;  %v26554_v61 = vld [vmem:[#allocation23_spill] sm:$0xff] }
 0x85b   : > { %18966 = vmatmul.mubr.msk.f32.gmra.mrb[48].mxu0 %vm513_vm10, %v24529_v22  ;;  %v26555_v22 = vld [vmem:[#allocation24_spill] sm:$0xff] }
 0x85c   : > { %18968 = vmatprep.mubr.msk.f32.mxu0 %vm513_vm10, %v24536_v31  ;;  %v26556_v31 = vld [vmem:[#allocation25_spill] sm:$0xff] }
 0x85f   : > { %18969 = vmatmul.mubr.msk.f32.gmra.mrb[50].mxu0 %vm513_vm10, %v24541_v23  ;;  %v26557_v23 = vld [vmem:[#allocation26_spill] sm:$0xff] }
 0x860   : > { %18971 = vmatprep.mubr.msk.f32.mxu0 %vm513_vm10, %v24548_v56  ;;  %v26558_v56 = vld [vmem:[#allocation27_spill] sm:$0xff] }
 0x863   : > { %18972 = vmatmul.mubr.msk.f32.gmra.mrb[52].mxu0 %vm513_vm10, %v24553_v48  ;;  %v26559_v48 = vld [vmem:[#allocation18_spill] sm:$0xff] }
 0x864   : > { %18974 = vmatprep.mubr.msk.f32.mxu0 %vm513_vm10, %v24560_v16  ;;  %v26560_v16 = vld [vmem:[#allocation15_spill] sm:$0xff] }
 0x867   : > { %18975 = vmatmul.mubr.msk.f32.gmra.mrb[54].mxu0 %vm513_vm10, %v24565_v54  ;;  %v26561_v54 = vld [vmem:[#allocation28_spill] sm:$0xff] }
 0x868   : > { %18977 = vmatprep.mubr.msk.f32.mxu0 %vm513_vm10, %v24572_v15  ;;  %v26562_v15 = vld [vmem:[#allocation29_spill] sm:$0xff] }
 0x86b   : > { %18978 = vmatmul.mubr.msk.f32.gmra.mrb[56].mxu0 %vm513_vm10, %v26546_v28  ;;  %v26572_v28 = vld [vmem:[#allocation39_spill] sm:$0xff] }
 0x86c   : > { %18980 = vmatprep.mubr.msk.f32.mxu0 %vm513_vm10, %v26547_v55  ;;  %v26573_v55 = vld [vmem:[#allocation40_spill] sm:$0xff] }
 0x86f   : > { %18981 = vmatmul.mubr.msk.f32.gmra.mrb[58].mxu0 %vm513_vm10, %v26548_v9  ;;  %v26574_v9 = vld [vmem:[#allocation41_spill] sm:$0xff] }
 0x870   : > { %18983 = vmatprep.mubr.msk.f32.mxu0 %vm513_vm10, %v26549_v10  ;;  %v26575_v10 = vld [vmem:[#allocation42_spill] sm:$0xff] }
 0x873   : > { %18984 = vmatmul.mubr.msk.f32.gmra.mrb[60].mxu0 %vm513_vm10, %v26550_v14  ;;  %v26576_v14 = vld [vmem:[#allocation43_spill] sm:$0xff] }
 0x874   : > { %18986 = vmatprep.mubr.msk.f32.mxu0 %vm513_vm10, %v25028_v46 }
 0x877   : > { %18987 = vmatmul.mubr.msk.f32.gmra.mrb[62].mxu0 %vm513_vm10, %v25032_v45 }
 0x878   : > { %18997 = vmatprep.mubr.msk.f32.mxu0 %vm513_vm10, %v24751_v18  ;;  %v26563_v18 = vld [vmem:[#allocation30_spill] sm:$0xff] }
 0x87b   : > { %18998 = vmatmul.mubr.msk.f32.vlgmr.msra.gmra.mrb[32].mxu0 %vm513_vm10, %v24758_v3  ;;  %v26564_v3 = vld [vmem:[#allocation31_spill] sm:$0xff] }
 0x87c   : > { %19552 = vmatpush3.bf16.msra.mxu0 %v19549_v11  ;;  %19000 = vmatprep.mubr.msk.f32.mxu0 %vm513_vm10, %v26551_v32  ;;  %v26571_v11 = vld [vmem:[#allocation38_spill] sm:$0xff] }
 0x87d   : > { %19554 = vmatprep.subr.bf16.mxu0 %v19553_v49 }
 0x87f   : > { %19001 = vmatmul.mubr.msk.f32.gmra.mrb[34].mxu0 %vm513_vm10, %v26552_v26 }
 0x880   : > { %19003 = vmatprep.mubr.msk.f32.mxu0 %vm513_vm10, %v26553_v24  ;;  %19556 = vmatpush3.bf16.msra.mxu0 %v19553_v49  ;;  %v25108_v49 = vld [vmem:[#allocation5 + $0x182] sm:$0xff] }
 0x881   : > { %19558 = vmatprep.subr.bf16.mxu0 %v19557_v36  ;;  %26579 = vst [vmem:[#allocation14_spill] sm:$0xff] %v25108_v49 }
 0x883   : > { %19004 = vmatmul.mubr.msk.f32.gmra.mrb[36].mxu0 %vm513_vm10, %v26554_v61 }
 0x884   : > { %19006 = vmatprep.mubr.msk.f32.mxu0 %vm513_vm10, %v26555_v22 }
 0x887   : > { %19007 = vmatmul.mubr.msk.f32.gmra.mrb[38].mxu0 %vm513_vm10, %v26556_v31 }
 0x888   : > { %19009 = vmatprep.mubr.msk.f32.mxu0 %vm513_vm10, %v26557_v23 }
 0x88b   : > { %19010 = vmatmul.mubr.msk.f32.gmra.mrb[40].mxu0 %vm513_vm10, %v26558_v56 }
 0x88c   : > { %19012 = vmatprep.mubr.msk.f32.mxu0 %vm513_vm10, %v26559_v48 }
 0x88f   : > { %19013 = vmatmul.mubr.msk.f32.gmra.mrb[42].mxu0 %vm513_vm10, %v26560_v16 }
 0x890   : > { %19015 = vmatprep.mubr.msk.f32.mxu0 %vm513_vm10, %v26561_v54 }
 0x893   : > { %19016 = vmatmul.mubr.msk.f32.gmra.mrb[44].mxu0 %vm513_vm10, %v26562_v15 }
 0x894   : > { %19018 = vmatprep.mubr.msk.f32.mxu0 %vm513_vm10, %v26563_v18 }
 0x897   : > { %19019 = vmatmul.mubr.msk.f32.gmra.mrb[46].mxu0 %vm513_vm10, %v26564_v3 }
 0x898   : > { %19021 = vmatprep.mubr.msk.f32.mxu0 %vm513_vm10, %v26565_v35 }
 0x89b   : > { %19022 = vmatmul.mubr.msk.f32.gmra.mrb[48].mxu0 %vm513_vm10, %v26566_v19 }
 0x89c   : > { %19024 = vmatprep.mubr.msk.f32.mxu0 %vm513_vm10, %v26567_v27 }
 0x89f   : > { %19025 = vmatmul.mubr.msk.f32.gmra.mrb[50].mxu0 %vm513_vm10, %v26568_v39 }
 0x8a0   : > { %19027 = vmatprep.mubr.msk.f32.mxu0 %vm513_vm10, %v26569_v20 }
 0x8a3   : > { %19028 = vmatmul.mubr.msk.f32.gmra.mrb[52].mxu0 %vm513_vm10, %v26570_v30 }
 0x8a4   : > { %19030 = vmatprep.mubr.msk.f32.mxu0 %vm513_vm10, %v26571_v11 }
 0x8a7   : > { %19031 = vmatmul.mubr.msk.f32.gmra.mrb[54].mxu0 %vm513_vm10, %v26572_v28 }
 0x8a8   : > { %19033 = vmatprep.mubr.msk.f32.mxu0 %vm513_vm10, %v26573_v55 }
 0x8ab   : > { %19034 = vmatmul.mubr.msk.f32.gmra.mrb[56].mxu0 %vm513_vm10, %v26574_v9 }
 0x8ac   : > { %19036 = vmatprep.mubr.msk.f32.mxu0 %vm513_vm10, %v26575_v10 }
 0x8af   : > { %19037 = vmatmul.mubr.msk.f32.gmra.mrb[58].mxu0 %vm513_vm10, %v26576_v14  ;;  %v16426_v14 = vld [vmem:[%s26241_s7 + $0xf8] sm:$0xff] }
 0x8b0   : > { %19039 = vmatprep.mubr.msk.f32.mxu0 %vm513_vm10, %v26577_v63  ;;  %v16460_v63 = vld [vmem:[%s26241_s7 + $0x108] sm:$0xff] }
 0x8b3   : > { %19040 = vmatmul.mubr.msk.f32.gmra.mrb[60].mxu0 %vm513_vm10, %v26578_v52  ;;  %v19561_v52 = vpack.c.bf16 %v16426_v14, %v16425_v2  ;;  %v13193_v14 = vld [vmem:[#allocation5 + $0x169] sm:$0xff] }
 0x8b4   : > { %19042 = vmatprep.mubr.msk.f32.mxu0 %vm513_vm10, %v25108_v49  ;;  %v16459_v49 = vld [vmem:[%s26241_s7 + $0x100] sm:$0xff] }
 0x8b7   : > { %19043 = vmatmul.mubr.msk.f32.gmra.mrb[62].mxu0 %vm513_vm10, %v25112_v37  ;;  %v19565_v37 = vpack.c.bf16 %v16460_v63, %v16459_v49  ;;  %v13194_v63 = vld [vmem:[#allocation5 + $0x171] sm:$0xff]  ;;  %v13198_v49 = vld [vmem:[#allocation5 + $0x1a1] sm:$0xff] }
 0x8b8   : > { %19053 = vmatprep.mubr.msk.f32.mxu0 %vm513_vm10, %v24624_v43  ;;  %v12807_v43 = vld [vmem:[#allocation5 + $0x198] sm:$0xff] }
 0x8bb   : > { %19054 = vmatmul.mubr.msk.f32.vlgmr.msra.gmra.mrb[32].mxu0 %vm513_vm10, %v24629_v25  ;;  %v12808_v25 = vld [vmem:[#allocation5 + $0x1a0] sm:$0xff] }
 0x8bc   : > { %19560 = vmatpush3.bf16.msra.mxu0 %v19557_v36  ;;  %19056 = vmatprep.mubr.msk.f32.mxu0 %vm513_vm10, %v24633_v57  ;;  %v16461_v57 = vld [vmem:[%s26241_s7 + $0x110] sm:$0xff] }
 0x8bd   : > { %19562 = vmatprep.subr.bf16.mxu0 %v19561_v52  ;;  %v13192_v36 = vld [vmem:[#allocation5 + $0x159] sm:$0xff] }
 0x8bf   : > { %19057 = vmatmul.mubr.msk.f32.gmra.mrb[34].mxu0 %vm513_vm10, %v24637_v60  ;;  %v16462_v60 = vld [vmem:[%s26241_s7 + $0x118] sm:$0xff] }
 0x8c0   : > { %19059 = vmatprep.mubr.msk.f32.mxu0 %vm513_vm10, %v24641_v33  ;;  %19564 = vmatpush3.bf16.msra.mxu0 %v19561_v52  ;;  %v13167_v33 = vld [vmem:[#allocation5 + $0x31] sm:$0xff]  ;;  %v13197_v52 = vld [vmem:[#allocation5 + $0x199] sm:$0xff] }
 0x8c1   : > { %19566 = vmatprep.subr.bf16.mxu0 %v19565_v37 }
 0x8c3   : > { %19060 = vmatmul.mubr.msk.f32.gmra.mrb[36].mxu0 %vm513_vm10, %v24645_v13  ;;  %v19569_v13 = vpack.c.bf16 %v16462_v60, %v16461_v57 }
 0x8c4   : > { %19062 = vmatprep.mubr.msk.f32.mxu0 %vm513_vm10, %v24649_v12  ;;  %v13168_v12 = vld [vmem:[#allocation5 + $0x39] sm:$0xff] }
 0x8c7   : > { %19063 = vmatmul.mubr.msk.f32.gmra.mrb[38].mxu0 %vm513_vm10, %v24653_v62  ;;  %v13169_v62 = vld [vmem:[#allocation5 + $0x49] sm:$0xff] }
 0x8c8   : > { %19065 = vmatprep.mubr.msk.f32.mxu0 %vm513_vm10, %v24657_v50  ;;  %v13170_v50 = vld [vmem:[#allocation5 + $0x51] sm:$0xff] }
 0x8cb   : > { %19066 = vmatmul.mubr.msk.f32.gmra.mrb[40].mxu0 %vm513_vm10, %v24661_v51  ;;  %v13171_v51 = vld [vmem:[#allocation5 + $0x61] sm:$0xff] }
 0x8cc   : > { %19068 = vmatprep.mubr.msk.f32.mxu0 %vm513_vm10, %v24665_v44  ;;  %v13172_v44 = vld [vmem:[#allocation5 + $0x69] sm:$0xff] }
 0x8cf   : > { %19069 = vmatmul.mubr.msk.f32.gmra.mrb[42].mxu0 %vm513_vm10, %v24669_v53  ;;  %v13173_v53 = vld [vmem:[#allocation5 + $0x79] sm:$0xff] }
 0x8d0   : > { %19071 = vmatprep.mubr.msk.f32.mxu0 %vm513_vm10, %v24673_v6  ;;  %v13174_v6 = vld [vmem:[#allocation5 + $0x81] sm:$0xff] }
 0x8d3   : > { %19072 = vmatmul.mubr.msk.f32.gmra.mrb[44].mxu0 %vm513_vm10, %v24677_v8  ;;  %v13175_v8 = vld [vmem:[#allocation5 + $0x91] sm:$0xff] }
 0x8d4   : > { %19074 = vmatprep.mubr.msk.f32.mxu0 %vm513_vm10, %v24681_v4  ;;  %v13176_v4 = vld [vmem:[#allocation5 + $0x99] sm:$0xff] }
 0x8d7   : > { %19075 = vmatmul.mubr.msk.f32.gmra.mrb[46].mxu0 %vm513_vm10, %v24685_v34  ;;  %v13177_v34 = vld [vmem:[#allocation5 + $0xa9] sm:$0xff] }
 0x8d8   : > { %19077 = vmatprep.mubr.msk.f32.mxu0 %vm513_vm10, %v24689_v47  ;;  %v13178_v47 = vld [vmem:[#allocation5 + $0xb1] sm:$0xff] }
 0x8db   : > { %19078 = vmatmul.mubr.msk.f32.gmra.mrb[48].mxu0 %vm513_vm10, %v24693_v40  ;;  %v13179_v40 = vld [vmem:[#allocation5 + $0xc1] sm:$0xff] }
 0x8dc   : > { %19080 = vmatprep.mubr.msk.f32.mxu0 %vm513_vm10, %v24697_v41  ;;  %v13180_v41 = vld [vmem:[#allocation5 + $0xc9] sm:$0xff] }
 0x8df   : > { %19081 = vmatmul.mubr.msk.f32.gmra.mrb[50].mxu0 %vm513_vm10, %v24701_v29  ;;  %v13181_v29 = vld [vmem:[#allocation5 + $0xd9] sm:$0xff] }
 0x8e0   : > { %19083 = vmatprep.mubr.msk.f32.mxu0 %vm513_vm10, %v24705_v42  ;;  %v13182_v42 = vld [vmem:[#allocation5 + $0xe1] sm:$0xff] }
 0x8e3   : > { %19084 = vmatmul.mubr.msk.f32.gmra.mrb[52].mxu0 %vm513_vm10, %v24709_v7  ;;  %v13183_v7 = vld [vmem:[#allocation5 + $0xf1] sm:$0xff] }
 0x8e4   : > { %19086 = vmatprep.mubr.msk.f32.mxu0 %vm513_vm10, %v24713_v58  ;;  %v13184_v58 = vld [vmem:[#allocation5 + $0xf9] sm:$0xff] }
 0x8e7   : > { %19087 = vmatmul.mubr.msk.f32.gmra.mrb[54].mxu0 %vm513_vm10, %v24717_v17  ;;  %v13185_v17 = vld [vmem:[#allocation5 + $0x109] sm:$0xff] }
 0x8e8   : > { %19089 = vmatprep.mubr.msk.f32.mxu0 %vm513_vm10, %v24721_v0  ;;  %v13186_v0 = vld [vmem:[#allocation5 + $0x111] sm:$0xff] }
 0x8eb   : > { %19090 = vmatmul.mubr.msk.f32.gmra.mrb[56].mxu0 %vm513_vm10, %v24725_v5  ;;  %v13187_v5 = vld [vmem:[#allocation5 + $0x121] sm:$0xff] }
 0x8ec   : > { %19092 = vmatprep.mubr.msk.f32.mxu0 %vm513_vm10, %v24729_v59  ;;  %v13188_v59 = vld [vmem:[#allocation5 + $0x129] sm:$0xff] }
 0x8ef   : > { %19093 = vmatmul.mubr.msk.f32.gmra.mrb[58].mxu0 %vm513_vm10, %v24733_v38  ;;  %v13189_v38 = vld [vmem:[#allocation5 + $0x139] sm:$0xff] }
 0x8f0   : > { %19095 = vmatprep.mubr.msk.f32.mxu0 %vm513_vm10, %v24948_v1  ;;  %v13190_v1 = vld [vmem:[#allocation5 + $0x141] sm:$0xff] }
 0x8f3   : > { %19096 = vmatmul.mubr.msk.f32.gmra.mrb[60].mxu0 %vm513_vm10, %v24952_v21  ;;  %v13191_v21 = vld [vmem:[#allocation5 + $0x151] sm:$0xff] }
 0x8f4   : > { %19098 = vmatprep.mubr.msk.f32.mxu0 %vm513_vm10, %v12807_v43 }
 0x8f7   : > { %19099 = vmatmul.mubr.msk.f32.gmra.mrb[62].mxu0 %vm513_vm10, %v12808_v25  ;;  %v14316_v25 = vld [vmem:[#allocation6 + $0x2] sm:$0xff] }
 0x8f8   : > { %19109 = vmatprep.mubr.msk.f32.mxu0 %vm513_vm10, %v13167_v33 }
 0x8fb   : > { %19110 = vmatmul.mubr.msk.f32.vlgmr.msra.gmra.mrb[32].mxu0 %vm513_vm10, %v13168_v12 }
 0x8fc   : > { %19568 = vmatpush3.bf16.msra.mxu0 %v19565_v37  ;;  %19112 = vmatprep.mubr.msk.f32.mxu0 %vm513_vm10, %v13169_v62  ;;  %v25315_v37 = vld [vmem:[%s26243_s9 + $0x2] ss:$0 sm:$0xff] }
 0x8fd   : > { %19570 = vmatprep.subr.bf16.mxu0 %v19569_v13 }
 0x8ff   : > { %19113 = vmatmul.mubr.msk.f32.gmra.mrb[34].mxu0 %vm513_vm10, %v13170_v50  ;;  %v14353_v50 = vmul.f32 %v25315_v37, %v14316_v25 }
 0x900   : > { %19115 = vmatprep.mubr.msk.f32.mxu0 %vm513_vm10, %v13171_v51  ;;  %19572 = vmatpush3.bf16.msra.mxu0 %v19569_v13 }
 0x903   : > { %19116 = vmatmul.mubr.msk.f32.gmra.mrb[36].mxu0 %vm513_vm10, %v13172_v44 }
 0x904   : > { %19118 = vmatprep.mubr.msk.f32.mxu0 %vm513_vm10, %v13173_v53 }
 0x907   : > { %19119 = vmatmul.mubr.msk.f32.gmra.mrb[38].mxu0 %vm513_vm10, %v13174_v6 }
 0x908   : > { %19121 = vmatprep.mubr.msk.f32.mxu0 %vm513_vm10, %v13175_v8 }
 0x90b   : > { %19122 = vmatmul.mubr.msk.f32.gmra.mrb[40].mxu0 %vm513_vm10, %v13176_v4 }
 0x90c   : > { %19124 = vmatprep.mubr.msk.f32.mxu0 %vm513_vm10, %v13177_v34 }
 0x90f   : > { %19125 = vmatmul.mubr.msk.f32.gmra.mrb[42].mxu0 %vm513_vm10, %v13178_v47  ;;  %v25330_v47 = vld [vmem:[%s26243_s9 + $0x4] ss:$0 sm:$0xff] }
 0x910   : > { %19127 = vmatprep.mubr.msk.f32.mxu0 %vm513_vm10, %v13179_v40 }
 0x913   : > { %19128 = vmatmul.mubr.msk.f32.gmra.mrb[44].mxu0 %vm513_vm10, %v13180_v41  ;;  %v25336_v41 = vld [vmem:[%s26243_s9 + $0x5] ss:$0 sm:$0xff] }
 0x914   : > { %19130 = vmatprep.mubr.msk.f32.mxu0 %vm513_vm10, %v13181_v29 }
 0x917   : > { %19131 = vmatmul.mubr.msk.f32.gmra.mrb[46].mxu0 %vm513_vm10, %v13182_v42 }
 0x918   : > { %19133 = vmatprep.mubr.msk.f32.mxu0 %vm513_vm10, %v13183_v7  ;;  %v25341_v7 = vld [vmem:[%s26243_s9 + $0x3] ss:$0 sm:$0xff] }
 0x91b   : > { %19134 = vmatmul.mubr.msk.f32.gmra.mrb[48].mxu0 %vm513_vm10, %v13184_v58 }
 0x91c   : > { %19136 = vmatprep.mubr.msk.f32.mxu0 %vm513_vm10, %v13185_v17 }
 0x91f   : > { %19137 = vmatmul.mubr.msk.f32.gmra.mrb[50].mxu0 %vm513_vm10, %v13186_v0 }
 0x920   : > { %19139 = vmatprep.mubr.msk.f32.mxu0 %vm513_vm10, %v13187_v5 }
 0x923   : > { %19140 = vmatmul.mubr.msk.f32.gmra.mrb[52].mxu0 %vm513_vm10, %v13188_v59 }
 0x924   : > { %19142 = vmatprep.mubr.msk.f32.mxu0 %vm513_vm10, %v13189_v38 }
 0x927   : > { %19143 = vmatmul.mubr.msk.f32.gmra.mrb[54].mxu0 %vm513_vm10, %v13190_v1  ;;  %v25351_v1 = vld [vmem:[%s26243_s9 + $0x7] ss:$0 sm:$0xff] }
 0x928   : > { %19145 = vmatprep.mubr.msk.f32.mxu0 %vm513_vm10, %v13191_v21 }
 0x92b   : > { %19146 = vmatmul.mubr.msk.f32.gmra.mrb[56].mxu0 %vm513_vm10, %v13192_v36 }
 0x92c   : > { %19148 = vmatprep.mubr.msk.f32.mxu0 %vm513_vm10, %v13193_v14 }
 0x92f   : > { %19149 = vmatmul.mubr.msk.f32.gmra.mrb[58].mxu0 %vm513_vm10, %v13194_v63 }
 0x930   : > { %19151 = vmatprep.mubr.msk.f32.mxu0 %vm513_vm10, %v25028_v46  ;;  %v26581_v46 = vld [vmem:[#allocation43_spill] sm:$0xff] }
 0x933   : > { %19152 = vmatmul.mubr.msk.f32.gmra.mrb[60].mxu0 %vm513_vm10, %v25032_v45  ;;  %v26582_v45 = vld [vmem:[#allocation12_spill] sm:$0xff] }
 0x934   : > { %19154 = vmatprep.mubr.msk.f32.mxu0 %vm513_vm10, %v13197_v52 }
 0x937   : > { %19155 = vmatmul.mubr.msk.f32.gmra.mrb[62].mxu0 %vm513_vm10, %v13198_v49 }
 0x938   : > { %19165 = vmatprep.mubr.msk.f32.mxu0 %vm513_vm10, %v26551_v32  ;;  %v26583_v32 = vld [vmem:[#allocation13_spill] sm:$0xff] }
 0x93b   : > { %19166 = vmatmul.mubr.msk.f32.vlgmr.msra.gmra.mrb[32].mxu0 %vm513_vm10, %v26552_v26  ;;  %v26584_v26 = vld [vmem:[#allocation14_spill] sm:$0xff] }
 0x93c   : > { %19168 = vmatprep.mubr.msk.f32.mxu0 %vm513_vm10, %v26553_v24  ;;  %v13587_v24 = vld [vmem:[#allocation5 + $0x19a] sm:$0xff] }
 0x93f   : > { %19169 = vmatmul.mubr.msk.f32.gmra.mrb[34].mxu0 %vm513_vm10, %v26554_v61  ;;  %v26585_v61 = vld [vmem:[#allocation17_spill] sm:$0xff] }
 0x940   : > { %19171 = vmatprep.mubr.msk.f32.mxu0 %vm513_vm10, %v26555_v22  ;;  %v13588_v22 = vld [vmem:[#allocation5 + $0x1a2] sm:$0xff] }
 0x943   : > { %19172 = vmatmul.mubr.msk.f32.gmra.mrb[36].mxu0 %vm513_vm10, %v26556_v31  ;;  %v25295_v31 = vld [vmem:[%s26242_s8] ss:$0 sm:$0xff] }
 0x944   : > { %19174 = vmatprep.mubr.msk.f32.mxu0 %vm513_vm10, %v26557_v23 }
 0x947   : > { %19175 = vmatmul.mubr.msk.f32.gmra.mrb[38].mxu0 %vm513_vm10, %v26558_v56  ;;  %v14115_v56 = vld [vmem:[#allocation6 + $0x8] sm:$0xff] }
 0x948   : > { %19177 = vmatprep.mubr.msk.f32.mxu0 %vm513_vm10, %v26559_v48 }
 0x94b   : > { %19178 = vmatmul.mubr.msk.f32.gmra.mrb[40].mxu0 %vm513_vm10, %v26560_v16 }
 0x94c   : > { %19180 = vmatprep.mubr.msk.f32.mxu0 %vm513_vm10, %v26561_v54  ;;  %v25301_v54 = vld [vmem:[%s26243_s9] ss:$0 sm:$0xff] }
 0x94f   : > { %19181 = vmatmul.mubr.msk.f32.gmra.mrb[42].mxu0 %vm513_vm10, %v26562_v15  ;;  %v14216_v15 = vld [vmem:[#allocation6 + $0x9] sm:$0xff] }
 0x950   : > { %19183 = vmatprep.mubr.msk.f32.mxu0 %vm513_vm10, %v26563_v18  ;;  %v25306_v18 = vld [vmem:[%s26243_s9 + $0x1] ss:$0 sm:$0xff] }
 0x953   : > { %19184 = vmatmul.mubr.msk.f32.gmra.mrb[44].mxu0 %vm513_vm10, %v26564_v3 }
 0x954   : > { %19186 = vmatprep.mubr.msk.f32.mxu0 %vm513_vm10, %v26565_v35  ;;  %v14114_v35 = vld [vmem:[#allocation6] sm:$0xff] }
 0x955   : > { %v14151_v2 = vmul.f32 %v25301_v54, %v14114_v35 }
 0x957   : > { %19187 = vmatmul.mubr.msk.f32.gmra.mrb[46].mxu0 %vm513_vm10, %v26566_v19  ;;  %v14215_v19 = vld [vmem:[#allocation6 + $0x1] sm:$0xff] }
 0x958   : > { %19189 = vmatprep.mubr.msk.f32.mxu0 %vm513_vm10, %v26567_v27  ;;  %v14252_v43 = vmul.f32 %v25306_v18, %v14215_v19 }
 0x95a   : > { %v14284_v8 = vadd.f32 %v14252_v43, %v14151_v2 }
 0x95b   : > { %19190 = vmatmul.mubr.msk.f32.gmra.mrb[48].mxu0 %vm513_vm10, %v26568_v39 }
 0x95c   : > { %19192 = vmatprep.mubr.msk.f32.mxu0 %vm513_vm10, %v26569_v20  ;;  %v14385_v21 = vadd.f32 %v14353_v50, %v14284_v8 }
 0x95f   : > { %19193 = vmatmul.mubr.msk.f32.gmra.mrb[50].mxu0 %vm513_vm10, %v26570_v30  ;;  %v14152_v30 = vmul.f32 %v25301_v54, %v14115_v56 }
 0x960   : > { %19195 = vmatprep.mubr.msk.f32.mxu0 %vm513_vm10, %v26571_v11  ;;  %v14253_v11 = vmul.f32 %v25306_v18, %v14216_v15 }
 0x962   : > { %v14285_v6 = vadd.f32 %v14253_v11, %v14152_v30 }
 0x963   : > { %19196 = vmatmul.mubr.msk.f32.gmra.mrb[52].mxu0 %vm513_vm10, %v26572_v28 }
 0x964   : > { %19198 = vmatprep.mubr.msk.f32.mxu0 %vm513_vm10, %v26573_v55 }
 0x967   : > { %19199 = vmatmul.mubr.msk.f32.gmra.mrb[54].mxu0 %vm513_vm10, %v26574_v9 }
 0x968   : > { %19201 = vmatprep.mubr.msk.f32.mxu0 %vm513_vm10, %v26575_v10  ;;  %v14317_v10 = vld [vmem:[#allocation6 + $0xa] sm:$0xff] }
 0x969   : > { %v14354_v62 = vmul.f32 %v25315_v37, %v14317_v10 }
 0x96b   : > { %19202 = vmatmul.mubr.msk.f32.gmra.mrb[56].mxu0 %vm513_vm10, %v26581_v46  ;;  %v14386_v5 = vadd.f32 %v14354_v62, %v14285_v6 }
 0x96c   : > { %19204 = vmatprep.mubr.msk.f32.mxu0 %vm513_vm10, %v26582_v45 }
 0x96f   : > { %19205 = vmatmul.mubr.msk.f32.gmra.mrb[58].mxu0 %vm513_vm10, %v26583_v32 }
 0x970   : > { %19207 = vmatprep.mubr.msk.f32.mxu0 %vm513_vm10, %v26584_v26 }
 0x973   : > { %19208 = vmatmul.mubr.msk.f32.gmra.mrb[60].mxu0 %vm513_vm10, %v26585_v61 }
 0x974   : > { %19210 = vmatprep.mubr.msk.f32.mxu0 %vm513_vm10, %v13587_v24  ;;  %v25367_v24 = vld [vmem:[%s26243_s9 + $0x8] ss:$0 sm:$0xff] }
 0x977   : > { %19211 = vmatmul.mubr.msk.f32.gmra.mrb[62].mxu0 %vm513_vm10, %v13588_v22 }
 0xa0e   : > { %v19167_v23 = vpop.f32.mrb[32].mxu0 }
 0xa0f   : > { %v13955_v48 = vadd.f32 %v19167_v23, %v25295_v31  ;;  %v13756_v16 = vpop.f32.mrb[33].mxu0 }
 0xa10   : > { %v13954_v3 = vadd.f32 %v25295_v31, %v13756_v16 }
 0xa11   : > { %vm13987_vm14 = vcmp.gt.f32.partialorder %v13955_v48, 0.0  ;;  %v14019_v27 = vmul.f32 0.2, %v13955_v48 }
 0xa12   : > { %vm13986_vm15 = vcmp.gt.f32.partialorder %v13954_v3, 0.0  ;;  %v14018_v39 = vmul.f32 0.2, %v13954_v3  ;;  %v19170_v20 = vpop.f32.mrb[34].mxu0 }
 0xa13   : > { %v14051_v28 = vsel %vm13987_vm14, %v13955_v48, %v14019_v27  ;;  %v13957_v55 = vadd.f32 %v19170_v20, %v25295_v31  ;;  %v13766_v9 = vpop.f32.mrb[35].mxu0  ;;  %v25373_v48 = vld [vmem:[%s26243_s9 + $0x6] ss:$0 sm:$0xff] }
 0xa14   : > { %14083 = vst.msk [vmem:[#allocation6 + $0x21] sm:$0xff] %vm513_vm10, %v14051_v28  ;;  %v14050_v57 = vsel %vm13986_vm15, %v13954_v3, %v14018_v39  ;;  %v13956_v60 = vadd.f32 %v25295_v31, %v13766_v9 }
 0xa15   : > { %14082 = vst.msk [vmem:[#allocation6 + $0x19] sm:$0xff] %vm513_vm10, %v14050_v57  ;;  %vm13989_vm1 = vcmp.gt.f32.partialorder %v13957_v55, 0.0  ;;  %v14021_v33 = vmul.f32 0.2, %v13957_v55 }
 0xa16   : > { %vm13988_vm2 = vcmp.gt.f32.partialorder %v13956_v60, 0.0  ;;  %v14020_v13 = vmul.f32 0.2, %v13956_v60  ;;  %v19173_v12 = vpop.f32.mrb[36].mxu0 }
 0xa17   : > { %v14053_v51 = vsel %vm13989_vm1, %v13957_v55, %v14021_v33  ;;  %v13959_v44 = vadd.f32 %v19173_v12, %v25295_v31  ;;  %v13776_v53 = vpop.f32.mrb[37].mxu0 }
 0xa18   : > { %14085 = vst.msk [vmem:[#allocation6 + $0x39] sm:$0xff] %vm513_vm10, %v14053_v51  ;;  %v14052_v4 = vsel %vm13988_vm2, %v13956_v60, %v14020_v13  ;;  %v13958_v34 = vadd.f32 %v25295_v31, %v13776_v53 }
 0xa19   : > { %14084 = vst.msk [vmem:[#allocation6 + $0x31] sm:$0xff] %vm513_vm10, %v14052_v4  ;;  %vm13991_vm0 = vcmp.gt.f32.partialorder %v13959_v44, 0.0  ;;  %v14023_v40 = vmul.f32 0.2, %v13959_v44 }
 0xa1a   : > { %vm13990_vm4 = vcmp.gt.f32.partialorder %v13958_v34, 0.0  ;;  %v14022_v29 = vmul.f32 0.2, %v13958_v34  ;;  %v19176_v42 = vpop.f32.mrb[38].mxu0 }
 0xa1b   : > { %v14055_v58 = vsel %vm13991_vm0, %v13959_v44, %v14023_v40  ;;  %v13961_v17 = vadd.f32 %v19176_v42, %v25295_v31  ;;  %v13786_v0 = vpop.f32.mrb[39].mxu0  ;;  %v25344_v59 = vld [vmem:[#allocation6 + $0x21] sm:$0xff] }
 0xa1c   : > { %v25346_v38 = vld [vmem:[#allocation6 + $0x22] sm:$0xff]  ;;  %14087 = vst.msk [vmem:[#allocation6 + $0x51] sm:$0xff] %vm513_vm10, %v14055_v58  ;;  %v14054_v36 = vsel %vm13990_vm4, %v13958_v34, %v14022_v29  ;;  %v13960_v14 = vadd.f32 %v25295_v31, %v13786_v0  ;;  %v14556_v52 = vmul.f32 %v25330_v47, %v25344_v59  ;;  %v14417_v46 = vld [vmem:[#allocation6 + $0x18] sm:$0xff] }
 0xa1d   : > { %v25355_v63 = vld [vmem:[#allocation6 + $0x20] sm:$0xff]  ;;  %v14657_v49 = vmul.f32 %v25336_v41, %v25346_v38  ;;  %14086 = vst.msk [vmem:[#allocation6 + $0x49] sm:$0xff] %vm513_vm10, %v14054_v36  ;;  %vm13993_vm5 = vcmp.gt.f32.partialorder %v13961_v17, 0.0  ;;  %v14025_v32 = vmul.f32 0.2, %v13961_v17  ;;  %v14454_v61 = vmul.f32 %v25341_v7, %v14417_v46 }
 0xa1e   : > { %v14518_v45 = vld [vmem:[#allocation6 + $0x19] sm:$0xff]  ;;  %v14455_v26 = vmul.f32 %v25341_v7, %v25355_v63  ;;  %vm13992_vm6 = vcmp.gt.f32.partialorder %v13960_v14, 0.0  ;;  %v14024_v23 = vmul.f32 0.2, %v13960_v14  ;;  %v19179_v56 = vpop.f32.mrb[40].mxu0 }
 0xa1f   : > { %v14619_v22 = vld [vmem:[#allocation6 + $0x1a] sm:$0xff]  ;;  %v14555_v16 = vmul.f32 %v25330_v47, %v14518_v45  ;;  %v14057_v3 = vsel %vm13993_vm5, %v13961_v17, %v14025_v32  ;;  %v13963_v35 = vadd.f32 %v19179_v56, %v25295_v31  ;;  %v13796_v19 = vpop.f32.mrb[41].mxu0  ;;  %v14486_v30 = vadd.f32 %v14454_v61, %v14385_v21 }
 0xa20   : > { %v14656_v15 = vmul.f32 %v25336_v41, %v14619_v22  ;;  %v14487_v27 = vadd.f32 %v14455_v26, %v14386_v5  ;;  %v25378_v39 = vld [vmem:[#allocation6 + $0x39] sm:$0xff]  ;;  %14089 = vst.msk [vmem:[#allocation6 + $0x69] sm:$0xff] %vm513_vm10, %v14057_v3  ;;  %v14056_v11 = vsel %vm13992_vm6, %v13960_v14, %v14024_v23  ;;  %v13962_v28 = vadd.f32 %v25295_v31, %v13796_v19  ;;  %v25390_v2 = vld [vmem:[#allocation6 + $0x30] sm:$0xff] }
 0xa21   : > { %v25380_v20 = vld [vmem:[#allocation6 + $0x3a] sm:$0xff]  ;;  %v14860_v9 = vmul.f32 %v25351_v1, %v25378_v39  ;;  %v25392_v43 = vld [vmem:[#allocation6 + $0x31] sm:$0xff]  ;;  %14088 = vst.msk [vmem:[#allocation6 + $0x61] sm:$0xff] %vm513_vm10, %v14056_v11  ;;  %vm13995_vm7 = vcmp.gt.f32.partialorder %v13963_v35, 0.0  ;;  %v14027_v25 = vmul.f32 0.2, %v13963_v35  ;;  %v14587_v62 = vadd.f32 %v14555_v16, %v14486_v30 }
 0xa22   : > { %v25384_v55 = vld [vmem:[#allocation6 + $0x38] sm:$0xff]  ;;  %v14961_v10 = vmul.f32 %v25367_v24, %v25380_v20  ;;  %v14588_v57 = vadd.f32 %v14556_v52, %v14487_v27  ;;  %vm13994_vm8 = vcmp.gt.f32.partialorder %v13962_v28, 0.0  ;;  %v14026_v13 = vmul.f32 0.2, %v13962_v28  ;;  %v19182_v12 = vpop.f32.mrb[42].mxu0 }
 0xa23   : > { %v14759_v60 = vmul.f32 %v25373_v48, %v25384_v55  ;;  %v25397_v33 = vld [vmem:[#allocation6 + $0x32] sm:$0xff]  ;;  %v14758_v50 = vmul.f32 %v25373_v48, %v25390_v2  ;;  %v14059_v51 = vsel %vm13995_vm7, %v13963_v35, %v14027_v25  ;;  %v13965_v44 = vadd.f32 %v19182_v12, %v25295_v31  ;;  %v13806_v53 = vpop.f32.mrb[43].mxu0 }
 0xa24   : > { %v14689_v6 = vadd.f32 %v14657_v49, %v14588_v57  ;;  %v14859_v8 = vmul.f32 %v25351_v1, %v25392_v43  ;;  %14091 = vst.msk [vmem:[#allocation6 + $0x81] sm:$0xff] %vm513_vm10, %v14059_v51  ;;  %v14058_v4 = vsel %vm13994_vm8, %v13962_v28, %v14026_v13  ;;  %v13964_v34 = vadd.f32 %v25295_v31, %v13806_v53  ;;  %v25422_v25 = vld [vmem:[#allocation6 + $0x48] sm:$0xff] }
 0xa25   : > { %v14688_v40 = vadd.f32 %v14656_v15, %v14587_v62  ;;  %v14960_v29 = vmul.f32 %v25367_v24, %v25397_v33  ;;  %14090 = vst.msk [vmem:[#allocation6 + $0x79] sm:$0xff] %vm513_vm10, %v14058_v4  ;;  %vm13997_vm9 = vcmp.gt.f32.partialorder %v13965_v44, 0.0  ;;  %v14029_v42 = vmul.f32 0.2, %v13965_v44  ;;  %v25427_v12 = vld [vmem:[#allocation6 + $0x49] sm:$0xff] }
 0xa26   : > { %v14791_v58 = vadd.f32 %v14759_v60, %v14689_v6  ;;  %v14153_v17 = vmul.f32 %v25301_v54, %v14417_v46  ;;  %vm13996_vm11 = vcmp.gt.f32.partialorder %v13964_v34, 0.0  ;;  %v14028_v0 = vmul.f32 0.2, %v13964_v34  ;;  %v19185_v5 = vpop.f32.mrb[44].mxu0 }
 0xa27   : > { %v14790_v21 = vadd.f32 %v14758_v50, %v14688_v40  ;;  %v14254_v36 = vmul.f32 %v25306_v18, %v14518_v45  ;;  %v14061_v14 = vsel %vm13997_vm9, %v13965_v44, %v14029_v42  ;;  %v13967_v52 = vadd.f32 %v19185_v5, %v25295_v31  ;;  %v13816_v49 = vpop.f32.mrb[45].mxu0 }
 0xa28   : > { %v14892_v32 = vadd.f32 %v14860_v9, %v14791_v58  ;;  %v14355_v26 = vmul.f32 %v25315_v37, %v14619_v22  ;;  %14093 = vst.msk [vmem:[#allocation6 + $0x99] sm:$0xff] %vm513_vm10, %v14061_v14  ;;  %v14060_v61 = vsel %vm13996_vm11, %v13964_v34, %v14028_v0  ;;  %v13966_v23 = vadd.f32 %v25295_v31, %v13816_v49  ;;  %v25441_v0 = vld [vmem:[#allocation6 + $0x4a] sm:$0xff] }
 0xa29   : > { %v14891_v56 = vadd.f32 %v14859_v8, %v14790_v21  ;;  %v14286_v46 = vadd.f32 %v14254_v36, %v14153_v17  ;;  %14092 = vst.msk [vmem:[#allocation6 + $0x91] sm:$0xff] %vm513_vm10, %v14060_v61  ;;  %vm13999_vm12 = vcmp.gt.f32.partialorder %v13967_v52, 0.0  ;;  %v14031_v16 = vmul.f32 0.2, %v13967_v52 }
 0xa2a   : > { %v14993_v15 = vadd.f32 %v14961_v10, %v14892_v32  ;;  %v14456_v45 = vmul.f32 %v25341_v7, %v25390_v2  ;;  %vm13998_vm3 = vcmp.gt.f32.partialorder %v13966_v23, 0.0  ;;  %v14030_v3 = vmul.f32 0.2, %v13966_v23  ;;  %v19188_v35 = vpop.f32.mrb[46].mxu0 }
 0xa2b   : > { %v14992_v19 = vadd.f32 %v14960_v29, %v14891_v56  ;;  %v14387_v22 = vadd.f32 %v14355_v26, %v14286_v46  ;;  %v14063_v27 = vsel %vm13999_vm12, %v13967_v52, %v14031_v16  ;;  %v13969_v30 = vadd.f32 %v19188_v35, %v25295_v31  ;;  %v13826_v11 = vpop.f32.mrb[47].mxu0 }
 0xa2c   : > { %v15027_v28 = vsel %vm513_vm10, %v14993_v15, 0.0  ;;  %v14557_v9 = vmul.f32 %v25330_v47, %v25392_v43  ;;  %14095 = vst.msk [vmem:[#allocation6 + $0xb1] sm:$0xff] %vm513_vm10, %v14063_v27  ;;  %v14062_v10 = vsel %vm13998_vm3, %v13966_v23, %v14030_v3  ;;  %v13968_v57 = vadd.f32 %v25295_v31, %v13826_v11  ;;  %v25460_v11 = vld [vmem:[#allocation6 + $0x51] sm:$0xff] }
 0xa2d   : > { %15028 = vadd.xlane.f32.xlu1 %v15027_v28  ;;  %v15024_v60 = vsel %vm513_vm10, %v14992_v19, 0.0  ;;  %v14488_v13 = vadd.f32 %v14456_v45, %v14387_v22  ;;  %14094 = vst.msk [vmem:[#allocation6 + $0xa9] sm:$0xff] %vm513_vm10, %v14062_v10  ;;  %vm14001_vm13 = vcmp.gt.f32.partialorder %v13969_v30, 0.0  ;;  %v14033_v62 = vmul.f32 0.2, %v13969_v30  ;;  %v25458_v22 = vld [vmem:[#allocation6 + $0x50] sm:$0xff] }
 0xa2e   : > { %15025 = vadd.xlane.f32.xlu0 %v15024_v60  ;;  %v14658_v50 = vmul.f32 %v25336_v41, %v25397_v33  ;;  %vm14000_vm14 = vcmp.gt.f32.partialorder %v13968_v57, 0.0  ;;  %v14032_v51 = vmul.f32 0.2, %v13968_v57  ;;  %v19191_v44 = vpop.f32.mrb[48].mxu0  ;;  %v14760_v6 = vmul.f32 %v25373_v48, %v25422_v25  ;;  %v25462_v28 = vld [vmem:[#allocation6 + $0x52] sm:$0xff] }
 0xa2f   : > { %v14589_v53 = vadd.f32 %v14557_v9, %v14488_v13  ;;  %v14065_v8 = vsel %vm14001_vm13, %v13969_v30, %v14033_v62  ;;  %v13971_v4 = vadd.f32 %v19191_v44, %v25295_v31  ;;  %v13836_v34 = vpop.f32.mrb[49].mxu0  ;;  %v14861_v40 = vmul.f32 %v25351_v1, %v25427_v12 }
 0xa30   : > { %v14154_v29 = vmul.f32 %v25301_v54, %v25355_v63  ;;  %14097 = vst.msk [vmem:[#allocation6 + $0xc9] sm:$0xff] %vm513_vm10, %v14065_v8  ;;  %v14064_v42 = vsel %vm14000_vm14, %v13968_v57, %v14032_v51  ;;  %v13970_v58 = vadd.f32 %v25295_v31, %v13836_v34  ;;  %v14255_v5 = vmul.f32 %v25306_v18, %v25344_v59 }
 0xa31   : > { %v14690_v17 = vadd.f32 %v14658_v50, %v14589_v53  ;;  %14096 = vst.msk [vmem:[#allocation6 + $0xc1] sm:$0xff] %vm513_vm10, %v14064_v42  ;;  %vm14003_vm15 = vcmp.gt.f32.partialorder %v13971_v4, 0.0  ;;  %v14035_v21 = vmul.f32 0.2, %v13971_v4  ;;  %v14356_v36 = vmul.f32 %v25315_v37, %v25346_v38 }
 0xa32   : > { %v14457_v63 = vmul.f32 %v25341_v7, %v25384_v55  ;;  %vm14002_vm1 = vcmp.gt.f32.partialorder %v13970_v58, 0.0  ;;  %v14034_v14 = vmul.f32 0.2, %v13970_v58  ;;  %v19194_v49 = vpop.f32.mrb[50].mxu0  ;;  %v14287_v32 = vadd.f32 %v14255_v5, %v14154_v29 }
 0xa33   : > { %v14792_v52 = vadd.f32 %v14760_v6, %v14690_v17  ;;  %v14067_v26 = vsel %vm14003_vm15, %v13971_v4, %v14035_v21  ;;  %v14962_v61 = vmul.f32 %v25367_v24, %v25441_v0  ;;  %v13973_v59 = vadd.f32 %v19194_v49, %v25295_v31  ;;  %v13846_v23 = vpop.f32.mrb[51].mxu0  ;;  %v25491_v21 = vld [vmem:[#allocation6 + $0x60] sm:$0xff] }
 0xa34   : > { %14099 = vst.msk [vmem:[#allocation6 + $0xe1] sm:$0xff] %vm513_vm10, %v14067_v26  ;;  %v14066_v56 = vsel %vm14002_vm1, %v13970_v58, %v14034_v14  ;;  %v13972_v38 = vadd.f32 %v25295_v31, %v13846_v23  ;;  %v14388_v16 = vadd.f32 %v14356_v36, %v14287_v32  ;;  %v14558_v45 = vmul.f32 %v25330_v47, %v25378_v39  ;;  %v25493_v36 = vld [vmem:[#allocation6 + $0x61] sm:$0xff] }
 0xa35   : > { %v14893_v46 = vadd.f32 %v14861_v40, %v14792_v52  ;;  %14098 = vst.msk [vmem:[#allocation6 + $0xd9] sm:$0xff] %vm513_vm10, %v14066_v56  ;;  %vm14005_vm2 = vcmp.gt.f32.partialorder %v13973_v59, 0.0  ;;  %v14037_v15 = vmul.f32 0.2, %v13973_v59  ;;  %v14155_v9 = vmul.f32 %v25301_v54, %v25390_v2  ;;  %v25499_v49 = vld [vmem:[#allocation6 + $0x62] sm:$0xff] }
 0xa36   : > { %vm14004_vm0 = vcmp.gt.f32.partialorder %v13972_v38, 0.0  ;;  %v14036_v35 = vmul.f32 0.2, %v13972_v38  ;;  %v14489_v19 = vadd.f32 %v14457_v63, %v14388_v16  ;;  %v19197_v27 = vpop.f32.mrb[52].mxu0  ;;  %v14256_v10 = vmul.f32 %v25306_v18, %v25392_v43 }
 0xa37   : > { %v14994_v3 = vadd.f32 %v14962_v61, %v14893_v46  ;;  %v14069_v30 = vsel %vm14005_vm2, %v13973_v59, %v14037_v15  ;;  %v13856_v57 = vpop.f32.mrb[53].mxu0  ;;  %v14659_v50 = vmul.f32 %v25336_v41, %v25380_v20  ;;  %v14761_v51 = vmul.f32 %v25373_v48, %v25458_v22 }
 0xa38   : > { %14101 = vst.msk [vmem:[#allocation6 + $0xf9] sm:$0xff] %vm513_vm10, %v14069_v30  ;;  %v14068_v13 = vsel %vm14004_vm0, %v13972_v38, %v14036_v35  ;;  %v14590_v62 = vadd.f32 %v14558_v45, %v14489_v19  ;;  %v14288_v2 = vadd.f32 %v14256_v10, %v14155_v9  ;;  %v14357_v43 = vmul.f32 %v25315_v37, %v25397_v33  ;;  %v25509_v38 = vld [vmem:[#allocation6 + $0x68] sm:$0xff] }
 0xa39   : > { %v15030_v60 = vsel %vm513_vm10, %v14994_v3, 0.0  ;;  %14100 = vst.msk [vmem:[#allocation6 + $0xf1] sm:$0xff] %vm513_vm10, %v14068_v13  ;;  %v14458_v44 = vmul.f32 %v25341_v7, %v25422_v25  ;;  %v14862_v6 = vmul.f32 %v25351_v1, %v25460_v11  ;;  %v14963_v8 = vmul.f32 %v25367_v24, %v25462_v28  ;;  %v25519_v30 = vld [vmem:[#allocation6 + $0x69] sm:$0xff] }
 0xa3a   : > { %15031 = vadd.xlane.f32.xlu0 %v15030_v60  ;;  %v14691_v53 = vadd.f32 %v14659_v50, %v14590_v62  ;;  %v14559_v4 = vmul.f32 %v25330_v47, %v25427_v12  ;;  %v19200_v34 = vpop.f32.mrb[54].mxu0  ;;  %v14389_v40 = vadd.f32 %v14357_v43, %v14288_v2  ;;  %v13975_v29 = vadd.f32 %v19197_v27, %v25295_v31 }
 0xa3b   : > { %v13974_v42 = vadd.f32 %v25295_v31, %v13856_v57  ;;  %v14156_v33 = vmul.f32 %v25301_v54, %v25384_v55  ;;  %v13866_v58 = vpop.f32.mrb[55].mxu0  ;;  %v14660_v5 = vmul.f32 %v25336_v41, %v25441_v0  ;;  %v14257_v63 = vmul.f32 %v25306_v18, %v25378_v39 }
 0xa3c   : > { %v14793_v17 = vadd.f32 %v14761_v51, %v14691_v53  ;;  %v14358_v14 = vmul.f32 %v25315_v37, %v25380_v20  ;;  %v14490_v52 = vadd.f32 %v14458_v44, %v14389_v40  ;;  %vm14007_vm4 = vcmp.gt.f32.partialorder %v13975_v29, 0.0 }
 0xa3d   : > { %v14039_v55 = vmul.f32 0.2, %v13975_v29  ;;  %vm14006_vm5 = vcmp.gt.f32.partialorder %v13974_v42, 0.0  ;;  %v14038_v26 = vmul.f32 0.2, %v13974_v42  ;;  %v14289_v61 = vadd.f32 %v14257_v63, %v14156_v33 }
 0xa3e   : > { %v14894_v32 = vadd.f32 %v14862_v6, %v14793_v17  ;;  %v14459_v59 = vmul.f32 %v25341_v7, %v25458_v22  ;;  %v25503_v23 = vpop.f32.mrb[56].mxu0  ;;  %v14591_v56 = vadd.f32 %v14559_v4, %v14490_v52  ;;  %v14762_v39 = vmul.f32 %v25373_v48, %v25491_v21  ;;  %v25554_v52 = vld [vmem:[#allocation6 + $0x6a] sm:$0xff] }
 0xa3f   : > { %v14863_v20 = vmul.f32 %v25351_v1, %v25493_v36  ;;  %v14071_v46 = vsel %vm14007_vm4, %v13975_v29, %v14039_v55  ;;  %v25511_v16 = vpop.f32.mrb[57].mxu0  ;;  %v14964_v45 = vmul.f32 %v25367_v24, %v25499_v49  ;;  %v14070_v3 = vsel %vm14006_vm5, %v13974_v42, %v14038_v26  ;;  %v25558_v26 = vld [vmem:[#allocation6 + $0x78] sm:$0xff] }
 0xa40   : > { %v14995_v15 = vadd.f32 %v14963_v8, %v14894_v32  ;;  %14103 = vst.msk [vmem:[#allocation6 + $0x111] sm:$0xff] %vm513_vm10, %v14071_v46  ;;  %v14390_v35 = vadd.f32 %v14358_v14, %v14289_v61  ;;  %v14692_v19 = vadd.f32 %v14660_v5, %v14591_v56  ;;  %14102 = vst.msk [vmem:[#allocation6 + $0x109] sm:$0xff] %vm513_vm10, %v14070_v3  ;;  %v25562_v61 = vld [vmem:[#allocation6 + $0x7a] sm:$0xff]  ;;  %vm15342_vm1 = vcmask 1041409  }
 0xa41   : > { %v14560_v27 = vmul.f32 %v25330_v47, %v25460_v11  ;;  %v14157_v9 = vmul.f32 %v25301_v54, %v25422_v25  ;;  %v14258_v10 = vmul.f32 %v25306_v18, %v25427_v12  ;;  %v14661_v13 = vmul.f32 %v25336_v41, %v25462_v28 }
 0xa42   : > { %v15033_v57 = vsel %vm513_vm10, %v14995_v15, 0.0  ;;  %v14491_v60 = vadd.f32 %v14459_v59, %v14390_v35  ;;  %v14763_v62 = vmul.f32 %v25373_v48, %v25509_v38  ;;  %v25530_v50 = vpop.f32.mrb[58].mxu0  ;;  %v14794_v51 = vadd.f32 %v14762_v39, %v14692_v19  ;;  %v25570_v35 = vld [vmem:[#allocation6 + $0x80] sm:$0xff] }
 0xa43   : > { %15034 = vadd.xlane.f32.xlu0 %v15033_v57  ;;  %v14290_v2 = vadd.f32 %v14258_v10, %v14157_v9  ;;  %v14359_v25 = vmul.f32 %v25315_v37, %v25441_v0  ;;  %v14460_v12 = vmul.f32 %v25341_v7, %v25491_v21  ;;  %v25536_v43 = vpop.f32.mrb[59].mxu0  ;;  %v14864_v53 = vmul.f32 %v25351_v1, %v25519_v30 }
 0xa44   : > { %v14592_v44 = vadd.f32 %v14560_v27, %v14491_v60  ;;  %v14561_v6 = vmul.f32 %v25330_v47, %v25493_v36  ;;  %v14662_v8 = vmul.f32 %v25336_v41, %v25499_v49  ;;  %v14895_v4 = vadd.f32 %v14863_v20, %v14794_v51  ;;  %v25581_v60 = vld [vmem:[#allocation6 + $0x81] sm:$0xff] }
 0xa45   : > { %v14391_v40 = vadd.f32 %v14359_v25, %v14290_v2  ;;  %v13977_v29 = vadd.f32 %v19200_v34, %v25295_v31  ;;  %v13976_v0 = vadd.f32 %v25295_v31, %v13866_v58  ;;  %v14158_v33 = vmul.f32 %v25301_v54, %v25458_v22  ;;  %v25560_v22 = vld [vmem:[#allocation6 + $0x79] sm:$0xff] }
 0xa46   : > { %v14693_v42 = vadd.f32 %v14661_v13, %v14592_v44  ;;  %v14259_v17 = vmul.f32 %v25306_v18, %v25460_v11  ;;  %v14360_v5 = vmul.f32 %v25315_v37, %v25462_v28  ;;  %v25552_v63 = vpop.f32.mrb[60].mxu0  ;;  %v14996_v14 = vadd.f32 %v14964_v45, %v14895_v4  ;;  %v25583_v13 = vld [vmem:[#allocation6 + $0x82] sm:$0xff] }
 0xa47   : > { %v14492_v55 = vadd.f32 %v14460_v12, %v14391_v40  ;;  %vm14009_vm6 = vcmp.gt.f32.partialorder %v13977_v29, 0.0  ;;  %v14041_v34 = vmul.f32 0.2, %v13977_v29  ;;  %v25556_v32 = vpop.f32.mrb[61].mxu0  ;;  %vm14008_vm7 = vcmp.gt.f32.partialorder %v13976_v0, 0.0 }
 0xa48   : > { %v14795_v58 = vadd.f32 %v14763_v62, %v14693_v42  ;;  %v14040_v11 = vmul.f32 0.2, %v13976_v0  ;;  %v14291_v28 = vadd.f32 %v14259_v17, %v14158_v33  ;;  %v15036_v59 = vsel %vm513_vm10, %v14996_v14, 0.0 }
 0xa49   : > { %v14593_v56 = vadd.f32 %v14561_v6, %v14492_v55  ;;  %v14073_v39 = vsel %vm14009_vm6, %v13977_v29, %v14041_v34  ;;  %v14461_v20 = vmul.f32 %v25341_v7, %v25509_v38  ;;  %15037 = vadd.xlane.f32.xlu1 %v15036_v59  ;;  %v14965_v15 = vmul.f32 %v25367_v24, %v25554_v52  ;;  %v25616_v59 = vld [vmem:[#allocation6 + $0x90] sm:$0xff] }
 0xa4a   : > { %v14896_v46 = vadd.f32 %v14864_v53, %v14795_v58  ;;  %14105 = vst.msk [vmem:[#allocation6 + $0x129] sm:$0xff] %vm513_vm10, %v14073_v39  ;;  %v14072_v45 = vsel %vm14008_vm7, %v13976_v0, %v14040_v11  ;;  %v14392_v3 = vadd.f32 %v14360_v5, %v14291_v28  ;;  %v25572_v19 = vpop.f32.mrb[62].mxu0  ;;  %v14764_v9 = vmul.f32 %v25373_v48, %v25558_v26 }
 0xa4b   : > { %v14694_v27 = vadd.f32 %v14662_v8, %v14593_v56  ;;  %v14865_v10 = vmul.f32 %v25351_v1, %v25560_v22  ;;  %v14966_v57 = vmul.f32 %v25367_v24, %v25562_v61  ;;  %14104 = vst.msk [vmem:[#allocation6 + $0x121] sm:$0xff] %vm513_vm10, %v14072_v45  ;;  %v25585_v62 = vpop.f32.mrb[63].mxu0  ;;  %v14562_v25 = vmul.f32 %v25330_v47, %v25519_v30 }
 0xa4c   : > { %v14997_v51 = vadd.f32 %v14965_v15, %v14896_v46  ;;  %v14493_v2 = vadd.f32 %v14461_v20, %v14392_v3  ;;  %v14159_v12 = vmul.f32 %v25301_v54, %v25491_v21  ;;  %v14663_v53 = vmul.f32 %v25336_v41, %v25554_v52  ;;  %v25619_v20 = vld [vmem:[#allocation6 + $0x91] sm:$0xff] }
 0xa4d   : > { %v14796_v44 = vadd.f32 %v14764_v9, %v14694_v27  ;;  %v14765_v6 = vmul.f32 %v25373_v48, %v25570_v35  ;;  %v14260_v8 = vmul.f32 %v25306_v18, %v25493_v36  ;;  %v14866_v29 = vmul.f32 %v25351_v1, %v25581_v60 }
 0xa4e   : > { %v15039_v4 = vsel %vm513_vm10, %v14997_v51, 0.0  ;;  %v14594_v40 = vadd.f32 %v14562_v25, %v14493_v2  ;;  %v14967_v0 = vmul.f32 %v25367_v24, %v25583_v13  ;;  %v14361_v33 = vmul.f32 %v25315_v37, %v25499_v49  ;;  %v25633_v51 = vld [vmem:[#allocation6 + $0x98] sm:$0xff] }
 0xa4f   : > { %15040 = vadd.xlane.f32.xlu0 %v15039_v4  ;;  %v14897_v21 = vadd.f32 %v14865_v10, %v14796_v44  ;;  %v14292_v42 = vadd.f32 %v14260_v8, %v14159_v12  ;;  %v14462_v17 = vmul.f32 %v25341_v7, %v25558_v26  ;;  %v14563_v36 = vmul.f32 %v25330_v47, %v25560_v22 }
 0xa50   : > { %v14695_v5 = vadd.f32 %v14663_v53, %v14594_v40  ;;  %v13979_v14 = vadd.f32 %v25503_v23, %v25295_v31  ;;  %v13978_v55 = vadd.f32 %v25295_v31, %v25511_v16  ;;  %v14160_v11 = vmul.f32 %v25301_v54, %v25509_v38  ;;  %v25621_v16 = vld [vmem:[#allocation6 + $0x92] sm:$0xff] }
 0xa51   : > { %v14998_v34 = vadd.f32 %v14966_v57, %v14897_v21  ;;  %v14393_v58 = vadd.f32 %v14361_v33, %v14292_v42  ;;  %v14261_v49 = vmul.f32 %v25306_v18, %v25519_v30  ;;  %v14362_v30 = vmul.f32 %v25315_v37, %v25554_v52 }
 0xa52   : > { %v14797_v28 = vadd.f32 %v14765_v6, %v14695_v5  ;;  %vm14011_vm8 = vcmp.gt.f32.partialorder %v13979_v14, 0.0  ;;  %v14043_v56 = vmul.f32 0.2, %v13979_v14  ;;  %vm14010_vm9 = vcmp.gt.f32.partialorder %v13978_v55, 0.0  ;;  %v25642_v6 = vld [vmem:[#allocation6 + $0x99] sm:$0xff] }
 0xa53   : > { %v15042_v39 = vsel %vm513_vm10, %v14998_v34, 0.0  ;;  %v14494_v23 = vadd.f32 %v14462_v17, %v14393_v58  ;;  %v14042_v46 = vmul.f32 0.2, %v13978_v55  ;;  %v14293_v15 = vadd.f32 %v14261_v49, %v14160_v11 }
 0xa54   : > { %15043 = vadd.xlane.f32.xlu1 %v15042_v39  ;;  %v14898_v38 = vadd.f32 %v14866_v29, %v14797_v28  ;;  %v14075_v45 = vsel %vm14011_vm8, %v13979_v14, %v14043_v56  ;;  %v14463_v3 = vmul.f32 %v25341_v7, %v25570_v35  ;;  %v14664_v9 = vmul.f32 %v25336_v41, %v25562_v61 }
 0xa55   : > { %v14595_v27 = vadd.f32 %v14563_v36, %v14494_v23  ;;  %v14766_v10 = vmul.f32 %v25373_v48, %v25616_v59  ;;  %14107 = vst.msk [vmem:[#allocation6 + $0x141] sm:$0xff] %vm513_vm10, %v14075_v45  ;;  %v14074_v57 = vsel %vm14010_vm9, %v13978_v55, %v14042_v46  ;;  %v14867_v52 = vmul.f32 %v25351_v1, %v25619_v20  ;;  %v25673_v23 = vld [vmem:[#allocation6 + $0x9a] sm:$0xff]  ;;  %v25679_v45 = vld [vmem:[#allocation6 + $0xaa] sm:$0xff] }
 0xa56   : > { %v14999_v2 = vadd.f32 %v14967_v0, %v14898_v38  ;;  %v14968_v25 = vmul.f32 %v25367_v24, %v25621_v16  ;;  %14106 = vst.msk [vmem:[#allocation6 + $0x139] sm:$0xff] %vm513_vm10, %v14074_v57  ;;  %v14394_v12 = vadd.f32 %v14362_v30, %v14293_v15  ;;  %v14564_v53 = vmul.f32 %v25330_v47, %v25581_v60  ;;  %v25675_v38 = vld [vmem:[#allocation6 + $0xa8] sm:$0xff] }
 0xa57   : > { %v14696_v44 = vadd.f32 %v14664_v9, %v14595_v27  ;;  %v14161_v8 = vmul.f32 %v25301_v54, %v25558_v26  ;;  %v14262_v4 = vmul.f32 %v25306_v18, %v25560_v22  ;;  %v14665_v0 = vmul.f32 %v25336_v41, %v25583_v13 }
 0xa58   : > { %v15045_v40 = vsel %vm513_vm10, %v14999_v2, 0.0  ;;  %v14495_v29 = vadd.f32 %v14463_v3, %v14394_v12  ;;  %v14767_v21 = vmul.f32 %v25373_v48, %v25633_v51  ;;  %v14363_v17 = vmul.f32 %v25315_v37, %v25562_v61 }
 0xa59   : > { %15046 = vadd.xlane.f32.xlu0 %v15045_v40  ;;  %v14798_v42 = vadd.f32 %v14766_v10, %v14696_v44  ;;  %v14294_v33 = vadd.f32 %v14262_v4, %v14161_v8  ;;  %v14464_v26 = vmul.f32 %v25341_v7, %v25616_v59  ;;  %v14868_v22 = vmul.f32 %v25351_v1, %v25642_v6  ;;  %v25696_v8 = vld [vmem:[#allocation6 + $0xb1] sm:$0xff] }
 0xa5a   : > { %v14596_v5 = vadd.f32 %v14564_v53, %v14495_v29  ;;  %v14565_v36 = vmul.f32 %v25330_v47, %v25619_v20  ;;  %v14666_v14 = vmul.f32 %v25336_v41, %v25621_v16  ;;  %v13981_v58 = vadd.f32 %v25530_v50, %v25295_v31  ;;  %v25698_v4 = vld [vmem:[#allocation6 + $0xb2] sm:$0xff] }
 0xa5b   : > { %v14899_v55 = vadd.f32 %v14867_v52, %v14798_v42  ;;  %v14395_v34 = vadd.f32 %v14363_v17, %v14294_v33  ;;  %v13980_v61 = vadd.f32 %v25295_v31, %v25536_v43  ;;  %v14162_v49 = vmul.f32 %v25301_v54, %v25570_v35  ;;  %v25677_v43 = vld [vmem:[#allocation6 + $0xa9] sm:$0xff] }
 0xa5c   : > { %v14697_v11 = vadd.f32 %v14665_v0, %v14596_v5  ;;  %v14263_v28 = vmul.f32 %v25306_v18, %v25581_v60  ;;  %v14364_v56 = vmul.f32 %v25315_v37, %v25583_v13  ;;  %vm14013_vm11 = vcmp.gt.f32.partialorder %v13981_v58, 0.0  ;;  %v25687_v52 = vld [vmem:[#allocation6 + $0xb0] sm:$0xff] }
 0xa5d   : > { %v15000_v39 = vadd.f32 %v14968_v25, %v14899_v55  ;;  %v14496_v46 = vadd.f32 %v14464_v26, %v14395_v34  ;;  %v14045_v15 = vmul.f32 0.2, %v13981_v58  ;;  %vm14012_vm12 = vcmp.gt.f32.partialorder %v13980_v61, 0.0 }
 0xa5e   : > { %v14799_v50 = vadd.f32 %v14767_v21, %v14697_v11  ;;  %v14044_v35 = vmul.f32 0.2, %v13980_v61  ;;  %v14295_v30 = vadd.f32 %v14263_v28, %v14162_v49  ;;  %v14465_v27 = vmul.f32 %v25341_v7, %v25633_v51 }
 0xa5f   : > { %v15048_v60 = vsel %vm513_vm10, %v15000_v39, 0.0  ;;  %v14597_v3 = vadd.f32 %v14565_v36, %v14496_v46  ;;  %v14077_v13 = vsel %vm14013_vm11, %v13981_v58, %v14045_v15  ;;  %v14969_v10 = vmul.f32 %v25367_v24, %v25673_v23  ;;  %v25729_v15 = vld [vmem:[#allocation6 + $0xc0] sm:$0xff] }
 0xa60   : > { %15049 = vadd.xlane.f32.xlu1 %v15048_v60  ;;  %v14900_v9 = vadd.f32 %v14868_v22, %v14799_v50  ;;  %14109 = vst.msk [vmem:[#allocation6 + $0x159] sm:$0xff] %vm513_vm10, %v14077_v13  ;;  %v14076_v57 = vsel %vm14012_vm12, %v13980_v61, %v14044_v35  ;;  %v14396_v2 = vadd.f32 %v14364_v56, %v14295_v30  ;;  %v25732_v30 = vld [vmem:[#allocation6 + $0xc1] sm:$0xff]  ;;  %vm15344_vm2 = vcmask 1042434  }
 0xa61   : > { %v14698_v25 = vadd.f32 %v14666_v14, %v14597_v3  ;;  %v14768_v12 = vmul.f32 %v25373_v48, %v25675_v38  ;;  %v14869_v44 = vmul.f32 %v25351_v1, %v25677_v43  ;;  %v14970_v53 = vmul.f32 %v25367_v24, %v25679_v45  ;;  %14108 = vst.msk [vmem:[#allocation6 + $0x151] sm:$0xff] %vm513_vm10, %v14076_v57 }
 0xa62   : > { %v15001_v40 = vadd.f32 %v14969_v10, %v14900_v9  ;;  %v14497_v29 = vadd.f32 %v14465_v27, %v14396_v2  ;;  %v14566_v0 = vmul.f32 %v25330_v47, %v25642_v6  ;;  %v14163_v21 = vmul.f32 %v25301_v54, %v25616_v59 }
 0xa63   : > { %v14800_v42 = vadd.f32 %v14768_v12, %v14698_v25  ;;  %v14667_v33 = vmul.f32 %v25336_v41, %v25673_v23  ;;  %v14769_v17 = vmul.f32 %v25373_v48, %v25687_v52  ;;  %v14264_v26 = vmul.f32 %v25306_v18, %v25619_v20  ;;  %v25746_v25 = vld [vmem:[#allocation6 + $0xc8] sm:$0xff] }
 0xa64   : > { %v15051_v5 = vsel %vm513_vm10, %v15001_v40, 0.0  ;;  %v14598_v22 = vadd.f32 %v14566_v0, %v14497_v29  ;;  %v14870_v36 = vmul.f32 %v25351_v1, %v25696_v8  ;;  %v14971_v14 = vmul.f32 %v25367_v24, %v25698_v4  ;;  %v25755_v0 = vld [vmem:[#allocation6 + $0xc9] sm:$0xff] }
 0xa65   : > { %15052 = vadd.xlane.f32.xlu0 %v15051_v5  ;;  %v14901_v59 = vadd.f32 %v14869_v44, %v14800_v42  ;;  %v14296_v55 = vadd.f32 %v14264_v26, %v14163_v21  ;;  %v14365_v34 = vmul.f32 %v25315_v37, %v25621_v16  ;;  %v14466_v58 = vmul.f32 %v25341_v7, %v25675_v38 }
 0xa66   : > { %v14699_v61 = vadd.f32 %v14667_v33, %v14598_v22  ;;  %v14567_v20 = vmul.f32 %v25330_v47, %v25677_v43  ;;  %v13983_v11 = vadd.f32 %v25552_v63, %v25295_v31  ;;  %v13982_v49 = vadd.f32 %v25295_v31, %v25556_v32  ;;  %v25734_v32 = vld [vmem:[#allocation6 + $0xc2] sm:$0xff] }
 0xa67   : > { %v15002_v28 = vadd.f32 %v14970_v53, %v14901_v59  ;;  %v14397_v56 = vadd.f32 %v14365_v34, %v14296_v55  ;;  %v14164_v39 = vmul.f32 %v25301_v54, %v25633_v51  ;;  %v14265_v16 = vmul.f32 %v25306_v18, %v25642_v6 }
 0xa68   : > { %v14801_v46 = vadd.f32 %v14769_v17, %v14699_v61  ;;  %vm14015_vm3 = vcmp.gt.f32.partialorder %v13983_v11, 0.0  ;;  %v14047_v50 = vmul.f32 0.2, %v13983_v11  ;;  %vm14014_vm13 = vcmp.gt.f32.partialorder %v13982_v49, 0.0 }
 0xa69   : > { %v15054_v35 = vsel %vm513_vm10, %v15002_v28, 0.0  ;;  %v14498_v63 = vadd.f32 %v14466_v58, %v14397_v56  ;;  %v14046_v60 = vmul.f32 0.2, %v13982_v49  ;;  %v14297_v3 = vadd.f32 %v14265_v16, %v14164_v39  ;;  %v14936_v16 = vld [vmem:[#allocation6 + $0xca] sm:$0xff] }
 0xa6a   : > { %15055 = vadd.xlane.f32.xlu1 %v15054_v35  ;;  %v14902_v51 = vadd.f32 %v14870_v36, %v14801_v46  ;;  %v14079_v13 = vsel %vm14015_vm3, %v13983_v11, %v14047_v50  ;;  %v14366_v6 = vmul.f32 %v25315_v37, %v25673_v23  ;;  %v14467_v27 = vmul.f32 %v25341_v7, %v25687_v52 }
 0xa6b   : > { %v14599_v9 = vadd.f32 %v14567_v20, %v14498_v63  ;;  %v14668_v10 = vmul.f32 %v25336_v41, %v25679_v45  ;;  %v14770_v57 = vmul.f32 %v25373_v48, %v25729_v15  ;;  %14111 = vst.msk [vmem:[#allocation6 + $0x171] sm:$0xff] %vm513_vm10, %v14079_v13  ;;  %v14078_v2 = vsel %vm14014_vm13, %v13982_v49, %v14046_v60 }
 0xa6c   : > { %v15003_v12 = vadd.f32 %v14971_v14, %v14902_v51  ;;  %v14871_v23 = vmul.f32 %v25351_v1, %v25732_v30  ;;  %v14972_v44 = vmul.f32 %v25367_v24, %v25734_v32  ;;  %14110 = vst.msk [vmem:[#allocation6 + $0x169] sm:$0xff] %vm513_vm10, %v14078_v2  ;;  %v14398_v53 = vadd.f32 %v14366_v6, %v14297_v3  ;;  %v25795_v6 = vld [vmem:[#allocation6 + $0xda] sm:$0xff] }
 0xa6d   : > { %v14700_v40 = vadd.f32 %v14668_v10, %v14599_v9  ;;  %v14568_v29 = vmul.f32 %v25330_v47, %v25696_v8  ;;  %v14165_v21 = vmul.f32 %v25301_v54, %v25675_v38  ;;  %v14266_v42 = vmul.f32 %v25306_v18, %v25677_v43 }
 0xa6e   : > { %v15057_v33 = vsel %vm513_vm10, %v15003_v12, 0.0  ;;  %v14499_v17 = vadd.f32 %v14467_v27, %v14398_v53  ;;  %v14669_v26 = vmul.f32 %v25336_v41, %v25698_v4  ;;  %v14771_v5 = vmul.f32 %v25373_v48, %v25746_v25  ;;  %v25811_v53 = vld [vmem:[%s26243_s9 + $0x1] ss:$0 sm:$0xff] }
 0xa6f   : > { %15058 = vadd.xlane.f32.xlu0 %v15057_v33  ;;  %v14802_v22 = vadd.f32 %v14770_v57, %v14700_v40  ;;  %v14298_v36 = vadd.f32 %v14266_v42, %v14165_v21  ;;  %v14367_v14 = vmul.f32 %v25315_v37, %v25679_v45  ;;  %v14468_v38 = vmul.f32 %v25341_v7, %v25729_v15  ;;  %v25803_v57 = vld [vmem:[%s26243_s9] ss:$0 sm:$0xff]  ;;  %v14837_v42 = vld [vmem:[#allocation6 + $0xe1] sm:$0xff] }
 0xa70   : > { %v14600_v59 = vadd.f32 %v14568_v29, %v14499_v17  ;;  %v14872_v43 = vmul.f32 %v25351_v1, %v25755_v0  ;;  %v14569_v55 = vmul.f32 %v25330_v47, %v25732_v30  ;;  %v14670_v34 = vmul.f32 %v25336_v41, %v25734_v32  ;;  %v25819_v33 = vld [vmem:[#allocation6 + $0xe2] sm:$0xff] }
 0xa71   : > { %v14903_v58 = vadd.f32 %v14871_v23, %v14802_v22  ;;  %v14399_v61 = vadd.f32 %v14367_v14, %v14298_v36  ;;  %v13985_v20 = vadd.f32 %v25572_v19, %v25295_v31  ;;  %v13984_v45 = vadd.f32 %v25295_v31, %v25585_v62  ;;  %v25786_v19 = vld [vmem:[#allocation6 + $0xd8] sm:$0xff] }
 0xa72   : > { %v14701_v11 = vadd.f32 %v14669_v26, %v14600_v59  ;;  %v14166_v49 = vmul.f32 %v25301_v54, %v25687_v52  ;;  %v14267_v28 = vmul.f32 %v25306_v18, %v25696_v8  ;;  %v14368_v56 = vmul.f32 %v25315_v37, %v25698_v4  ;;  %v14836_v4 = vld [vmem:[#allocation6 + $0xd9] sm:$0xff] }
 0xa73   : > { %v15004_v39 = vadd.f32 %v14972_v44, %v14903_v58  ;;  %v14500_v46 = vadd.f32 %v14468_v38, %v14399_v61  ;;  %vm14017_vm14 = vcmp.gt.f32.partialorder %v13985_v20, 0.0  ;;  %v14049_v50 = vmul.f32 0.2, %v13985_v20  ;;  %v14736_v44 = vld [vmem:[#allocation6 + $0xe0] sm:$0xff]  ;;  %v14838_v61 = vld [vmem:[#allocation6 + $0xf1] sm:$0xff] }
 0xa74   : > { %v14803_v35 = vadd.f32 %v14771_v5, %v14701_v11  ;;  %vm14016_vm15 = vcmp.gt.f32.partialorder %v13984_v45, 0.0  ;;  %v14048_v31 = vmul.f32 0.2, %v13984_v45  ;;  %v14299_v62 = vadd.f32 %v14267_v28, %v14166_v49  ;;  %v25824_v5 = vld [vmem:[%s26243_s9 + $0x2] ss:$0 sm:$0xff] }
 0xa75   : > { %v15060_v63 = vsel %vm513_vm10, %v15004_v39, 0.0  ;;  %v14601_v54 = vadd.f32 %v14569_v55, %v14500_v46  ;;  %v14081_v52 = vsel %vm14017_vm14, %v13985_v20, %v14049_v50  ;;  %v14469_v18 = vmul.f32 %v25341_v7, %v25746_v25  ;;  %v25851_v49 = vld [vmem:[%s26243_s9 + $0x4] ss:$0 sm:$0xff] }
 0xa76   : > { %15061 = vadd.xlane.f32.xlu1 %v15060_v63  ;;  %v14904_v37 = vadd.f32 %v14872_v43, %v14803_v35  ;;  %v14973_v8 = vmul.f32 %v25367_v24, %v14936_v16  ;;  %14113 = vst.msk [vmem:[#allocation6 + $0x189] sm:$0xff] %vm513_vm10, %v14081_v52  ;;  %v14080_v60 = vsel %vm14016_vm15, %v13984_v45, %v14048_v31  ;;  %v25872_v52 = vld [vmem:[#allocation6 + $0xf8] sm:$0xff]  ;;  %vm15346_vm0 = vcmask 1043459  }
 0xa77   : > { %v14400_v3 = vadd.f32 %v14368_v56, %v14299_v62  ;;  %v14702_v51 = vadd.f32 %v14670_v34, %v14601_v54  ;;  %v14772_v13 = vmul.f32 %v25373_v48, %v25786_v19  ;;  %14112 = vst.msk [vmem:[#allocation6 + $0x181] sm:$0xff] %vm513_vm10, %v14080_v60  ;;  %v14570_v10 = vmul.f32 %v25330_v47, %v25755_v0  ;;  %v25857_v56 = vld [vmem:[%s26243_s9 + $0x5] ss:$0 sm:$0xff]  ;;  %v25867_v62 = vld [vmem:[%s26243_s9 + $0x7] ss:$0 sm:$0xff]  ;;  %v14839_v60 = vld [vmem:[#allocation6 + $0xf9] sm:$0xff] }
 0xa78   : > { %v15005_v27 = vadd.f32 %v14973_v8, %v14904_v37  ;;  %v14167_v2 = vmul.f32 %v25803_v57, %v25729_v15  ;;  %v14873_v23 = vmul.f32 %v25351_v1, %v14836_v4  ;;  %v14268_v47 = vmul.f32 %v25811_v53, %v25732_v30 }
 0xa79   : > { %v14501_v9 = vadd.f32 %v14469_v18, %v14400_v3  ;;  %v14804_v12 = vadd.f32 %v14772_v13, %v14702_v51  ;;  %v14974_v29 = vmul.f32 %v25367_v24, %v25795_v6  ;;  %v14671_v15 = vmul.f32 %v25336_v41, %v14936_v16  ;;  %v25878_v51 = vld [vmem:[#allocation6 + $0xfa] sm:$0xff] }
 0xa7a   : > { %v15063_v40 = vsel %vm513_vm10, %v15005_v27, 0.0  ;;  %v14300_v26 = vadd.f32 %v14268_v47, %v14167_v2  ;;  %v14369_v30 = vmul.f32 %v25824_v5, %v25734_v32  ;;  %v14470_v22 = vmul.f32 %v25341_v7, %v25786_v19  ;;  %v14737_v32 = vld [vmem:[#allocation6 + $0xf0] sm:$0xff] }
 0xa7b   : > { %v14602_v21 = vadd.f32 %v14570_v10, %v14501_v9  ;;  %15064 = vadd.xlane.f32.xlu0 %v15063_v40  ;;  %v14905_v17 = vadd.f32 %v14873_v23, %v14804_v12  ;;  %v14773_v41 = vmul.f32 %v25373_v48, %v14736_v44  ;;  %v14168_v14 = vmul.f32 %v25803_v57, %v25746_v25  ;;  %v25838_v7 = vld [vmem:[#allocation6 + $0xf2] sm:$0xff]  ;;  %v25844_v25 = vld [vmem:[%s26243_s9 + $0x3] ss:$0 sm:$0xff]  ;;  %v25887_v10 = vld [vmem:[%s26243_s9 + $0x6] ss:$0 sm:$0xff] }
 0xa7c   : > { %v14269_v38 = vmul.f32 %v25811_v53, %v25755_v0  ;;  %v14874_v43 = vmul.f32 %v25351_v1, %v14837_v42  ;;  %v14975_v55 = vmul.f32 %v25367_v24, %v25819_v33  ;;  %v14401_v34 = vadd.f32 %v14369_v30, %v14300_v26  ;;  %v25893_v40 = vld [vmem:[#allocation6 + $0x108] sm:$0xff] }
 0xa7d   : > { %v14703_v36 = vadd.f32 %v14671_v15, %v14602_v21  ;;  %v15006_v59 = vadd.f32 %v14974_v29, %v14905_v17  ;;  %v14370_v45 = vmul.f32 %v25824_v5, %v14936_v16  ;;  %v14471_v0 = vmul.f32 %v25844_v25, %v14736_v44  ;;  %v25899_v15 = vld [vmem:[%s26243_s9 + $0x8] ss:$0 sm:$0xff] }
 0xa7e   : > { %v14301_v20 = vadd.f32 %v14269_v38, %v14168_v14  ;;  %v14502_v11 = vadd.f32 %v14470_v22, %v14401_v34  ;;  %v14571_v28 = vmul.f32 %v25851_v49, %v14836_v4  ;;  %v14672_v39 = vmul.f32 %v25857_v56, %v25795_v6  ;;  %v14840_v34 = vld [vmem:[#allocation6 + $0x109] sm:$0xff] }
 0xa7f   : > { %v14805_v58 = vadd.f32 %v14773_v41, %v14703_v36  ;;  %v15066_v1 = vsel %vm513_vm10, %v15006_v59, 0.0  ;;  %v14774_v46 = vmul.f32 %v25373_v48, %v14737_v32  ;;  %v14169_v35 = vmul.f32 %v25803_v57, %v25786_v19 }
 0xa80   : > { %15067 = vadd.xlane.f32.xlu1 %v15066_v1  ;;  %v14402_v50 = vadd.f32 %v14370_v45, %v14301_v20  ;;  %v14603_v31 = vadd.f32 %v14571_v28, %v14502_v11  ;;  %v14875_v63 = vmul.f32 %v25867_v62, %v14838_v61  ;;  %v14976_v54 = vmul.f32 %v25367_v24, %v25838_v7  ;;  %v25915_v1 = vld [vmem:[#allocation6 + $0x110] sm:$0xff] }
 0xa81   : > { %v14906_v16 = vadd.f32 %v14874_v43, %v14805_v58  ;;  %v14270_v18 = vmul.f32 %v25811_v53, %v14836_v4  ;;  %v14572_v8 = vmul.f32 %v25851_v49, %v14837_v42  ;;  %v14673_v19 = vmul.f32 %v25857_v56, %v25819_v33  ;;  %v14941_v58 = vld [vmem:[#allocation6 + $0x10a] sm:$0xff] }
 0xa82   : > { %v14503_v37 = vadd.f32 %v14471_v0, %v14402_v50  ;;  %v14704_v3 = vadd.f32 %v14672_v39, %v14603_v31  ;;  %v14371_v27 = vmul.f32 %v25824_v5, %v25795_v6  ;;  %v14472_v24 = vmul.f32 %v25844_v25, %v14737_v32 }
 0xa83   : > { %v15007_v48 = vadd.f32 %v14975_v55, %v14906_v16  ;;  %v14302_v13 = vadd.f32 %v14270_v18, %v14169_v35  ;;  %v14775_v2 = vmul.f32 %v25887_v10, %v25872_v52  ;;  %v14170_v12 = vmul.f32 %v25803_v57, %v14736_v44 }
 0xa84   : > { %v14604_v4 = vadd.f32 %v14572_v8, %v14503_v37  ;;  %v14806_v23 = vadd.f32 %v14774_v46, %v14704_v3  ;;  %v14876_v47 = vmul.f32 %v25867_v62, %v14839_v60  ;;  %v14271_v29 = vmul.f32 %v25811_v53, %v14837_v42  ;;  %v14841_v46 = vld [vmem:[#allocation6 + $0x111] sm:$0xff] }
 0xa85   : > { %v15069_v9 = vsel %vm513_vm10, %v15007_v48, 0.0  ;;  %v14403_v6 = vadd.f32 %v14371_v27, %v14302_v13  ;;  %v14977_v17 = vmul.f32 %v25899_v15, %v25878_v51  ;;  %v14573_v44 = vmul.f32 %v25851_v49, %v14838_v61  ;;  %v14942_v48 = vld [vmem:[#allocation6 + $0x112] sm:$0xff] }
 0xa86   : > { %15070 = vadd.xlane.f32.xlu0 %v15069_v9  ;;  %v14705_v21 = vadd.f32 %v14673_v19, %v14604_v4  ;;  %v14372_v26 = vmul.f32 %v25824_v5, %v25819_v33  ;;  %v14907_v30 = vadd.f32 %v14875_v63, %v14806_v23  ;;  %v14303_v36 = vadd.f32 %v14271_v29, %v14170_v12 }
 0xa87   : > { %v14504_v22 = vadd.f32 %v14472_v24, %v14403_v6  ;;  %v14473_v42 = vmul.f32 %v25844_v25, %v25872_v52  ;;  %v14674_v14 = vmul.f32 %v25857_v56, %v25838_v7  ;;  %v14776_v38 = vmul.f32 %v25887_v10, %v25893_v40 }
 0xa88   : > { %v14807_v41 = vadd.f32 %v14775_v2, %v14705_v21  ;;  %v14171_v59 = vmul.f32 %v25803_v57, %v14737_v32  ;;  %v15008_v43 = vadd.f32 %v14976_v54, %v14907_v30  ;;  %v14404_v33 = vadd.f32 %v14372_v26, %v14303_v36  ;;  %v14741_v2 = vld [vmem:[#allocation6 + $0x120] sm:$0xff] }
 0xa89   : > { %v14605_v55 = vadd.f32 %v14573_v44, %v14504_v22  ;;  %v14272_v20 = vmul.f32 %v25811_v53, %v14838_v61  ;;  %v14574_v0 = vmul.f32 %v25851_v49, %v14839_v60  ;;  %v14373_v11 = vmul.f32 %v25824_v5, %v25838_v7  ;;  %v14842_v44 = vld [vmem:[#allocation6 + $0x121] sm:$0xff] }
 0xa8a   : > { %v14908_v45 = vadd.f32 %v14876_v47, %v14807_v41  ;;  %v14474_v28 = vmul.f32 %v25844_v25, %v25893_v40  ;;  %v15072_v32 = vsel %vm513_vm10, %v15008_v43, 0.0  ;;  %v14505_v16 = vadd.f32 %v14473_v42, %v14404_v33  ;;  %v14943_v26 = vld [vmem:[#allocation6 + $0x122] sm:$0xff] }
 0xa8b   : > { %v14706_v39 = vadd.f32 %v14674_v14, %v14605_v55  ;;  %v14304_v50 = vadd.f32 %v14272_v20, %v14171_v59  ;;  %15073 = vadd.xlane.f32.xlu1 %v15072_v32  ;;  %v14877_v61 = vmul.f32 %v25867_v62, %v14840_v34  ;;  %v14978_v31 = vmul.f32 %v25899_v15, %v14941_v58 }
 0xa8c   : > { %v15009_v35 = vadd.f32 %v14977_v17, %v14908_v45  ;;  %v14675_v63 = vmul.f32 %v25857_v56, %v25878_v51  ;;  %v14606_v7 = vadd.f32 %v14574_v0, %v14505_v16  ;;  %v14777_v18 = vmul.f32 %v25887_v10, %v25915_v1  ;;  %v14843_v0 = vld [vmem:[#allocation6 + $0x129] sm:$0xff] }
 0xa8d   : > { %v14808_v54 = vadd.f32 %v14776_v38, %v14706_v39  ;;  %v14405_v37 = vadd.f32 %v14373_v11, %v14304_v50  ;;  %v14878_v19 = vmul.f32 %v25867_v62, %v14841_v46  ;;  %v14172_v3 = vmul.f32 %v25803_v57, %v25872_v52  ;;  %v14742_v38 = vld [vmem:[#allocation6 + $0x128] sm:$0xff] }
 0xa8e   : > { %v15075_v8 = vsel %vm513_vm10, %v15009_v35, 0.0  ;;  %v14273_v13 = vmul.f32 %v25811_v53, %v14839_v60  ;;  %v14707_v24 = vadd.f32 %v14675_v63, %v14606_v7  ;;  %v14575_v4 = vmul.f32 %v25851_v49, %v14840_v34  ;;  %v14944_v35 = vld [vmem:[#allocation6 + $0x12a] sm:$0xff] }
 0xa8f   : > { %15076 = vadd.xlane.f32.xlu0 %v15075_v8  ;;  %v14909_v27 = vadd.f32 %v14877_v61, %v14808_v54  ;;  %v14506_v9 = vadd.f32 %v14474_v28, %v14405_v37  ;;  %v14979_v12 = vmul.f32 %v25899_v15, %v14942_v48  ;;  %v14374_v47 = vmul.f32 %v25824_v5, %v25878_v51  ;;  %v14844_v8 = vld [vmem:[#allocation6 + $0x139] sm:$0xff] }
 0xa90   : > { %v14305_v23 = vadd.f32 %v14273_v13, %v14172_v3  ;;  %v14475_v6 = vmul.f32 %v25844_v25, %v25915_v1  ;;  %v14809_v52 = vadd.f32 %v14777_v18, %v14707_v24  ;;  %v14676_v60 = vmul.f32 %v25857_v56, %v14941_v58  ;;  %v14743_v18 = vld [vmem:[#allocation6 + $0x138] sm:$0xff] }
 0xa91   : > { %v15010_v29 = vadd.f32 %v14978_v31, %v14909_v27  ;;  %v14607_v21 = vadd.f32 %v14575_v4, %v14506_v9  ;;  %v14778_v17 = vmul.f32 %v25887_v10, %v14741_v2  ;;  %v14173_v22 = vmul.f32 %v25803_v57, %v25893_v40  ;;  %v25962_v9 = vld [vmem:[#allocation6 + $0x13a] sm:$0xff] }
 0xa92   : > { %v14406_v30 = vadd.f32 %v14374_v47, %v14305_v23  ;;  %v14274_v36 = vmul.f32 %v25811_v53, %v14840_v34  ;;  %v14910_v42 = vadd.f32 %v14878_v19, %v14809_v52  ;;  %v14576_v14 = vmul.f32 %v25851_v49, %v14841_v46  ;;  %v14744_v52 = vld [vmem:[#allocation6 + $0x140] sm:$0xff] }
 0xa93   : > { %v15078_v51 = vsel %vm513_vm10, %v15010_v29, 0.0  ;;  %v14708_v41 = vadd.f32 %v14676_v60, %v14607_v21  ;;  %v14375_v55 = vmul.f32 %v25824_v5, %v14941_v58  ;;  %v14476_v33 = vmul.f32 %v25844_v25, %v14741_v2 }
 0xa94   : > { %15079 = vadd.xlane.f32.xlu1 %v15078_v51  ;;  %v14507_v59 = vadd.f32 %v14475_v6, %v14406_v30  ;;  %v14306_v43 = vadd.f32 %v14274_v36, %v14173_v22  ;;  %v15011_v20 = vadd.f32 %v14979_v12, %v14910_v42  ;;  %v14879_v40 = vmul.f32 %v25867_v62, %v14842_v44  ;;  %v14845_v42 = vld [vmem:[#allocation6 + $0x141] sm:$0xff] }
 0xa95   : > { %v14810_v45 = vadd.f32 %v14778_v17, %v14708_v41  ;;  %v14980_v34 = vmul.f32 %v25899_v15, %v14943_v26  ;;  %v14677_v28 = vmul.f32 %v25857_v56, %v14942_v48  ;;  %v14779_v32 = vmul.f32 %v25887_v10, %v14742_v38 }
 0xa96   : > { %v14608_v11 = vadd.f32 %v14576_v14, %v14507_v59  ;;  %v14407_v39 = vadd.f32 %v14375_v55, %v14306_v43  ;;  %v15081_v16 = vsel %vm513_vm10, %v15011_v20, 0.0  ;;  %v14174_v58 = vmul.f32 %v25803_v57, %v25915_v1  ;;  %v14946_v20 = vld [vmem:[#allocation6 + $0x142] sm:$0xff] }
 0xa97   : > { %v14911_v50 = vadd.f32 %v14879_v40, %v14810_v45  ;;  %v14275_v61 = vmul.f32 %v25811_v53, %v14841_v46  ;;  %15082 = vadd.xlane.f32.xlu0 %v15081_v16  ;;  %v14880_v63 = vmul.f32 %v25867_v62, %v14843_v0  ;;  %v14577_v7 = vmul.f32 %v25851_v49, %v14842_v44  ;;  %v25978_v40 = vld [vmem:[#allocation6 + $0x150] sm:$0xff] }
 0xa98   : > { %v14709_v31 = vadd.f32 %v14677_v28, %v14608_v11  ;;  %v14508_v54 = vadd.f32 %v14476_v33, %v14407_v39  ;;  %v14376_v3 = vmul.f32 %v25824_v5, %v14942_v48  ;;  %v14477_v13 = vmul.f32 %v25844_v25, %v14742_v38 }
 0xa99   : > { %v15012_v37 = vadd.f32 %v14980_v34, %v14911_v50  ;;  %v14307_v19 = vadd.f32 %v14275_v61, %v14174_v58  ;;  %v14981_v1 = vmul.f32 %v25899_v15, %v14944_v35  ;;  %v14678_v46 = vmul.f32 %v25857_v56, %v14943_v26  ;;  %v14947_v50 = vld [vmem:[#allocation6 + $0x152] sm:$0xff] }
 0xa9a   : > { %v14811_v27 = vadd.f32 %v14779_v32, %v14709_v31  ;;  %v14609_v24 = vadd.f32 %v14577_v7, %v14508_v54  ;;  %v14780_v12 = vmul.f32 %v25887_v10, %v14743_v18  ;;  %v14175_v47 = vmul.f32 %v25803_v57, %v14741_v2 }
 0xa9b   : > { %v15084_v4 = vsel %vm513_vm10, %v15012_v37, 0.0  ;;  %v14408_v23 = vadd.f32 %v14376_v3, %v14307_v19  ;;  %v14881_v29 = vmul.f32 %v25867_v62, %v14844_v8  ;;  %v14276_v21 = vmul.f32 %v25811_v53, %v14842_v44 }
 0xa9c   : > { %15085 = vadd.xlane.f32.xlu1 %v15084_v4  ;;  %v14912_v6 = vadd.f32 %v14880_v63, %v14811_v27  ;;  %v14710_v48 = vadd.f32 %v14678_v46, %v14609_v24  ;;  %v14982_v60 = vmul.f32 %v25899_v15, %v25962_v9  ;;  %v14578_v30 = vmul.f32 %v25851_v49, %v14843_v0 }
 0xa9d   : > { %v14509_v17 = vadd.f32 %v14477_v13, %v14408_v23  ;;  %v14377_v22 = vmul.f32 %v25824_v5, %v14943_v26  ;;  %v14308_v2 = vadd.f32 %v14276_v21, %v14175_v47  ;;  %v14478_v41 = vmul.f32 %v25844_v25, %v14743_v18  ;;  %v14847_v47 = vld [vmem:[#allocation6 + $0x159] sm:$0xff] }
 0xa9e   : > { %v15013_v36 = vadd.f32 %v14981_v1, %v14912_v6  ;;  %v14812_v51 = vadd.f32 %v14780_v12, %v14710_v48  ;;  %v14679_v59 = vmul.f32 %v25857_v56, %v14944_v35  ;;  %v14781_v43 = vmul.f32 %v25887_v10, %v14744_v52  ;;  %v14746_v1 = vld [vmem:[#allocation6 + $0x158] sm:$0xff] }
 0xa9f   : > { %v14610_v14 = vadd.f32 %v14578_v30, %v14509_v17  ;;  %v14176_v44 = vmul.f32 %v25803_v57, %v14742_v38  ;;  %v14409_v45 = vadd.f32 %v14377_v22, %v14308_v2  ;;  %v14277_v26 = vmul.f32 %v25811_v53, %v14843_v0  ;;  %v14846_v38 = vld [vmem:[#allocation6 + $0x151] sm:$0xff]  ;;  %v25997_v48 = vld [vmem:[#allocation6 + $0x15a] sm:$0xff]  ;;  %v26007_v2 = vld [vmem:[#allocation6 + $0x168] sm:$0xff] }
 0xaa0   : > { %v15087_v55 = vsel %vm513_vm10, %v15013_v36, 0.0  ;;  %v14913_v33 = vadd.f32 %v14881_v29, %v14812_v51  ;;  %v14882_v11 = vmul.f32 %v25867_v62, %v14845_v42  ;;  %v14579_v28 = vmul.f32 %v25851_v49, %v14844_v8 }
 0xaa1   : > { %15088 = vadd.xlane.f32.xlu0 %v15087_v55  ;;  %v14711_v34 = vadd.f32 %v14679_v59, %v14610_v14  ;;  %v14378_v32 = vmul.f32 %v25824_v5, %v14944_v35  ;;  %v14510_v16 = vadd.f32 %v14478_v41, %v14409_v45  ;;  %v14309_v58 = vadd.f32 %v14277_v26, %v14176_v44 }
 0xaa2   : > { %v15014_v39 = vadd.f32 %v14982_v60, %v14913_v33  ;;  %v14479_v61 = vmul.f32 %v25844_v25, %v14744_v52  ;;  %v14983_v63 = vmul.f32 %v25899_v15, %v14946_v20  ;;  %v14680_v0 = vmul.f32 %v25857_v56, %v25962_v9 }
 0xaa3   : > { %v14813_v31 = vadd.f32 %v14781_v43, %v14711_v34  ;;  %v14782_v54 = vmul.f32 %v25887_v10, %v25978_v40  ;;  %v14611_v37 = vadd.f32 %v14579_v28, %v14510_v16  ;;  %v14410_v35 = vadd.f32 %v14378_v32, %v14309_v58  ;;  %v14848_v28 = vld [vmem:[#allocation6 + $0x169] sm:$0xff] }
 0xaa4   : > { %v15090_v7 = vsel %vm513_vm10, %v15014_v39, 0.0  ;;  %v14177_v19 = vmul.f32 %v25803_v57, %v14743_v18  ;;  %v14883_v13 = vmul.f32 %v25867_v62, %v14846_v38  ;;  %v14984_v27 = vmul.f32 %v25899_v15, %v14947_v50  ;;  %v14949_v32 = vld [vmem:[#allocation6 + $0x16a] sm:$0xff] }
 0xaa5   : > { %15091 = vadd.xlane.f32.xlu1 %v15090_v7  ;;  %v14914_v3 = vadd.f32 %v14882_v11, %v14813_v31  ;;  %v14278_v24 = vmul.f32 %v25811_v53, %v14844_v8  ;;  %v14712_v46 = vadd.f32 %v14680_v0, %v14611_v37  ;;  %v14511_v4 = vadd.f32 %v14479_v61, %v14410_v35  ;;  %v14849_v37 = vld [vmem:[#allocation6 + $0x171] sm:$0xff] }
 0xaa6   : > { %v14580_v12 = vmul.f32 %v25851_v49, %v14845_v42  ;;  %v14681_v23 = vmul.f32 %v25857_v56, %v14946_v20  ;;  %v14379_v29 = vmul.f32 %v25824_v5, %v25962_v9  ;;  %v14480_v21 = vmul.f32 %v25844_v25, %v25978_v40 }
 0xaa7   : > { %v15015_v6 = vadd.f32 %v14983_v63, %v14914_v3  ;;  %v14310_v18 = vadd.f32 %v14278_v24, %v14177_v19  ;;  %v14814_v60 = vadd.f32 %v14782_v54, %v14712_v46  ;;  %v14783_v8 = vmul.f32 %v25887_v10, %v14746_v1  ;;  %v26023_v63 = vld [vmem:[#allocation6 + $0x170] sm:$0xff] }
 0xaa8   : > { %v14612_v17 = vadd.f32 %v14580_v12, %v14511_v4  ;;  %v14178_v30 = vmul.f32 %v25803_v57, %v14744_v52  ;;  %v14884_v36 = vmul.f32 %v25867_v62, %v14847_v47  ;;  %v14279_v41 = vmul.f32 %v25811_v53, %v14845_v42  ;;  %v14950_v46 = vld [vmem:[#allocation6 + $0x172] sm:$0xff] }
 0xaa9   : > { %v15093_v22 = vsel %vm513_vm10, %v15015_v6, 0.0  ;;  %v14411_v51 = vadd.f32 %v14379_v29, %v14310_v18  ;;  %v14915_v9 = vadd.f32 %v14883_v13, %v14814_v60  ;;  %v14985_v59 = vmul.f32 %v25899_v15, %v25997_v48 }
 0xaaa   : > { %15094 = vadd.xlane.f32.xlu0 %v15093_v22  ;;  %v14713_v14 = vadd.f32 %v14681_v23, %v14612_v17  ;;  %v14581_v43 = vmul.f32 %v25851_v49, %v14846_v38  ;;  %v14311_v55 = vadd.f32 %v14279_v41, %v14178_v30  ;;  %v14380_v52 = vmul.f32 %v25824_v5, %v14946_v20 }
 0xaab   : > { %v14512_v44 = vadd.f32 %v14480_v21, %v14411_v51  ;;  %v14481_v33 = vmul.f32 %v25844_v25, %v14746_v1  ;;  %v15016_v45 = vadd.f32 %v14984_v27, %v14915_v9  ;;  %v14682_v34 = vmul.f32 %v25857_v56, %v14947_v50 }
 0xaac   : > { %v14815_v26 = vadd.f32 %v14783_v8, %v14713_v14  ;;  %v14784_v42 = vmul.f32 %v25887_v10, %v26007_v2  ;;  %v14412_v39 = vadd.f32 %v14380_v52, %v14311_v55  ;;  %v14179_v16 = vmul.f32 %v25803_v57, %v25978_v40  ;;  %v14749_v8 = vld [vmem:[#allocation6 + $0x180] sm:$0xff] }
 0xaad   : > { %v14613_v11 = vadd.f32 %v14581_v43, %v14512_v44  ;;  %v14280_v58 = vmul.f32 %v25811_v53, %v14846_v38  ;;  %v15096_v20 = vsel %vm513_vm10, %v15016_v45, 0.0  ;;  %v14582_v31 = vmul.f32 %v25851_v49, %v14847_v47  ;;  %v14951_v43 = vld [vmem:[#allocation6 + $0x182] sm:$0xff] }
 0xaae   : > { %v14916_v61 = vadd.f32 %v14884_v36, %v14815_v26  ;;  %v14381_v0 = vmul.f32 %v25824_v5, %v14947_v50  ;;  %15097 = vadd.xlane.f32.xlu1 %v15096_v20  ;;  %v14513_v7 = vadd.f32 %v14481_v33, %v14412_v39  ;;  %v14482_v19 = vmul.f32 %v25844_v25, %v26007_v2 }
 0xaaf   : > { %v14714_v54 = vadd.f32 %v14682_v34, %v14613_v11  ;;  %v14312_v35 = vadd.f32 %v14280_v58, %v14179_v16  ;;  %v14885_v38 = vmul.f32 %v25867_v62, %v14848_v28  ;;  %v14986_v3 = vmul.f32 %v25899_v15, %v14949_v32  ;;  %v14750_v34 = vld [vmem:[#allocation6 + $0x188] sm:$0xff] }
 0xab0   : > { %v15017_v40 = vadd.f32 %v14985_v59, %v14916_v61  ;;  %v14683_v13 = vmul.f32 %v25857_v56, %v25997_v48  ;;  %v14614_v24 = vadd.f32 %v14582_v31, %v14513_v7  ;;  %v14785_v50 = vmul.f32 %v25887_v10, %v26023_v63  ;;  %v14850_v59 = vld [vmem:[#allocation6 + $0x181] sm:$0xff]  ;;  %v14851_v61 = vld [vmem:[#allocation6 + $0x189] sm:$0xff] }
 0xab1   : > { %v14816_v27 = vadd.f32 %v14784_v42, %v14714_v54  ;;  %v14413_v4 = vadd.f32 %v14381_v0, %v14312_v35  ;;  %v14886_v23 = vmul.f32 %v25867_v62, %v14849_v37  ;;  %v14180_v6 = vmul.f32 %v25803_v57, %v14746_v1 }
 0xab2   : > { %v15099_v12 = vsel %vm513_vm10, %v15017_v40, 0.0  ;;  %v14281_v18 = vmul.f32 %v25811_v53, %v14847_v47  ;;  %v14715_v21 = vadd.f32 %v14683_v13, %v14614_v24  ;;  %v14583_v17 = vmul.f32 %v25851_v49, %v14848_v28  ;;  %v14751_v40 = vld [vmem:[#allocation6 + $0x198] sm:$0xff] }
 0xab3   : > { %15100 = vadd.xlane.f32.xlu0 %v15099_v12  ;;  %v14917_v29 = vadd.f32 %v14885_v38, %v14816_v27  ;;  %v14514_v60 = vadd.f32 %v14482_v19, %v14413_v4  ;;  %v14987_v30 = vmul.f32 %v25899_v15, %v14950_v46  ;;  %v14382_v36 = vmul.f32 %v25824_v5, %v25997_v48  ;;  %v14952_v4 = vld [vmem:[#allocation6 + $0x18a] sm:$0xff]  ;;  %v14852_v12 = vld [vmem:[#allocation6 + $0x199] sm:$0xff] }
 0xab4   : > { %v14313_v22 = vadd.f32 %v14281_v18, %v14180_v6  ;;  %v14483_v51 = vmul.f32 %v25844_v25, %v26023_v63  ;;  %v14817_v1 = vadd.f32 %v14785_v50, %v14715_v21  ;;  %v14684_v47 = vmul.f32 %v25857_v56, %v14949_v32 }
 0xab5   : > { %v15018_v41 = vadd.f32 %v14986_v3, %v14917_v29  ;;  %v14615_v9 = vadd.f32 %v14583_v17, %v14514_v60  ;;  %v14786_v14 = vmul.f32 %v25887_v10, %v14749_v8  ;;  %v14181_v55 = vmul.f32 %v25803_v57, %v26007_v2 }
 0xab6   : > { %v14414_v44 = vadd.f32 %v14382_v36, %v14313_v22  ;;  %v14282_v52 = vmul.f32 %v25811_v53, %v14848_v28  ;;  %v14918_v33 = vadd.f32 %v14886_v23, %v14817_v1  ;;  %v14584_v26 = vmul.f32 %v25851_v49, %v14849_v37  ;;  %v14853_v1 = vld [vmem:[#allocation6 + $0x1a1] sm:$0xff] }
 0xab7   : > { %v15102_v48 = vsel %vm513_vm10, %v15018_v41, 0.0  ;;  %v14716_v45 = vadd.f32 %v14684_v47, %v14615_v9  ;;  %v14383_v39 = vmul.f32 %v25824_v5, %v14949_v32  ;;  %v14484_v16 = vmul.f32 %v25844_v25, %v14749_v8 }
 0xab8   : > { %15103 = vadd.xlane.f32.xlu1 %v15102_v48  ;;  %v14515_v42 = vadd.f32 %v14483_v51, %v14414_v44  ;;  %v14314_v11 = vadd.f32 %v14282_v52, %v14181_v55  ;;  %v15019_v58 = vadd.f32 %v14987_v30, %v14918_v33  ;;  %v14887_v2 = vmul.f32 %v25867_v62, %v14850_v59  ;;  %v14954_v44 = vld [vmem:[#allocation6 + $0x1a2] sm:$0xff] }
 0xab9   : > { %v14818_v20 = vadd.f32 %v14786_v14, %v14716_v45  ;;  %v14988_v28 = vmul.f32 %v25899_v15, %v14951_v43  ;;  %v14685_v0 = vmul.f32 %v25857_v56, %v14950_v46  ;;  %v14787_v54 = vmul.f32 %v25887_v10, %v14750_v34 }
 0xaba   : > { %v14616_v31 = vadd.f32 %v14584_v26, %v14515_v42  ;;  %v14415_v7 = vadd.f32 %v14383_v39, %v14314_v11  ;;  %v15105_v35 = vsel %vm513_vm10, %v15019_v58, 0.0  ;;  %v14182_v32 = vmul.f32 %v25803_v57, %v26023_v63  ;;  %v15029_v11 = vpop.xlane.xlu1 %15028 }
 0xabb   : > { %v14919_v19 = vadd.f32 %v14887_v2, %v14818_v20  ;;  %v14283_v38 = vmul.f32 %v25811_v53, %v14849_v37  ;;  %15106 = vadd.xlane.f32.xlu0 %v15105_v35  ;;  %v14888_v13 = vmul.f32 %v25867_v62, %v14851_v61  ;;  %v14585_v24 = vmul.f32 %v25851_v49, %v14850_v59  ;;  %v14953_v37 = vld [vmem:[#allocation6 + $0x19a] sm:$0xff]  ;;  %v15026_v42 = vpop.xlane.xlu0 %15025 }
 0xabc   : > { %v14717_v3 = vadd.f32 %v14685_v0, %v14616_v31  ;;  %v14516_v27 = vadd.f32 %v14484_v16, %v14415_v7  ;;  %v14384_v6 = vmul.f32 %v25824_v5, %v14950_v46  ;;  %v14485_v18 = vmul.f32 %v25844_v25, %v14750_v34  ;;  %v14752_v5 = vld [vmem:[#allocation6 + $0x1a0] sm:$0xff] }
 0xabd   : > { %v15020_v50 = vadd.f32 %v14988_v28, %v14919_v19  ;;  %v14315_v23 = vadd.f32 %v14283_v38, %v14182_v32  ;;  %v14686_v57 = vmul.f32 %v25857_v56, %v14951_v43  ;;  %v14788_v53 = vmul.f32 %v25887_v10, %v14751_v40 }
 0xabe   : > { %v14819_v29 = vadd.f32 %v14787_v54, %v14717_v3  ;;  %v14617_v21 = vadd.f32 %v14585_v24, %v14516_v27  ;;  %v14989_v8 = vmul.f32 %v25899_v15, %v14952_v4  ;;  %v14889_v22 = vmul.f32 %v25867_v62, %v14852_v12 }
 0xabf   : > { %v15108_v63 = vsel %vm513_vm10, %v15020_v50, 0.0  ;;  %v14416_v60 = vadd.f32 %v14384_v6, %v14315_v23  ;;  %v14586_v25 = vmul.f32 %v25851_v49, %v14851_v61  ;;  %v14990_v41 = vmul.f32 %v25899_v15, %v14953_v37 }
 0xac0   : > { %15109 = vadd.xlane.f32.xlu1 %v15108_v63  ;;  %v14920_v17 = vadd.f32 %v14888_v13, %v14819_v29  ;;  %v14718_v30 = vadd.f32 %v14686_v57, %v14617_v21  ;;  %v14687_v47 = vmul.f32 %v25857_v56, %v14952_v4  ;;  %v14789_v14 = vmul.f32 %v25887_v10, %v14752_v5  ;;  %v16505_v10 = vld [vmem:[#allocation7] ss:$0 sm:$0xff] }
 0xac1   : > { %v14517_v46 = vadd.f32 %v14485_v18, %v14416_v60  ;;  %v14890_v52 = vmul.f32 %v25867_v62, %v14853_v1  ;;  %v14991_v33 = vmul.f32 %v25899_v15, %v14954_v44  ;;  %v15194_v23 = vlaneseq }
 0xac2   : > { %v15021_v36 = vadd.f32 %v14989_v8, %v14920_v17  ;;  %v14820_v51 = vadd.f32 %v14788_v53, %v14718_v30  ;;  %vm15348_vm4 = vcmask 1044484   ;;  %vm15350_vm5 = vcmask 1045509  }
 0xac3   : > { %v14618_v9 = vadd.f32 %v14586_v25, %v14517_v46  ;;  %v15195_v18 = vand.u32 127, %v15194_v23  ;;  %v15197_v57 = vshrl.u32 %v15194_v23, 7  ;;  %vm15352_vm6 = vcmask 1046534  }
 0xac4   : > { %v15111_v59 = vsel %vm513_vm10, %v15021_v36, 0.0  ;;  %v14921_v43 = vadd.f32 %v14889_v22, %v14820_v51  ;;  %vm15354_vm7 = vcmask 1047559   ;;  %vm15365_vm8 = vcmask 130048  }
 0xac5   : > { %15112 = vadd.xlane.f32.xlu0 %v15111_v59  ;;  %v14719_v55 = vadd.f32 %v14687_v47, %v14618_v9  ;;  %v15200_v53 = vadd.s32 4294967288, %v15195_v18  ;;  %v26079_v37 = vsub.s32 %v15195_v18, %v15197_v57 }
 0xac6   : > { %v15022_v48 = vadd.f32 %v14990_v41, %v14921_v43 }
 0xac7   : > { %v14821_v49 = vadd.f32 %v14789_v14, %v14719_v55  ;;  %v15032_v16 = vpop.xlane.xlu0 %15031  ;;  %v26081_v60 = vsub.s32 %v15200_v53, %v15197_v57 }
 0xac8   : > { %v15114_v45 = vsel %vm513_vm10, %v15022_v48, 0.0 }
 0xac9   : > { %15115 = vadd.xlane.f32.xlu1 %v15114_v45  ;;  %v14922_v26 = vadd.f32 %v14890_v52, %v14821_v49 }
 0xacb   : > { %v15023_v34 = vadd.f32 %v14991_v33, %v14922_v26 }
 0xacd   : > { %v15117_v56 = vsel %vm513_vm10, %v15023_v34, 0.0  ;;  %vm15205_vm10 = vcmask 130112  }
 0xace   : > { %15118 = vadd.xlane.f32.xlu0 %v15117_v56 }
 0xad0   : > { %v15035_v62 = vpop.xlane.xlu0 %15034 }
 0xad6   : > { %v15038_v39 = vpop.xlane.xlu1 %15037 }
 0xada   : > { %15127 = vperm.xlu1 %20393, %v16505_v10  }
 0xadc   : > { %v15041_v2 = vpop.xlane.xlu0 %15040 }
 0xae1   : > { %v15044_v58 = vpop.xlane.xlu1 %15043 }
 0xae6   : > { %v15047_v15 = vpop.xlane.xlu0 %15046 }
 0xaed   : > { %v15050_v20 = vpop.xlane.xlu1 %15049 }
 0xaf2   : > { %v15053_v31 = vpop.xlane.xlu0 %15052 }
 0xaf7   : > { %v15056_v28 = vpop.xlane.xlu1 %15055 }
 0xafc   : > { %v15059_v54 = vpop.xlane.xlu0 %15058 }
 0xb03   : > { %v15062_v61 = vpop.xlane.xlu1 %15061 }
 0xb08   : > { %v15065_v35 = vpop.xlane.xlu0 %15064 }
 0xb0d   : > { %v15068_v0 = vpop.xlane.xlu1 %15067 }
 0xb13   : > { %v15071_v40 = vpop.xlane.xlu0 %15070 }
 0xb18   : > { %v15074_v7 = vpop.xlane.xlu1 %15073 }
 0xb1c   : > { %v15077_v38 = vpop.xlane.xlu0 %15076 }
 0xb21   : > { %v15080_v19 = vpop.xlane.xlu1 %15079 }
 0xb24   : > { %v15083_v13 = vpop.xlane.xlu0 %15082 }
 0xb29   : > { %v15086_v32 = vpop.xlane.xlu1 %15085 }
 0xb2e   : > { %v15089_v24 = vpop.xlane.xlu0 %15088 }
 0xb32   : > { %v15092_v3 = vpop.xlane.xlu1 %15091 }
 0xb37   : > { %v15095_v4 = vpop.xlane.xlu0 %15094 }
 0xb3b   : > { %v15098_v27 = vpop.xlane.xlu1 %15097 }
 0xb40   : > { %v15101_v6 = vpop.xlane.xlu0 %15100 }
 0xb45   : > { %v15104_v50 = vpop.xlane.xlu1 %15103 }
 0xb48   : > { %v15107_v21 = vpop.xlane.xlu0 %15106 }
 0xb4d   : > { %v15110_v12 = vpop.xlane.xlu1 %15109 }
 0xb52   : > { %v15113_v17 = vpop.xlane.xlu0 %15112 }
 0xb56   : > { %v15116_v29 = vpop.xlane.xlu1 %15115 }
 0xb5a   : > { %v15128_v63 = vpop.permute.xlu1 %15127 }
 0xb5b   : > { %v15130_v8 = vadd.f32 %v15128_v63, %v15026_v42  ;;  %v15131_v30 = vadd.f32 %v15128_v63, %v15029_v11  ;;  %v15132_v22 = vadd.f32 %v15128_v63, %v15032_v16  ;;  %v15133_v5 = vadd.f32 %v15128_v63, %v15035_v62  ;;  %v15119_v56 = vpop.xlane.xlu0 %15118 }
 0xb5c   : > { %v15134_v46 = vadd.f32 %v15128_v63, %v15038_v39  ;;  %v15135_v25 = vadd.f32 %v15128_v63, %v15041_v2  ;;  %v15136_v36 = vadd.f32 %v15128_v63, %v15044_v58  ;;  %v15137_v51 = vadd.f32 %v15128_v63, %v15047_v15 }
 0xb5d   : > { %v26083_v41 = vadd.f32 %v15128_v63, %v15050_v20  ;;  %v26085_v1 = vadd.f32 %v15128_v63, %v15053_v31  ;;  %v26087_v9 = vadd.f32 %v15128_v63, %v15056_v28  ;;  %v26089_v47 = vadd.f32 %v15128_v63, %v15059_v54 }
 0xb5e   : > { %v26091_v14 = vadd.f32 %v15128_v63, %v15062_v61  ;;  %v26093_v59 = vadd.f32 %v15128_v63, %v15065_v35  ;;  %v26095_v43 = vadd.f32 %v15128_v63, %v15068_v0  ;;  %v26097_v44 = vadd.f32 %v15128_v63, %v15071_v40 }
 0xb5f   : > { %v15146_v55 = vadd.f32 %v15128_v63, %v15074_v7  ;;  %v15147_v52 = vadd.f32 %v15128_v63, %v15077_v38  ;;  %v15148_v48 = vadd.f32 %v15128_v63, %v15080_v19  ;;  %v15149_v49 = vadd.f32 %v15128_v63, %v15083_v13 }
 0xb60   : > { %v15150_v33 = vadd.f32 %v15128_v63, %v15086_v32  ;;  %v15151_v45 = vadd.f32 %v15128_v63, %v15089_v24  ;;  %v15152_v26 = vadd.f32 %v15128_v63, %v15092_v3  ;;  %v15153_v34 = vadd.f32 %v15128_v63, %v15095_v4 }
 0xb61   : > { %v15199_v10 = vrot.slane %v15130_v8, %v26079_v37  ;;  %v15204_v42 = vrot.slane %v15131_v30, %v26081_v60  ;;  %v15210_v11 = vrot.slane %v15132_v22, %v26079_v37  ;;  %v15214_v39 = vrot.slane %v15133_v5, %v26081_v60 }
 0xb62   : > { %v15219_v16 = vrot.slane %v15134_v46, %v26079_v37  ;;  %v15223_v58 = vrot.slane %v15135_v25, %v26081_v60  ;;  %v15228_v62 = vrot.slane %v15136_v36, %v26079_v37  ;;  %v15232_v20 = vrot.slane %v15137_v51, %v26081_v60 }
 0xb63   : > { %v15154_v2 = vadd.f32 %v15128_v63, %v15098_v27  ;;  %v15155_v28 = vadd.f32 %v15128_v63, %v15101_v6  ;;  %v15156_v15 = vadd.f32 %v15128_v63, %v15104_v50  ;;  %v15157_v61 = vadd.f32 %v15128_v63, %v15107_v21 }
 0xb64   : > { %v15158_v31 = vadd.f32 %v15128_v63, %v15110_v12  ;;  %v15159_v0 = vadd.f32 %v15128_v63, %v15113_v17  ;;  %v26108_v54 = vadd.f32 %v15128_v63, %v15116_v29  ;;  %v26110_v7 = vadd.f32 %v15128_v63, %v15119_v56 }
 0xb65   : > { %v15206_v35 = vsel %vm15205_vm10, %v15204_v42, %v15199_v10  ;;  %v15215_v19 = vsel %vm15205_vm10, %v15214_v39, %v15210_v11  ;;  %v15237_v40 = vrot.slane %v26083_v41, %v26079_v37  ;;  %v15241_v32 = vrot.slane %v26085_v1, %v26081_v60 }
 0xb66   : > { %v15224_v38 = vsel %vm15205_vm10, %v15223_v58, %v15219_v16  ;;  %v15233_v3 = vsel %vm15205_vm10, %v15232_v20, %v15228_v62  ;;  %v15273_v13 = vrot.slane %v15146_v55, %v26079_v37  ;;  %v15277_v27 = vrot.slane %v15147_v52, %v26081_v60 }
 0xb67   : > { %v15246_v24 = vrot.slane %v26087_v9, %v26079_v37  ;;  %v15282_v50 = vrot.slane %v15148_v48, %v26079_v37  ;;  %v15286_v4 = vrot.slane %v15149_v49, %v26081_v60  ;;  %v15291_v12 = vrot.slane %v15150_v33, %v26079_v37 }
 0xb68   : > { %v15250_v23 = vrot.slane %v26089_v47, %v26081_v60  ;;  %v15255_v6 = vrot.slane %v26091_v14, %v26079_v37  ;;  %v15295_v18 = vrot.slane %v15151_v45, %v26081_v60  ;;  %v15300_v29 = vrot.slane %v15152_v26, %v26079_v37 }
 0xb69   : > { %v15259_v21 = vrot.slane %v26093_v59, %v26081_v60  ;;  %v15278_v57 = vsel %vm15205_vm10, %v15277_v27, %v15273_v13  ;;  %v15287_v53 = vsel %vm15205_vm10, %v15286_v4, %v15282_v50  ;;  %v15304_v63 = vrot.slane %v15153_v34, %v26081_v60 }
 0xb6a   : > { %v15264_v17 = vrot.slane %v26095_v43, %v26079_v37  ;;  %v15296_v8 = vsel %vm15205_vm10, %v15295_v18, %v15291_v12  ;;  %v15309_v30 = vrot.slane %v15154_v2, %v26079_v37  ;;  %v15313_v22 = vrot.slane %v15155_v28, %v26081_v60 }
 0xb6b   : > { %v15268_v5 = vrot.slane %v26097_v44, %v26081_v60  ;;  %v15318_v46 = vrot.slane %v15156_v15, %v26079_v37  ;;  %v15322_v25 = vrot.slane %v15157_v61, %v26081_v60  ;;  %v15327_v36 = vrot.slane %v15158_v31, %v26079_v37 }
 0xb6c   : > { %v15305_v51 = vsel %vm15205_vm10, %v15304_v63, %v15300_v29  ;;  %v15331_v41 = vrot.slane %v15159_v0, %v26081_v60  ;;  %v15343_v1 = vsel %vm15342_vm1, %v15215_v19, %v15206_v35  ;;  %v15356_v9 = vsel %vm15342_vm1, %v15287_v53, %v15278_v57 }
 0xb6d   : > { %v15336_v47 = vrot.slane %v26108_v54, %v26079_v37  ;;  %v15340_v14 = vrot.slane %v26110_v7, %v26081_v60  ;;  %v15345_v59 = vsel %vm15344_vm2, %v15224_v38, %v15343_v1  ;;  %v15357_v43 = vsel %vm15344_vm2, %v15296_v8, %v15356_v9 }
 0xb6e   : > { %v15242_v44 = vsel %vm15205_vm10, %v15241_v32, %v15237_v40  ;;  %v15314_v55 = vsel %vm15205_vm10, %v15313_v22, %v15309_v30  ;;  %v15347_v52 = vsel %vm15346_vm0, %v15233_v3, %v15345_v59  ;;  %v15358_v48 = vsel %vm15346_vm0, %v15305_v51, %v15357_v43 }
 0xb6f   : > { %v15251_v37 = vsel %vm15205_vm10, %v15250_v23, %v15246_v24  ;;  %v15323_v49 = vsel %vm15205_vm10, %v15322_v25, %v15318_v46  ;;  %v15349_v60 = vsel %vm15348_vm4, %v15242_v44, %v15347_v52  ;;  %v15359_v33 = vsel %vm15348_vm4, %v15314_v55, %v15358_v48 }
 0xb70   : > { %v15260_v45 = vsel %vm15205_vm10, %v15259_v21, %v15255_v6  ;;  %v15332_v26 = vsel %vm15205_vm10, %v15331_v41, %v15327_v36  ;;  %v15351_v34 = vsel %vm15350_vm5, %v15251_v37, %v15349_v60  ;;  %v15360_v56 = vsel %vm15350_vm5, %v15323_v49, %v15359_v33 }
 0xb71   : > { %v15269_v10 = vsel %vm15205_vm10, %v15268_v5, %v15264_v17  ;;  %v15341_v42 = vsel %vm15205_vm10, %v15340_v14, %v15336_v47  ;;  %v15353_v11 = vsel %vm15352_vm6, %v15260_v45, %v15351_v34  ;;  %v15361_v39 = vsel %vm15352_vm6, %v15332_v26, %v15360_v56 }
 0xb72   : > { %v15355_v16 = vsel %vm15354_vm7, %v15269_v10, %v15353_v11  ;;  %v15362_v58 = vsel %vm15354_vm7, %v15341_v42, %v15361_v39 }
 0xb73   : > { %15366 = vst.msk [vmem:[%s381_s16] sm:$0xff] %vm15365_vm8, %v15355_v16  ;;  %15367 = vst.msk [vmem:[%s381_s16 + $0x8] sm:$0xff] %vm15365_vm8, %v15362_v58 }
 0xb74   : > { %20436 = shalt.err (!%p20433_p3)
}
 0xb75   : > { %s20437_s12 = scalar_lea.hbm %s26179_s18, 256  ;;  %s20441_s10 = scalar_lea.hbm %s26245_s11, 512 }
 0xb76   : > { %p20438_p4 = scmp.ne.s32.totalorder %s26179_s18, %s20437_s12  ;;  %p20442_p9 = scmp.lt.u32.totalorder %s26179_s18, %s26245_s11 }
 0xb77   : > { %p20443_p10 = scmp.lt.u32.totalorder %s20441_s10, %s20437_s12  ;;  %p20445_p12 = scmp.lt.u32.totalorder %s20437_s12, %s26179_s18 }
 0xb78   : > { %p20439_p7 = pnand %p20438_p4, %p20593_p5 }
 0xb79   : > { %p20444_p11 = por %p20443_p10, %p20442_p9 }
 0xb7a   : > { %p20440_p8 = pneg %p20439_p7 }
 0xb7b   : > { %p20446_p13 = por %p20445_p12, %p20444_p11 }
 0xb7d   : > { %p20447_p0 = pnand %p20446_p13, %p20440_p8 }
 0xb7f   : > { %20450 = shalt.err (!%p20447_p0)
}
 0xb80   : > { %s20490_s25 = smov 128   ;;  %s20491_s30 = smov 8  }
 0xb81   : > { %20349 = dma.vmem_to_hbm [thread:$0]  (%p20593_p5), %s26181_s17, 256, %s26179_s18, %s26193_s23, %s20490_s25, %s20490_s25, %s20491_s30  }
 0xb82 PF: > { %p20355_p1 = scmp.ge.s32.totalorder %s20485_s22, 2  ;;  %s15397_s13 = sand.u32 1, %s20473_s19  }
 0xb83   : > { %s15398_s12 = scalar_lea.sflag [#allocation9], %s15397_s13 }
 0xb84   : > { %p20352_p2 = pnand %p20355_p1, %p20597_p6 }
 0xb86   : > { %20468 = dma.done.wait (!%p20352_p2), %s15398_s12, 256  }
 0xb87   : > { %20470 = vsyncadd (!%p20352_p2), %s15398_s12, 4294967040  ;;  %p23_p3 = scmp.ge.s32.totalorder %s20580_s24, 4   ;;  %s26586_s19 = smov %s20477_s20 }
 0xb88   : > { %s26587_s20 = smov %s20481_s21  ;;  %s26588_s21 = smov %s20591_s27 }
 0xb89   : > { %s26589_s22 = smov %s20580_s24  ;;  %25 = sbr.rel (!%p23_p3) target bundleno = 6 (0x6), region = 146 }
 0xb90   :  { %15403 = vsyncpa [#allocation9], 1 }
 0xb91   :  { %15405 = vsyncpa [#allocation9 + $0x1], 1 }

</bundles_post_ra>
